<compile_context>
chip_gen: v7x
topology: tpu7x:2x2x1
jax: 0.10.0
libtpu: 0.0.40
codegen_flags: <defaults>
</compile_context>

<pallas_src>
import functools
import math

import numpy as np

import jax
import jax.numpy as jnp
from jax.experimental import pallas as pl
from jax.experimental.pallas import tpu as pltpu

# ------------------------- model hyper-parameters ---------------------------
NC = 4                        # number of classes (cfg.MODEL.YOLO.NUM_CLASSES)
NA = 3                        # anchors per level
NO = NC + 5                   # outputs per anchor
K = NA * NO                   # 27 detect-head channels
KPAD = 128                    # lane-dense detect width (columns >= K are zero)
ANCHORS = [[12, 16, 19, 36, 40, 28],
           [36, 75, 76, 55, 72, 146],
           [142, 110, 192, 243, 459, 401]]
STRIDES = [8.0, 16.0, 32.0]
BACKBONE_COUT = [8, 16, 32, 64, 128]   # five /2 stages; last three feed Detect
MATMUL_DTYPE = jnp.bfloat16            # MXU operand dtype (accum stays f32)


# --------------------------- layout helpers (host) --------------------------
def _rkey(n):
    """Reversed-Morton key for an n x n raster: (y&1, x&1) in the TOP two key
    bits, so the 4 members of every 2x2 block occupy the 4 contiguous quarters
    of the row range (and the sub-ordering recurses to the next level)."""
    nb = int(round(math.log2(n)))
    r = np.arange(n)
    key = np.zeros((n, n), np.int64)
    for i in range(nb):
        yb = (r[:, None] >> i) & 1
        xb = (r[None, :] >> i) & 1
        key += (yb << (2 * (nb - 1 - i) + 1)) + (xb << (2 * (nb - 1 - i)))
    return key                                     # raster (y, x) -> hier key


def _level_sizes(S):
    """Per-level spatial sizes and row offsets inside the per-batch output slab."""
    ns = [S // int(s) for s in STRIDES]
    rows = [n * n for n in ns]
    raw_off, dec_off, off = [], [], 0
    for r in rows:
        raw_off.append(off)
        dec_off.append(off + r)
        off += 2 * r
    return ns, rows, raw_off, dec_off, off         # off == slab rows per batch


def _input_perm(bs, n0):
    """For each (batch-major, hier-ordered) input row, its raster source row."""
    key = _rkey(n0).reshape(-1)
    inv = np.argsort(key)                          # hier key -> raster position
    return (np.arange(bs)[:, None] * (n0 * n0) + inv[None, :]).reshape(-1).astype(np.int32)


def _output_gather_idx(bs, S):
    """One concatenated gather (all levels, raw+dec) from the output slab."""
    ns, _, raw_off, dec_off, slab = _level_sizes(S)
    base = np.arange(bs)[:, None] * slab
    chunks = []
    for lvl, n in enumerate(ns):
        key = _rkey(n).reshape(-1)
        chunks.append((base + raw_off[lvl] + key[None, :]).reshape(-1))
        chunks.append((base + dec_off[lvl] + key[None, :]).reshape(-1))
    return np.concatenate(chunks).astype(np.int32)


def _decode_consts(lvl, n):
    """Host-precomputed decode constants: dec = sig*(sig*P + Q) + G.

    channels 0,1 (xy): P=0, Q=2*stride, G=(grid-0.5)*stride
    channels 2,3 (wh): P=4*anchor,  Q=0, G=0
    channels >=4     : P=0, Q=1,        G=0
    """
    s = STRIDES[lvl]
    a = np.asarray(ANCHORS[lvl], np.float32).reshape(NA, 2)
    P = np.zeros((1, KPAD), np.float32)
    Q = np.zeros((1, KPAD), np.float32)
    for ai in range(NA):
        P[0, ai * NO + 2] = 4.0 * a[ai, 0]
        P[0, ai * NO + 3] = 4.0 * a[ai, 1]
        Q[0, ai * NO + 0] = 2.0 * s
        Q[0, ai * NO + 1] = 2.0 * s
        Q[0, ai * NO + 4:ai * NO + NO] = 1.0
    key = _rkey(n).reshape(-1)
    yv, xv = np.meshgrid(np.arange(n), np.arange(n), indexing="ij")
    G = np.zeros((n * n, KPAD), np.float32)
    for ai in range(NA):
        G[key, ai * NO + 0] = (xv.reshape(-1).astype(np.float32) - 0.5) * s
        G[key, ai * NO + 1] = (yv.reshape(-1).astype(np.float32) - 0.5) * s
    return jnp.asarray(P), jnp.asarray(Q), jnp.asarray(G)


def space_to_depth(x_nhwc):
    bs, h, w, c = x_nhwc.shape
    x = x_nhwc.reshape(bs, h // 2, 2, w // 2, 2, c)
    x = x.transpose(0, 1, 3, 2, 4, 5)
    return x.reshape(bs, h // 2, w // 2, 4 * c)


# ------------------------------ fused kernel --------------------------------
def _fused_yolo_kernel(x0_ref,
                       w0_ref, b0_ref,
                       w1_ref, b1_ref, w2_ref, b2_ref, w3_ref, b3_ref, w4_ref, b4_ref,
                       dw0_ref, db0_ref, p0_ref, q0_ref, g0_ref,
                       dw1_ref, db1_ref, p1_ref, q1_ref, g1_ref,
                       dw2_ref, db2_ref, p2_ref, q2_ref, g2_ref,
                       out_ref):
    """One batch block: backbone (5 stages) + fused Detect (3 levels), all in VMEM."""

    def leaky(z):
        return jnp.maximum(z, 0.1 * z)             # mul+max, no compare/select

    # ---- stage 0: 1x1 conv on the already space-to-depth'd input rows ------
    t = jnp.dot(x0_ref[...], w0_ref[...], preferred_element_type=jnp.float32)
    t = leaky(t + b0_ref[...])

    # ---- stages 1..4: space_to_depth folded into 4 contiguous quarter GEMMs
    feats = []
    for w_ref, b_ref in ((w1_ref, b1_ref), (w2_ref, b2_ref),
                         (w3_ref, b3_ref), (w4_ref, b4_ref)):
        q = t.shape[0] // 4                        # quarter = one (dy, dx) plane
        tb = t.astype(MATMUL_DTYPE)
        acc = jnp.dot(tb[0:q], w_ref[0], preferred_element_type=jnp.float32)
        for j in range(1, 4):
            acc = acc + jnp.dot(tb[j * q:(j + 1) * q], w_ref[j],
                                preferred_element_type=jnp.float32)
        t = leaky(acc + b_ref[...])
        feats.append(t)

    # ---- fused Detect head: 1x1 conv + sigmoid + closed-form decode --------
    det = ((dw0_ref, db0_ref, p0_ref, q0_ref, g0_ref),
           (dw1_ref, db1_ref, p1_ref, q1_ref, g1_ref),
           (dw2_ref, db2_ref, p2_ref, q2_ref, g2_ref))
    off = 0
    for feat, (dw_ref, db_ref, p_ref, q_ref, g_ref) in zip(feats[1:], det):
        raw = jnp.dot(feat.astype(MATMUL_DTYPE), dw_ref[...],
                      preferred_element_type=jnp.float32) + db_ref[...]
        sig = jax.nn.sigmoid(raw)
        dec = sig * (sig * p_ref[...] + q_ref[...]) + g_ref[...]
        rows = g_ref.shape[0]
        out_ref[off:off + rows, :] = raw           # pre-sigmoid x[i]
        out_ref[off + rows:off + 2 * rows, :] = dec
        off += 2 * rows


def fused_forward(x0, consts, *, bs, n0, slab_rows):
    """One pallas_call, grid over batch; x0: (bs*n0*n0, 12) hierarchical rows."""
    inputs = [x0] + consts

    # rough cost hint for the XLA scheduler
    flops_b = 2 * (n0 * n0) * 12 * BACKBONE_COUT[0]
    m, cprev = n0 * n0, BACKBONE_COUT[0]
    det_rows = []
    for i, cout in enumerate(BACKBONE_COUT[1:]):
        m //= 4
        flops_b += 2 * m * (4 * cprev) * cout
        cprev = cout
        if i >= 1:
            det_rows.append((m, cout))
    for mr, c in det_rows:
        flops_b += 2 * mr * c * KPAD
    bytes_acc = (sum(int(np.prod(a.shape)) * a.dtype.itemsize for a in inputs)
                 + bs * slab_rows * KPAD * 4)
    cost = pl.CostEstimate(flops=bs * flops_b,
                           transcendentals=bs * sum(mr for mr, _ in det_rows) * KPAD,
                           bytes_accessed=bytes_acc)

    in_specs = [pl.BlockSpec((n0 * n0, x0.shape[1]), lambda b: (b, 0))]
    for a in consts:                               # weights / consts: one shared block
        in_specs.append(pl.BlockSpec(a.shape, lambda b, _n=a.ndim: (0,) * _n))
    out_specs = pl.BlockSpec((slab_rows, KPAD), lambda b: (b, 0))

    return pl.pallas_call(
        _fused_yolo_kernel,
        out_shape=jax.ShapeDtypeStruct((bs * slab_rows, KPAD), jnp.float32),
        grid=(bs,),
        in_specs=in_specs,
        out_specs=out_specs,
        compiler_params=pltpu.CompilerParams(
            dimension_semantics=("parallel",)),    # batch-parallel (v7x: 2 TCs)
        cost_estimate=cost,
    )(*inputs)


# ------------------------------- glue (JAX) ---------------------------------
def init_params(key):
    backbone = []
    cin = 3
    for cout in BACKBONE_COUT:
        key, kw = jax.random.split(key)
        cin_s2d = cin * 4
        w = jax.random.normal(kw, (cin_s2d, cout), jnp.float32) / math.sqrt(cin_s2d)
        b = jnp.zeros((cout,), jnp.float32)
        backbone.append((w, b))
        cin = cout
    detect = []
    for lvl, c in enumerate(BACKBONE_COUT[2:]):
        key, kw = jax.random.split(key)
        # torch layout Conv2d(c, K, 1): weight (K, c, 1, 1) -> store as (c, K)
        w_t = jax.random.normal(kw, (K, c), jnp.float32) / math.sqrt(c)
        b = jnp.zeros((NA, NO), jnp.float32)
        s = STRIDES[lvl]
        b = b.at[:, 4].add(math.log(8.0 / (640.0 / s) ** 2))     # _initialize_biases
        b = b.at[:, 5:].add(math.log(0.6 / (NC - 0.99)))
        detect.append((w_t.T, b.reshape(-1)))
    return {"backbone": backbone, "detect": detect}


def _kernel_consts(params, S):
    """bf16 weights (stacked per s2d quarter), f32 biases, padded detect head,
    host-precomputed decode constants P/Q/G per level."""
    consts = []
    w0, b0 = params["backbone"][0]
    consts += [w0.astype(MATMUL_DTYPE), b0.reshape(1, -1)]
    for w, b in params["backbone"][1:]:
        c_out = w.shape[1]
        c_in = w.shape[0] // 4
        consts += [w.reshape(4, c_in, c_out).astype(MATMUL_DTYPE), b.reshape(1, -1)]
    for lvl, (w, b) in enumerate(params["detect"]):
        c = w.shape[0]
        dw = jnp.zeros((c, KPAD), jnp.float32).at[:, :K].set(w).astype(MATMUL_DTYPE)
        db = jnp.zeros((1, KPAD), jnp.float32).at[0, :K].set(b)
        n = S // int(STRIDES[lvl])
        P, Q, G = _decode_consts(lvl, n)
        consts += [dw, db, P, Q, G]
    return consts


def model_forward(params, x_nchw, use_pallas=True):
    """Returns (decoded_preds, [raw_x_per_level]) like Detect eval mode."""
    bs, _, S, _ = x_nchw.shape

    if use_pallas:
        n0 = S // 2
        ns, _, _, _, slab_rows = _level_sizes(S)

        # input: NCHW -> space_to_depth rows (raster) -> one static gather to
        # batch-major hierarchical row order (fused transpose chain).
        x = x_nchw.astype(jnp.float32).reshape(bs, 3, n0, 2, n0, 2)
        x = jnp.transpose(x, (0, 2, 4, 3, 5, 1))            # (bs, Y, X, dy, dx, c)
        flat = x.reshape(bs * n0 * n0, 12)
        x0 = jnp.take(flat, jnp.asarray(_input_perm(bs, n0)), axis=0)
        x0 = x0.astype(MATMUL_DTYPE)

        consts = _kernel_consts(params, S)
        slab = fused_forward(x0, consts, bs=bs, n0=n0, slab_rows=slab_rows)

        # outputs: ONE consolidated gather for all levels (raw + decoded),
        # then the per-level reshape/transpose to the PyTorch layouts.
        gidx = jnp.asarray(_output_gather_idx(bs, S))
        g = jnp.take(slab, gidx, axis=0)[:, :K]
        pos, z_list, x_list = 0, [], []
        for lvl, n in enumerate(ns):
            cnt = bs * n * n
            raw = g[pos:pos + cnt].reshape(bs, n, n, NA, NO); pos += cnt
            dec = g[pos:pos + cnt].reshape(bs, n, n, NA, NO); pos += cnt
            x_list.append(jnp.transpose(raw, (0, 3, 1, 2, 4)))            # (bs,na,ny,nx,no)
            z_list.append(jnp.transpose(dec, (0, 3, 1, 2, 4)).reshape(bs, NA * n * n, NO))
        return jnp.concatenate(z_list, axis=1), x_list

    # ---------------- pure-JAX reference (mirrors PyTorch Detect) ------------
    # Matmuls use the same bf16 operand precision as the kernel (f32 accum), so
    # the tolerance check isolates layout / decode correctness.
    feat = jnp.transpose(x_nchw, (0, 2, 3, 1)).astype(jnp.float32)
    detect_feats = []
    for stage_idx, (w, b) in enumerate(params["backbone"]):
        feat = space_to_depth(feat)
        bsz, hy, wx, cin = feat.shape
        t = jnp.dot(feat.reshape(bsz * hy * wx, cin).astype(MATMUL_DTYPE),
                    w.astype(MATMUL_DTYPE),
                    preferred_element_type=jnp.float32) + b
        t = jnp.where(t >= 0.0, t, 0.1 * t)
        feat = t.reshape(bsz, hy, wx, w.shape[1])
        if stage_idx >= 2:
            detect_feats.append(feat)

    z_list, x_list = [], []
    for lvl, feat in enumerate(detect_feats):
        w, b = params["detect"][lvl]
        bsz, ny, nx, cin = feat.shape
        anchors = jnp.asarray(ANCHORS[lvl], jnp.float32).reshape(NA, 2)
        raw = jnp.dot(feat.reshape(bsz * ny * nx, cin).astype(MATMUL_DTYPE),
                      w.astype(MATMUL_DTYPE),
                      preferred_element_type=jnp.float32) + b
        x_i = raw.reshape(bsz, ny, nx, NA, NO).transpose(0, 3, 1, 2, 4)
        y = jax.nn.sigmoid(x_i)
        yv, xv = jnp.meshgrid(jnp.arange(ny), jnp.arange(nx), indexing="ij")
        grid = jnp.stack((xv, yv), 2).reshape(1, 1, ny, nx, 2).astype(jnp.float32)
        xy = (y[..., 0:2] * 2.0 - 0.5 + grid) * STRIDES[lvl]
        wh = (y[..., 2:4] * 2.0) ** 2 * anchors.reshape(1, NA, 1, 1, 2)
        z_i = jnp.concatenate([xy, wh, y[..., 4:]], -1).reshape(bsz, -1, NO)
        x_list.append(x_i)
        z_list.append(z_i)
    return jnp.concatenate(z_list, axis=1), x_list


# --------------------------------- main --------------------------------------
if __name__ == "__main__":
    key = jax.random.PRNGKey(0)
    k_params, k_input = jax.random.split(key)
    params = init_params(k_params)
    x = jax.random.normal(k_input, (2, 3, 128, 128), jnp.float32)   # NCHW input

    fwd = jax.jit(functools.partial(model_forward, use_pallas=True))
    preds, raw_x = fwd(params, x)
    preds = jax.block_until_ready(preds)
    raw_x = [jax.block_until_ready(r) for r in raw_x]

    # correctness check against the pure-JAX reference (same bf16 matmul precision)
    preds_ref, raw_ref = model_forward(params, x, use_pallas=False)
    assert preds.shape == (2, NA * (16 * 16 + 8 * 8 + 4 * 4), NO), preds.shape
    assert jnp.allclose(preds, preds_ref, atol=5e-2, rtol=2e-2)
    for a, b in zip(raw_x, raw_ref):
        assert a.shape == b.shape
        assert jnp.allclose(a, b, atol=5e-2, rtol=2e-2)

    print("KERNEL_OK")
</pallas_src>

<mosaic_0001>
module attributes {stable_mosaic.version = 11 : i64} {
  func.func private @main(%arg0: i32) attributes {dimension_semantics = [#tpu.dimension_semantics<core_parallel>], iteration_bounds = array<i64: 2>, tpu.core_type = #tpu.core_type<sc_scalar_subcore>, window_params = []} {
    return
  }
}

module attributes {stable_mosaic.version = 11 : i64} {
  func.func private @main(%arg0: i32) attributes {dimension_semantics = [#tpu.dimension_semantics<core_parallel>], iteration_bounds = array<i64: 2>, tpu.core_type = #tpu.core_type<sc_scalar_subcore>, window_params = []} {
    return
  }
}

module attributes {stable_mosaic.version = 11 : i64} {
  func.func @_fused_yolo_kernel(%arg0: i32, %arg1: memref<4096x12xbf16, #tpu.memory_space<vmem>>, %arg2: memref<12x8xbf16, #tpu.memory_space<vmem>>, %arg3: memref<1x8xf32, #tpu.memory_space<vmem>>, %arg4: memref<4x8x16xbf16, #tpu.memory_space<vmem>>, %arg5: memref<1x16xf32, #tpu.memory_space<vmem>>, %arg6: memref<4x16x32xbf16, #tpu.memory_space<vmem>>, %arg7: memref<1x32xf32, #tpu.memory_space<vmem>>, %arg8: memref<4x32x64xbf16, #tpu.memory_space<vmem>>, %arg9: memref<1x64xf32, #tpu.memory_space<vmem>>, %arg10: memref<4x64x128xbf16, #tpu.memory_space<vmem>>, %arg11: memref<1x128xf32, #tpu.memory_space<vmem>>, %arg12: memref<32x128xbf16, #tpu.memory_space<vmem>>, %arg13: memref<1x128xf32, #tpu.memory_space<vmem>>, %arg14: memref<1x128xf32, #tpu.memory_space<vmem>>, %arg15: memref<1x128xf32, #tpu.memory_space<vmem>>, %arg16: memref<256x128xf32, #tpu.memory_space<vmem>>, %arg17: memref<64x128xbf16, #tpu.memory_space<vmem>>, %arg18: memref<1x128xf32, #tpu.memory_space<vmem>>, %arg19: memref<1x128xf32, #tpu.memory_space<vmem>>, %arg20: memref<1x128xf32, #tpu.memory_space<vmem>>, %arg21: memref<64x128xf32, #tpu.memory_space<vmem>>, %arg22: memref<128x128xbf16, #tpu.memory_space<vmem>>, %arg23: memref<1x128xf32, #tpu.memory_space<vmem>>, %arg24: memref<1x128xf32, #tpu.memory_space<vmem>>, %arg25: memref<1x128xf32, #tpu.memory_space<vmem>>, %arg26: memref<16x128xf32, #tpu.memory_space<vmem>>, %arg27: memref<672x128xf32, #tpu.memory_space<vmem>>) attributes {dimension_semantics = [#tpu.dimension_semantics<parallel>], iteration_bounds = array<i64: 2>, scalar_prefetch = 0 : i64, scratch_operands = 0 : i64, tpu.core_type = #tpu.core_type<tc>, window_params = [{transform_indices = @transform_0, window_bounds = array<i64: 4096, 12>}, {pipeline_mode = #tpu.pipeline_mode<synchronous>, transform_indices = @transform_1, window_bounds = array<i64: 12, 8>}, {pipeline_mode = #tpu.pipeline_mode<synchronous>, transform_indices = @transform_2, window_bounds = array<i64: 1, 8>}, {pipeline_mode = #tpu.pipeline_mode<synchronous>, transform_indices = @transform_3, window_bounds = array<i64: 4, 8, 16>}, {pipeline_mode = #tpu.pipeline_mode<synchronous>, transform_indices = @transform_4, window_bounds = array<i64: 1, 16>}, {pipeline_mode = #tpu.pipeline_mode<synchronous>, transform_indices = @transform_5, window_bounds = array<i64: 4, 16, 32>}, {pipeline_mode = #tpu.pipeline_mode<synchronous>, transform_indices = @transform_6, window_bounds = array<i64: 1, 32>}, {pipeline_mode = #tpu.pipeline_mode<synchronous>, transform_indices = @transform_7, window_bounds = array<i64: 4, 32, 64>}, {pipeline_mode = #tpu.pipeline_mode<synchronous>, transform_indices = @transform_8, window_bounds = array<i64: 1, 64>}, {pipeline_mode = #tpu.pipeline_mode<synchronous>, transform_indices = @transform_9, window_bounds = array<i64: 4, 64, 128>}, {pipeline_mode = #tpu.pipeline_mode<synchronous>, transform_indices = @transform_10, window_bounds = array<i64: 1, 128>}, {pipeline_mode = #tpu.pipeline_mode<synchronous>, transform_indices = @transform_11, window_bounds = array<i64: 32, 128>}, {pipeline_mode = #tpu.pipeline_mode<synchronous>, transform_indices = @transform_12, window_bounds = array<i64: 1, 128>}, {pipeline_mode = #tpu.pipeline_mode<synchronous>, transform_indices = @transform_13, window_bounds = array<i64: 1, 128>}, {pipeline_mode = #tpu.pipeline_mode<synchronous>, transform_indices = @transform_14, window_bounds = array<i64: 1, 128>}, {pipeline_mode = #tpu.pipeline_mode<synchronous>, transform_indices = @transform_15, window_bounds = array<i64: 256, 128>}, {pipeline_mode = #tpu.pipeline_mode<synchronous>, transform_indices = @transform_16, window_bounds = array<i64: 64, 128>}, {pipeline_mode = #tpu.pipeline_mode<synchronous>, transform_indices = @transform_17, window_bounds = array<i64: 1, 128>}, {pipeline_mode = #tpu.pipeline_mode<synchronous>, transform_indices = @transform_18, window_bounds = array<i64: 1, 128>}, {pipeline_mode = #tpu.pipeline_mode<synchronous>, transform_indices = @transform_19, window_bounds = array<i64: 1, 128>}, {pipeline_mode = #tpu.pipeline_mode<synchronous>, transform_indices = @transform_20, window_bounds = array<i64: 64, 128>}, {pipeline_mode = #tpu.pipeline_mode<synchronous>, transform_indices = @transform_21, window_bounds = array<i64: 128, 128>}, {pipeline_mode = #tpu.pipeline_mode<synchronous>, transform_indices = @transform_22, window_bounds = array<i64: 1, 128>}, {pipeline_mode = #tpu.pipeline_mode<synchronous>, transform_indices = @transform_23, window_bounds = array<i64: 1, 128>}, {pipeline_mode = #tpu.pipeline_mode<synchronous>, transform_indices = @transform_24, window_bounds = array<i64: 1, 128>}, {pipeline_mode = #tpu.pipeline_mode<synchronous>, transform_indices = @transform_25, window_bounds = array<i64: 16, 128>}, {transform_indices = @transform_26, window_bounds = array<i64: 672, 128>}]} {
    %c0 = arith.constant 0 : index
    %c0_0 = arith.constant 0 : index
    %0 = vector.load %arg1[%c0, %c0_0] : memref<4096x12xbf16, #tpu.memory_space<vmem>>, vector<4096x12xbf16>
    %c0_1 = arith.constant 0 : index
    %c0_2 = arith.constant 0 : index
    %1 = vector.load %arg2[%c0_1, %c0_2] : memref<12x8xbf16, #tpu.memory_space<vmem>>, vector<12x8xbf16>
    %cst = arith.constant dense<0.000000e+00> : vector<4096x8xf32>
    %2 = tpu.matmul %0, %1, %cst {dimension_numbers = #tpu.dot_dimension_numbers<[1], [0], [0], [1], [0, 0, 1, 1], [], []>} : vector<4096x12xbf16>, vector<12x8xbf16>, vector<4096x8xf32> -> vector<4096x8xf32>
    %c0_3 = arith.constant 0 : index
    %c0_4 = arith.constant 0 : index
    %3 = vector.load %arg3[%c0_3, %c0_4] : memref<1x8xf32, #tpu.memory_space<vmem>>, vector<1x8xf32>
    %4 = vector.broadcast %3 : vector<1x8xf32> to vector<4096x8xf32>
    %5 = arith.addf %2, %4 : vector<4096x8xf32>
    %cst_5 = arith.constant 1.000000e-01 : f32
    %6 = vector.broadcast %cst_5 : f32 to vector<4096x8xf32>
    %7 = arith.mulf %6, %5 : vector<4096x8xf32>
    %8 = arith.maximumf %5, %7 : vector<4096x8xf32>
    %9 = arith.truncf %8 : vector<4096x8xf32> to vector<4096x8xbf16>
    %10 = vector.extract_strided_slice %9 {offsets = [0, 0], sizes = [1024, 8], strides = [1, 1]} : vector<4096x8xbf16> to vector<1024x8xbf16>
    %c0_6 = arith.constant 0 : index
    %c0_7 = arith.constant 0 : index
    %c0_8 = arith.constant 0 : index
    %11 = vector.load %arg4[%c0_6, %c0_7, %c0_8] : memref<4x8x16xbf16, #tpu.memory_space<vmem>>, vector<1x8x16xbf16>
    %12 = vector.shape_cast %11 : vector<1x8x16xbf16> to vector<8x16xbf16>
    %cst_9 = arith.constant dense<0.000000e+00> : vector<1024x16xf32>
    %13 = tpu.matmul %10, %12, %cst_9 {dimension_numbers = #tpu.dot_dimension_numbers<[1], [0], [0], [1], [0, 0, 1, 1], [], []>} : vector<1024x8xbf16>, vector<8x16xbf16>, vector<1024x16xf32> -> vector<1024x16xf32>
    %14 = vector.extract_strided_slice %9 {offsets = [1024, 0], sizes = [1024, 8], strides = [1, 1]} : vector<4096x8xbf16> to vector<1024x8xbf16>
    %c1 = arith.constant 1 : index
    %c0_10 = arith.constant 0 : index
    %c0_11 = arith.constant 0 : index
    %15 = vector.load %arg4[%c1, %c0_10, %c0_11] : memref<4x8x16xbf16, #tpu.memory_space<vmem>>, vector<1x8x16xbf16>
    %16 = vector.shape_cast %15 : vector<1x8x16xbf16> to vector<8x16xbf16>
    %cst_12 = arith.constant dense<0.000000e+00> : vector<1024x16xf32>
    %17 = tpu.matmul %14, %16, %cst_12 {dimension_numbers = #tpu.dot_dimension_numbers<[1], [0], [0], [1], [0, 0, 1, 1], [], []>} : vector<1024x8xbf16>, vector<8x16xbf16>, vector<1024x16xf32> -> vector<1024x16xf32>
    %18 = arith.addf %13, %17 : vector<1024x16xf32>
    %19 = vector.extract_strided_slice %9 {offsets = [2048, 0], sizes = [1024, 8], strides = [1, 1]} : vector<4096x8xbf16> to vector<1024x8xbf16>
    %c2 = arith.constant 2 : index
    %c0_13 = arith.constant 0 : index
    %c0_14 = arith.constant 0 : index
    %20 = vector.load %arg4[%c2, %c0_13, %c0_14] : memref<4x8x16xbf16, #tpu.memory_space<vmem>>, vector<1x8x16xbf16>
    %21 = vector.shape_cast %20 : vector<1x8x16xbf16> to vector<8x16xbf16>
    %cst_15 = arith.constant dense<0.000000e+00> : vector<1024x16xf32>
    %22 = tpu.matmul %19, %21, %cst_15 {dimension_numbers = #tpu.dot_dimension_numbers<[1], [0], [0], [1], [0, 0, 1, 1], [], []>} : vector<1024x8xbf16>, vector<8x16xbf16>, vector<1024x16xf32> -> vector<1024x16xf32>
    %23 = arith.addf %18, %22 : vector<1024x16xf32>
    %24 = vector.extract_strided_slice %9 {offsets = [3072, 0], sizes = [1024, 8], strides = [1, 1]} : vector<4096x8xbf16> to vector<1024x8xbf16>
    %c3 = arith.constant 3 : index
    %c0_16 = arith.constant 0 : index
    %c0_17 = arith.constant 0 : index
    %25 = vector.load %arg4[%c3, %c0_16, %c0_17] : memref<4x8x16xbf16, #tpu.memory_space<vmem>>, vector<1x8x16xbf16>
    %26 = vector.shape_cast %25 : vector<1x8x16xbf16> to vector<8x16xbf16>
    %cst_18 = arith.constant dense<0.000000e+00> : vector<1024x16xf32>
    %27 = tpu.matmul %24, %26, %cst_18 {dimension_numbers = #tpu.dot_dimension_numbers<[1], [0], [0], [1], [0, 0, 1, 1], [], []>} : vector<1024x8xbf16>, vector<8x16xbf16>, vector<1024x16xf32> -> vector<1024x16xf32>
    %28 = arith.addf %23, %27 : vector<1024x16xf32>
    %c0_19 = arith.constant 0 : index
    %c0_20 = arith.constant 0 : index
    %29 = vector.load %arg5[%c0_19, %c0_20] : memref<1x16xf32, #tpu.memory_space<vmem>>, vector<1x16xf32>
    %30 = vector.broadcast %29 : vector<1x16xf32> to vector<1024x16xf32>
    %31 = arith.addf %28, %30 : vector<1024x16xf32>
    %cst_21 = arith.constant 1.000000e-01 : f32
    %32 = vector.broadcast %cst_21 : f32 to vector<1024x16xf32>
    %33 = arith.mulf %32, %31 : vector<1024x16xf32>
    %34 = arith.maximumf %31, %33 : vector<1024x16xf32>
    %35 = arith.truncf %34 : vector<1024x16xf32> to vector<1024x16xbf16>
    %36 = vector.extract_strided_slice %35 {offsets = [0, 0], sizes = [256, 16], strides = [1, 1]} : vector<1024x16xbf16> to vector<256x16xbf16>
    %c0_22 = arith.constant 0 : index
    %c0_23 = arith.constant 0 : index
    %c0_24 = arith.constant 0 : index
    %37 = vector.load %arg6[%c0_22, %c0_23, %c0_24] : memref<4x16x32xbf16, #tpu.memory_space<vmem>>, vector<1x16x32xbf16>
    %38 = vector.shape_cast %37 : vector<1x16x32xbf16> to vector<16x32xbf16>
    %cst_25 = arith.constant dense<0.000000e+00> : vector<256x32xf32>
    %39 = tpu.matmul %36, %38, %cst_25 {dimension_numbers = #tpu.dot_dimension_numbers<[1], [0], [0], [1], [0, 0, 1, 1], [], []>} : vector<256x16xbf16>, vector<16x32xbf16>, vector<256x32xf32> -> vector<256x32xf32>
    %40 = vector.extract_strided_slice %35 {offsets = [256, 0], sizes = [256, 16], strides = [1, 1]} : vector<1024x16xbf16> to vector<256x16xbf16>
    %c1_26 = arith.constant 1 : index
    %c0_27 = arith.constant 0 : index
    %c0_28 = arith.constant 0 : index
    %41 = vector.load %arg6[%c1_26, %c0_27, %c0_28] : memref<4x16x32xbf16, #tpu.memory_space<vmem>>, vector<1x16x32xbf16>
    %42 = vector.shape_cast %41 : vector<1x16x32xbf16> to vector<16x32xbf16>
    %cst_29 = arith.constant dense<0.000000e+00> : vector<256x32xf32>
    %43 = tpu.matmul %40, %42, %cst_29 {dimension_numbers = #tpu.dot_dimension_numbers<[1], [0], [0], [1], [0, 0, 1, 1], [], []>} : vector<256x16xbf16>, vector<16x32xbf16>, vector<256x32xf32> -> vector<256x32xf32>
    %44 = arith.addf %39, %43 : vector<256x32xf32>
    %45 = vector.extract_strided_slice %35 {offsets = [512, 0], sizes = [256, 16], strides = [1, 1]} : vector<1024x16xbf16> to vector<256x16xbf16>
    %c2_30 = arith.constant 2 : index
    %c0_31 = arith.constant 0 : index
    %c0_32 = arith.constant 0 : index
    %46 = vector.load %arg6[%c2_30, %c0_31, %c0_32] : memref<4x16x32xbf16, #tpu.memory_space<vmem>>, vector<1x16x32xbf16>
    %47 = vector.shape_cast %46 : vector<1x16x32xbf16> to vector<16x32xbf16>
    %cst_33 = arith.constant dense<0.000000e+00> : vector<256x32xf32>
    %48 = tpu.matmul %45, %47, %cst_33 {dimension_numbers = #tpu.dot_dimension_numbers<[1], [0], [0], [1], [0, 0, 1, 1], [], []>} : vector<256x16xbf16>, vector<16x32xbf16>, vector<256x32xf32> -> vector<256x32xf32>
    %49 = arith.addf %44, %48 : vector<256x32xf32>
    %50 = vector.extract_strided_slice %35 {offsets = [768, 0], sizes = [256, 16], strides = [1, 1]} : vector<1024x16xbf16> to vector<256x16xbf16>
    %c3_34 = arith.constant 3 : index
    %c0_35 = arith.constant 0 : index
    %c0_36 = arith.constant 0 : index
    %51 = vector.load %arg6[%c3_34, %c0_35, %c0_36] : memref<4x16x32xbf16, #tpu.memory_space<vmem>>, vector<1x16x32xbf16>
    %52 = vector.shape_cast %51 : vector<1x16x32xbf16> to vector<16x32xbf16>
    %cst_37 = arith.constant dense<0.000000e+00> : vector<256x32xf32>
    %53 = tpu.matmul %50, %52, %cst_37 {dimension_numbers = #tpu.dot_dimension_numbers<[1], [0], [0], [1], [0, 0, 1, 1], [], []>} : vector<256x16xbf16>, vector<16x32xbf16>, vector<256x32xf32> -> vector<256x32xf32>
    %54 = arith.addf %49, %53 : vector<256x32xf32>
    %c0_38 = arith.constant 0 : index
    %c0_39 = arith.constant 0 : index
    %55 = vector.load %arg7[%c0_38, %c0_39] : memref<1x32xf32, #tpu.memory_space<vmem>>, vector<1x32xf32>
    %56 = vector.broadcast %55 : vector<1x32xf32> to vector<256x32xf32>
    %57 = arith.addf %54, %56 : vector<256x32xf32>
    %cst_40 = arith.constant 1.000000e-01 : f32
    %58 = vector.broadcast %cst_40 : f32 to vector<256x32xf32>
    %59 = arith.mulf %58, %57 : vector<256x32xf32>
    %60 = arith.maximumf %57, %59 : vector<256x32xf32>
    %61 = arith.truncf %60 : vector<256x32xf32> to vector<256x32xbf16>
    %62 = vector.extract_strided_slice %61 {offsets = [0, 0], sizes = [64, 32], strides = [1, 1]} : vector<256x32xbf16> to vector<64x32xbf16>
    %c0_41 = arith.constant 0 : index
    %c0_42 = arith.constant 0 : index
    %c0_43 = arith.constant 0 : index
    %63 = vector.load %arg8[%c0_41, %c0_42, %c0_43] : memref<4x32x64xbf16, #tpu.memory_space<vmem>>, vector<1x32x64xbf16>
    %64 = vector.shape_cast %63 : vector<1x32x64xbf16> to vector<32x64xbf16>
    %cst_44 = arith.constant dense<0.000000e+00> : vector<64x64xf32>
    %65 = tpu.matmul %62, %64, %cst_44 {dimension_numbers = #tpu.dot_dimension_numbers<[1], [0], [0], [1], [0, 0, 1, 1], [], []>} : vector<64x32xbf16>, vector<32x64xbf16>, vector<64x64xf32> -> vector<64x64xf32>
    %66 = vector.extract_strided_slice %61 {offsets = [64, 0], sizes = [64, 32], strides = [1, 1]} : vector<256x32xbf16> to vector<64x32xbf16>
    %c1_45 = arith.constant 1 : index
    %c0_46 = arith.constant 0 : index
    %c0_47 = arith.constant 0 : index
    %67 = vector.load %arg8[%c1_45, %c0_46, %c0_47] : memref<4x32x64xbf16, #tpu.memory_space<vmem>>, vector<1x32x64xbf16>
    %68 = vector.shape_cast %67 : vector<1x32x64xbf16> to vector<32x64xbf16>
    %cst_48 = arith.constant dense<0.000000e+00> : vector<64x64xf32>
    %69 = tpu.matmul %66, %68, %cst_48 {dimension_numbers = #tpu.dot_dimension_numbers<[1], [0], [0], [1], [0, 0, 1, 1], [], []>} : vector<64x32xbf16>, vector<32x64xbf16>, vector<64x64xf32> -> vector<64x64xf32>
    %70 = arith.addf %65, %69 : vector<64x64xf32>
    %71 = vector.extract_strided_slice %61 {offsets = [128, 0], sizes = [64, 32], strides = [1, 1]} : vector<256x32xbf16> to vector<64x32xbf16>
    %c2_49 = arith.constant 2 : index
    %c0_50 = arith.constant 0 : index
    %c0_51 = arith.constant 0 : index
    %72 = vector.load %arg8[%c2_49, %c0_50, %c0_51] : memref<4x32x64xbf16, #tpu.memory_space<vmem>>, vector<1x32x64xbf16>
    %73 = vector.shape_cast %72 : vector<1x32x64xbf16> to vector<32x64xbf16>
    %cst_52 = arith.constant dense<0.000000e+00> : vector<64x64xf32>
    %74 = tpu.matmul %71, %73, %cst_52 {dimension_numbers = #tpu.dot_dimension_numbers<[1], [0], [0], [1], [0, 0, 1, 1], [], []>} : vector<64x32xbf16>, vector<32x64xbf16>, vector<64x64xf32> -> vector<64x64xf32>
    %75 = arith.addf %70, %74 : vector<64x64xf32>
    %76 = vector.extract_strided_slice %61 {offsets = [192, 0], sizes = [64, 32], strides = [1, 1]} : vector<256x32xbf16> to vector<64x32xbf16>
    %c3_53 = arith.constant 3 : index
    %c0_54 = arith.constant 0 : index
    %c0_55 = arith.constant 0 : index
    %77 = vector.load %arg8[%c3_53, %c0_54, %c0_55] : memref<4x32x64xbf16, #tpu.memory_space<vmem>>, vector<1x32x64xbf16>
    %78 = vector.shape_cast %77 : vector<1x32x64xbf16> to vector<32x64xbf16>
    %cst_56 = arith.constant dense<0.000000e+00> : vector<64x64xf32>
    %79 = tpu.matmul %76, %78, %cst_56 {dimension_numbers = #tpu.dot_dimension_numbers<[1], [0], [0], [1], [0, 0, 1, 1], [], []>} : vector<64x32xbf16>, vector<32x64xbf16>, vector<64x64xf32> -> vector<64x64xf32>
    %80 = arith.addf %75, %79 : vector<64x64xf32>
    %c0_57 = arith.constant 0 : index
    %c0_58 = arith.constant 0 : index
    %81 = vector.load %arg9[%c0_57, %c0_58] : memref<1x64xf32, #tpu.memory_space<vmem>>, vector<1x64xf32>
    %82 = vector.broadcast %81 : vector<1x64xf32> to vector<64x64xf32>
    %83 = arith.addf %80, %82 : vector<64x64xf32>
    %cst_59 = arith.constant 1.000000e-01 : f32
    %84 = vector.broadcast %cst_59 : f32 to vector<64x64xf32>
    %85 = arith.mulf %84, %83 : vector<64x64xf32>
    %86 = arith.maximumf %83, %85 : vector<64x64xf32>
    %87 = arith.truncf %86 : vector<64x64xf32> to vector<64x64xbf16>
    %88 = vector.extract_strided_slice %87 {offsets = [0, 0], sizes = [16, 64], strides = [1, 1]} : vector<64x64xbf16> to vector<16x64xbf16>
    %c0_60 = arith.constant 0 : index
    %c0_61 = arith.constant 0 : index
    %c0_62 = arith.constant 0 : index
    %89 = vector.load %arg10[%c0_60, %c0_61, %c0_62] : memref<4x64x128xbf16, #tpu.memory_space<vmem>>, vector<1x64x128xbf16>
    %90 = vector.shape_cast %89 : vector<1x64x128xbf16> to vector<64x128xbf16>
    %cst_63 = arith.constant dense<0.000000e+00> : vector<16x128xf32>
    %91 = tpu.matmul %88, %90, %cst_63 {dimension_numbers = #tpu.dot_dimension_numbers<[1], [0], [0], [1], [0, 0, 1, 1], [], []>} : vector<16x64xbf16>, vector<64x128xbf16>, vector<16x128xf32> -> vector<16x128xf32>
    %92 = vector.extract_strided_slice %87 {offsets = [16, 0], sizes = [16, 64], strides = [1, 1]} : vector<64x64xbf16> to vector<16x64xbf16>
    %c1_64 = arith.constant 1 : index
    %c0_65 = arith.constant 0 : index
    %c0_66 = arith.constant 0 : index
    %93 = vector.load %arg10[%c1_64, %c0_65, %c0_66] : memref<4x64x128xbf16, #tpu.memory_space<vmem>>, vector<1x64x128xbf16>
    %94 = vector.shape_cast %93 : vector<1x64x128xbf16> to vector<64x128xbf16>
    %cst_67 = arith.constant dense<0.000000e+00> : vector<16x128xf32>
    %95 = tpu.matmul %92, %94, %cst_67 {dimension_numbers = #tpu.dot_dimension_numbers<[1], [0], [0], [1], [0, 0, 1, 1], [], []>} : vector<16x64xbf16>, vector<64x128xbf16>, vector<16x128xf32> -> vector<16x128xf32>
    %96 = arith.addf %91, %95 : vector<16x128xf32>
    %97 = vector.extract_strided_slice %87 {offsets = [32, 0], sizes = [16, 64], strides = [1, 1]} : vector<64x64xbf16> to vector<16x64xbf16>
    %c2_68 = arith.constant 2 : index
    %c0_69 = arith.constant 0 : index
    %c0_70 = arith.constant 0 : index
    %98 = vector.load %arg10[%c2_68, %c0_69, %c0_70] : memref<4x64x128xbf16, #tpu.memory_space<vmem>>, vector<1x64x128xbf16>
    %99 = vector.shape_cast %98 : vector<1x64x128xbf16> to vector<64x128xbf16>
    %cst_71 = arith.constant dense<0.000000e+00> : vector<16x128xf32>
    %100 = tpu.matmul %97, %99, %cst_71 {dimension_numbers = #tpu.dot_dimension_numbers<[1], [0], [0], [1], [0, 0, 1, 1], [], []>} : vector<16x64xbf16>, vector<64x128xbf16>, vector<16x128xf32> -> vector<16x128xf32>
    %101 = arith.addf %96, %100 : vector<16x128xf32>
    %102 = vector.extract_strided_slice %87 {offsets = [48, 0], sizes = [16, 64], strides = [1, 1]} : vector<64x64xbf16> to vector<16x64xbf16>
    %c3_72 = arith.constant 3 : index
    %c0_73 = arith.constant 0 : index
    %c0_74 = arith.constant 0 : index
    %103 = vector.load %arg10[%c3_72, %c0_73, %c0_74] : memref<4x64x128xbf16, #tpu.memory_space<vmem>>, vector<1x64x128xbf16>
    %104 = vector.shape_cast %103 : vector<1x64x128xbf16> to vector<64x128xbf16>
    %cst_75 = arith.constant dense<0.000000e+00> : vector<16x128xf32>
    %105 = tpu.matmul %102, %104, %cst_75 {dimension_numbers = #tpu.dot_dimension_numbers<[1], [0], [0], [1], [0, 0, 1, 1], [], []>} : vector<16x64xbf16>, vector<64x128xbf16>, vector<16x128xf32> -> vector<16x128xf32>
    %106 = arith.addf %101, %105 : vector<16x128xf32>
    %c0_76 = arith.constant 0 : index
    %c0_77 = arith.constant 0 : index
    %107 = vector.load %arg11[%c0_76, %c0_77] : memref<1x128xf32, #tpu.memory_space<vmem>>, vector<1x128xf32>
    %108 = vector.broadcast %107 : vector<1x128xf32> to vector<16x128xf32>
    %109 = arith.addf %106, %108 : vector<16x128xf32>
    %cst_78 = arith.constant 1.000000e-01 : f32
    %110 = vector.broadcast %cst_78 : f32 to vector<16x128xf32>
    %111 = arith.mulf %110, %109 : vector<16x128xf32>
    %112 = arith.maximumf %109, %111 : vector<16x128xf32>
    %113 = arith.truncf %60 : vector<256x32xf32> to vector<256x32xbf16>
    %c0_79 = arith.constant 0 : index
    %c0_80 = arith.constant 0 : index
    %114 = vector.load %arg12[%c0_79, %c0_80] : memref<32x128xbf16, #tpu.memory_space<vmem>>, vector<32x128xbf16>
    %cst_81 = arith.constant dense<0.000000e+00> : vector<256x128xf32>
    %115 = tpu.matmul %113, %114, %cst_81 {dimension_numbers = #tpu.dot_dimension_numbers<[1], [0], [0], [1], [0, 0, 1, 1], [], []>} : vector<256x32xbf16>, vector<32x128xbf16>, vector<256x128xf32> -> vector<256x128xf32>
    %c0_82 = arith.constant 0 : index
    %c0_83 = arith.constant 0 : index
    %116 = vector.load %arg13[%c0_82, %c0_83] : memref<1x128xf32, #tpu.memory_space<vmem>>, vector<1x128xf32>
    %117 = vector.broadcast %116 : vector<1x128xf32> to vector<256x128xf32>
    %118 = arith.addf %115, %117 : vector<256x128xf32>
    %119 = arith.negf %118 : vector<256x128xf32>
    %120 = math.exp %119 : vector<256x128xf32>
    %cst_84 = arith.constant 1.000000e+00 : f32
    %121 = vector.broadcast %cst_84 : f32 to vector<256x128xf32>
    %122 = arith.addf %121, %120 : vector<256x128xf32>
    %123 = arith.divf %121, %122 : vector<256x128xf32>
    %c0_85 = arith.constant 0 : index
    %c0_86 = arith.constant 0 : index
    %124 = vector.load %arg14[%c0_85, %c0_86] : memref<1x128xf32, #tpu.memory_space<vmem>>, vector<1x128xf32>
    %125 = vector.broadcast %124 : vector<1x128xf32> to vector<256x128xf32>
    %126 = arith.mulf %123, %125 : vector<256x128xf32>
    %c0_87 = arith.constant 0 : index
    %c0_88 = arith.constant 0 : index
    %127 = vector.load %arg15[%c0_87, %c0_88] : memref<1x128xf32, #tpu.memory_space<vmem>>, vector<1x128xf32>
    %128 = vector.broadcast %127 : vector<1x128xf32> to vector<256x128xf32>
    %129 = arith.addf %126, %128 : vector<256x128xf32>
    %130 = arith.mulf %123, %129 : vector<256x128xf32>
    %c0_89 = arith.constant 0 : index
    %c0_90 = arith.constant 0 : index
    %131 = vector.load %arg16[%c0_89, %c0_90] : memref<256x128xf32, #tpu.memory_space<vmem>>, vector<256x128xf32>
    %132 = arith.addf %130, %131 : vector<256x128xf32>
    %c0_91 = arith.constant 0 : index
    %c0_92 = arith.constant 0 : index
    %133 = vector.load %arg27[%c0_91, %c0_92] : memref<672x128xf32, #tpu.memory_space<vmem>>, vector<256x128xf32>
    tpu.vector_store %arg27[%c0_91, %c0_92], %118 {strides = array<i32>} : memref<672x128xf32, #tpu.memory_space<vmem>>, vector<256x128xf32>,
    %c256 = arith.constant 256 : index
    %c0_93 = arith.constant 0 : index
    %134 = vector.load %arg27[%c256, %c0_93] : memref<672x128xf32, #tpu.memory_space<vmem>>, vector<256x128xf32>
    tpu.vector_store %arg27[%c256, %c0_93], %132 {strides = array<i32>} : memref<672x128xf32, #tpu.memory_space<vmem>>, vector<256x128xf32>,
    %135 = arith.truncf %86 : vector<64x64xf32> to vector<64x64xbf16>
    %c0_94 = arith.constant 0 : index
    %c0_95 = arith.constant 0 : index
    %136 = vector.load %arg17[%c0_94, %c0_95] : memref<64x128xbf16, #tpu.memory_space<vmem>>, vector<64x128xbf16>
    %cst_96 = arith.constant dense<0.000000e+00> : vector<64x128xf32>
    %137 = tpu.matmul %135, %136, %cst_96 {dimension_numbers = #tpu.dot_dimension_numbers<[1], [0], [0], [1], [0, 0, 1, 1], [], []>} : vector<64x64xbf16>, vector<64x128xbf16>, vector<64x128xf32> -> vector<64x128xf32>
    %c0_97 = arith.constant 0 : index
    %c0_98 = arith.constant 0 : index
    %138 = vector.load %arg18[%c0_97, %c0_98] : memref<1x128xf32, #tpu.memory_space<vmem>>, vector<1x128xf32>
    %139 = vector.broadcast %138 : vector<1x128xf32> to vector<64x128xf32>
    %140 = arith.addf %137, %139 : vector<64x128xf32>
    %141 = arith.negf %140 : vector<64x128xf32>
    %142 = math.exp %141 : vector<64x128xf32>
    %cst_99 = arith.constant 1.000000e+00 : f32
    %143 = vector.broadcast %cst_99 : f32 to vector<64x128xf32>
    %144 = arith.addf %143, %142 : vector<64x128xf32>
    %145 = arith.divf %143, %144 : vector<64x128xf32>
    %c0_100 = arith.constant 0 : index
    %c0_101 = arith.constant 0 : index
    %146 = vector.load %arg19[%c0_100, %c0_101] : memref<1x128xf32, #tpu.memory_space<vmem>>, vector<1x128xf32>
    %147 = vector.broadcast %146 : vector<1x128xf32> to vector<64x128xf32>
    %148 = arith.mulf %145, %147 : vector<64x128xf32>
    %c0_102 = arith.constant 0 : index
    %c0_103 = arith.constant 0 : index
    %149 = vector.load %arg20[%c0_102, %c0_103] : memref<1x128xf32, #tpu.memory_space<vmem>>, vector<1x128xf32>
    %150 = vector.broadcast %149 : vector<1x128xf32> to vector<64x128xf32>
    %151 = arith.addf %148, %150 : vector<64x128xf32>
    %152 = arith.mulf %145, %151 : vector<64x128xf32>
    %c0_104 = arith.constant 0 : index
    %c0_105 = arith.constant 0 : index
    %153 = vector.load %arg21[%c0_104, %c0_105] : memref<64x128xf32, #tpu.memory_space<vmem>>, vector<64x128xf32>
    %154 = arith.addf %152, %153 : vector<64x128xf32>
    %c512 = arith.constant 512 : index
    %c0_106 = arith.constant 0 : index
    %155 = vector.load %arg27[%c512, %c0_106] : memref<672x128xf32, #tpu.memory_space<vmem>>, vector<64x128xf32>
    tpu.vector_store %arg27[%c512, %c0_106], %140 {strides = array<i32>} : memref<672x128xf32, #tpu.memory_space<vmem>>, vector<64x128xf32>,
    %c576 = arith.constant 576 : index
    %c0_107 = arith.constant 0 : index
    %156 = vector.load %arg27[%c576, %c0_107] : memref<672x128xf32, #tpu.memory_space<vmem>>, vector<64x128xf32>
    tpu.vector_store %arg27[%c576, %c0_107], %154 {strides = array<i32>} : memref<672x128xf32, #tpu.memory_space<vmem>>, vector<64x128xf32>,
    %157 = arith.truncf %112 : vector<16x128xf32> to vector<16x128xbf16>
    %c0_108 = arith.constant 0 : index
    %c0_109 = arith.constant 0 : index
    %158 = vector.load %arg22[%c0_108, %c0_109] : memref<128x128xbf16, #tpu.memory_space<vmem>>, vector<128x128xbf16>
    %cst_110 = arith.constant dense<0.000000e+00> : vector<16x128xf32>
    %159 = tpu.matmul %157, %158, %cst_110 {dimension_numbers = #tpu.dot_dimension_numbers<[1], [0], [0], [1], [0, 0, 1, 1], [], []>} : vector<16x128xbf16>, vector<128x128xbf16>, vector<16x128xf32> -> vector<16x128xf32>
    %c0_111 = arith.constant 0 : index
    %c0_112 = arith.constant 0 : index
    %160 = vector.load %arg23[%c0_111, %c0_112] : memref<1x128xf32, #tpu.memory_space<vmem>>, vector<1x128xf32>
    %161 = vector.broadcast %160 : vector<1x128xf32> to vector<16x128xf32>
    %162 = arith.addf %159, %161 : vector<16x128xf32>
    %163 = arith.negf %162 : vector<16x128xf32>
    %164 = math.exp %163 : vector<16x128xf32>
    %cst_113 = arith.constant 1.000000e+00 : f32
    %165 = vector.broadcast %cst_113 : f32 to vector<16x128xf32>
    %166 = arith.addf %165, %164 : vector<16x128xf32>
    %167 = arith.divf %165, %166 : vector<16x128xf32>
    %c0_114 = arith.constant 0 : index
    %c0_115 = arith.constant 0 : index
    %168 = vector.load %arg24[%c0_114, %c0_115] : memref<1x128xf32, #tpu.memory_space<vmem>>, vector<1x128xf32>
    %169 = vector.broadcast %168 : vector<1x128xf32> to vector<16x128xf32>
    %170 = arith.mulf %167, %169 : vector<16x128xf32>
    %c0_116 = arith.constant 0 : index
    %c0_117 = arith.constant 0 : index
    %171 = vector.load %arg25[%c0_116, %c0_117] : memref<1x128xf32, #tpu.memory_space<vmem>>, vector<1x128xf32>
    %172 = vector.broadcast %171 : vector<1x128xf32> to vector<16x128xf32>
    %173 = arith.addf %170, %172 : vector<16x128xf32>
    %174 = arith.mulf %167, %173 : vector<16x128xf32>
    %c0_118 = arith.constant 0 : index
    %c0_119 = arith.constant 0 : index
    %175 = vector.load %arg26[%c0_118, %c0_119] : memref<16x128xf32, #tpu.memory_space<vmem>>, vector<16x128xf32>
    %176 = arith.addf %174, %175 : vector<16x128xf32>
    %c640 = arith.constant 640 : index
    %c0_120 = arith.constant 0 : index
    %177 = vector.load %arg27[%c640, %c0_120] : memref<672x128xf32, #tpu.memory_space<vmem>>, vector<16x128xf32>
    tpu.vector_store %arg27[%c640, %c0_120], %162 {strides = array<i32>} : memref<672x128xf32, #tpu.memory_space<vmem>>, vector<16x128xf32>,
    %c656 = arith.constant 656 : index
    %c0_121 = arith.constant 0 : index
    %178 = vector.load %arg27[%c656, %c0_121] : memref<672x128xf32, #tpu.memory_space<vmem>>, vector<16x128xf32>
    tpu.vector_store %arg27[%c656, %c0_121], %176 {strides = array<i32>} : memref<672x128xf32, #tpu.memory_space<vmem>>, vector<16x128xf32>,
    return
  }
  func.func @transform_0(%arg0: i32) -> (i32, i32) {
    %c0_i32 = arith.constant 0 : i32
    %c0_i32_0 = arith.constant 0 : i32
    return %arg0, %c0_i32 : i32, i32
  }
  func.func @transform_1(%arg0: i32) -> (i32, i32) {
    %c0_i32 = arith.constant 0 : i32
    %c0_i32_0 = arith.constant 0 : i32
    %c0_i32_1 = arith.constant 0 : i32
    return %c0_i32, %c0_i32_0 : i32, i32
  }
  func.func @transform_2(%arg0: i32) -> (i32, i32) {
    %c0_i32 = arith.constant 0 : i32
    %c0_i32_0 = arith.constant 0 : i32
    %c0_i32_1 = arith.constant 0 : i32
    return %c0_i32, %c0_i32_0 : i32, i32
  }
  func.func @transform_3(%arg0: i32) -> (i32, i32, i32) {
    %c0_i32 = arith.constant 0 : i32
    %c0_i32_0 = arith.constant 0 : i32
    %c0_i32_1 = arith.constant 0 : i32
    %c0_i32_2 = arith.constant 0 : i32
    return %c0_i32, %c0_i32_0, %c0_i32_1 : i32, i32, i32
  }
  func.func @transform_4(%arg0: i32) -> (i32, i32) {
    %c0_i32 = arith.constant 0 : i32
    %c0_i32_0 = arith.constant 0 : i32
    %c0_i32_1 = arith.constant 0 : i32
    return %c0_i32, %c0_i32_0 : i32, i32
  }
  func.func @transform_5(%arg0: i32) -> (i32, i32, i32) {
    %c0_i32 = arith.constant 0 : i32
    %c0_i32_0 = arith.constant 0 : i32
    %c0_i32_1 = arith.constant 0 : i32
    %c0_i32_2 = arith.constant 0 : i32
    return %c0_i32, %c0_i32_0, %c0_i32_1 : i32, i32, i32
  }
  func.func @transform_6(%arg0: i32) -> (i32, i32) {
    %c0_i32 = arith.constant 0 : i32
    %c0_i32_0 = arith.constant 0 : i32
    %c0_i32_1 = arith.constant 0 : i32
    return %c0_i32, %c0_i32_0 : i32, i32
  }
  func.func @transform_7(%arg0: i32) -> (i32, i32, i32) {
    %c0_i32 = arith.constant 0 : i32
    %c0_i32_0 = arith.constant 0 : i32
    %c0_i32_1 = arith.constant 0 : i32
    %c0_i32_2 = arith.constant 0 : i32
    return %c0_i32, %c0_i32_0, %c0_i32_1 : i32, i32, i32
  }
  func.func @transform_8(%arg0: i32) -> (i32, i32) {
    %c0_i32 = arith.constant 0 : i32
    %c0_i32_0 = arith.constant 0 : i32
    %c0_i32_1 = arith.constant 0 : i32
    return %c0_i32, %c0_i32_0 : i32, i32
  }
  func.func @transform_9(%arg0: i32) -> (i32, i32, i32) {
    %c0_i32 = arith.constant 0 : i32
    %c0_i32_0 = arith.constant 0 : i32
    %c0_i32_1 = arith.constant 0 : i32
    %c0_i32_2 = arith.constant 0 : i32
    return %c0_i32, %c0_i32_0, %c0_i32_1 : i32, i32, i32
  }
  func.func @transform_10(%arg0: i32) -> (i32, i32) {
    %c0_i32 = arith.constant 0 : i32
    %c0_i32_0 = arith.constant 0 : i32
    %c0_i32_1 = arith.constant 0 : i32
    return %c0_i32, %c0_i32_0 : i32, i32
  }
  func.func @transform_11(%arg0: i32) -> (i32, i32) {
    %c0_i32 = arith.constant 0 : i32
    %c0_i32_0 = arith.constant 0 : i32
    %c0_i32_1 = arith.constant 0 : i32
    return %c0_i32, %c0_i32_0 : i32, i32
  }
  func.func @transform_12(%arg0: i32) -> (i32, i32) {
    %c0_i32 = arith.constant 0 : i32
    %c0_i32_0 = arith.constant 0 : i32
    %c0_i32_1 = arith.constant 0 : i32
    return %c0_i32, %c0_i32_0 : i32, i32
  }
  func.func @transform_13(%arg0: i32) -> (i32, i32) {
    %c0_i32 = arith.constant 0 : i32
    %c0_i32_0 = arith.constant 0 : i32
    %c0_i32_1 = arith.constant 0 : i32
    return %c0_i32, %c0_i32_0 : i32, i32
  }
  func.func @transform_14(%arg0: i32) -> (i32, i32) {
    %c0_i32 = arith.constant 0 : i32
    %c0_i32_0 = arith.constant 0 : i32
    %c0_i32_1 = arith.constant 0 : i32
    return %c0_i32, %c0_i32_0 : i32, i32
  }
  func.func @transform_15(%arg0: i32) -> (i32, i32) {
    %c0_i32 = arith.constant 0 : i32
    %c0_i32_0 = arith.constant 0 : i32
    %c0_i32_1 = arith.constant 0 : i32
    return %c0_i32, %c0_i32_0 : i32, i32
  }
  func.func @transform_16(%arg0: i32) -> (i32, i32) {
    %c0_i32 = arith.constant 0 : i32
    %c0_i32_0 = arith.constant 0 : i32
    %c0_i32_1 = arith.constant 0 : i32
    return %c0_i32, %c0_i32_0 : i32, i32
  }
  func.func @transform_17(%arg0: i32) -> (i32, i32) {
    %c0_i32 = arith.constant 0 : i32
    %c0_i32_0 = arith.constant 0 : i32
    %c0_i32_1 = arith.constant 0 : i32
    return %c0_i32, %c0_i32_0 : i32, i32
  }
  func.func @transform_18(%arg0: i32) -> (i32, i32) {
    %c0_i32 = arith.constant 0 : i32
    %c0_i32_0 = arith.constant 0 : i32
    %c0_i32_1 = arith.constant 0 : i32
    return %c0_i32, %c0_i32_0 : i32, i32
  }
  func.func @transform_19(%arg0: i32) -> (i32, i32) {
    %c0_i32 = arith.constant 0 : i32
    %c0_i32_0 = arith.constant 0 : i32
    %c0_i32_1 = arith.constant 0 : i32
    return %c0_i32, %c0_i32_0 : i32, i32
  }
  func.func @transform_20(%arg0: i32) -> (i32, i32) {
    %c0_i32 = arith.constant 0 : i32
    %c0_i32_0 = arith.constant 0 : i32
    %c0_i32_1 = arith.constant 0 : i32
    return %c0_i32, %c0_i32_0 : i32, i32
  }
  func.func @transform_21(%arg0: i32) -> (i32, i32) {
    %c0_i32 = arith.constant 0 : i32
    %c0_i32_0 = arith.constant 0 : i32
    %c0_i32_1 = arith.constant 0 : i32
    return %c0_i32, %c0_i32_0 : i32, i32
  }
  func.func @transform_22(%arg0: i32) -> (i32, i32) {
    %c0_i32 = arith.constant 0 : i32
    %c0_i32_0 = arith.constant 0 : i32
    %c0_i32_1 = arith.constant 0 : i32
    return %c0_i32, %c0_i32_0 : i32, i32
  }
  func.func @transform_23(%arg0: i32) -> (i32, i32) {
    %c0_i32 = arith.constant 0 : i32
    %c0_i32_0 = arith.constant 0 : i32
    %c0_i32_1 = arith.constant 0 : i32
    return %c0_i32, %c0_i32_0 : i32, i32
  }
  func.func @transform_24(%arg0: i32) -> (i32, i32) {
    %c0_i32 = arith.constant 0 : i32
    %c0_i32_0 = arith.constant 0 : i32
    %c0_i32_1 = arith.constant 0 : i32
    return %c0_i32, %c0_i32_0 : i32, i32
  }
  func.func @transform_25(%arg0: i32) -> (i32, i32) {
    %c0_i32 = arith.constant 0 : i32
    %c0_i32_0 = arith.constant 0 : i32
    %c0_i32_1 = arith.constant 0 : i32
    return %c0_i32, %c0_i32_0 : i32, i32
  }
  func.func @transform_26(%arg0: i32) -> (i32, i32) {
    %c0_i32 = arith.constant 0 : i32
    %c0_i32_0 = arith.constant 0 : i32
    return %arg0, %c0_i32 : i32, i32
  }
}

</mosaic_0001>

<bundles_post_ra>
// kernel: model_forward.1
= control target key start
LH: loop header
LB: loop body
LE: loop exit
PB: predicated region body
PF: predicated region fallthrough
CT: control target
= control target key end

     0   :  { %s20621_s0 = inlined_call_operand.vmem [shape: bf16[8192,12], index: 0, kind: input, shape index: {}]   ;;  %s20622_s1 = inlined_call_operand.vmem [shape: bf16[12,8], index: 1, kind: input, shape index: {}]   ;;  %s20623_s2 = inlined_call_operand.vmem [shape: f32[1,8], index: 2, kind: input, shape index: {}]   ;;  %s20624_s3 = inlined_call_operand.vmem [shape: bf16[4,8,16], index: 3, kind: input, shape index: {}]   ;;  %s20625_s4 = inlined_call_operand.vmem [shape: f32[1,16], index: 4, kind: input, shape index: {}]   ;;  %s20626_s5 = inlined_call_operand.vmem [shape: bf16[4,16,32], index: 5, kind: input, shape index: {}]   ;;  %s20627_s6 = inlined_call_operand.vmem [shape: f32[1,32], index: 6, kind: input, shape index: {}]   ;;  %s20628_s7 = inlined_call_operand.vmem [shape: bf16[4,32,64], index: 7, kind: input, shape index: {}]   ;;  %s20629_s8 = inlined_call_operand.vmem [shape: f32[1,64], index: 8, kind: input, shape index: {}]   ;;  %s20630_s9 = inlined_call_operand.vmem [shape: bf16[4,64,128], index: 9, kind: input, shape index: {}]   ;;  %s20631_s10 = inlined_call_operand.vmem [shape: f32[1,128], index: 10, kind: input, shape index: {}]   ;;  %s20632_s11 = inlined_call_operand.vmem [shape: bf16[32,128], index: 11, kind: input, shape index: {}]   ;;  %s20633_s12 = inlined_call_operand.vmem [shape: f32[1,128], index: 12, kind: input, shape index: {}]   ;;  %s20634_s13 = inlined_call_operand.vmem [shape: f32[1,128], index: 13, kind: input, shape index: {}]   ;;  %s20635_s14 = inlined_call_operand.vmem [shape: f32[1,128], index: 14, kind: input, shape index: {}]   ;;  %s20636_s15 = inlined_call_operand.vmem [shape: f32[256,128], index: 15, kind: input, shape index: {}]   ;;  %s20637_s16 = inlined_call_operand.vmem [shape: bf16[64,128], index: 16, kind: input, shape index: {}]   ;;  %s20638_s17 = inlined_call_operand.vmem [shape: f32[1,128], index: 17, kind: input, shape index: {}]   ;;  %s20639_s18 = inlined_call_operand.vmem [shape: f32[1,128], index: 18, kind: input, shape index: {}]   ;;  %s20640_s19 = inlined_call_operand.vmem [shape: f32[1,128], index: 19, kind: input, shape index: {}]   ;;  %s20641_s20 = inlined_call_operand.vmem [shape: f32[64,128], index: 20, kind: input, shape index: {}]   ;;  %s20642_s21 = inlined_call_operand.vmem [shape: bf16[128,128], index: 21, kind: input, shape index: {}]   ;;  %s20643_s22 = inlined_call_operand.vmem [shape: f32[1,128], index: 22, kind: input, shape index: {}]   ;;  %s20644_s23 = inlined_call_operand.vmem [shape: f32[1,128], index: 23, kind: input, shape index: {}]   ;;  %s20645_s24 = inlined_call_operand.vmem [shape: f32[1,128], index: 24, kind: input, shape index: {}]   ;;  %s20646_s25 = inlined_call_operand.vmem [shape: f32[16,128], index: 25, kind: input, shape index: {}]   ;;  %s20647_s26 = inlined_call_operand.hbm [shape: f32[1344,128], index: 26, kind: output, shape index: {}]  }
   0x1   :  { %20664 = sst [smem:[#allocation39_spill]] %s20621_s0 }
   0x2   :  { %20665 = sst [smem:[#allocation40_spill]] %s20622_s1 }
   0x3   :  { %20666 = sst [smem:[#allocation41_spill]] %s20623_s2 }
   0x4   :  { %20667 = sst [smem:[#allocation42_spill]] %s20624_s3 }
   0x5   :  { %20668 = sst [smem:[#allocation43_spill]] %s20625_s4 }
   0x6   :  { %20669 = sst [smem:[#allocation44_spill]] %s20626_s5 }
   0x7   :  { %20670 = sst [smem:[#allocation45_spill]] %s20627_s6 }
   0x8   :  { %20671 = sst [smem:[#allocation46_spill]] %s20628_s7 }
   0x9   :  { %20672 = sst [smem:[#allocation47_spill]] %s20629_s8 }
   0xa   :  { %20673 = sst [smem:[#allocation48_spill]] %s20630_s9 }
   0xb   :  { %20674 = sst [smem:[#allocation49_spill]] %s20631_s10 }
   0xc   :  { %20675 = sst [smem:[#allocation50_spill]] %s20632_s11 }
   0xd   :  { %31 = vsyncpa [#allocation3], 0 }
   0xe   :  { %33 = vsyncpa [#allocation3 + $0x1], 0  ;;  %s17547_s27 = smov 0   ;;  %s17549_s3 = smov 0  }
   0xf   :  { %s17551_s7 = smov 0   ;;  %s17553_s28 = smov 0  }
  0x10 LB: > { %20676 = sst [smem:[#allocation5_spill]] %s17401_s7  ;;  %s17568_s8 = sadd.s32 4294967295, %s17405_s28   ;;  %s17405_s28 = sphi %s17553_s28, %s20756_s28   ;;  %s17401_s7 = sphi %s17551_s7, %s20758_s7   ;;  %s17397_s3 = sphi %s17549_s3, %s20760_s3   ;;  %s17393_s27 = sphi %s17547_s27, %s20759_s27  }
  0x11   : > { %s13286_s4 = sadd.s32 4294967294, %s17405_s28   ;;  %s17572_s29 = sadd.s32 1, %s17405_s28  }
  0x12   : > { %20677 = sst [smem:[#allocation6_spill]] %s17572_s29  ;;  %s597_s0 = sadd.s32 1, %s17401_s7 }
  0x13   : > { %s594_s9 = ssub.s32 %s17405_s28, %s17572_s29  ;;  %p607_p0 = scmp.ne.s32.totalorder %s17401_s7, %s17397_s3 }
  0x14   : > { %p595_p1 = scmp.eq.s32.totalorder %s594_s9, 0  ;;  %p608_p2 = scmp.eq.s32.totalorder %s17568_s8, 1 }
  0x15   : > { %p613_p3 = scmp.ne.s32.totalorder %s17397_s3, %s17393_s27  ;;  %p614_p4 = scmp.eq.s32.totalorder %s13286_s4, 1 }
  0x16   : > { %s17583_s30 = scalar_select %p595_p1, %s17401_s7, %s597_s0  }
  0x17   : > { %p17585_p5 = por %p608_p2, %p607_p0  ;;  %p17589_p6 = por %p614_p4, %p613_p3 }
  0x18   : > { %20678 = sst [smem:[#allocation7_spill]] %s17583_s30  ;;  %p13289_p7 = scmp.ge.s32.totalorder %s17405_s28, 1 }
  0x19   : > { %p716_p8 = scmp.lt.s32.totalorder %s17405_s28, 3 }
  0x1b   : > { %p717_p9 = pnand %p13289_p7, %p716_p8 }
  0x1d   : > { %720 = sbr.rel (%p717_p9) target bundleno = 2822 (0xb06), region = 124 }
  0x24   : > { %s20681_s1 = sld [smem:[#allocation40_spill]]  ;;  %vm3369_vm0 = vcmask 1045504   ;;  %s13290_s4 = sshll.u32 %s17568_s8, 9  ;;  %vm2600_vm1 = vcmask 97280   ;;  %vm6930_vm2 = vcmask 1043456   ;;  %vm6737_vm3 = vcmask 64512  }
  0x25   : > { %p787_p10 = scmp.lt.s32.totalorder %s13290_s4, 1023  ;;  %s20682_s7 = sld [smem:[#allocation39_spill]]  ;;  %vm10425_vm4 = vcmask 130048   ;;  %vm11490_vm5 = vcmask 261120   ;;  %vm17408_vm6 = vmmov 0   ;;  %vm11937_vm7 = vcmask 523264  }
  0x26   : > { %s20683_s10 = sld [smem:[#allocation41_spill]]  ;;  %s20751_s6 = sld [smem:[#allocation48_spill]] }
  0x27   : > { %s20762_s4 = smov (!%p787_p10, %s13290_s4), 1023  ;;  %s20753_s11 = sld [smem:[#allocation50_spill]] }
  0x28   : > { %s13291_s0 = sshll.u32 %s20762_s4, 2  ;;  %s20684_s4 = sld [smem:[#allocation42_spill]] }
  0x2a   : > { %v16870_v0 = vld [vmem:[%s20681_s1] sm:$0x3f]   ;;  %s20749_s1 = sld [smem:[#allocation46_spill]] }
  0x2b   : > { %16820 = vmatprep.subr.msk.bf16.mxu0 %vm3369_vm0, %v16870_v0  ;;  %v3371_v1 = vsel %vm3369_vm0, %v16870_v0, 0  ;;  %16821 = vmatprep.subr.msk.bf16.mxu1 %vm3369_vm0, %v16870_v0  ;;  %s17602_s29 = scalar_lea.vmem %s20682_s7, %s13291_s0  ;;  %s20697_s0 = sld [smem:[#allocation44_spill]] }
  0x2c   : > { %14977 = vmatpush3.bf16.msra.mxu0 %v3371_v1  ;;  %16315 = vmatpush3.bf16.msra.mxu1 %v3371_v1  ;;  %v16871_v2 = vld [vmem:[%s17602_s29] sm:$0xff]   ;;  %v16872_v3 = vld [vmem:[%s17602_s29 + $0x8] sm:$0xff]   ;;  %v16873_v4 = vld [vmem:[%s17602_s29 + $0x10] sm:$0xff]  }
  0x2d   : > { %14978 = vmatprep.mubr.msk.bf16.mxu0 %vm2600_vm1, %v16871_v2  ;;  %v16874_v5 = vld [vmem:[%s17602_s29 + $0x18] sm:$0xff]   ;;  %v16875_v6 = vld [vmem:[%s17602_s29 + $0x20] sm:$0xff]   ;;  %v16876_v7 = vld [vmem:[%s17602_s29 + $0x28] sm:$0xff]  }
  0x2e   : > { %v16877_v8 = vld [vmem:[%s17602_s29 + $0x30] sm:$0xff]   ;;  %v16878_v9 = vld [vmem:[%s17602_s29 + $0x38] sm:$0xff]   ;;  %v16879_v10 = vld [vmem:[%s17602_s29 + $0x40] sm:$0xff]  }
  0x2f   : > { %14979 = vmatmul.mubr.msk.bf16.vlgmr.msra.gmra.mrb[0].mxu0 %vm2600_vm1, %v16872_v3  ;;  %v16880_v11 = vld [vmem:[%s17602_s29 + $0x48] sm:$0xff]   ;;  %v16881_v12 = vld [vmem:[%s17602_s29 + $0x50] sm:$0xff]   ;;  %v16882_v13 = vld [vmem:[%s17602_s29 + $0x58] sm:$0xff]  }
  0x30   : > { %14982 = vmatprep.mubr.msk.bf16.mxu0 %vm2600_vm1, %v16873_v4  ;;  %v16883_v14 = vld [vmem:[%s17602_s29 + $0x60] sm:$0xff]   ;;  %v16884_v15 = vld [vmem:[%s17602_s29 + $0x68] sm:$0xff]   ;;  %v16885_v16 = vld [vmem:[%s17602_s29 + $0x70] sm:$0xff]  }
  0x31   : > { %v16886_v17 = vld [vmem:[%s17602_s29 + $0x78] sm:$0xff]   ;;  %v16887_v18 = vld [vmem:[%s17602_s29 + $0x80] sm:$0xff]   ;;  %v16888_v19 = vld [vmem:[%s17602_s29 + $0x88] sm:$0xff]  }
  0x32   : > { %v16889_v20 = vld [vmem:[%s17602_s29 + $0x90] sm:$0xff]   ;;  %v16890_v21 = vld [vmem:[%s17602_s29 + $0x98] sm:$0xff]   ;;  %v16891_v22 = vld [vmem:[%s17602_s29 + $0xa0] sm:$0xff]  }
  0x33   : > { %v16892_v23 = vld [vmem:[%s17602_s29 + $0xa8] sm:$0xff]   ;;  %v16893_v24 = vld [vmem:[%s17602_s29 + $0xb0] sm:$0xff]   ;;  %v16894_v25 = vld [vmem:[%s17602_s29 + $0xb8] sm:$0xff]  }
  0x34   : > { %v16895_v26 = vld [vmem:[%s17602_s29 + $0xc0] sm:$0xff]   ;;  %v16896_v27 = vld [vmem:[%s17602_s29 + $0xc8] sm:$0xff]   ;;  %v16897_v28 = vld [vmem:[%s17602_s29 + $0xd0] sm:$0xff]  }
  0x35   : > { %v16898_v29 = vld [vmem:[%s17602_s29 + $0xd8] sm:$0xff]   ;;  %v16899_v30 = vld [vmem:[%s17602_s29 + $0xe0] sm:$0xff]   ;;  %v16900_v31 = vld [vmem:[%s17602_s29 + $0xe8] sm:$0xff]  }
  0x36   : > { %v16901_v32 = vld [vmem:[%s17602_s29 + $0xf0] sm:$0xff]   ;;  %v16902_v33 = vld [vmem:[%s17602_s29 + $0xf8] sm:$0xff]   ;;  %v16903_v34 = vld [vmem:[%s17602_s29 + $0x100] sm:$0xff]  }
  0x37   : > { %14983 = vmatmul.mubr.msk.bf16.gmra.mrb[4].mxu0 %vm2600_vm1, %v16874_v5  ;;  %v16904_v35 = vld [vmem:[%s17602_s29 + $0x108] sm:$0xff]   ;;  %v16905_v36 = vld [vmem:[%s17602_s29 + $0x110] sm:$0xff]   ;;  %v16906_v37 = vld [vmem:[%s17602_s29 + $0x118] sm:$0xff]  }
  0x38   : > { %14986 = vmatprep.mubr.msk.bf16.mxu0 %vm2600_vm1, %v16875_v6  ;;  %v16907_v38 = vld [vmem:[%s17602_s29 + $0x120] sm:$0xff]   ;;  %v16908_v39 = vld [vmem:[%s17602_s29 + $0x128] sm:$0xff]   ;;  %v16909_v40 = vld [vmem:[%s17602_s29 + $0x130] sm:$0xff]  }
  0x39   : > { %v16910_v41 = vld [vmem:[%s17602_s29 + $0x138] sm:$0xff]   ;;  %v16911_v42 = vld [vmem:[%s17602_s29 + $0x140] sm:$0xff]   ;;  %v16912_v43 = vld [vmem:[%s17602_s29 + $0x148] sm:$0xff]  }
  0x3a   : > { %v16913_v44 = vld [vmem:[%s17602_s29 + $0x150] sm:$0xff]   ;;  %v16914_v45 = vld [vmem:[%s17602_s29 + $0x158] sm:$0xff]   ;;  %v16915_v46 = vld [vmem:[%s17602_s29 + $0x160] sm:$0xff]  }
  0x3b   : > { %v16916_v47 = vld [vmem:[%s17602_s29 + $0x168] sm:$0xff]   ;;  %v16917_v48 = vld [vmem:[%s17602_s29 + $0x170] sm:$0xff]   ;;  %v16918_v49 = vld [vmem:[%s17602_s29 + $0x178] sm:$0xff]  }
  0x3c   : > { %v16919_v50 = vld [vmem:[%s17602_s29 + $0x180] sm:$0xff]   ;;  %v16920_v51 = vld [vmem:[%s17602_s29 + $0x188] sm:$0xff]   ;;  %v16921_v52 = vld [vmem:[%s17602_s29 + $0x190] sm:$0xff]  }
  0x3d   : > { %v16922_v53 = vld [vmem:[%s17602_s29 + $0x198] sm:$0xff]   ;;  %v16923_v54 = vld [vmem:[%s17602_s29 + $0x1a0] sm:$0xff]   ;;  %v16924_v55 = vld [vmem:[%s17602_s29 + $0x1a8] sm:$0xff]  }
  0x3e   : > { %v16925_v56 = vld [vmem:[%s17602_s29 + $0x1b0] sm:$0xff]   ;;  %v17715_v57 = vld [vmem:[%s20683_s10] ss:$0 sm:$0xff]  ;;  %v16926_v61 = vld [vmem:[%s17602_s29 + $0x1b8] sm:$0xff]  }
  0x3f   : > { %14987 = vmatmul.mubr.msk.bf16.gmra.mrb[8].mxu0 %vm2600_vm1, %v16876_v7  ;;  %v16927_v0 = vld [vmem:[%s17602_s29 + $0x1c0] sm:$0xff]  }
  0x40   : > { %14990 = vmatprep.mubr.msk.bf16.mxu0 %vm2600_vm1, %v16877_v8 }
  0x47   : > { %14991 = vmatmul.mubr.msk.bf16.gmra.mrb[12].mxu0 %vm2600_vm1, %v16878_v9 }
  0x48   : > { %14994 = vmatprep.mubr.msk.bf16.mxu0 %vm2600_vm1, %v16879_v10 }
  0x4f   : > { %14995 = vmatmul.mubr.msk.bf16.gmra.mrb[16].mxu0 %vm2600_vm1, %v16880_v11 }
  0x50   : > { %14998 = vmatprep.mubr.msk.bf16.mxu0 %vm2600_vm1, %v16881_v12 }
  0x57   : > { %14999 = vmatmul.mubr.msk.bf16.gmra.mrb[20].mxu0 %vm2600_vm1, %v16882_v13 }
  0x58   : > { %15002 = vmatprep.mubr.msk.bf16.mxu0 %vm2600_vm1, %v16883_v14 }
  0x5f   : > { %15003 = vmatmul.mubr.msk.bf16.gmra.mrb[24].mxu0 %vm2600_vm1, %v16884_v15 }
  0x60   : > { %15006 = vmatprep.mubr.msk.bf16.mxu0 %vm2600_vm1, %v16885_v16  ;;  %v16928_v16 = vld [vmem:[%s17602_s29 + $0x1c8] sm:$0xff]  }
  0x67   : > { %15007 = vmatmul.mubr.msk.bf16.gmra.mrb[28].mxu0 %vm2600_vm1, %v16886_v17 }
  0x68   : > { %15010 = vmatprep.mubr.msk.bf16.mxu0 %vm2600_vm1, %v16887_v18 }
  0x6f   : > { %15011 = vmatmul.mubr.msk.bf16.gmra.mrb[32].mxu0 %vm2600_vm1, %v16888_v19  ;;  %v16929_v19 = vld [vmem:[%s17602_s29 + $0x1d0] sm:$0xff]  }
  0x70   : > { %15014 = vmatprep.mubr.msk.bf16.mxu0 %vm2600_vm1, %v16889_v20 }
  0x77   : > { %15015 = vmatmul.mubr.msk.bf16.gmra.mrb[36].mxu0 %vm2600_vm1, %v16890_v21 }
  0x78   : > { %15018 = vmatprep.mubr.msk.bf16.mxu0 %vm2600_vm1, %v16891_v22 }
  0x7f   : > { %15019 = vmatmul.mubr.msk.bf16.gmra.mrb[40].mxu0 %vm2600_vm1, %v16892_v23 }
  0x80   : > { %15022 = vmatprep.mubr.msk.bf16.mxu0 %vm2600_vm1, %v16893_v24 }
  0x87   : > { %15023 = vmatmul.mubr.msk.bf16.gmra.mrb[44].mxu0 %vm2600_vm1, %v16894_v25 }
  0x88   : > { %15026 = vmatprep.mubr.msk.bf16.mxu0 %vm2600_vm1, %v16895_v26 }
  0x8f   : > { %15027 = vmatmul.mubr.msk.bf16.gmra.mrb[48].mxu0 %vm2600_vm1, %v16896_v27 }
  0x90   : > { %15030 = vmatprep.mubr.msk.bf16.mxu0 %vm2600_vm1, %v16897_v28 }
  0x97   : > { %15031 = vmatmul.mubr.msk.bf16.gmra.mrb[52].mxu0 %vm2600_vm1, %v16898_v29 }
  0x98   : > { %15034 = vmatprep.mubr.msk.bf16.mxu0 %vm2600_vm1, %v16899_v30 }
  0x9f   : > { %15035 = vmatmul.mubr.msk.bf16.gmra.mrb[56].mxu0 %vm2600_vm1, %v16900_v31 }
  0xa0   : > { %15038 = vmatprep.mubr.msk.bf16.mxu0 %vm2600_vm1, %v16901_v32 }
  0xa7   : > { %15039 = vmatmul.mubr.msk.bf16.gmra.mrb[60].mxu0 %vm2600_vm1, %v16902_v33 }
  0xa8   : > { %15042 = vmatprep.mubr.msk.bf16.mxu0 %vm2600_vm1, %v16903_v34 }
  0xaf   : > { %15043 = vmatmul.mubr.msk.bf16.gmra.mrb[64].mxu0 %vm2600_vm1, %v16904_v35  ;;  %v16930_v35 = vld [vmem:[%s17602_s29 + $0x1d8] sm:$0xff]  }
  0xb0   : > { %15046 = vmatprep.mubr.msk.bf16.mxu0 %vm2600_vm1, %v16905_v36 }
  0xb7   : > { %15047 = vmatmul.mubr.msk.bf16.gmra.mrb[68].mxu0 %vm2600_vm1, %v16906_v37 }
  0xb8   : > { %15050 = vmatprep.mubr.msk.bf16.mxu0 %vm2600_vm1, %v16907_v38 }
  0xbf   : > { %15051 = vmatmul.mubr.msk.bf16.gmra.mrb[72].mxu0 %vm2600_vm1, %v16908_v39  ;;  %v16931_v39 = vld [vmem:[%s17602_s29 + $0x1e0] sm:$0xff]  }
  0xc0   : > { %15054 = vmatprep.mubr.msk.bf16.mxu0 %vm2600_vm1, %v16909_v40 }
  0xc7   : > { %15055 = vmatmul.mubr.msk.bf16.gmra.mrb[76].mxu0 %vm2600_vm1, %v16910_v41 }
  0xc8   : > { %15058 = vmatprep.mubr.msk.bf16.mxu0 %vm2600_vm1, %v16911_v42 }
  0xcf   : > { %15059 = vmatmul.mubr.msk.bf16.gmra.mrb[80].mxu0 %vm2600_vm1, %v16912_v43 }
  0xd0   : > { %15062 = vmatprep.mubr.msk.bf16.mxu0 %vm2600_vm1, %v16913_v44 }
  0xd7   : > { %15063 = vmatmul.mubr.msk.bf16.gmra.mrb[84].mxu0 %vm2600_vm1, %v16914_v45 }
  0xd8   : > { %15066 = vmatprep.mubr.msk.bf16.mxu0 %vm2600_vm1, %v16915_v46 }
  0xdf   : > { %15067 = vmatmul.mubr.msk.bf16.gmra.mrb[88].mxu0 %vm2600_vm1, %v16916_v47 }
  0xe0   : > { %15070 = vmatprep.mubr.msk.bf16.mxu0 %vm2600_vm1, %v16917_v48 }
  0xe7   : > { %15071 = vmatmul.mubr.msk.bf16.gmra.mrb[92].mxu0 %vm2600_vm1, %v16918_v49 }
  0xe8   : > { %15074 = vmatprep.mubr.msk.bf16.mxu0 %vm2600_vm1, %v16919_v50 }
  0xef   : > { %15075 = vmatmul.mubr.msk.bf16.gmra.mrb[96].mxu0 %vm2600_vm1, %v16920_v51 }
  0xf0   : > { %15078 = vmatprep.mubr.msk.bf16.mxu0 %vm2600_vm1, %v16921_v52 }
  0xf7   : > { %15079 = vmatmul.mubr.msk.bf16.gmra.mrb[100].mxu0 %vm2600_vm1, %v16922_v53 }
  0xf8   : > { %15082 = vmatprep.mubr.msk.bf16.mxu0 %vm2600_vm1, %v16923_v54 }
  0xff   : > { %15083 = vmatmul.mubr.msk.bf16.gmra.mrb[104].mxu0 %vm2600_vm1, %v16924_v55  ;;  %v16932_v55 = vld [vmem:[%s17602_s29 + $0x1e8] sm:$0xff]  }
 0x100   : > { %15086 = vmatprep.mubr.msk.bf16.mxu0 %vm2600_vm1, %v16925_v56 }
 0x102   : > { %v14980_v58 = vpop.f32.mrb[0].mxu0 }
 0x103   : > { %v3416_v59 = vadd.f32 %v14980_v58, %v17715_v57  ;;  %v3407_v60 = vpop.f32.mrb[1].mxu0 }
 0x104   : > { %v3408_v62 = vadd.f32 %v17715_v57, %v3407_v60  ;;  %v14981_v63 = vpop.f32.mrb[2].mxu0  ;;  %v16933_v60 = vld [vmem:[%s17602_s29 + $0x1f0] sm:$0xff]  }
 0x105   : > { %v5456_v1 = vmul.f32 0.1, %v3416_v59  ;;  %v3419_v2 = vadd.f32 %v14981_v63, %v17715_v57  ;;  %v3410_v3 = vpop.f32.mrb[3].mxu0 }
 0x106   : > { %v5454_v4 = vmul.f32 0.1, %v3408_v62  ;;  %v3411_v5 = vadd.f32 %v17715_v57, %v3410_v3 }
 0x107   : > { %v5457_v6 = vmul.f32 0.1, %v3419_v2  ;;  %15087 = vmatmul.mubr.msk.bf16.gmra.mrb[108].mxu0 %vm2600_vm1, %v16926_v61  ;;  %v5968_v8 = vmax.f32 %v3416_v59, %v5456_v1 }
 0x108   : > { %v5455_v7 = vmul.f32 0.1, %v3411_v5  ;;  %15090 = vmatprep.mubr.msk.bf16.mxu0 %vm2600_vm1, %v16927_v0  ;;  %v5966_v10 = vmax.f32 %v3408_v62, %v5454_v4 }
 0x109   : > { %v5969_v9 = vmax.f32 %v3419_v2, %v5457_v6 }
 0x10a   : > { %v5967_v11 = vmax.f32 %v3411_v5, %v5455_v7  ;;  %v14984_v12 = vpop.f32.mrb[4].mxu0 }
 0x10b   : > { %v17727_v13 = vpack.c.bf16 %v5969_v9, %v5968_v8  ;;  %v3432_v14 = vadd.f32 %v14984_v12, %v17715_v57  ;;  %v3423_v15 = vpop.f32.mrb[5].mxu0  ;;  %v16934_v12 = vld [vmem:[%s17602_s29 + $0x1f8] sm:$0xff]  }
 0x10c   : > { %v3424_v17 = vadd.f32 %v17715_v57, %v3423_v15  ;;  %v14985_v18 = vpop.f32.mrb[6].mxu0  ;;  %v17733_v20 = vpack.c.bf16 %v5967_v11, %v5966_v10 }
 0x10d   : > { %v5460_v21 = vmul.f32 0.1, %v3432_v14  ;;  %v3435_v22 = vadd.f32 %v14985_v18, %v17715_v57  ;;  %v3426_v23 = vpop.f32.mrb[7].mxu0 }
 0x10e   : > { %v5458_v24 = vmul.f32 0.1, %v3424_v17  ;;  %v3427_v25 = vadd.f32 %v17715_v57, %v3426_v23 }
 0x10f   : > { %v5461_v26 = vmul.f32 0.1, %v3435_v22  ;;  %15091 = vmatmul.mubr.msk.bf16.gmra.mrb[112].mxu0 %vm2600_vm1, %v16928_v16  ;;  %v5972_v28 = vmax.f32 %v3432_v14, %v5460_v21 }
 0x110   : > { %v5459_v27 = vmul.f32 0.1, %v3427_v25  ;;  %15094 = vmatprep.mubr.msk.bf16.mxu0 %vm2600_vm1, %v16929_v19  ;;  %v5970_v30 = vmax.f32 %v3424_v17, %v5458_v24  ;;  %v16935_v17 = vld [vmem:[%s17602_s29 + $0x200] sm:$0xff]  }
 0x111   : > { %v5973_v29 = vmax.f32 %v3435_v22, %v5461_v26 }
 0x112   : > { %v5971_v31 = vmax.f32 %v3427_v25, %v5459_v27  ;;  %v14988_v32 = vpop.f32.mrb[8].mxu0 }
 0x113   : > { %v3448_v33 = vadd.f32 %v14988_v32, %v17715_v57  ;;  %v3439_v34 = vpop.f32.mrb[9].mxu0  ;;  %v17741_v36 = vpack.c.bf16 %v5973_v29, %v5972_v28 }
 0x114   : > { %v3440_v37 = vadd.f32 %v17715_v57, %v3439_v34  ;;  %v14989_v38 = vpop.f32.mrb[10].mxu0  ;;  %v17745_v40 = vpack.c.bf16 %v5971_v31, %v5970_v30  ;;  %v16936_v34 = vld [vmem:[%s17602_s29 + $0x208] sm:$0xff]  }
 0x115   : > { %v5464_v41 = vmul.f32 0.1, %v3448_v33  ;;  %v3451_v42 = vadd.f32 %v14989_v38, %v17715_v57  ;;  %v3442_v43 = vpop.f32.mrb[11].mxu0 }
 0x116   : > { %v5462_v44 = vmul.f32 0.1, %v3440_v37  ;;  %v3443_v45 = vadd.f32 %v17715_v57, %v3442_v43 }
 0x117   : > { %v5465_v46 = vmul.f32 0.1, %v3451_v42  ;;  %15095 = vmatmul.mubr.msk.bf16.gmra.mrb[116].mxu0 %vm2600_vm1, %v16930_v35  ;;  %v5976_v48 = vmax.f32 %v3448_v33, %v5464_v41 }
 0x118   : > { %v5463_v47 = vmul.f32 0.1, %v3443_v45  ;;  %15098 = vmatprep.mubr.msk.bf16.mxu0 %vm2600_vm1, %v16931_v39  ;;  %v5974_v50 = vmax.f32 %v3440_v37, %v5462_v44  ;;  %v16937_v39 = vld [vmem:[%s17602_s29 + $0x210] sm:$0xff]  }
 0x119   : > { %v5977_v49 = vmax.f32 %v3451_v42, %v5465_v46 }
 0x11a   : > { %v5975_v51 = vmax.f32 %v3443_v45, %v5463_v47  ;;  %v14992_v52 = vpop.f32.mrb[12].mxu0 }
 0x11b   : > { %v3464_v53 = vadd.f32 %v14992_v52, %v17715_v57  ;;  %v3455_v54 = vpop.f32.mrb[13].mxu0  ;;  %v17753_v56 = vpack.c.bf16 %v5977_v49, %v5976_v48 }
 0x11c   : > { %v3456_v58 = vadd.f32 %v17715_v57, %v3455_v54  ;;  %v14993_v59 = vpop.f32.mrb[14].mxu0  ;;  %v17757_v61 = vpack.c.bf16 %v5975_v51, %v5974_v50 }
 0x11d   : > { %v5468_v62 = vmul.f32 0.1, %v3464_v53  ;;  %v3467_v63 = vadd.f32 %v14993_v59, %v17715_v57  ;;  %v3458_v0 = vpop.f32.mrb[15].mxu0 }
 0x11e   : > { %v5466_v1 = vmul.f32 0.1, %v3456_v58  ;;  %v3459_v2 = vadd.f32 %v17715_v57, %v3458_v0 }
 0x11f   : > { %v5469_v3 = vmul.f32 0.1, %v3467_v63  ;;  %15099 = vmatmul.mubr.msk.bf16.gmra.mrb[120].mxu0 %vm2600_vm1, %v16932_v55  ;;  %v5980_v5 = vmax.f32 %v3464_v53, %v5468_v62 }
 0x120   : > { %v5467_v4 = vmul.f32 0.1, %v3459_v2  ;;  %15102 = vmatprep.mubr.msk.bf16.mxu0 %vm2600_vm1, %v16933_v60  ;;  %v5978_v7 = vmax.f32 %v3456_v58, %v5466_v1  ;;  %v16938_v58 = vld [vmem:[%s17602_s29 + $0x218] sm:$0xff]  }
 0x121   : > { %v5981_v6 = vmax.f32 %v3467_v63, %v5469_v3  ;;  %v16939_v63 = vld [vmem:[%s17602_s29 + $0x220] sm:$0xff]  }
 0x122   : > { %v5979_v8 = vmax.f32 %v3459_v2, %v5467_v4  ;;  %v14996_v9 = vpop.f32.mrb[16].mxu0 }
 0x123   : > { %v3480_v10 = vadd.f32 %v14996_v9, %v17715_v57  ;;  %v3471_v11 = vpop.f32.mrb[17].mxu0  ;;  %v17765_v14 = vpack.c.bf16 %v5981_v6, %v5980_v5 }
 0x124   : > { %v3472_v15 = vadd.f32 %v17715_v57, %v3471_v11  ;;  %v14997_v16 = vpop.f32.mrb[18].mxu0  ;;  %v17769_v18 = vpack.c.bf16 %v5979_v8, %v5978_v7 }
 0x125   : > { %v5472_v19 = vmul.f32 0.1, %v3480_v10  ;;  %v3483_v21 = vadd.f32 %v14997_v16, %v17715_v57  ;;  %v3474_v22 = vpop.f32.mrb[19].mxu0 }
 0x126   : > { %v5470_v23 = vmul.f32 0.1, %v3472_v15  ;;  %v3475_v24 = vadd.f32 %v17715_v57, %v3474_v22 }
 0x127   : > { %v5473_v25 = vmul.f32 0.1, %v3483_v21  ;;  %15103 = vmatmul.mubr.msk.bf16.gmra.mrb[124].mxu0 %vm2600_vm1, %v16934_v12  ;;  %v5984_v27 = vmax.f32 %v3480_v10, %v5472_v19 }
 0x128   : > { %v5471_v26 = vmul.f32 0.1, %v3475_v24  ;;  %15106 = vmatprep.mubr.msk.bf16.mxu0 %vm2600_vm1, %v16935_v17  ;;  %v5982_v29 = vmax.f32 %v3472_v15, %v5470_v23  ;;  %v16940_v17 = vld [vmem:[%s17602_s29 + $0x228] sm:$0xff]   ;;  %v16941_v23 = vld [vmem:[%s17602_s29 + $0x230] sm:$0xff]  }
 0x129   : > { %v5985_v28 = vmax.f32 %v3483_v21, %v5473_v25 }
 0x12a   : > { %v5983_v30 = vmax.f32 %v3475_v24, %v5471_v26  ;;  %v15000_v31 = vpop.f32.mrb[20].mxu0 }
 0x12b   : > { %v3496_v32 = vadd.f32 %v15000_v31, %v17715_v57  ;;  %v3487_v33 = vpop.f32.mrb[21].mxu0  ;;  %v17777_v35 = vpack.c.bf16 %v5985_v28, %v5984_v27 }
 0x12c   : > { %v3488_v37 = vadd.f32 %v17715_v57, %v3487_v33  ;;  %v15001_v38 = vpop.f32.mrb[22].mxu0  ;;  %v17781_v41 = vpack.c.bf16 %v5983_v30, %v5982_v29 }
 0x12d   : > { %v5476_v42 = vmul.f32 0.1, %v3496_v32  ;;  %v3499_v43 = vadd.f32 %v15001_v38, %v17715_v57  ;;  %v3490_v44 = vpop.f32.mrb[23].mxu0 }
 0x12e   : > { %v5474_v45 = vmul.f32 0.1, %v3488_v37  ;;  %v3491_v46 = vadd.f32 %v17715_v57, %v3490_v44 }
 0x12f   : > { %v5477_v47 = vmul.f32 0.1, %v3499_v43  ;;  %15107 = vmatmul.mubr.msk.bf16.gmra.mrb[128].mxu0 %vm2600_vm1, %v16936_v34  ;;  %v5988_v49 = vmax.f32 %v3496_v32, %v5476_v42 }
 0x130   : > { %v5475_v48 = vmul.f32 0.1, %v3491_v46  ;;  %15110 = vmatprep.mubr.msk.bf16.mxu0 %vm2600_vm1, %v16937_v39  ;;  %v5986_v51 = vmax.f32 %v3488_v37, %v5474_v45 }
 0x131   : > { %v5989_v50 = vmax.f32 %v3499_v43, %v5477_v47  ;;  %v16942_v43 = vld [vmem:[%s17602_s29 + $0x238] sm:$0xff]   ;;  %v16943_v47 = vld [vmem:[%s17602_s29 + $0x240] sm:$0xff]  }
 0x132   : > { %v5987_v52 = vmax.f32 %v3491_v46, %v5475_v48  ;;  %v15004_v53 = vpop.f32.mrb[24].mxu0 }
 0x133   : > { %v3512_v54 = vadd.f32 %v15004_v53, %v17715_v57  ;;  %v3503_v55 = vpop.f32.mrb[25].mxu0  ;;  %v17789_v59 = vpack.c.bf16 %v5989_v50, %v5988_v49 }
 0x134   : > { %v3504_v60 = vadd.f32 %v17715_v57, %v3503_v55  ;;  %v15005_v62 = vpop.f32.mrb[26].mxu0  ;;  %v17793_v0 = vpack.c.bf16 %v5987_v52, %v5986_v51 }
 0x135   : > { %v5480_v1 = vmul.f32 0.1, %v3512_v54  ;;  %v3515_v2 = vadd.f32 %v15005_v62, %v17715_v57  ;;  %v3506_v3 = vpop.f32.mrb[27].mxu0 }
 0x136   : > { %v5478_v4 = vmul.f32 0.1, %v3504_v60  ;;  %v3507_v5 = vadd.f32 %v17715_v57, %v3506_v3 }
 0x137   : > { %v5481_v6 = vmul.f32 0.1, %v3515_v2  ;;  %15111 = vmatmul.mubr.msk.bf16.gmra.mrb[132].mxu0 %vm2600_vm1, %v16938_v58  ;;  %v5992_v8 = vmax.f32 %v3512_v54, %v5480_v1 }
 0x138   : > { %v5479_v7 = vmul.f32 0.1, %v3507_v5  ;;  %15114 = vmatprep.mubr.msk.bf16.mxu0 %vm2600_vm1, %v16939_v63  ;;  %v5990_v10 = vmax.f32 %v3504_v60, %v5478_v4  ;;  %v16944_v4 = vld [vmem:[%s17602_s29 + $0x248] sm:$0xff]  }
 0x139   : > { %v5993_v9 = vmax.f32 %v3515_v2, %v5481_v6 }
 0x13a   : > { %v5991_v11 = vmax.f32 %v3507_v5, %v5479_v7  ;;  %v15008_v12 = vpop.f32.mrb[28].mxu0 }
 0x13b   : > { %v3528_v15 = vadd.f32 %v15008_v12, %v17715_v57  ;;  %v3519_v16 = vpop.f32.mrb[29].mxu0  ;;  %v17801_v19 = vpack.c.bf16 %v5993_v9, %v5992_v8  ;;  %v16945_v8 = vld [vmem:[%s17602_s29 + $0x250] sm:$0xff]  }
 0x13c   : > { %v3520_v21 = vadd.f32 %v17715_v57, %v3519_v16  ;;  %v15009_v22 = vpop.f32.mrb[30].mxu0  ;;  %v17805_v24 = vpack.c.bf16 %v5991_v11, %v5990_v10 }
 0x13d   : > { %v5484_v25 = vmul.f32 0.1, %v3528_v15  ;;  %v3531_v26 = vadd.f32 %v15009_v22, %v17715_v57  ;;  %v3522_v27 = vpop.f32.mrb[31].mxu0 }
 0x13e   : > { %v5482_v28 = vmul.f32 0.1, %v3520_v21  ;;  %v3523_v29 = vadd.f32 %v17715_v57, %v3522_v27 }
 0x13f   : > { %v5485_v30 = vmul.f32 0.1, %v3531_v26  ;;  %15115 = vmatmul.mubr.msk.bf16.gmra.mrb[136].mxu0 %vm2600_vm1, %v16940_v17  ;;  %v5996_v32 = vmax.f32 %v3528_v15, %v5484_v25 }
 0x140   : > { %v5483_v31 = vmul.f32 0.1, %v3523_v29  ;;  %15118 = vmatprep.mubr.msk.bf16.mxu0 %vm2600_vm1, %v16941_v23  ;;  %v5994_v34 = vmax.f32 %v3520_v21, %v5482_v28 }
 0x141   : > { %v5997_v33 = vmax.f32 %v3531_v26, %v5485_v30  ;;  %v16946_v30 = vld [vmem:[%s17602_s29 + $0x258] sm:$0xff]  }
 0x142   : > { %v5995_v37 = vmax.f32 %v3523_v29, %v5483_v31  ;;  %v15012_v38 = vpop.f32.mrb[32].mxu0 }
 0x143   : > { %v3544_v39 = vadd.f32 %v15012_v38, %v17715_v57  ;;  %v3535_v42 = vpop.f32.mrb[33].mxu0  ;;  %v17813_v44 = vpack.c.bf16 %v5997_v33, %v5996_v32 }
 0x144   : > { %v3536_v45 = vadd.f32 %v17715_v57, %v3535_v42  ;;  %v15013_v46 = vpop.f32.mrb[34].mxu0  ;;  %v17817_v48 = vpack.c.bf16 %v5995_v37, %v5994_v34  ;;  %v16947_v34 = vld [vmem:[%s17602_s29 + $0x260] sm:$0xff]  }
 0x145   : > { %v5488_v49 = vmul.f32 0.1, %v3544_v39  ;;  %v3547_v50 = vadd.f32 %v15013_v46, %v17715_v57  ;;  %v3538_v51 = vpop.f32.mrb[35].mxu0 }
 0x146   : > { %v5486_v52 = vmul.f32 0.1, %v3536_v45  ;;  %v3539_v53 = vadd.f32 %v17715_v57, %v3538_v51 }
 0x147   : > { %v5489_v54 = vmul.f32 0.1, %v3547_v50  ;;  %15119 = vmatmul.mubr.msk.bf16.gmra.mrb[140].mxu0 %vm2600_vm1, %v16942_v43  ;;  %v6000_v58 = vmax.f32 %v3544_v39, %v5488_v49 }
 0x148   : > { %v5487_v55 = vmul.f32 0.1, %v3539_v53  ;;  %15122 = vmatprep.mubr.msk.bf16.mxu0 %vm2600_vm1, %v16943_v47  ;;  %v5998_v62 = vmax.f32 %v3536_v45, %v5486_v52 }
 0x149   : > { %v6001_v60 = vmax.f32 %v3547_v50, %v5489_v54 }
 0x14a   : > { %v5999_v63 = vmax.f32 %v3539_v53, %v5487_v55  ;;  %v15016_v1 = vpop.f32.mrb[36].mxu0 }
 0x14b   : > { %v3560_v2 = vadd.f32 %v15016_v1, %v17715_v57  ;;  %v3551_v3 = vpop.f32.mrb[37].mxu0  ;;  %v17825_v5 = vpack.c.bf16 %v6001_v60, %v6000_v58  ;;  %v16948_v58 = vld [vmem:[%s17602_s29 + $0x268] sm:$0xff]   ;;  %v16949_v1 = vld [vmem:[%s17602_s29 + $0x270] sm:$0xff]  }
 0x14c   : > { %v3552_v6 = vadd.f32 %v17715_v57, %v3551_v3  ;;  %v15017_v7 = vpop.f32.mrb[38].mxu0  ;;  %v17829_v9 = vpack.c.bf16 %v5999_v63, %v5998_v62 }
 0x14d   : > { %v5492_v10 = vmul.f32 0.1, %v3560_v2  ;;  %v3563_v11 = vadd.f32 %v15017_v7, %v17715_v57  ;;  %v3554_v12 = vpop.f32.mrb[39].mxu0 }
 0x14e   : > { %v5490_v15 = vmul.f32 0.1, %v3552_v6  ;;  %v3555_v16 = vadd.f32 %v17715_v57, %v3554_v12 }
 0x14f   : > { %v5493_v17 = vmul.f32 0.1, %v3563_v11  ;;  %15123 = vmatmul.mubr.msk.bf16.gmra.mrb[144].mxu0 %vm2600_vm1, %v16944_v4  ;;  %v6004_v22 = vmax.f32 %v3560_v2, %v5492_v10 }
 0x150   : > { %v5491_v21 = vmul.f32 0.1, %v3555_v16  ;;  %15126 = vmatprep.mubr.msk.bf16.mxu0 %vm2600_vm1, %v16945_v8  ;;  %v6002_v25 = vmax.f32 %v3552_v6, %v5490_v15 }
 0x151   : > { %v6005_v23 = vmax.f32 %v3563_v11, %v5493_v17 }
 0x152   : > { %v6003_v26 = vmax.f32 %v3555_v16, %v5491_v21  ;;  %v15020_v27 = vpop.f32.mrb[40].mxu0 }
 0x153   : > { %v3576_v28 = vadd.f32 %v15020_v27, %v17715_v57  ;;  %v3567_v29 = vpop.f32.mrb[41].mxu0  ;;  %v17837_v31 = vpack.c.bf16 %v6005_v23, %v6004_v22 }
 0x154   : > { %v3568_v32 = vadd.f32 %v17715_v57, %v3567_v29  ;;  %v15021_v33 = vpop.f32.mrb[42].mxu0  ;;  %v17841_v37 = vpack.c.bf16 %v6003_v26, %v6002_v25  ;;  %v16950_v25 = vld [vmem:[%s17602_s29 + $0x278] sm:$0xff]   ;;  %v16951_v29 = vld [vmem:[%s17602_s29 + $0x280] sm:$0xff]  }
 0x155   : > { %v5496_v38 = vmul.f32 0.1, %v3576_v28  ;;  %v3579_v39 = vadd.f32 %v15021_v33, %v17715_v57  ;;  %v3570_v42 = vpop.f32.mrb[43].mxu0 }
 0x156   : > { %v5494_v43 = vmul.f32 0.1, %v3568_v32  ;;  %v3571_v45 = vadd.f32 %v17715_v57, %v3570_v42 }
 0x157   : > { %v5497_v46 = vmul.f32 0.1, %v3579_v39  ;;  %15127 = vmatmul.mubr.msk.bf16.gmra.mrb[148].mxu0 %vm2600_vm1, %v16946_v30  ;;  %v6008_v49 = vmax.f32 %v3576_v28, %v5496_v38 }
 0x158   : > { %v5495_v47 = vmul.f32 0.1, %v3571_v45  ;;  %15130 = vmatprep.mubr.msk.bf16.mxu0 %vm2600_vm1, %v16947_v34  ;;  %v6006_v51 = vmax.f32 %v3568_v32, %v5494_v43 }
 0x159   : > { %v6009_v50 = vmax.f32 %v3579_v39, %v5497_v46 }
 0x15a   : > { %v6007_v52 = vmax.f32 %v3571_v45, %v5495_v47  ;;  %v15024_v53 = vpop.f32.mrb[44].mxu0 }
 0x15b   : > { %v3592_v54 = vadd.f32 %v15024_v53, %v17715_v57  ;;  %v3583_v55 = vpop.f32.mrb[45].mxu0  ;;  %v17849_v60 = vpack.c.bf16 %v6009_v50, %v6008_v49  ;;  %v16952_v53 = vld [vmem:[%s17602_s29 + $0x288] sm:$0xff]  }
 0x15c   : > { %v3584_v62 = vadd.f32 %v17715_v57, %v3583_v55  ;;  %v15025_v63 = vpop.f32.mrb[46].mxu0  ;;  %v17853_v2 = vpack.c.bf16 %v6007_v52, %v6006_v51 }
 0x15d   : > { %v5500_v3 = vmul.f32 0.1, %v3592_v54  ;;  %v3595_v4 = vadd.f32 %v15025_v63, %v17715_v57  ;;  %v3586_v6 = vpop.f32.mrb[47].mxu0 }
 0x15e   : > { %v5498_v7 = vmul.f32 0.1, %v3584_v62  ;;  %v3587_v8 = vadd.f32 %v17715_v57, %v3586_v6 }
 0x15f   : > { %v5501_v10 = vmul.f32 0.1, %v3595_v4  ;;  %15131 = vmatmul.mubr.msk.bf16.gmra.mrb[152].mxu0 %vm2600_vm1, %v16948_v58  ;;  %v6012_v12 = vmax.f32 %v3592_v54, %v5500_v3 }
 0x160   : > { %v5499_v11 = vmul.f32 0.1, %v3587_v8  ;;  %15134 = vmatprep.mubr.msk.bf16.mxu0 %vm2600_vm1, %v16949_v1  ;;  %v6010_v16 = vmax.f32 %v3584_v62, %v5498_v7  ;;  %v16953_v62 = vld [vmem:[%s17602_s29 + $0x290] sm:$0xff]  }
 0x161   : > { %v6013_v15 = vmax.f32 %v3595_v4, %v5501_v10 }
 0x162   : > { %v6011_v17 = vmax.f32 %v3587_v8, %v5499_v11  ;;  %v15028_v21 = vpop.f32.mrb[48].mxu0 }
 0x163   : > { %v3608_v22 = vadd.f32 %v15028_v21, %v17715_v57  ;;  %v3599_v23 = vpop.f32.mrb[49].mxu0  ;;  %v17861_v26 = vpack.c.bf16 %v6013_v15, %v6012_v12 }
 0x164   : > { %v3600_v27 = vadd.f32 %v17715_v57, %v3599_v23  ;;  %v15029_v28 = vpop.f32.mrb[50].mxu0  ;;  %v17865_v30 = vpack.c.bf16 %v6011_v17, %v6010_v16  ;;  %v16954_v23 = vld [vmem:[%s17602_s29 + $0x298] sm:$0xff]  }
 0x165   : > { %v5504_v32 = vmul.f32 0.1, %v3608_v22  ;;  %v3611_v33 = vadd.f32 %v15029_v28, %v17715_v57  ;;  %v3602_v34 = vpop.f32.mrb[51].mxu0 }
 0x166   : > { %v5502_v38 = vmul.f32 0.1, %v3600_v27  ;;  %v3603_v39 = vadd.f32 %v17715_v57, %v3602_v34 }
 0x167   : > { %v5505_v42 = vmul.f32 0.1, %v3611_v33  ;;  %15135 = vmatmul.mubr.msk.bf16.gmra.mrb[156].mxu0 %vm2600_vm1, %v16950_v25  ;;  %v6016_v45 = vmax.f32 %v3608_v22, %v5504_v32 }
 0x168   : > { %v5503_v43 = vmul.f32 0.1, %v3603_v39  ;;  %15138 = vmatprep.mubr.msk.bf16.mxu0 %vm2600_vm1, %v16951_v29  ;;  %v6014_v47 = vmax.f32 %v3600_v27, %v5502_v38  ;;  %v16955_v29 = vld [vmem:[%s17602_s29 + $0x2a0] sm:$0xff]  }
 0x169   : > { %v6017_v46 = vmax.f32 %v3611_v33, %v5505_v42 }
 0x16a   : > { %v6015_v49 = vmax.f32 %v3603_v39, %v5503_v43  ;;  %v15032_v50 = vpop.f32.mrb[52].mxu0 }
 0x16b   : > { %v3624_v51 = vadd.f32 %v15032_v50, %v17715_v57  ;;  %v3615_v52 = vpop.f32.mrb[53].mxu0  ;;  %v17873_v54 = vpack.c.bf16 %v6017_v46, %v6016_v45  ;;  %v16987_v45 = vld [vmem:[%s17602_s29 + $0x7e0] sm:$0xff]  }
 0x16c   : > { %v3616_v55 = vadd.f32 %v17715_v57, %v3615_v52  ;;  %v15033_v58 = vpop.f32.mrb[54].mxu0  ;;  %v17877_v63 = vpack.c.bf16 %v6015_v49, %v6014_v47  ;;  %v16988_v47 = vld [vmem:[%s17602_s29 + $0x7e8] sm:$0xff]   ;;  %15482 = vmatprep.mubr.msk.bf16.mxu1 %vm2600_vm1, %v16987_v45 }
 0x16d   : > { %v5508_v1 = vmul.f32 0.1, %v3624_v51  ;;  %v3627_v3 = vadd.f32 %v15033_v58, %v17715_v57  ;;  %v3618_v4 = vpop.f32.mrb[55].mxu0  ;;  %15483 = vmatmul.mubr.msk.bf16.vlgmr.msra.gmra.mrb[0].mxu1 %vm2600_vm1, %v16988_v47 }
 0x16e   : > { %v5506_v6 = vmul.f32 0.1, %v3616_v55  ;;  %v3619_v7 = vadd.f32 %v17715_v57, %v3618_v4 }
 0x16f   : > { %v5509_v8 = vmul.f32 0.1, %v3627_v3  ;;  %15139 = vmatmul.mubr.msk.bf16.gmra.mrb[160].mxu0 %vm2600_vm1, %v16952_v53  ;;  %v6020_v11 = vmax.f32 %v3624_v51, %v5508_v1 }
 0x170   : > { %v5507_v10 = vmul.f32 0.1, %v3619_v7  ;;  %15142 = vmatprep.mubr.msk.bf16.mxu0 %vm2600_vm1, %v16953_v62  ;;  %v6018_v15 = vmax.f32 %v3616_v55, %v5506_v6  ;;  %v16956_v62 = vld [vmem:[%s17602_s29 + $0x2a8] sm:$0xff]   ;;  %v16957_v6 = vld [vmem:[%s17602_s29 + $0x2b0] sm:$0xff]  }
 0x171   : > { %v6021_v12 = vmax.f32 %v3627_v3, %v5509_v8 }
 0x172   : > { %v6019_v16 = vmax.f32 %v3619_v7, %v5507_v10  ;;  %v15036_v17 = vpop.f32.mrb[56].mxu0 }
 0x173   : > { %v3640_v21 = vadd.f32 %v15036_v17, %v17715_v57  ;;  %v3631_v22 = vpop.f32.mrb[57].mxu0  ;;  %v17885_v25 = vpack.c.bf16 %v6021_v12, %v6020_v11  ;;  %v16991_v17 = vld [vmem:[%s17602_s29 + $0x7f0] sm:$0xff]  }
 0x174   : > { %v3632_v27 = vadd.f32 %v17715_v57, %v3631_v22  ;;  %v15037_v28 = vpop.f32.mrb[58].mxu0  ;;  %v17889_v32 = vpack.c.bf16 %v6019_v16, %v6018_v15  ;;  %v16992_v22 = vld [vmem:[%s17602_s29 + $0x7f8] sm:$0xff]   ;;  %15486 = vmatprep.mubr.msk.bf16.mxu1 %vm2600_vm1, %v16991_v17 }
 0x175   : > { %v5512_v33 = vmul.f32 0.1, %v3640_v21  ;;  %v3643_v34 = vadd.f32 %v15037_v28, %v17715_v57  ;;  %v3634_v38 = vpop.f32.mrb[59].mxu0  ;;  %15487 = vmatmul.mubr.msk.bf16.gmra.mrb[4].mxu1 %vm2600_vm1, %v16992_v22 }
 0x176   : > { %v5510_v39 = vmul.f32 0.1, %v3632_v27  ;;  %v3635_v42 = vadd.f32 %v17715_v57, %v3634_v38 }
 0x177   : > { %v5513_v43 = vmul.f32 0.1, %v3643_v34  ;;  %15143 = vmatmul.mubr.msk.bf16.gmra.mrb[164].mxu0 %vm2600_vm1, %v16954_v23  ;;  %v6024_v49 = vmax.f32 %v3640_v21, %v5512_v33 }
 0x178   : > { %v5511_v46 = vmul.f32 0.1, %v3635_v42  ;;  %15146 = vmatprep.mubr.msk.bf16.mxu0 %vm2600_vm1, %v16955_v29  ;;  %v6022_v51 = vmax.f32 %v3632_v27, %v5510_v39 }
 0x179   : > { %v6025_v50 = vmax.f32 %v3643_v34, %v5513_v43  ;;  %v13806_v34 = vld [vmem:[%s20684_s4 + $0x4] sm:$0xf] }
 0x17a   : > { %v6023_v52 = vmax.f32 %v3635_v42, %v5511_v46  ;;  %v15040_v53 = vpop.f32.mrb[60].mxu0  ;;  %v16958_v42 = vld [vmem:[%s17602_s29 + $0x2b8] sm:$0xff]   ;;  %16822 = vmatprep.subr.msk.bf16.mxu1 %vm6930_vm2, %v13806_v34  ;;  %v6932_v43 = vsel %vm6930_vm2, %v13806_v34, 0 }
 0x17b   : > { %v3656_v55 = vadd.f32 %v15040_v53, %v17715_v57  ;;  %v3647_v58 = vpop.f32.mrb[61].mxu0  ;;  %v17901_v1 = vpack.c.bf16 %v6025_v50, %v6024_v49  ;;  %v16959_v49 = vld [vmem:[%s17602_s29 + $0x2c0] sm:$0xff]   ;;  %15491 = vmatpush3.bf16.msra.mxu1 %v6932_v43 }
 0x17c   : > { %v3648_v3 = vadd.f32 %v17715_v57, %v3647_v58  ;;  %v15041_v4 = vpop.f32.mrb[62].mxu0  ;;  %v17905_v7 = vpack.c.bf16 %v6023_v52, %v6022_v51 }
 0x17d   : > { %v5516_v8 = vmul.f32 0.1, %v3656_v55  ;;  %v3659_v10 = vadd.f32 %v15041_v4, %v17715_v57  ;;  %v3650_v11 = vpop.f32.mrb[63].mxu0 }
 0x17e   : > { %v5514_v12 = vmul.f32 0.1, %v3648_v3  ;;  %v3651_v15 = vadd.f32 %v17715_v57, %v3650_v11 }
 0x17f   : > { %v5517_v16 = vmul.f32 0.1, %v3659_v10  ;;  %15147 = vmatmul.mubr.msk.bf16.gmra.mrb[168].mxu0 %vm2600_vm1, %v16956_v62  ;;  %v6028_v23 = vmax.f32 %v3656_v55, %v5516_v8 }
 0x180   : > { %v5515_v21 = vmul.f32 0.1, %v3651_v15  ;;  %15150 = vmatprep.mubr.msk.bf16.mxu0 %vm2600_vm1, %v16957_v6  ;;  %v6026_v28 = vmax.f32 %v3648_v3, %v5514_v12 }
 0x181   : > { %v6029_v27 = vmax.f32 %v3659_v10, %v5517_v16  ;;  %v16960_v16 = vld [vmem:[%s17602_s29 + $0x2c8] sm:$0xff]  }
 0x182   : > { %v6027_v29 = vmax.f32 %v3651_v15, %v5515_v21  ;;  %v15044_v33 = vpop.f32.mrb[64].mxu0 }
 0x183   : > { %v3672_v38 = vadd.f32 %v15044_v33, %v17715_v57  ;;  %v3663_v39 = vpop.f32.mrb[65].mxu0  ;;  %v17922_v45 = vpack.c.bf16 %v6029_v27, %v6028_v23  ;;  %v16961_v23 = vld [vmem:[%s17602_s29 + $0x2d0] sm:$0xff]  }
 0x184   : > { %v3664_v46 = vadd.f32 %v17715_v57, %v3663_v39  ;;  %v15045_v47 = vpop.f32.mrb[66].mxu0  ;;  %v17926_v50 = vpack.c.bf16 %v6027_v29, %v6026_v28 }
 0x185   : > { %v5520_v51 = vmul.f32 0.1, %v3672_v38  ;;  %v3675_v52 = vadd.f32 %v15045_v47, %v17715_v57  ;;  %v3666_v53 = vpop.f32.mrb[67].mxu0 }
 0x186   : > { %v5518_v55 = vmul.f32 0.1, %v3664_v46  ;;  %v3667_v58 = vadd.f32 %v17715_v57, %v3666_v53 }
 0x187   : > { %v5521_v62 = vmul.f32 0.1, %v3675_v52  ;;  %15151 = vmatmul.mubr.msk.bf16.gmra.mrb[172].mxu0 %vm2600_vm1, %v16958_v42  ;;  %v6032_v4 = vmax.f32 %v3672_v38, %v5520_v51 }
 0x188   : > { %v5519_v3 = vmul.f32 0.1, %v3667_v58  ;;  %15154 = vmatprep.mubr.msk.bf16.mxu0 %vm2600_vm1, %v16959_v49  ;;  %v6030_v8 = vmax.f32 %v3664_v46, %v5518_v55 }
 0x189   : > { %v6033_v6 = vmax.f32 %v3675_v52, %v5521_v62  ;;  %v17947_v52 = vld [vmem:[%s20684_s4] sm:$0xf] }
 0x18a   : > { %v6031_v10 = vmax.f32 %v3667_v58, %v5519_v3  ;;  %v15048_v11 = vpop.f32.mrb[68].mxu0  ;;  %v16962_v58 = vld [vmem:[%s17602_s29 + $0x2d8] sm:$0xff]   ;;  %16823 = vmatprep.subr.msk.bf16.mxu1 %vm6930_vm2, %v17947_v52 }
 0x18b   : > { %v3688_v12 = vadd.f32 %v15048_v11, %v17715_v57  ;;  %v3679_v15 = vpop.f32.mrb[69].mxu0  ;;  %v17934_v17 = vpack.c.bf16 %v6033_v6, %v6032_v4  ;;  %v16963_v6 = vld [vmem:[%s17602_s29 + $0x2e0] sm:$0xff]  }
 0x18c   : > { %v3680_v21 = vadd.f32 %v17715_v57, %v3679_v15  ;;  %v15049_v22 = vpop.f32.mrb[70].mxu0  ;;  %v17938_v27 = vpack.c.bf16 %v6031_v10, %v6030_v8 }
 0x18d   : > { %v5524_v28 = vmul.f32 0.1, %v3688_v12  ;;  %v3691_v29 = vadd.f32 %v15049_v22, %v17715_v57  ;;  %v3682_v33 = vpop.f32.mrb[71].mxu0 }
 0x18e   : > { %v5522_v34 = vmul.f32 0.1, %v3680_v21  ;;  %v3683_v38 = vadd.f32 %v17715_v57, %v3682_v33 }
 0x18f   : > { %v5525_v39 = vmul.f32 0.1, %v3691_v29  ;;  %15155 = vmatmul.mubr.msk.bf16.gmra.mrb[176].mxu0 %vm2600_vm1, %v16960_v16  ;;  %v6036_v43 = vmax.f32 %v3688_v12, %v5524_v28 }
 0x190   : > { %v5523_v42 = vmul.f32 0.1, %v3683_v38  ;;  %15158 = vmatprep.mubr.msk.bf16.mxu0 %vm2600_vm1, %v16961_v23  ;;  %v6034_v47 = vmax.f32 %v3680_v21, %v5522_v34 }
 0x191   : > { %v6037_v46 = vmax.f32 %v3691_v29, %v5525_v39 }
 0x192   : > { %v6035_v49 = vmax.f32 %v3683_v38, %v5523_v42  ;;  %v15052_v51 = vpop.f32.mrb[72].mxu0  ;;  %v16964_v42 = vld [vmem:[%s17602_s29 + $0x2e8] sm:$0xff]  }
 0x193   : > { %v3704_v53 = vadd.f32 %v15052_v51, %v17715_v57  ;;  %v3695_v55 = vpop.f32.mrb[73].mxu0  ;;  %v17953_v62 = vpack.c.bf16 %v6037_v46, %v6036_v43 }
 0x194   : > { %v3696_v3 = vadd.f32 %v17715_v57, %v3695_v55  ;;  %v15053_v4 = vpop.f32.mrb[74].mxu0  ;;  %v17957_v8 = vpack.c.bf16 %v6035_v49, %v6034_v47  ;;  %v16965_v49 = vld [vmem:[%s17602_s29 + $0x2f0] sm:$0xff]  }
 0x195   : > { %20685 = vst [vmem:[#allocation8_spill] sm:$0xff] %v17953_v62  ;;  %v5528_v10 = vmul.f32 0.1, %v3704_v53  ;;  %v3707_v11 = vadd.f32 %v15053_v4, %v17715_v57  ;;  %v3698_v12 = vpop.f32.mrb[75].mxu0 }
 0x196   : > { %20686 = vst [vmem:[#allocation9_spill] sm:$0xff] %v17957_v8  ;;  %v5526_v15 = vmul.f32 0.1, %v3696_v3  ;;  %v3699_v16 = vadd.f32 %v17715_v57, %v3698_v12 }
 0x197   : > { %v5529_v21 = vmul.f32 0.1, %v3707_v11  ;;  %15159 = vmatmul.mubr.msk.bf16.gmra.mrb[180].mxu0 %vm2600_vm1, %v16962_v58  ;;  %v6040_v23 = vmax.f32 %v3704_v53, %v5528_v10 }
 0x198   : > { %v5527_v22 = vmul.f32 0.1, %v3699_v16  ;;  %15162 = vmatprep.mubr.msk.bf16.mxu0 %vm2600_vm1, %v16963_v6  ;;  %v6038_v29 = vmax.f32 %v3696_v3, %v5526_v15 }
 0x199   : > { %v6041_v28 = vmax.f32 %v3707_v11, %v5529_v21 }
 0x19a   : > { %v6039_v33 = vmax.f32 %v3699_v16, %v5527_v22  ;;  %v15056_v34 = vpop.f32.mrb[76].mxu0 }
 0x19b   : > { %v3720_v38 = vadd.f32 %v15056_v34, %v17715_v57  ;;  %v3711_v39 = vpop.f32.mrb[77].mxu0  ;;  %v17965_v43 = vpack.c.bf16 %v6041_v28, %v6040_v23  ;;  %v16966_v28 = vld [vmem:[%s17602_s29 + $0x2f8] sm:$0xff]  }
 0x19c   : > { %v3712_v46 = vadd.f32 %v17715_v57, %v3711_v39  ;;  %v15057_v47 = vpop.f32.mrb[78].mxu0  ;;  %v17969_v51 = vpack.c.bf16 %v6039_v33, %v6038_v29  ;;  %v16967_v39 = vld [vmem:[%s17602_s29 + $0x300] sm:$0xff]  }
 0x19d   : > { %20687 = vst [vmem:[#allocation10_spill] sm:$0xff] %v17965_v43  ;;  %v5532_v55 = vmul.f32 0.1, %v3720_v38  ;;  %v3723_v53 = vadd.f32 %v15057_v47, %v17715_v57  ;;  %v3714_v58 = vpop.f32.mrb[79].mxu0 }
 0x19e   : > { %20688 = vst [vmem:[#allocation11_spill] sm:$0xff] %v17969_v51  ;;  %v5530_v3 = vmul.f32 0.1, %v3712_v46  ;;  %v3715_v4 = vadd.f32 %v17715_v57, %v3714_v58 }
 0x19f   : > { %v5533_v6 = vmul.f32 0.1, %v3723_v53  ;;  %15163 = vmatmul.mubr.msk.bf16.gmra.mrb[184].mxu0 %vm2600_vm1, %v16964_v42  ;;  %v6044_v11 = vmax.f32 %v3720_v38, %v5532_v55 }
 0x1a0   : > { %v5531_v10 = vmul.f32 0.1, %v3715_v4  ;;  %15166 = vmatprep.mubr.msk.bf16.mxu0 %vm2600_vm1, %v16965_v49  ;;  %v6042_v15 = vmax.f32 %v3712_v46, %v5530_v3 }
 0x1a1   : > { %v6045_v12 = vmax.f32 %v3723_v53, %v5533_v6 }
 0x1a2   : > { %v6043_v16 = vmax.f32 %v3715_v4, %v5531_v10  ;;  %v15060_v21 = vpop.f32.mrb[80].mxu0 }
 0x1a3   : > { %v3736_v22 = vadd.f32 %v15060_v21, %v17715_v57  ;;  %v3727_v23 = vpop.f32.mrb[81].mxu0  ;;  %v17977_v29 = vpack.c.bf16 %v6045_v12, %v6044_v11  ;;  %v17990_v12 = vld [vmem:[%s20683_s10] ss:$0 sm:$0xff] }
 0x1a4   : > { %v3728_v33 = vadd.f32 %v17715_v57, %v3727_v23  ;;  %v15061_v34 = vpop.f32.mrb[82].mxu0  ;;  %v17981_v47 = vpack.c.bf16 %v6043_v16, %v6042_v15  ;;  %v16968_v16 = vld [vmem:[%s17602_s29 + $0x308] sm:$0xff]  }
 0x1a5   : > { %20689 = vst [vmem:[#allocation12_spill] sm:$0xff] %v17977_v29  ;;  %v5536_v42 = vmul.f32 0.1, %v3736_v22  ;;  %v3739_v49 = vadd.f32 %v15061_v34, %v17715_v57  ;;  %v3730_v38 = vpop.f32.mrb[83].mxu0  ;;  %v16969_v34 = vld [vmem:[%s17602_s29 + $0x310] sm:$0xff]  }
 0x1a6   : > { %20690 = vst [vmem:[#allocation13_spill] sm:$0xff] %v17981_v47  ;;  %v5534_v46 = vmul.f32 0.1, %v3728_v33  ;;  %v3731_v55 = vadd.f32 %v17715_v57, %v3730_v38 }
 0x1a7   : > { %v5537_v53 = vmul.f32 0.1, %v3739_v49  ;;  %15167 = vmatmul.mubr.msk.bf16.gmra.mrb[188].mxu0 %vm2600_vm1, %v16966_v28  ;;  %v6048_v3 = vmax.f32 %v3736_v22, %v5536_v42 }
 0x1a8   : > { %v5535_v58 = vmul.f32 0.1, %v3731_v55  ;;  %15170 = vmatprep.mubr.msk.bf16.mxu0 %vm2600_vm1, %v16967_v39  ;;  %v6046_v6 = vmax.f32 %v3728_v33, %v5534_v46 }
 0x1a9   : > { %v6049_v4 = vmax.f32 %v3739_v49, %v5537_v53 }
 0x1aa   : > { %v6047_v10 = vmax.f32 %v3731_v55, %v5535_v58  ;;  %v15064_v11 = vpop.f32.mrb[84].mxu0 }
 0x1ab   : > { %v3752_v15 = vadd.f32 %v17990_v12, %v15064_v11  ;;  %v3743_v57 = vpop.f32.mrb[85].mxu0  ;;  %v17994_v21 = vpack.c.bf16 %v6049_v4, %v6048_v3 }
 0x1ac   : > { %v3744_v23 = vadd.f32 %v17990_v12, %v3743_v57  ;;  %v15065_v28 = vpop.f32.mrb[86].mxu0  ;;  %v17998_v22 = vpack.c.bf16 %v6047_v10, %v6046_v6  ;;  %v16970_v57 = vld [vmem:[%s17602_s29 + $0x318] sm:$0xff]  }
 0x1ad   : > { %20691 = vst [vmem:[#allocation14_spill] sm:$0xff] %v17994_v21  ;;  %v5540_v33 = vmul.f32 0.1, %v3752_v15  ;;  %v3755_v39 = vadd.f32 %v17990_v12, %v15065_v28  ;;  %v3746_v42 = vpop.f32.mrb[87].mxu0 }
 0x1ae   : > { %20692 = vst [vmem:[#allocation15_spill] sm:$0xff] %v17998_v22  ;;  %v5538_v49 = vmul.f32 0.1, %v3744_v23  ;;  %v3747_v38 = vadd.f32 %v17990_v12, %v3746_v42  ;;  %v16971_v22 = vld [vmem:[%s17602_s29 + $0x320] sm:$0xff]  }
 0x1af   : > { %v5541_v46 = vmul.f32 0.1, %v3755_v39  ;;  %15171 = vmatmul.mubr.msk.bf16.gmra.mrb[192].mxu0 %vm2600_vm1, %v16968_v16  ;;  %v6052_v53 = vmax.f32 %v3752_v15, %v5540_v33 }
 0x1b0   : > { %v5539_v55 = vmul.f32 0.1, %v3747_v38  ;;  %15174 = vmatprep.mubr.msk.bf16.mxu0 %vm2600_vm1, %v16969_v34  ;;  %v6050_v3 = vmax.f32 %v3744_v23, %v5538_v49 }
 0x1b1   : > { %v6053_v58 = vmax.f32 %v3755_v39, %v5541_v46 }
 0x1b2   : > { %v6051_v4 = vmax.f32 %v3747_v38, %v5539_v55  ;;  %v15068_v6 = vpop.f32.mrb[88].mxu0 }
 0x1b3   : > { %v3768_v10 = vadd.f32 %v17990_v12, %v15068_v6  ;;  %v3759_v11 = vpop.f32.mrb[89].mxu0  ;;  %v18006_v28 = vpack.c.bf16 %v6053_v58, %v6052_v53 }
 0x1b4   : > { %v3760_v42 = vadd.f32 %v17990_v12, %v3759_v11  ;;  %v15069_v21 = vpop.f32.mrb[90].mxu0  ;;  %v18010_v29 = vpack.c.bf16 %v6051_v4, %v6050_v3 }
 0x1b5   : > { %20693 = vst [vmem:[#allocation16_spill] sm:$0xff] %v18006_v28  ;;  %v5544_v16 = vmul.f32 0.1, %v3768_v10  ;;  %v3771_v15 = vadd.f32 %v17990_v12, %v15069_v21  ;;  %v3762_v34 = vpop.f32.mrb[91].mxu0  ;;  %v16972_v21 = vld [vmem:[%s17602_s29 + $0x328] sm:$0xff]   ;;  %v16973_v28 = vld [vmem:[%s17602_s29 + $0x330] sm:$0xff]  }
 0x1b6   : > { %20694 = vst [vmem:[#allocation17_spill] sm:$0xff] %v18010_v29  ;;  %v5542_v23 = vmul.f32 0.1, %v3760_v42  ;;  %v3763_v33 = vadd.f32 %v17990_v12, %v3762_v34 }
 0x1b7   : > { %v5545_v39 = vmul.f32 0.1, %v3771_v15  ;;  %15175 = vmatmul.mubr.msk.bf16.gmra.mrb[196].mxu0 %vm2600_vm1, %v16970_v57  ;;  %v6056_v38 = vmax.f32 %v3768_v10, %v5544_v16 }
 0x1b8   : > { %v5543_v49 = vmul.f32 0.1, %v3763_v33  ;;  %15178 = vmatprep.mubr.msk.bf16.mxu0 %vm2600_vm1, %v16971_v22  ;;  %v6054_v55 = vmax.f32 %v3760_v42, %v5542_v23 }
 0x1b9   : > { %v6057_v46 = vmax.f32 %v3771_v15, %v5545_v39 }
 0x1ba   : > { %v6055_v53 = vmax.f32 %v3763_v33, %v5543_v49  ;;  %v15072_v58 = vpop.f32.mrb[92].mxu0 }
 0x1bb   : > { %v3784_v3 = vadd.f32 %v17990_v12, %v15072_v58  ;;  %v3775_v4 = vpop.f32.mrb[93].mxu0  ;;  %v18018_v6 = vpack.c.bf16 %v6057_v46, %v6056_v38 }
 0x1bc   : > { %v3776_v11 = vadd.f32 %v17990_v12, %v3775_v4  ;;  %v15073_v34 = vpop.f32.mrb[94].mxu0  ;;  %v18022_v29 = vpack.c.bf16 %v6055_v53, %v6054_v55  ;;  %v17003_v55 = vld [vmem:[%s20697_s0 + $0x8] sm:$0xff]   ;;  %v16974_v4 = vld [vmem:[%s17602_s29 + $0x338] sm:$0xff]  }
 0x1bd   : > { %20695 = vst [vmem:[#allocation18_spill] sm:$0xff] %v18018_v6  ;;  %v5548_v57 = vmul.f32 0.1, %v3784_v3  ;;  %v3787_v22 = vadd.f32 %v17990_v12, %v15073_v34  ;;  %v3778_v10 = vpop.f32.mrb[95].mxu0  ;;  %v16975_v6 = vld [vmem:[%s17602_s29 + $0x340] sm:$0xff]   ;;  %16010 = vmatprep.subr.bf16.mxu0 %v17003_v55 }
 0x1be   : > { %20696 = vst [vmem:[#allocation19_spill] sm:$0xff] %v18022_v29  ;;  %v5546_v42 = vmul.f32 0.1, %v3776_v11  ;;  %v3779_v16 = vadd.f32 %v17990_v12, %v3778_v10  ;;  %16011 = vmatpush3.bf16.msra.mxu0 %v17003_v55 }
 0x1bf   : > { %v5549_v15 = vmul.f32 0.1, %v3787_v22  ;;  %15179 = vmatmul.mubr.msk.bf16.gmra.mrb[200].mxu0 %vm2600_vm1, %v16972_v21  ;;  %v6060_v33 = vmax.f32 %v3784_v3, %v5548_v57 }
 0x1c0   : > { %v5547_v23 = vmul.f32 0.1, %v3779_v16  ;;  %15182 = vmatprep.mubr.msk.bf16.mxu0 %vm2600_vm1, %v16973_v28  ;;  %v6058_v49 = vmax.f32 %v3776_v11, %v5546_v42 }
 0x1c1   : > { %v6061_v39 = vmax.f32 %v3787_v22, %v5549_v15 }
 0x1c2   : > { %v6059_v38 = vmax.f32 %v3779_v16, %v5547_v23  ;;  %v15076_v46 = vpop.f32.mrb[96].mxu0 }
 0x1c3   : > { %v3800_v53 = vadd.f32 %v17990_v12, %v15076_v46  ;;  %v3791_v58 = vpop.f32.mrb[97].mxu0  ;;  %v18033_v34 = vpack.c.bf16 %v6061_v39, %v6060_v33 }
 0x1c4   : > { %v3792_v21 = vadd.f32 %v17990_v12, %v3791_v58  ;;  %v15077_v10 = vpop.f32.mrb[98].mxu0  ;;  %v18037_v28 = vpack.c.bf16 %v6059_v38, %v6058_v49 }
 0x1c5   : > { %20698 = vst [vmem:[#allocation20_spill] sm:$0xff] %v18033_v34  ;;  %v5552_v3 = vmul.f32 0.1, %v3800_v53  ;;  %v3803_v11 = vadd.f32 %v17990_v12, %v15077_v10  ;;  %v3794_v57 = vpop.f32.mrb[99].mxu0  ;;  %v16976_v10 = vld [vmem:[%s17602_s29 + $0x348] sm:$0xff]  }
 0x1c6   : > { %20699 = vst [vmem:[#allocation21_spill] sm:$0xff] %v18037_v28  ;;  %v5550_v22 = vmul.f32 0.1, %v3792_v21  ;;  %v3795_v42 = vadd.f32 %v17990_v12, %v3794_v57  ;;  %v16977_v28 = vld [vmem:[%s17602_s29 + $0x350] sm:$0xff]  }
 0x1c7   : > { %v5553_v16 = vmul.f32 0.1, %v3803_v11  ;;  %15183 = vmatmul.mubr.msk.bf16.gmra.mrb[204].mxu0 %vm2600_vm1, %v16974_v4  ;;  %v6064_v23 = vmax.f32 %v3800_v53, %v5552_v3 }
 0x1c8   : > { %v5551_v15 = vmul.f32 0.1, %v3795_v42  ;;  %15186 = vmatprep.mubr.msk.bf16.mxu0 %vm2600_vm1, %v16975_v6  ;;  %v6062_v39 = vmax.f32 %v3792_v21, %v5550_v22 }
 0x1c9   : > { %v6065_v33 = vmax.f32 %v3803_v11, %v5553_v16 }
 0x1ca   : > { %v6063_v49 = vmax.f32 %v3795_v42, %v5551_v15  ;;  %v15080_v38 = vpop.f32.mrb[100].mxu0 }
 0x1cb   : > { %v3816_v46 = vadd.f32 %v17990_v12, %v15080_v38  ;;  %v3807_v58 = vpop.f32.mrb[101].mxu0  ;;  %v18045_v55 = vpack.c.bf16 %v6065_v33, %v6064_v23 }
 0x1cc   : > { %v3808_v57 = vadd.f32 %v17990_v12, %v3807_v58  ;;  %v15081_v34 = vpop.f32.mrb[102].mxu0  ;;  %v18049_v29 = vpack.c.bf16 %v6063_v49, %v6062_v39 }
 0x1cd   : > { %20700 = vst [vmem:[#allocation22_spill] sm:$0xff] %v18045_v55  ;;  %v5556_v4 = vmul.f32 0.1, %v3816_v46  ;;  %v3819_v6 = vadd.f32 %v17990_v12, %v15081_v34  ;;  %v3810_v53 = vpop.f32.mrb[103].mxu0  ;;  %v16978_v34 = vld [vmem:[%s17602_s29 + $0x358] sm:$0xff]   ;;  %v16979_v55 = vld [vmem:[%s17602_s29 + $0x360] sm:$0xff]  }
 0x1ce   : > { %20701 = vst [vmem:[#allocation23_spill] sm:$0xff] %v18049_v29  ;;  %v5554_v21 = vmul.f32 0.1, %v3808_v57  ;;  %v3811_v3 = vadd.f32 %v17990_v12, %v3810_v53 }
 0x1cf   : > { %v5557_v11 = vmul.f32 0.1, %v3819_v6  ;;  %15187 = vmatmul.mubr.msk.bf16.gmra.mrb[208].mxu0 %vm2600_vm1, %v16976_v10  ;;  %v6068_v42 = vmax.f32 %v3816_v46, %v5556_v4 }
 0x1d0   : > { %v5555_v22 = vmul.f32 0.1, %v3811_v3  ;;  %15190 = vmatprep.mubr.msk.bf16.mxu0 %vm2600_vm1, %v16977_v28  ;;  %v6066_v15 = vmax.f32 %v3808_v57, %v5554_v21 }
 0x1d1   : > { %v6069_v16 = vmax.f32 %v3819_v6, %v5557_v11 }
 0x1d2   : > { %v6067_v23 = vmax.f32 %v3811_v3, %v5555_v22  ;;  %v15084_v33 = vpop.f32.mrb[104].mxu0 }
 0x1d3   : > { %v3832_v39 = vadd.f32 %v17990_v12, %v15084_v33  ;;  %v3823_v49 = vpop.f32.mrb[105].mxu0  ;;  %v18057_v38 = vpack.c.bf16 %v6069_v16, %v6068_v42  ;;  %v16980_v33 = vld [vmem:[%s17602_s29 + $0x368] sm:$0xff]  }
 0x1d4   : > { %v3824_v58 = vadd.f32 %v17990_v12, %v3823_v49  ;;  %v15085_v53 = vpop.f32.mrb[106].mxu0  ;;  %v18061_v29 = vpack.c.bf16 %v6067_v23, %v6066_v15 }
 0x1d5   : > { %20702 = vst [vmem:[#allocation24_spill] sm:$0xff] %v18057_v38  ;;  %v5560_v10 = vmul.f32 0.1, %v3832_v39  ;;  %v3835_v28 = vadd.f32 %v17990_v12, %v15085_v53  ;;  %v3826_v46 = vpop.f32.mrb[107].mxu0  ;;  %v16981_v38 = vld [vmem:[%s17602_s29 + $0x370] sm:$0xff]  }
 0x1d6   : > { %20703 = vst [vmem:[#allocation25_spill] sm:$0xff] %v18061_v29  ;;  %v5558_v57 = vmul.f32 0.1, %v3824_v58  ;;  %v3827_v4 = vadd.f32 %v17990_v12, %v3826_v46 }
 0x1d7   : > { %v5561_v6 = vmul.f32 0.1, %v3835_v28  ;;  %15191 = vmatmul.mubr.msk.bf16.gmra.mrb[212].mxu0 %vm2600_vm1, %v16978_v34  ;;  %v6072_v3 = vmax.f32 %v3832_v39, %v5560_v10 }
 0x1d8   : > { %v5559_v21 = vmul.f32 0.1, %v3827_v4  ;;  %15194 = vmatprep.mubr.msk.bf16.mxu0 %vm2600_vm1, %v16979_v55  ;;  %v6070_v22 = vmax.f32 %v3824_v58, %v5558_v57 }
 0x1d9   : > { %v6073_v11 = vmax.f32 %v3835_v28, %v5561_v6 }
 0x1da   : > { %v6071_v42 = vmax.f32 %v3827_v4, %v5559_v21  ;;  %v15088_v16 = vpop.f32.mrb[108].mxu0 }
 0x1db   : > { %v3848_v15 = vadd.f32 %v17990_v12, %v15088_v16  ;;  %v3839_v23 = vpop.f32.mrb[109].mxu0  ;;  %v18069_v49 = vpack.c.bf16 %v6073_v11, %v6072_v3  ;;  %v16982_v16 = vld [vmem:[%s17602_s29 + $0x378] sm:$0xff]  }
 0x1dc   : > { %v3840_v53 = vadd.f32 %v17990_v12, %v3839_v23  ;;  %v15089_v46 = vpop.f32.mrb[110].mxu0  ;;  %v18073_v29 = vpack.c.bf16 %v6071_v42, %v6070_v22 }
 0x1dd   : > { %20704 = vst [vmem:[#allocation26_spill] sm:$0xff] %v18069_v49  ;;  %v5564_v34 = vmul.f32 0.1, %v3848_v15  ;;  %v3851_v55 = vadd.f32 %v17990_v12, %v15089_v46  ;;  %v3842_v39 = vpop.f32.mrb[111].mxu0  ;;  %v16983_v49 = vld [vmem:[%s17602_s29 + $0x380] sm:$0xff]  }
 0x1de   : > { %20705 = vst [vmem:[#allocation27_spill] sm:$0xff] %v18073_v29  ;;  %v5562_v58 = vmul.f32 0.1, %v3840_v53  ;;  %v3843_v10 = vadd.f32 %v17990_v12, %v3842_v39 }
 0x1df   : > { %v5565_v28 = vmul.f32 0.1, %v3851_v55  ;;  %15195 = vmatmul.mubr.msk.bf16.gmra.mrb[216].mxu0 %vm2600_vm1, %v16980_v33  ;;  %v6076_v4 = vmax.f32 %v3848_v15, %v5564_v34 }
 0x1e0   : > { %v5563_v57 = vmul.f32 0.1, %v3843_v10  ;;  %15198 = vmatprep.mubr.msk.bf16.mxu0 %vm2600_vm1, %v16981_v38  ;;  %v6074_v21 = vmax.f32 %v3840_v53, %v5562_v58 }
 0x1e1   : > { %v6077_v6 = vmax.f32 %v3851_v55, %v5565_v28 }
 0x1e2   : > { %v6075_v3 = vmax.f32 %v3843_v10, %v5563_v57  ;;  %v15092_v11 = vpop.f32.mrb[112].mxu0 }
 0x1e3   : > { %v3864_v22 = vadd.f32 %v17990_v12, %v15092_v11  ;;  %v3855_v42 = vpop.f32.mrb[113].mxu0  ;;  %v18081_v23 = vpack.c.bf16 %v6077_v6, %v6076_v4  ;;  %v16984_v11 = vld [vmem:[%s17602_s29 + $0x388] sm:$0xff]  }
 0x1e4   : > { %v3856_v46 = vadd.f32 %v17990_v12, %v3855_v42  ;;  %v15093_v39 = vpop.f32.mrb[114].mxu0  ;;  %v18085_v29 = vpack.c.bf16 %v6075_v3, %v6074_v21 }
 0x1e5   : > { %20706 = vst [vmem:[#allocation28_spill] sm:$0xff] %v18081_v23  ;;  %v5568_v33 = vmul.f32 0.1, %v3864_v22  ;;  %v3867_v38 = vadd.f32 %v17990_v12, %v15093_v39  ;;  %v3858_v15 = vpop.f32.mrb[115].mxu0  ;;  %v16985_v23 = vld [vmem:[%s17602_s29 + $0x390] sm:$0xff]  }
 0x1e6   : > { %20707 = vst [vmem:[#allocation29_spill] sm:$0xff] %v18085_v29  ;;  %v5566_v53 = vmul.f32 0.1, %v3856_v46  ;;  %v3859_v34 = vadd.f32 %v17990_v12, %v3858_v15 }
 0x1e7   : > { %v5569_v55 = vmul.f32 0.1, %v3867_v38  ;;  %15199 = vmatmul.mubr.msk.bf16.gmra.mrb[220].mxu0 %vm2600_vm1, %v16982_v16  ;;  %v6080_v10 = vmax.f32 %v3864_v22, %v5568_v33 }
 0x1e8   : > { %v5567_v58 = vmul.f32 0.1, %v3859_v34  ;;  %15202 = vmatprep.mubr.msk.bf16.mxu0 %vm2600_vm1, %v16983_v49  ;;  %v6078_v57 = vmax.f32 %v3856_v46, %v5566_v53 }
 0x1e9   : > { %v6081_v28 = vmax.f32 %v3867_v38, %v5569_v55 }
 0x1ea   : > { %v6079_v4 = vmax.f32 %v3859_v34, %v5567_v58  ;;  %v15096_v6 = vpop.f32.mrb[116].mxu0 }
 0x1eb   : > { %v3880_v21 = vadd.f32 %v17990_v12, %v15096_v6  ;;  %v3871_v3 = vpop.f32.mrb[117].mxu0  ;;  %v18093_v42 = vpack.c.bf16 %v6081_v28, %v6080_v10  ;;  %v16986_v6 = vld [vmem:[%s17602_s29 + $0x398] sm:$0xff]  }
 0x1ec   : > { %v3872_v39 = vadd.f32 %v17990_v12, %v3871_v3  ;;  %v15097_v15 = vpop.f32.mrb[118].mxu0  ;;  %v18097_v29 = vpack.c.bf16 %v6079_v4, %v6078_v57 }
 0x1ed   : > { %20708 = vst [vmem:[#allocation30_spill] sm:$0xff] %v18093_v42  ;;  %v5572_v16 = vmul.f32 0.1, %v3880_v21  ;;  %v3883_v49 = vadd.f32 %v17990_v12, %v15097_v15  ;;  %v3874_v22 = vpop.f32.mrb[119].mxu0  ;;  %v16989_v42 = vld [vmem:[%s17602_s29 + $0x3a0] sm:$0xff]  }
 0x1ee   : > { %20709 = vst [vmem:[#allocation31_spill] sm:$0xff] %v18097_v29  ;;  %v5570_v46 = vmul.f32 0.1, %v3872_v39  ;;  %v3875_v33 = vadd.f32 %v17990_v12, %v3874_v22 }
 0x1ef   : > { %v5573_v38 = vmul.f32 0.1, %v3883_v49  ;;  %15203 = vmatmul.mubr.msk.bf16.gmra.mrb[224].mxu0 %vm2600_vm1, %v16984_v11  ;;  %v6084_v34 = vmax.f32 %v3880_v21, %v5572_v16 }
 0x1f0   : > { %v5571_v53 = vmul.f32 0.1, %v3875_v33  ;;  %15206 = vmatprep.mubr.msk.bf16.mxu0 %vm2600_vm1, %v16985_v23  ;;  %v6082_v58 = vmax.f32 %v3872_v39, %v5570_v46 }
 0x1f1   : > { %v6085_v55 = vmax.f32 %v3883_v49, %v5573_v38 }
 0x1f2   : > { %v6083_v10 = vmax.f32 %v3875_v33, %v5571_v53  ;;  %v15100_v28 = vpop.f32.mrb[120].mxu0 }
 0x1f3   : > { %v3896_v57 = vadd.f32 %v17990_v12, %v15100_v28  ;;  %v3887_v4 = vpop.f32.mrb[121].mxu0  ;;  %v18105_v3 = vpack.c.bf16 %v6085_v55, %v6084_v34  ;;  %v16990_v28 = vld [vmem:[%s17602_s29 + $0x3a8] sm:$0xff]  }
 0x1f4   : > { %v3888_v15 = vadd.f32 %v17990_v12, %v3887_v4  ;;  %v15101_v22 = vpop.f32.mrb[122].mxu0  ;;  %v18109_v29 = vpack.c.bf16 %v6083_v10, %v6082_v58 }
 0x1f5   : > { %20710 = vst [vmem:[#allocation32_spill] sm:$0xff] %v18105_v3  ;;  %v5576_v11 = vmul.f32 0.1, %v3896_v57  ;;  %v3899_v23 = vadd.f32 %v17990_v12, %v15101_v22  ;;  %v3890_v21 = vpop.f32.mrb[123].mxu0  ;;  %v16993_v3 = vld [vmem:[%s17602_s29 + $0x3b0] sm:$0xff]  }
 0x1f6   : > { %20711 = vst [vmem:[#allocation33_spill] sm:$0xff] %v18109_v29  ;;  %v5574_v39 = vmul.f32 0.1, %v3888_v15  ;;  %v3891_v16 = vadd.f32 %v17990_v12, %v3890_v21 }
 0x1f7   : > { %v5577_v49 = vmul.f32 0.1, %v3899_v23  ;;  %15207 = vmatmul.mubr.msk.bf16.gmra.mrb[228].mxu0 %vm2600_vm1, %v16986_v6  ;;  %v6088_v33 = vmax.f32 %v3896_v57, %v5576_v11 }
 0x1f8   : > { %v5575_v46 = vmul.f32 0.1, %v3891_v16  ;;  %15210 = vmatprep.mubr.msk.bf16.mxu0 %vm2600_vm1, %v16989_v42  ;;  %v6086_v53 = vmax.f32 %v3888_v15, %v5574_v39 }
 0x1f9   : > { %v6089_v38 = vmax.f32 %v3899_v23, %v5577_v49 }
 0x1fa   : > { %v6087_v34 = vmax.f32 %v3891_v16, %v5575_v46  ;;  %v15104_v55 = vpop.f32.mrb[124].mxu0 }
 0x1fb   : > { %v3912_v58 = vadd.f32 %v17990_v12, %v15104_v55  ;;  %v3903_v10 = vpop.f32.mrb[125].mxu0  ;;  %v18117_v4 = vpack.c.bf16 %v6089_v38, %v6088_v33  ;;  %v16994_v55 = vld [vmem:[%s17602_s29 + $0x3b8] sm:$0xff]  }
 0x1fc   : > { %v3904_v22 = vadd.f32 %v17990_v12, %v3903_v10  ;;  %v15105_v21 = vpop.f32.mrb[126].mxu0  ;;  %v18121_v29 = vpack.c.bf16 %v6087_v34, %v6086_v53 }
 0x1fd   : > { %20712 = vst [vmem:[#allocation34_spill] sm:$0xff] %v18117_v4  ;;  %v5580_v6 = vmul.f32 0.1, %v3912_v58  ;;  %v3915_v42 = vadd.f32 %v17990_v12, %v15105_v21  ;;  %v3906_v57 = vpop.f32.mrb[127].mxu0  ;;  %v16995_v4 = vld [vmem:[%s17602_s29 + $0x3c0] sm:$0xff]  }
 0x1fe   : > { %20713 = vst [vmem:[#allocation35_spill] sm:$0xff] %v18121_v29  ;;  %v5578_v15 = vmul.f32 0.1, %v3904_v22  ;;  %v3907_v11 = vadd.f32 %v17990_v12, %v3906_v57 }
 0x1ff   : > { %v5581_v23 = vmul.f32 0.1, %v3915_v42  ;;  %15211 = vmatmul.mubr.msk.bf16.gmra.mrb[232].mxu0 %vm2600_vm1, %v16990_v28  ;;  %v6092_v16 = vmax.f32 %v3912_v58, %v5580_v6 }
 0x200   : > { %v5579_v39 = vmul.f32 0.1, %v3907_v11  ;;  %15214 = vmatprep.mubr.msk.bf16.mxu0 %vm2600_vm1, %v16993_v3  ;;  %v6090_v46 = vmax.f32 %v3904_v22, %v5578_v15 }
 0x201   : > { %v6093_v49 = vmax.f32 %v3915_v42, %v5581_v23 }
 0x202   : > { %v6091_v33 = vmax.f32 %v3907_v11, %v5579_v39  ;;  %v15108_v38 = vpop.f32.mrb[128].mxu0 }
 0x203   : > { %v3928_v53 = vadd.f32 %v17990_v12, %v15108_v38  ;;  %v3919_v34 = vpop.f32.mrb[129].mxu0  ;;  %v18129_v10 = vpack.c.bf16 %v6093_v49, %v6092_v16 }
 0x204   : > { %v3920_v21 = vadd.f32 %v17990_v12, %v3919_v34  ;;  %v15109_v57 = vpop.f32.mrb[130].mxu0  ;;  %v18133_v29 = vpack.c.bf16 %v6091_v33, %v6090_v46  ;;  %v16996_v34 = vld [vmem:[%s17602_s29 + $0x3c8] sm:$0xff]  }
 0x205   : > { %20714 = vst [vmem:[#allocation36_spill] sm:$0xff] %v18129_v10  ;;  %v5584_v28 = vmul.f32 0.1, %v3928_v53  ;;  %v3931_v3 = vadd.f32 %v17990_v12, %v15109_v57  ;;  %v3922_v58 = vpop.f32.mrb[131].mxu0 }
 0x206   : > { %20715 = vst [vmem:[#allocation37_spill] sm:$0xff] %v18133_v29  ;;  %v5582_v22 = vmul.f32 0.1, %v3920_v21  ;;  %v3923_v6 = vadd.f32 %v17990_v12, %v3922_v58 }
 0x207   : > { %v5585_v42 = vmul.f32 0.1, %v3931_v3  ;;  %15215 = vmatmul.mubr.msk.bf16.gmra.mrb[236].mxu0 %vm2600_vm1, %v16994_v55  ;;  %v6096_v11 = vmax.f32 %v3928_v53, %v5584_v28  ;;  %v16997_v55 = vld [vmem:[%s17602_s29 + $0x3d0] sm:$0xff]   ;;  %v7672_v53 = vsel %vm6930_vm2, %v17947_v52, 0 }
 0x208   : > { %v5583_v15 = vmul.f32 0.1, %v3923_v6  ;;  %15218 = vmatprep.mubr.msk.bf16.mxu0 %vm2600_vm1, %v16995_v4  ;;  %v6094_v39 = vmax.f32 %v3920_v21, %v5582_v22 }
 0x209   : > { %v6097_v23 = vmax.f32 %v3931_v3, %v5585_v42 }
 0x20a   : > { %v6095_v16 = vmax.f32 %v3923_v6, %v5583_v15  ;;  %v15112_v49 = vpop.f32.mrb[132].mxu0 }
 0x20b   : > { %v6543_v46 = vpack.c.bf16 %v6097_v23, %v6096_v11  ;;  %v3944_v33 = vadd.f32 %v17990_v12, %v15112_v49  ;;  %v3935_v38 = vpop.f32.mrb[133].mxu0 }
 0x20c   : > { %v3936_v57 = vadd.f32 %v17990_v12, %v3935_v38  ;;  %v15113_v58 = vpop.f32.mrb[134].mxu0  ;;  %v6542_v10 = vpack.c.bf16 %v6095_v16, %v6094_v39  ;;  %v16998_v16 = vld [vmem:[%s17602_s29 + $0x3d8] sm:$0xff]  }
 0x20d   : > { %v5588_v29 = vmul.f32 0.1, %v3944_v33  ;;  %v3947_v47 = vadd.f32 %v17990_v12, %v15113_v58  ;;  %v3938_v4 = vpop.f32.mrb[135].mxu0 }
 0x20e   : > { %v5586_v21 = vmul.f32 0.1, %v3936_v57  ;;  %v3939_v28 = vadd.f32 %v17990_v12, %v3938_v4  ;;  %15492 = vmatprep.mubr.msk.bf16.mxu1 %vm6737_vm3, %v6542_v10 }
 0x20f   : > { %v5589_v3 = vmul.f32 0.1, %v3947_v47  ;;  %15219 = vmatmul.mubr.msk.bf16.gmra.mrb[240].mxu0 %vm2600_vm1, %v16996_v34  ;;  %15493 = vmatmul.mubr.msk.bf16.vlgmr.msra.gmra.mrb[8].mxu1 %vm6737_vm3, %v6543_v46  ;;  %v6100_v6 = vmax.f32 %v3944_v33, %v5588_v29  ;;  %v16999_v46 = vld [vmem:[%s17602_s29 + $0x3e0] sm:$0xff]  }
 0x210   : > { %v5587_v22 = vmul.f32 0.1, %v3939_v28  ;;  %15621 = vmatpush3.bf16.msra.mxu1 %v7672_v53  ;;  %15222 = vmatprep.mubr.msk.bf16.mxu0 %vm2600_vm1, %v16997_v55  ;;  %v6098_v15 = vmax.f32 %v3936_v57, %v5586_v21 }
 0x211   : > { %v6101_v42 = vmax.f32 %v3947_v47, %v5589_v3 }
 0x212   : > { %v6099_v52 = vmax.f32 %v3939_v28, %v5587_v22  ;;  %v15116_v11 = vpop.f32.mrb[136].mxu0 }
 0x213   : > { %v3960_v23 = vadd.f32 %v17990_v12, %v15116_v11  ;;  %v3951_v39 = vpop.f32.mrb[137].mxu0  ;;  %v6545_v10 = vpack.c.bf16 %v6101_v42, %v6100_v6 }
 0x214   : > { %v3952_v49 = vadd.f32 %v17990_v12, %v3951_v39  ;;  %v15117_v38 = vpop.f32.mrb[138].mxu0  ;;  %v6544_v34 = vpack.c.bf16 %v6099_v52, %v6098_v15  ;;  %v17000_v15 = vld [vmem:[%s17602_s29 + $0x3e8] sm:$0xff]  }
 0x215   : > { %v5592_v58 = vmul.f32 0.1, %v3960_v23  ;;  %v3963_v4 = vadd.f32 %v17990_v12, %v15117_v38  ;;  %v3954_v53 = vpop.f32.mrb[139].mxu0  ;;  %v17001_v38 = vld [vmem:[%s17602_s29 + $0x3f0] sm:$0xff]  }
 0x216   : > { %v5590_v29 = vmul.f32 0.1, %v3952_v49  ;;  %v3955_v47 = vadd.f32 %v17990_v12, %v3954_v53  ;;  %15496 = vmatprep.mubr.msk.bf16.mxu1 %vm6737_vm3, %v6544_v34 }
 0x217   : > { %v5593_v33 = vmul.f32 0.1, %v3963_v4  ;;  %15223 = vmatmul.mubr.msk.bf16.gmra.mrb[244].mxu0 %vm2600_vm1, %v16998_v16  ;;  %15497 = vmatmul.mubr.msk.bf16.gmra.mrb[12].mxu1 %vm6737_vm3, %v6545_v10  ;;  %v6104_v55 = vmax.f32 %v3960_v23, %v5592_v58 }
 0x218   : > { %v5591_v57 = vmul.f32 0.1, %v3955_v47  ;;  %15226 = vmatprep.mubr.msk.bf16.mxu0 %vm2600_vm1, %v16999_v46  ;;  %v6102_v28 = vmax.f32 %v3952_v49, %v5590_v29 }
 0x219   : > { %v6105_v21 = vmax.f32 %v3963_v4, %v5593_v33 }
 0x21a   : > { %v6103_v3 = vmax.f32 %v3955_v47, %v5591_v57  ;;  %v15120_v22 = vpop.f32.mrb[140].mxu0 }
 0x21b   : > { %v3976_v6 = vadd.f32 %v17990_v12, %v15120_v22  ;;  %v3967_v42 = vpop.f32.mrb[141].mxu0  ;;  %v6547_v52 = vpack.c.bf16 %v6105_v21, %v6104_v55 }
 0x21c   : > { %v3968_v11 = vadd.f32 %v17990_v12, %v3967_v42  ;;  %v15121_v39 = vpop.f32.mrb[142].mxu0  ;;  %v6546_v16 = vpack.c.bf16 %v6103_v3, %v6102_v28  ;;  %v17002_v28 = vld [vmem:[%s17602_s29 + $0x3f8] sm:$0xff]  }
 0x21d   : > { %v5596_v34 = vmul.f32 0.1, %v3976_v6  ;;  %v3979_v10 = vadd.f32 %v17990_v12, %v15121_v39  ;;  %v3970_v53 = vpop.f32.mrb[143].mxu0 }
 0x21e   : > { %v5594_v23 = vmul.f32 0.1, %v3968_v11  ;;  %v3971_v49 = vadd.f32 %v17990_v12, %v3970_v53  ;;  %15500 = vmatprep.mubr.msk.bf16.mxu1 %vm6737_vm3, %v6546_v16 }
 0x21f   : > { %v5597_v46 = vmul.f32 0.1, %v3979_v10  ;;  %15227 = vmatmul.mubr.msk.bf16.gmra.mrb[248].mxu0 %vm2600_vm1, %v17000_v15  ;;  %15501 = vmatmul.mubr.msk.bf16.gmra.mrb[16].mxu1 %vm6737_vm3, %v6547_v52  ;;  %v6108_v4 = vmax.f32 %v3976_v6, %v5596_v34 }
 0x220   : > { %v5595_v58 = vmul.f32 0.1, %v3971_v49  ;;  %15230 = vmatprep.mubr.msk.bf16.mxu0 %vm2600_vm1, %v17001_v38  ;;  %v6106_v47 = vmax.f32 %v3968_v11, %v5594_v23 }
 0x221   : > { %v6109_v29 = vmax.f32 %v3979_v10, %v5597_v46 }
 0x222   : > { %v6107_v33 = vmax.f32 %v3971_v49, %v5595_v58  ;;  %v15124_v57 = vpop.f32.mrb[144].mxu0 }
 0x223   : > { %v3992_v55 = vadd.f32 %v17990_v12, %v15124_v57  ;;  %v3983_v21 = vpop.f32.mrb[145].mxu0  ;;  %v6549_v3 = vpack.c.bf16 %v6109_v29, %v6108_v4 }
 0x224   : > { %v3984_v22 = vadd.f32 %v17990_v12, %v3983_v21  ;;  %v15125_v42 = vpop.f32.mrb[146].mxu0  ;;  %v6548_v39 = vpack.c.bf16 %v6107_v33, %v6106_v47 }
 0x225   : > { %v5600_v15 = vmul.f32 0.1, %v3992_v55  ;;  %v3995_v52 = vadd.f32 %v17990_v12, %v15125_v42  ;;  %v3986_v16 = vpop.f32.mrb[147].mxu0 }
 0x226   : > { %v5598_v53 = vmul.f32 0.1, %v3984_v22  ;;  %v3987_v6 = vadd.f32 %v17990_v12, %v3986_v16  ;;  %15504 = vmatprep.mubr.msk.bf16.mxu1 %vm6737_vm3, %v6548_v39 }
 0x227   : > { %v5601_v11 = vmul.f32 0.1, %v3995_v52  ;;  %15231 = vmatmul.mubr.msk.bf16.gmra.mrb[252].mxu0 %vm2600_vm1, %v17002_v28  ;;  %15505 = vmatmul.mubr.msk.bf16.gmra.mrb[20].mxu1 %vm6737_vm3, %v6549_v3  ;;  %v6112_v34 = vmax.f32 %v3992_v55, %v5600_v15 }
 0x228   : > { %v5599_v38 = vmul.f32 0.1, %v3987_v6  ;;  %v6110_v23 = vmax.f32 %v3984_v22, %v5598_v53 }
 0x229   : > { %v6113_v10 = vmax.f32 %v3995_v52, %v5601_v11 }
 0x22a   : > { %v6111_v49 = vmax.f32 %v3987_v6, %v5599_v38  ;;  %v15128_v46 = vpop.f32.mrb[148].mxu0 }
 0x22b   : > { %v4008_v58 = vadd.f32 %v17990_v12, %v15128_v46  ;;  %v3999_v4 = vpop.f32.mrb[149].mxu0  ;;  %v6551_v29 = vpack.c.bf16 %v6113_v10, %v6112_v34 }
 0x22c   : > { %v4000_v47 = vadd.f32 %v17990_v12, %v3999_v4  ;;  %v15129_v33 = vpop.f32.mrb[150].mxu0  ;;  %v6550_v57 = vpack.c.bf16 %v6111_v49, %v6110_v23 }
 0x22d   : > { %v5604_v21 = vmul.f32 0.1, %v4008_v58  ;;  %v4011_v42 = vadd.f32 %v17990_v12, %v15129_v33  ;;  %v4002_v28 = vpop.f32.mrb[151].mxu0 }
 0x22e   : > { %v5602_v39 = vmul.f32 0.1, %v4000_v47  ;;  %v4003_v3 = vadd.f32 %v17990_v12, %v4002_v28  ;;  %15508 = vmatprep.mubr.msk.bf16.mxu1 %vm6737_vm3, %v6550_v57 }
 0x22f   : > { %v5605_v55 = vmul.f32 0.1, %v4011_v42  ;;  %15509 = vmatmul.mubr.msk.bf16.gmra.mrb[24].mxu1 %vm6737_vm3, %v6551_v29  ;;  %v6116_v15 = vmax.f32 %v4008_v58, %v5604_v21 }
 0x230   : > { %v5603_v22 = vmul.f32 0.1, %v4003_v3  ;;  %v6114_v16 = vmax.f32 %v4000_v47, %v5602_v39 }
 0x231   : > { %v6117_v52 = vmax.f32 %v4011_v42, %v5605_v55 }
 0x232   : > { %v6115_v53 = vmax.f32 %v4003_v3, %v5603_v22  ;;  %v15132_v6 = vpop.f32.mrb[152].mxu0 }
 0x233   : > { %v4024_v11 = vadd.f32 %v17990_v12, %v15132_v6  ;;  %v4015_v38 = vpop.f32.mrb[153].mxu0  ;;  %v6553_v34 = vpack.c.bf16 %v6117_v52, %v6116_v15 }
 0x234   : > { %v4016_v10 = vadd.f32 %v17990_v12, %v4015_v38  ;;  %v15133_v23 = vpop.f32.mrb[154].mxu0  ;;  %v6552_v49 = vpack.c.bf16 %v6115_v53, %v6114_v16 }
 0x235   : > { %v5608_v46 = vmul.f32 0.1, %v4024_v11  ;;  %v4027_v4 = vadd.f32 %v17990_v12, %v15133_v23  ;;  %v4018_v33 = vpop.f32.mrb[155].mxu0 }
 0x236   : > { %v5606_v57 = vmul.f32 0.1, %v4016_v10  ;;  %v4019_v29 = vadd.f32 %v17990_v12, %v4018_v33  ;;  %15512 = vmatprep.mubr.msk.bf16.mxu1 %vm6737_vm3, %v6552_v49 }
 0x237   : > { %v5609_v58 = vmul.f32 0.1, %v4027_v4  ;;  %15513 = vmatmul.mubr.msk.bf16.gmra.mrb[28].mxu1 %vm6737_vm3, %v6553_v34  ;;  %v6120_v21 = vmax.f32 %v4024_v11, %v5608_v46 }
 0x238   : > { %v5607_v47 = vmul.f32 0.1, %v4019_v29  ;;  %v6118_v28 = vmax.f32 %v4016_v10, %v5606_v57 }
 0x239   : > { %v6121_v42 = vmax.f32 %v4027_v4, %v5609_v58 }
 0x23a   : > { %v6119_v39 = vmax.f32 %v4019_v29, %v5607_v47  ;;  %v15136_v3 = vpop.f32.mrb[156].mxu0 }
 0x23b   : > { %v4040_v55 = vadd.f32 %v17990_v12, %v15136_v3  ;;  %v4031_v22 = vpop.f32.mrb[157].mxu0  ;;  %v6555_v15 = vpack.c.bf16 %v6121_v42, %v6120_v21 }
 0x23c   : > { %v4032_v52 = vadd.f32 %v17990_v12, %v4031_v22  ;;  %v15137_v16 = vpop.f32.mrb[158].mxu0  ;;  %v6554_v53 = vpack.c.bf16 %v6119_v39, %v6118_v28 }
 0x23d   : > { %v5612_v6 = vmul.f32 0.1, %v4040_v55  ;;  %v4043_v38 = vadd.f32 %v17990_v12, %v15137_v16  ;;  %v4034_v23 = vpop.f32.mrb[159].mxu0 }
 0x23e   : > { %v5610_v49 = vmul.f32 0.1, %v4032_v52  ;;  %v4035_v34 = vadd.f32 %v17990_v12, %v4034_v23  ;;  %15516 = vmatprep.mubr.msk.bf16.mxu1 %vm6737_vm3, %v6554_v53 }
 0x23f   : > { %v5613_v11 = vmul.f32 0.1, %v4043_v38  ;;  %15517 = vmatmul.mubr.msk.bf16.gmra.mrb[32].mxu1 %vm6737_vm3, %v6555_v15  ;;  %v6124_v46 = vmax.f32 %v4040_v55, %v5612_v6 }
 0x240   : > { %v5611_v10 = vmul.f32 0.1, %v4035_v34  ;;  %v6122_v33 = vmax.f32 %v4032_v52, %v5610_v49 }
 0x241   : > { %v6125_v4 = vmax.f32 %v4043_v38, %v5613_v11 }
 0x242   : > { %v6123_v57 = vmax.f32 %v4035_v34, %v5611_v10  ;;  %v15140_v29 = vpop.f32.mrb[160].mxu0 }
 0x243   : > { %v4056_v58 = vadd.f32 %v17990_v12, %v15140_v29  ;;  %v4047_v47 = vpop.f32.mrb[161].mxu0  ;;  %v6557_v21 = vpack.c.bf16 %v6125_v4, %v6124_v46 }
 0x244   : > { %v4048_v42 = vadd.f32 %v17990_v12, %v4047_v47  ;;  %v15141_v28 = vpop.f32.mrb[162].mxu0  ;;  %v6556_v39 = vpack.c.bf16 %v6123_v57, %v6122_v33 }
 0x245   : > { %v5616_v3 = vmul.f32 0.1, %v4056_v58  ;;  %v4059_v22 = vadd.f32 %v17990_v12, %v15141_v28  ;;  %v4050_v16 = vpop.f32.mrb[163].mxu0 }
 0x246   : > { %v5614_v53 = vmul.f32 0.1, %v4048_v42  ;;  %v4051_v15 = vadd.f32 %v17990_v12, %v4050_v16  ;;  %15520 = vmatprep.mubr.msk.bf16.mxu1 %vm6737_vm3, %v6556_v39  ;;  %v15484_v39 = vpop.f32.mrb[0].mxu1 }
 0x247   : > { %v5617_v55 = vmul.f32 0.1, %v4059_v22  ;;  %15521 = vmatmul.mubr.msk.bf16.gmra.mrb[36].mxu1 %vm6737_vm3, %v6557_v21  ;;  %v6128_v6 = vmax.f32 %v4056_v58, %v5616_v3 }
 0x248   : > { %v5615_v52 = vmul.f32 0.1, %v4051_v15  ;;  %v6126_v23 = vmax.f32 %v4048_v42, %v5614_v53  ;;  %v5423_v42 = vpop.f32.mrb[1].mxu1 }
 0x249   : > { %v6129_v38 = vmax.f32 %v4059_v22, %v5617_v55  ;;  %v15485_v22 = vpop.f32.mrb[2].mxu1 }
 0x24a   : > { %v6127_v49 = vmax.f32 %v4051_v15, %v5615_v52  ;;  %v15144_v34 = vpop.f32.mrb[164].mxu0  ;;  %v5426_v15 = vpop.f32.mrb[3].mxu1  ;;  %v5432_v52 = vadd.f32 %v17990_v12, %v15484_v39 }
 0x24b   : > { %v4072_v11 = vadd.f32 %v17990_v12, %v15144_v34  ;;  %v4063_v10 = vpop.f32.mrb[165].mxu0  ;;  %v6559_v46 = vpack.c.bf16 %v6129_v38, %v6128_v6  ;;  %v5424_v6 = vadd.f32 %v17990_v12, %v5423_v42  ;;  %v5435_v38 = vadd.f32 %v17990_v12, %v15485_v22 }
 0x24c   : > { %v4064_v4 = vadd.f32 %v17990_v12, %v4063_v10  ;;  %v15145_v33 = vpop.f32.mrb[166].mxu0  ;;  %v6558_v57 = vpack.c.bf16 %v6127_v49, %v6126_v23  ;;  %v5427_v10 = vadd.f32 %v17990_v12, %v5426_v15 }
 0x24d   : > { %v5620_v29 = vmul.f32 0.1, %v4072_v11  ;;  %v4075_v47 = vadd.f32 %v17990_v12, %v15145_v33  ;;  %v4066_v28 = vpop.f32.mrb[167].mxu0  ;;  %v5961_v39 = vmul.f32 0.1, %v5435_v38 }
 0x24e   : > { %v5618_v21 = vmul.f32 0.1, %v4064_v4  ;;  %v4067_v58 = vadd.f32 %v17990_v12, %v4066_v28  ;;  %15524 = vmatprep.mubr.msk.bf16.mxu1 %vm6737_vm3, %v6558_v57  ;;  %v5960_v28 = vmul.f32 0.1, %v5432_v52  ;;  %v5959_v43 = vmul.f32 0.1, %v5427_v10 }
 0x24f   : > { %v5621_v3 = vmul.f32 0.1, %v4075_v47  ;;  %15525 = vmatmul.mubr.msk.bf16.gmra.mrb[40].mxu1 %vm6737_vm3, %v6559_v46  ;;  %v6132_v16 = vmax.f32 %v4072_v11, %v5620_v29  ;;  %v5958_v11 = vmul.f32 0.1, %v5424_v6 }
 0x250   : > { %v5619_v53 = vmul.f32 0.1, %v4067_v58  ;;  %v6130_v23 = vmax.f32 %v4064_v4, %v5618_v21  ;;  %v6472_v21 = vmax.f32 %v5432_v52, %v5960_v28 }
 0x251   : > { %v6133_v55 = vmax.f32 %v4075_v47, %v5621_v3 }
 0x252   : > { %v6131_v49 = vmax.f32 %v4067_v58, %v5619_v53  ;;  %v15148_v34 = vpop.f32.mrb[168].mxu0  ;;  %v6470_v58 = vmax.f32 %v5424_v6, %v5958_v11  ;;  %v15488_v53 = vpop.f32.mrb[4].mxu1 }
 0x253   : > { %v4088_v33 = vadd.f32 %v17990_v12, %v15148_v34  ;;  %v4079_v57 = vpop.f32.mrb[169].mxu0  ;;  %v6561_v46 = vpack.c.bf16 %v6133_v55, %v6132_v16  ;;  %v6473_v16 = vmax.f32 %v5435_v38, %v5961_v39  ;;  %v6471_v55 = vmax.f32 %v5427_v10, %v5959_v43  ;;  %v5439_v51 = vpop.f32.mrb[5].mxu1 }
 0x254   : > { %v4080_v29 = vadd.f32 %v17990_v12, %v4079_v57  ;;  %v15149_v47 = vpop.f32.mrb[170].mxu0  ;;  %v6560_v3 = vpack.c.bf16 %v6131_v49, %v6130_v23  ;;  %v15489_v23 = vpop.f32.mrb[6].mxu1  ;;  %v5448_v28 = vadd.f32 %v17990_v12, %v15488_v53  ;;  %v5440_v11 = vadd.f32 %v17990_v12, %v5439_v51 }
 0x255   : > { %v5624_v42 = vmul.f32 0.1, %v4088_v33  ;;  %v4091_v22 = vadd.f32 %v17990_v12, %v15149_v47  ;;  %v4082_v4 = vpop.f32.mrb[171].mxu0  ;;  %v18219_v8 = vpack.c.bf16 %v6473_v16, %v6472_v21  ;;  %v18221_v47 = vpack.c.bf16 %v6471_v55, %v6470_v58  ;;  %v5442_v52 = vpop.f32.mrb[7].mxu1 }
 0x256   : > { %v5622_v15 = vmul.f32 0.1, %v4080_v29  ;;  %v4083_v34 = vadd.f32 %v17990_v12, %v4082_v4  ;;  %15528 = vmatprep.mubr.msk.bf16.mxu1 %vm6737_vm3, %v6560_v3  ;;  %v5451_v38 = vadd.f32 %v17990_v12, %v15489_v23  ;;  %v5964_v4 = vmul.f32 0.1, %v5448_v28 }
 0x257   : > { %v5625_v57 = vmul.f32 0.1, %v4091_v22  ;;  %15529 = vmatmul.mubr.msk.bf16.gmra.mrb[44].mxu1 %vm6737_vm3, %v6561_v46  ;;  %v6136_v49 = vmax.f32 %v4088_v33, %v5624_v42  ;;  %20716 = vst [vmem:[#allocation38_spill] sm:$0xff] %v18219_v8  ;;  %v5443_v46 = vadd.f32 %v17990_v12, %v5442_v52  ;;  %v5962_v21 = vmul.f32 0.1, %v5440_v11 }
 0x258   : > { %v5623_v62 = vmul.f32 0.1, %v4083_v34  ;;  %v6134_v43 = vmax.f32 %v4080_v29, %v5622_v15  ;;  %v5965_v29 = vmul.f32 0.1, %v5451_v38 }
 0x259   : > { %v6137_v6 = vmax.f32 %v4091_v22, %v5625_v57  ;;  %v18231_v22 = vld [vmem:[%s20683_s10] ss:$0 sm:$0xff]  ;;  %v6474_v55 = vmax.f32 %v5440_v11, %v5962_v21 }
 0x25a   : > { %v6135_v10 = vmax.f32 %v4083_v34, %v5623_v62  ;;  %v15152_v3 = vpop.f32.mrb[172].mxu0  ;;  %v5963_v62 = vmul.f32 0.1, %v5443_v46 }
 0x25b   : > { %v4104_v33 = vadd.f32 %v17990_v12, %v15152_v3  ;;  %v4095_v39 = vpop.f32.mrb[173].mxu0  ;;  %v6563_v42 = vpack.c.bf16 %v6137_v6, %v6136_v49  ;;  %v6476_v12 = vmax.f32 %v5448_v28, %v5964_v4  ;;  %v6477_v49 = vmax.f32 %v5451_v38, %v5965_v29 }
 0x25c   : > { %v4096_v51 = vadd.f32 %v18231_v22, %v4095_v39  ;;  %v15153_v58 = vpop.f32.mrb[174].mxu0  ;;  %v6562_v53 = vpack.c.bf16 %v6135_v10, %v6134_v43  ;;  %v6475_v52 = vmax.f32 %v5443_v46, %v5963_v62 }
 0x25d   : > { %v5628_v15 = vmul.f32 0.1, %v4104_v33  ;;  %v4107_v34 = vadd.f32 %v18231_v22, %v15153_v58  ;;  %v4098_v16 = vpop.f32.mrb[175].mxu0  ;;  %v18238_v43 = vpack.c.bf16 %v6477_v49, %v6476_v12 }
 0x25e   : > { %v5626_v57 = vmul.f32 0.1, %v4096_v51  ;;  %v4099_v23 = vadd.f32 %v18231_v22, %v4098_v16  ;;  %15532 = vmatprep.mubr.msk.bf16.mxu1 %vm6737_vm3, %v6562_v53  ;;  %v18240_v10 = vpack.c.bf16 %v6475_v52, %v6474_v55 }
 0x25f   : > { %v5629_v6 = vmul.f32 0.1, %v4107_v34  ;;  %15533 = vmatmul.mubr.msk.bf16.gmra.mrb[48].mxu1 %vm6737_vm3, %v6563_v42  ;;  %v6140_v39 = vmax.f32 %v4104_v33, %v5628_v15 }
 0x260   : > { %v5627_v3 = vmul.f32 0.1, %v4099_v23  ;;  %v6138_v8 = vmax.f32 %v4096_v51, %v5626_v57 }
 0x261   : > { %v6141_v58 = vmax.f32 %v4107_v34, %v5629_v6 }
 0x262   : > { %v6139_v28 = vmax.f32 %v4099_v23, %v5627_v3  ;;  %v15156_v11 = vpop.f32.mrb[176].mxu0 }
 0x263   : > { %v4120_v4 = vadd.f32 %v18231_v22, %v15156_v11  ;;  %v4111_v21 = vpop.f32.mrb[177].mxu0  ;;  %v6565_v16 = vpack.c.bf16 %v6141_v58, %v6140_v39 }
 0x264   : > { %v4112_v38 = vadd.f32 %v18231_v22, %v4111_v21  ;;  %v15157_v46 = vpop.f32.mrb[178].mxu0  ;;  %v6564_v53 = vpack.c.bf16 %v6139_v28, %v6138_v8 }
 0x265   : > { %v5632_v29 = vmul.f32 0.1, %v4120_v4  ;;  %v4123_v42 = vadd.f32 %v18231_v22, %v15157_v46  ;;  %v4114_v62 = vpop.f32.mrb[179].mxu0 }
 0x266   : > { %v5630_v12 = vmul.f32 0.1, %v4112_v38  ;;  %v4115_v55 = vadd.f32 %v18231_v22, %v4114_v62  ;;  %15536 = vmatprep.mubr.msk.bf16.mxu1 %vm6737_vm3, %v6564_v53 }
 0x267   : > { %v5633_v33 = vmul.f32 0.1, %v4123_v42  ;;  %15537 = vmatmul.mubr.msk.bf16.gmra.mrb[52].mxu1 %vm6737_vm3, %v6565_v16  ;;  %v6144_v15 = vmax.f32 %v4120_v4, %v5632_v29 }
 0x268   : > { %v5631_v51 = vmul.f32 0.1, %v4115_v55  ;;  %v6142_v57 = vmax.f32 %v4112_v38, %v5630_v12 }
 0x269   : > { %v6145_v34 = vmax.f32 %v4123_v42, %v5633_v33 }
 0x26a   : > { %v6143_v23 = vmax.f32 %v4115_v55, %v5631_v51  ;;  %v15160_v49 = vpop.f32.mrb[180].mxu0 }
 0x26b   : > { %v4136_v8 = vadd.f32 %v18231_v22, %v15160_v49  ;;  %v4127_v52 = vpop.f32.mrb[181].mxu0  ;;  %v6567_v6 = vpack.c.bf16 %v6145_v34, %v6144_v15 }
 0x26c   : > { %v4128_v3 = vadd.f32 %v18231_v22, %v4127_v52  ;;  %v15161_v39 = vpop.f32.mrb[182].mxu0  ;;  %v6566_v58 = vpack.c.bf16 %v6143_v23, %v6142_v57 }
 0x26d   : > { %v5636_v28 = vmul.f32 0.1, %v4136_v8  ;;  %v4139_v11 = vadd.f32 %v18231_v22, %v15161_v39  ;;  %v4130_v21 = vpop.f32.mrb[183].mxu0 }
 0x26e   : > { %v5634_v46 = vmul.f32 0.1, %v4128_v3  ;;  %v4131_v16 = vadd.f32 %v18231_v22, %v4130_v21  ;;  %15540 = vmatprep.mubr.msk.bf16.mxu1 %vm6737_vm3, %v6566_v58 }
 0x26f   : > { %v5637_v4 = vmul.f32 0.1, %v4139_v11  ;;  %15541 = vmatmul.mubr.msk.bf16.gmra.mrb[56].mxu1 %vm6737_vm3, %v6567_v6  ;;  %v6148_v53 = vmax.f32 %v4136_v8, %v5636_v28 }
 0x270   : > { %v5635_v38 = vmul.f32 0.1, %v4131_v16  ;;  %v6146_v42 = vmax.f32 %v4128_v3, %v5634_v46 }
 0x271   : > { %v6149_v29 = vmax.f32 %v4139_v11, %v5637_v4 }
 0x272   : > { %v6147_v62 = vmax.f32 %v4131_v16, %v5635_v38  ;;  %v15164_v12 = vpop.f32.mrb[184].mxu0 }
 0x273   : > { %v4152_v55 = vadd.f32 %v18231_v22, %v15164_v12  ;;  %v4143_v33 = vpop.f32.mrb[185].mxu0  ;;  %v6569_v51 = vpack.c.bf16 %v6149_v29, %v6148_v53 }
 0x274   : > { %v4144_v15 = vadd.f32 %v18231_v22, %v4143_v33  ;;  %v15165_v34 = vpop.f32.mrb[186].mxu0  ;;  %v6568_v57 = vpack.c.bf16 %v6147_v62, %v6146_v42 }
 0x275   : > { %v5640_v23 = vmul.f32 0.1, %v4152_v55  ;;  %v4155_v49 = vadd.f32 %v18231_v22, %v15165_v34  ;;  %v4146_v52 = vpop.f32.mrb[187].mxu0 }
 0x276   : > { %v5638_v39 = vmul.f32 0.1, %v4144_v15  ;;  %v4147_v6 = vadd.f32 %v18231_v22, %v4146_v52  ;;  %15544 = vmatprep.mubr.msk.bf16.mxu1 %vm6737_vm3, %v6568_v57 }
 0x277   : > { %v5641_v8 = vmul.f32 0.1, %v4155_v49  ;;  %15545 = vmatmul.mubr.msk.bf16.gmra.mrb[60].mxu1 %vm6737_vm3, %v6569_v51  ;;  %v6152_v58 = vmax.f32 %v4152_v55, %v5640_v23 }
 0x278   : > { %v5639_v3 = vmul.f32 0.1, %v4147_v6  ;;  %v6150_v11 = vmax.f32 %v4144_v15, %v5638_v39 }
 0x279   : > { %v6153_v28 = vmax.f32 %v4155_v49, %v5641_v8 }
 0x27a   : > { %v6151_v21 = vmax.f32 %v4147_v6, %v5639_v3  ;;  %v15168_v46 = vpop.f32.mrb[188].mxu0 }
 0x27b   : > { %v4168_v16 = vadd.f32 %v18231_v22, %v15168_v46  ;;  %v4159_v4 = vpop.f32.mrb[189].mxu0  ;;  %v6571_v38 = vpack.c.bf16 %v6153_v28, %v6152_v58 }
 0x27c   : > { %v4160_v53 = vadd.f32 %v18231_v22, %v4159_v4  ;;  %v15169_v29 = vpop.f32.mrb[190].mxu0  ;;  %v6570_v42 = vpack.c.bf16 %v6151_v21, %v6150_v11 }
 0x27d   : > { %v5644_v62 = vmul.f32 0.1, %v4168_v16  ;;  %v4171_v12 = vadd.f32 %v18231_v22, %v15169_v29  ;;  %v4162_v33 = vpop.f32.mrb[191].mxu0 }
 0x27e   : > { %v5642_v34 = vmul.f32 0.1, %v4160_v53  ;;  %v4163_v51 = vadd.f32 %v18231_v22, %v4162_v33  ;;  %15548 = vmatprep.mubr.msk.bf16.mxu1 %vm6737_vm3, %v6570_v42  ;;  %v18275_v42 = vld [vmem:[%s20684_s4 + $0x8] sm:$0xf] }
 0x27f   : > { %v5645_v55 = vmul.f32 0.1, %v4171_v12  ;;  %15549 = vmatmul.mubr.msk.bf16.gmra.mrb[64].mxu1 %vm6737_vm3, %v6571_v38  ;;  %v6156_v57 = vmax.f32 %v4168_v16, %v5644_v62  ;;  %16824 = vmatprep.subr.msk.bf16.mxu1 %vm6930_vm2, %v18275_v42 }
 0x280   : > { %v5643_v15 = vmul.f32 0.1, %v4163_v51  ;;  %v6154_v49 = vmax.f32 %v4160_v53, %v5642_v34 }
 0x281   : > { %v6157_v23 = vmax.f32 %v4171_v12, %v5645_v55 }
 0x282   : > { %v6155_v52 = vmax.f32 %v4163_v51, %v5643_v15  ;;  %v15172_v39 = vpop.f32.mrb[192].mxu0 }
 0x283   : > { %v4184_v6 = vadd.f32 %v18231_v22, %v15172_v39  ;;  %v4175_v8 = vpop.f32.mrb[193].mxu0  ;;  %v6573_v3 = vpack.c.bf16 %v6157_v23, %v6156_v57 }
 0x284   : > { %v4176_v58 = vadd.f32 %v18231_v22, %v4175_v8  ;;  %v15173_v28 = vpop.f32.mrb[194].mxu0  ;;  %v6572_v11 = vpack.c.bf16 %v6155_v52, %v6154_v49 }
 0x285   : > { %v5648_v21 = vmul.f32 0.1, %v4184_v6  ;;  %v4187_v46 = vadd.f32 %v18231_v22, %v15173_v28  ;;  %v4178_v4 = vpop.f32.mrb[195].mxu0 }
 0x286   : > { %v5646_v29 = vmul.f32 0.1, %v4176_v58  ;;  %v4179_v38 = vadd.f32 %v18231_v22, %v4178_v4  ;;  %15552 = vmatprep.mubr.msk.bf16.mxu1 %vm6737_vm3, %v6572_v11 }
 0x287   : > { %v5649_v16 = vmul.f32 0.1, %v4187_v46  ;;  %15553 = vmatmul.mubr.msk.bf16.gmra.mrb[68].mxu1 %vm6737_vm3, %v6573_v3  ;;  %v6160_v62 = vmax.f32 %v4184_v6, %v5648_v21 }
 0x288   : > { %v5647_v53 = vmul.f32 0.1, %v4179_v38  ;;  %v6158_v33 = vmax.f32 %v4176_v58, %v5646_v29 }
 0x289   : > { %v6161_v12 = vmax.f32 %v4187_v46, %v5649_v16 }
 0x28a   : > { %v6159_v34 = vmax.f32 %v4179_v38, %v5647_v53  ;;  %v15176_v51 = vpop.f32.mrb[196].mxu0 }
 0x28b   : > { %v4200_v55 = vadd.f32 %v18231_v22, %v15176_v51  ;;  %v4191_v15 = vpop.f32.mrb[197].mxu0  ;;  %v6575_v57 = vpack.c.bf16 %v6161_v12, %v6160_v62 }
 0x28c   : > { %v4192_v23 = vadd.f32 %v18231_v22, %v4191_v15  ;;  %v15177_v49 = vpop.f32.mrb[198].mxu0  ;;  %v6574_v52 = vpack.c.bf16 %v6159_v34, %v6158_v33 }
 0x28d   : > { %v5652_v39 = vmul.f32 0.1, %v4200_v55  ;;  %v4203_v8 = vadd.f32 %v18231_v22, %v15177_v49  ;;  %v4194_v3 = vpop.f32.mrb[199].mxu0 }
 0x28e   : > { %v5650_v6 = vmul.f32 0.1, %v4192_v23  ;;  %v4195_v28 = vadd.f32 %v18231_v22, %v4194_v3  ;;  %15556 = vmatprep.mubr.msk.bf16.mxu1 %vm6737_vm3, %v6574_v52 }
 0x28f   : > { %v5653_v58 = vmul.f32 0.1, %v4203_v8  ;;  %15557 = vmatmul.mubr.msk.bf16.gmra.mrb[72].mxu1 %vm6737_vm3, %v6575_v57  ;;  %v6164_v21 = vmax.f32 %v4200_v55, %v5652_v39 }
 0x290   : > { %v5651_v11 = vmul.f32 0.1, %v4195_v28  ;;  %v6162_v4 = vmax.f32 %v4192_v23, %v5650_v6 }
 0x291   : > { %v6165_v46 = vmax.f32 %v4203_v8, %v5653_v58 }
 0x292   : > { %v6163_v29 = vmax.f32 %v4195_v28, %v5651_v11  ;;  %v15180_v38 = vpop.f32.mrb[200].mxu0 }
 0x293   : > { %v4216_v16 = vadd.f32 %v18231_v22, %v15180_v38  ;;  %v4207_v53 = vpop.f32.mrb[201].mxu0  ;;  %v6577_v62 = vpack.c.bf16 %v6165_v46, %v6164_v21 }
 0x294   : > { %v4208_v12 = vadd.f32 %v18231_v22, %v4207_v53  ;;  %v15181_v33 = vpop.f32.mrb[202].mxu0  ;;  %v6576_v34 = vpack.c.bf16 %v6163_v29, %v6162_v4 }
 0x295   : > { %v5656_v51 = vmul.f32 0.1, %v4216_v16  ;;  %v4219_v15 = vadd.f32 %v18231_v22, %v15181_v33  ;;  %v4210_v49 = vpop.f32.mrb[203].mxu0 }
 0x296   : > { %v5654_v52 = vmul.f32 0.1, %v4208_v12  ;;  %v4211_v57 = vadd.f32 %v18231_v22, %v4210_v49  ;;  %15560 = vmatprep.mubr.msk.bf16.mxu1 %vm6737_vm3, %v6576_v34 }
 0x297   : > { %v5657_v55 = vmul.f32 0.1, %v4219_v15  ;;  %15561 = vmatmul.mubr.msk.bf16.gmra.mrb[76].mxu1 %vm6737_vm3, %v6577_v62  ;;  %v6168_v39 = vmax.f32 %v4216_v16, %v5656_v51 }
 0x298   : > { %v5655_v23 = vmul.f32 0.1, %v4211_v57  ;;  %v6166_v3 = vmax.f32 %v4208_v12, %v5654_v52 }
 0x299   : > { %v6169_v8 = vmax.f32 %v4219_v15, %v5657_v55 }
 0x29a   : > { %v6167_v6 = vmax.f32 %v4211_v57, %v5655_v23  ;;  %v15184_v28 = vpop.f32.mrb[204].mxu0 }
 0x29b   : > { %v4232_v58 = vadd.f32 %v18231_v22, %v15184_v28  ;;  %v4223_v11 = vpop.f32.mrb[205].mxu0  ;;  %v6579_v21 = vpack.c.bf16 %v6169_v8, %v6168_v39 }
 0x29c   : > { %v4224_v46 = vadd.f32 %v18231_v22, %v4223_v11  ;;  %v15185_v4 = vpop.f32.mrb[206].mxu0  ;;  %v6578_v29 = vpack.c.bf16 %v6167_v6, %v6166_v3 }
 0x29d   : > { %v5660_v38 = vmul.f32 0.1, %v4232_v58  ;;  %v4235_v53 = vadd.f32 %v18231_v22, %v15185_v4  ;;  %v4226_v33 = vpop.f32.mrb[207].mxu0 }
 0x29e   : > { %v5658_v34 = vmul.f32 0.1, %v4224_v46  ;;  %v4227_v62 = vadd.f32 %v18231_v22, %v4226_v33  ;;  %15564 = vmatprep.mubr.msk.bf16.mxu1 %vm6737_vm3, %v6578_v29  ;;  %v17004_v29 = vld [vmem:[%s17602_s29 + $0x400] sm:$0xff]  }
 0x29f   : > { %v5661_v16 = vmul.f32 0.1, %v4235_v53  ;;  %15565 = vmatmul.mubr.msk.bf16.gmra.mrb[80].mxu1 %vm6737_vm3, %v6579_v21  ;;  %v6172_v51 = vmax.f32 %v4232_v58, %v5660_v38  ;;  %15234 = vmatprep.mubr.msk.bf16.mxu0 %vm2600_vm1, %v17004_v29 }
 0x2a0   : > { %v5659_v12 = vmul.f32 0.1, %v4227_v62  ;;  %v6170_v49 = vmax.f32 %v4224_v46, %v5658_v34 }
 0x2a1   : > { %v6173_v15 = vmax.f32 %v4235_v53, %v5661_v16  ;;  %v17005_v53 = vld [vmem:[%s17602_s29 + $0x408] sm:$0xff]  }
 0x2a2   : > { %v6171_v52 = vmax.f32 %v4227_v62, %v5659_v12  ;;  %v15188_v57 = vpop.f32.mrb[208].mxu0  ;;  %15235 = vmatmul.mubr.msk.bf16.gmra.mrb[0].mxu0 %vm2600_vm1, %v17005_v53 }
 0x2a3   : > { %v4248_v55 = vadd.f32 %v18231_v22, %v15188_v57  ;;  %v4239_v23 = vpop.f32.mrb[209].mxu0  ;;  %v6581_v39 = vpack.c.bf16 %v6173_v15, %v6172_v51 }
 0x2a4   : > { %v4240_v8 = vadd.f32 %v18231_v22, %v4239_v23  ;;  %v15189_v3 = vpop.f32.mrb[210].mxu0  ;;  %v6580_v6 = vpack.c.bf16 %v6171_v52, %v6170_v49 }
 0x2a5   : > { %v5664_v28 = vmul.f32 0.1, %v4248_v55  ;;  %v4251_v11 = vadd.f32 %v18231_v22, %v15189_v3  ;;  %v4242_v21 = vpop.f32.mrb[211].mxu0 }
 0x2a6   : > { %v5662_v4 = vmul.f32 0.1, %v4240_v8  ;;  %v4243_v58 = vadd.f32 %v18231_v22, %v4242_v21  ;;  %15568 = vmatprep.mubr.msk.bf16.mxu1 %vm6737_vm3, %v6580_v6 }
 0x2a7   : > { %v5665_v46 = vmul.f32 0.1, %v4251_v11  ;;  %15569 = vmatmul.mubr.msk.bf16.gmra.mrb[84].mxu1 %vm6737_vm3, %v6581_v39  ;;  %v6176_v33 = vmax.f32 %v4248_v55, %v5664_v28 }
 0x2a8   : > { %v5663_v38 = vmul.f32 0.1, %v4243_v58  ;;  %v6174_v62 = vmax.f32 %v4240_v8, %v5662_v4  ;;  %v17007_v4 = vld [vmem:[%s17602_s29 + $0x418] sm:$0xff]  }
 0x2a9   : > { %v6177_v34 = vmax.f32 %v4251_v11, %v5665_v46  ;;  %v17006_v11 = vld [vmem:[%s17602_s29 + $0x410] sm:$0xff]  }
 0x2aa   : > { %v6175_v16 = vmax.f32 %v4243_v58, %v5663_v38  ;;  %v15192_v12 = vpop.f32.mrb[212].mxu0  ;;  %15238 = vmatprep.mubr.msk.bf16.mxu0 %vm2600_vm1, %v17006_v11 }
 0x2ab   : > { %v4264_v51 = vadd.f32 %v18231_v22, %v15192_v12  ;;  %v4255_v15 = vpop.f32.mrb[213].mxu0  ;;  %v6583_v49 = vpack.c.bf16 %v6177_v34, %v6176_v33  ;;  %15239 = vmatmul.mubr.msk.bf16.gmra.mrb[4].mxu0 %vm2600_vm1, %v17007_v4 }
 0x2ac   : > { %v4256_v52 = vadd.f32 %v18231_v22, %v4255_v15  ;;  %v15193_v57 = vpop.f32.mrb[214].mxu0  ;;  %v6582_v23 = vpack.c.bf16 %v6175_v16, %v6174_v62 }
 0x2ad   : > { %v5668_v39 = vmul.f32 0.1, %v4264_v51  ;;  %v4267_v55 = vadd.f32 %v18231_v22, %v15193_v57  ;;  %v4258_v3 = vpop.f32.mrb[215].mxu0 }
 0x2ae   : > { %v5666_v6 = vmul.f32 0.1, %v4256_v52  ;;  %v4259_v8 = vadd.f32 %v18231_v22, %v4258_v3  ;;  %15572 = vmatprep.mubr.msk.bf16.mxu1 %vm6737_vm3, %v6582_v23 }
 0x2af   : > { %v5669_v28 = vmul.f32 0.1, %v4267_v55  ;;  %15573 = vmatmul.mubr.msk.bf16.gmra.mrb[88].mxu1 %vm6737_vm3, %v6583_v49  ;;  %v6180_v58 = vmax.f32 %v4264_v51, %v5668_v39 }
 0x2b0   : > { %v5667_v21 = vmul.f32 0.1, %v4259_v8  ;;  %v6178_v29 = vmax.f32 %v4256_v52, %v5666_v6  ;;  %v17009_v6 = vld [vmem:[%s17602_s29 + $0x428] sm:$0xff]  }
 0x2b1   : > { %v6181_v46 = vmax.f32 %v4267_v55, %v5669_v28  ;;  %v17008_v55 = vld [vmem:[%s17602_s29 + $0x420] sm:$0xff]  }
 0x2b2   : > { %v6179_v38 = vmax.f32 %v4259_v8, %v5667_v21  ;;  %v15196_v53 = vpop.f32.mrb[216].mxu0  ;;  %15242 = vmatprep.mubr.msk.bf16.mxu0 %vm2600_vm1, %v17008_v55 }
 0x2b3   : > { %v4280_v33 = vadd.f32 %v18231_v22, %v15196_v53  ;;  %v4271_v34 = vpop.f32.mrb[217].mxu0  ;;  %v6585_v62 = vpack.c.bf16 %v6181_v46, %v6180_v58  ;;  %15243 = vmatmul.mubr.msk.bf16.gmra.mrb[8].mxu0 %vm2600_vm1, %v17009_v6 }
 0x2b4   : > { %v4272_v16 = vadd.f32 %v18231_v22, %v4271_v34  ;;  %v15197_v12 = vpop.f32.mrb[218].mxu0  ;;  %v6584_v15 = vpack.c.bf16 %v6179_v38, %v6178_v29 }
 0x2b5   : > { %v5672_v49 = vmul.f32 0.1, %v4280_v33  ;;  %v4283_v51 = vadd.f32 %v18231_v22, %v15197_v12  ;;  %v4274_v57 = vpop.f32.mrb[219].mxu0 }
 0x2b6   : > { %v5670_v23 = vmul.f32 0.1, %v4272_v16  ;;  %v4275_v52 = vadd.f32 %v18231_v22, %v4274_v57  ;;  %15576 = vmatprep.mubr.msk.bf16.mxu1 %vm6737_vm3, %v6584_v15 }
 0x2b7   : > { %v5673_v39 = vmul.f32 0.1, %v4283_v51  ;;  %15577 = vmatmul.mubr.msk.bf16.gmra.mrb[92].mxu1 %vm6737_vm3, %v6585_v62  ;;  %v6184_v8 = vmax.f32 %v4280_v33, %v5672_v49 }
 0x2b8   : > { %v5671_v3 = vmul.f32 0.1, %v4275_v52  ;;  %v6182_v11 = vmax.f32 %v4272_v16, %v5670_v23  ;;  %v17011_v23 = vld [vmem:[%s17602_s29 + $0x438] sm:$0xff]  }
 0x2b9   : > { %v6185_v28 = vmax.f32 %v4283_v51, %v5673_v39  ;;  %v17010_v51 = vld [vmem:[%s17602_s29 + $0x430] sm:$0xff]  }
 0x2ba   : > { %v6183_v21 = vmax.f32 %v4275_v52, %v5671_v3  ;;  %v15200_v4 = vpop.f32.mrb[220].mxu0  ;;  %15246 = vmatprep.mubr.msk.bf16.mxu0 %vm2600_vm1, %v17010_v51 }
 0x2bb   : > { %v4296_v58 = vadd.f32 %v18231_v22, %v15200_v4  ;;  %v4287_v46 = vpop.f32.mrb[221].mxu0  ;;  %v6587_v29 = vpack.c.bf16 %v6185_v28, %v6184_v8  ;;  %15247 = vmatmul.mubr.msk.bf16.gmra.mrb[12].mxu0 %vm2600_vm1, %v17011_v23 }
 0x2bc   : > { %v4288_v38 = vadd.f32 %v18231_v22, %v4287_v46  ;;  %v15201_v53 = vpop.f32.mrb[222].mxu0  ;;  %v6586_v34 = vpack.c.bf16 %v6183_v21, %v6182_v11 }
 0x2bd   : > { %v5676_v62 = vmul.f32 0.1, %v4296_v58  ;;  %v4299_v33 = vadd.f32 %v18231_v22, %v15201_v53  ;;  %v4290_v12 = vpop.f32.mrb[223].mxu0 }
 0x2be   : > { %v5674_v15 = vmul.f32 0.1, %v4288_v38  ;;  %v4291_v16 = vadd.f32 %v18231_v22, %v4290_v12  ;;  %15580 = vmatprep.mubr.msk.bf16.mxu1 %vm6737_vm3, %v6586_v34 }
 0x2bf   : > { %v5677_v49 = vmul.f32 0.1, %v4299_v33  ;;  %15581 = vmatmul.mubr.msk.bf16.gmra.mrb[96].mxu1 %vm6737_vm3, %v6587_v29  ;;  %v6188_v52 = vmax.f32 %v4296_v58, %v5676_v62 }
 0x2c0   : > { %v5675_v57 = vmul.f32 0.1, %v4291_v16  ;;  %v6186_v55 = vmax.f32 %v4288_v38, %v5674_v15  ;;  %v17013_v15 = vld [vmem:[%s17602_s29 + $0x448] sm:$0xff]  }
 0x2c1   : > { %v6189_v39 = vmax.f32 %v4299_v33, %v5677_v49  ;;  %v17012_v33 = vld [vmem:[%s17602_s29 + $0x440] sm:$0xff]  }
 0x2c2   : > { %v6187_v3 = vmax.f32 %v4291_v16, %v5675_v57  ;;  %v15204_v6 = vpop.f32.mrb[224].mxu0  ;;  %15250 = vmatprep.mubr.msk.bf16.mxu0 %vm2600_vm1, %v17012_v33 }
 0x2c3   : > { %v4312_v8 = vadd.f32 %v18231_v22, %v15204_v6  ;;  %v4303_v28 = vpop.f32.mrb[225].mxu0  ;;  %v6589_v11 = vpack.c.bf16 %v6189_v39, %v6188_v52  ;;  %15251 = vmatmul.mubr.msk.bf16.gmra.mrb[16].mxu0 %vm2600_vm1, %v17013_v15 }
 0x2c4   : > { %v4304_v21 = vadd.f32 %v18231_v22, %v4303_v28  ;;  %v15205_v4 = vpop.f32.mrb[226].mxu0  ;;  %v6588_v46 = vpack.c.bf16 %v6187_v3, %v6186_v55 }
 0x2c5   : > { %v5680_v29 = vmul.f32 0.1, %v4312_v8  ;;  %v4315_v58 = vadd.f32 %v18231_v22, %v15205_v4  ;;  %v4306_v53 = vpop.f32.mrb[227].mxu0 }
 0x2c6   : > { %v5678_v34 = vmul.f32 0.1, %v4304_v21  ;;  %v4307_v38 = vadd.f32 %v18231_v22, %v4306_v53  ;;  %15584 = vmatprep.mubr.msk.bf16.mxu1 %vm6737_vm3, %v6588_v46 }
 0x2c7   : > { %v5681_v62 = vmul.f32 0.1, %v4315_v58  ;;  %15585 = vmatmul.mubr.msk.bf16.gmra.mrb[100].mxu1 %vm6737_vm3, %v6589_v11  ;;  %v6192_v16 = vmax.f32 %v4312_v8, %v5680_v29 }
 0x2c8   : > { %v5679_v12 = vmul.f32 0.1, %v4307_v38  ;;  %v6190_v51 = vmax.f32 %v4304_v21, %v5678_v34  ;;  %v17015_v34 = vld [vmem:[%s17602_s29 + $0x458] sm:$0xff]  }
 0x2c9   : > { %v6193_v49 = vmax.f32 %v4315_v58, %v5681_v62  ;;  %v17014_v58 = vld [vmem:[%s17602_s29 + $0x450] sm:$0xff]  }
 0x2ca   : > { %v6191_v57 = vmax.f32 %v4307_v38, %v5679_v12  ;;  %v15208_v23 = vpop.f32.mrb[228].mxu0  ;;  %15254 = vmatprep.mubr.msk.bf16.mxu0 %vm2600_vm1, %v17014_v58 }
 0x2cb   : > { %v4328_v52 = vadd.f32 %v18231_v22, %v15208_v23  ;;  %v4319_v39 = vpop.f32.mrb[229].mxu0  ;;  %v6591_v55 = vpack.c.bf16 %v6193_v49, %v6192_v16  ;;  %15255 = vmatmul.mubr.msk.bf16.gmra.mrb[20].mxu0 %vm2600_vm1, %v17015_v34 }
 0x2cc   : > { %v4320_v3 = vadd.f32 %v18231_v22, %v4319_v39  ;;  %v15209_v6 = vpop.f32.mrb[230].mxu0  ;;  %v6590_v28 = vpack.c.bf16 %v6191_v57, %v6190_v51 }
 0x2cd   : > { %v5684_v11 = vmul.f32 0.1, %v4328_v52  ;;  %v4331_v8 = vadd.f32 %v18231_v22, %v15209_v6  ;;  %v4322_v4 = vpop.f32.mrb[231].mxu0 }
 0x2ce   : > { %v5682_v46 = vmul.f32 0.1, %v4320_v3  ;;  %v4323_v21 = vadd.f32 %v18231_v22, %v4322_v4  ;;  %15588 = vmatprep.mubr.msk.bf16.mxu1 %vm6737_vm3, %v6590_v28 }
 0x2cf   : > { %v5685_v29 = vmul.f32 0.1, %v4331_v8  ;;  %15589 = vmatmul.mubr.msk.bf16.gmra.mrb[104].mxu1 %vm6737_vm3, %v6591_v55  ;;  %v6196_v38 = vmax.f32 %v4328_v52, %v5684_v11 }
 0x2d0   : > { %v5683_v53 = vmul.f32 0.1, %v4323_v21  ;;  %v6194_v33 = vmax.f32 %v4320_v3, %v5682_v46  ;;  %v17017_v46 = vld [vmem:[%s17602_s29 + $0x468] sm:$0xff]  }
 0x2d1   : > { %v6197_v62 = vmax.f32 %v4331_v8, %v5685_v29  ;;  %v17016_v8 = vld [vmem:[%s17602_s29 + $0x460] sm:$0xff]  }
 0x2d2   : > { %v6195_v12 = vmax.f32 %v4323_v21, %v5683_v53  ;;  %v15212_v15 = vpop.f32.mrb[232].mxu0  ;;  %15258 = vmatprep.mubr.msk.bf16.mxu0 %vm2600_vm1, %v17016_v8 }
 0x2d3   : > { %v4344_v16 = vadd.f32 %v18231_v22, %v15212_v15  ;;  %v4335_v49 = vpop.f32.mrb[233].mxu0  ;;  %v6593_v51 = vpack.c.bf16 %v6197_v62, %v6196_v38  ;;  %15259 = vmatmul.mubr.msk.bf16.gmra.mrb[24].mxu0 %vm2600_vm1, %v17017_v46 }
 0x2d4   : > { %v4336_v57 = vadd.f32 %v18231_v22, %v4335_v49  ;;  %v15213_v23 = vpop.f32.mrb[234].mxu0  ;;  %v6592_v39 = vpack.c.bf16 %v6195_v12, %v6194_v33 }
 0x2d5   : > { %v5688_v55 = vmul.f32 0.1, %v4344_v16  ;;  %v4347_v52 = vadd.f32 %v18231_v22, %v15213_v23  ;;  %v4338_v6 = vpop.f32.mrb[235].mxu0 }
 0x2d6   : > { %v5686_v28 = vmul.f32 0.1, %v4336_v57  ;;  %v4339_v3 = vadd.f32 %v18231_v22, %v4338_v6  ;;  %15592 = vmatprep.mubr.msk.bf16.mxu1 %vm6737_vm3, %v6592_v39 }
 0x2d7   : > { %v5689_v11 = vmul.f32 0.1, %v4347_v52  ;;  %15593 = vmatmul.mubr.msk.bf16.gmra.mrb[108].mxu1 %vm6737_vm3, %v6593_v51  ;;  %v6200_v21 = vmax.f32 %v4344_v16, %v5688_v55 }
 0x2d8   : > { %v5687_v4 = vmul.f32 0.1, %v4339_v3  ;;  %v6198_v58 = vmax.f32 %v4336_v57, %v5686_v28  ;;  %v17019_v28 = vld [vmem:[%s17602_s29 + $0x478] sm:$0xff]  }
 0x2d9   : > { %v6201_v29 = vmax.f32 %v4347_v52, %v5689_v11  ;;  %v17018_v52 = vld [vmem:[%s17602_s29 + $0x470] sm:$0xff]  }
 0x2da   : > { %v6199_v53 = vmax.f32 %v4339_v3, %v5687_v4  ;;  %v15216_v34 = vpop.f32.mrb[236].mxu0  ;;  %15262 = vmatprep.mubr.msk.bf16.mxu0 %vm2600_vm1, %v17018_v52 }
 0x2db   : > { %v4360_v38 = vadd.f32 %v18231_v22, %v15216_v34  ;;  %v4351_v62 = vpop.f32.mrb[237].mxu0  ;;  %v6595_v33 = vpack.c.bf16 %v6201_v29, %v6200_v21  ;;  %15263 = vmatmul.mubr.msk.bf16.gmra.mrb[28].mxu0 %vm2600_vm1, %v17019_v28 }
 0x2dc   : > { %v4352_v12 = vadd.f32 %v18231_v22, %v4351_v62  ;;  %v15217_v15 = vpop.f32.mrb[238].mxu0  ;;  %v6594_v49 = vpack.c.bf16 %v6199_v53, %v6198_v58 }
 0x2dd   : > { %v5692_v51 = vmul.f32 0.1, %v4360_v38  ;;  %v4363_v16 = vadd.f32 %v18231_v22, %v15217_v15  ;;  %v4354_v23 = vpop.f32.mrb[239].mxu0 }
 0x2de   : > { %v5690_v39 = vmul.f32 0.1, %v4352_v12  ;;  %v4355_v57 = vadd.f32 %v18231_v22, %v4354_v23  ;;  %15596 = vmatprep.mubr.msk.bf16.mxu1 %vm6737_vm3, %v6594_v49 }
 0x2df   : > { %v5693_v55 = vmul.f32 0.1, %v4363_v16  ;;  %15597 = vmatmul.mubr.msk.bf16.gmra.mrb[112].mxu1 %vm6737_vm3, %v6595_v33  ;;  %v6204_v3 = vmax.f32 %v4360_v38, %v5692_v51 }
 0x2e0   : > { %v5691_v6 = vmul.f32 0.1, %v4355_v57  ;;  %v6202_v8 = vmax.f32 %v4352_v12, %v5690_v39  ;;  %v17021_v39 = vld [vmem:[%s17602_s29 + $0x488] sm:$0xff]  }
 0x2e1   : > { %v6205_v11 = vmax.f32 %v4363_v16, %v5693_v55  ;;  %v17020_v16 = vld [vmem:[%s17602_s29 + $0x480] sm:$0xff]  }
 0x2e2   : > { %v6203_v4 = vmax.f32 %v4355_v57, %v5691_v6  ;;  %v15220_v46 = vpop.f32.mrb[240].mxu0  ;;  %15266 = vmatprep.mubr.msk.bf16.mxu0 %vm2600_vm1, %v17020_v16 }
 0x2e3   : > { %v4376_v21 = vadd.f32 %v18231_v22, %v15220_v46  ;;  %v4367_v29 = vpop.f32.mrb[241].mxu0  ;;  %v6597_v58 = vpack.c.bf16 %v6205_v11, %v6204_v3  ;;  %15267 = vmatmul.mubr.msk.bf16.gmra.mrb[32].mxu0 %vm2600_vm1, %v17021_v39 }
 0x2e4   : > { %v4368_v53 = vadd.f32 %v18231_v22, %v4367_v29  ;;  %v15221_v34 = vpop.f32.mrb[242].mxu0  ;;  %v6596_v62 = vpack.c.bf16 %v6203_v4, %v6202_v8 }
 0x2e5   : > { %v5696_v33 = vmul.f32 0.1, %v4376_v21  ;;  %v4379_v38 = vadd.f32 %v18231_v22, %v15221_v34  ;;  %v4370_v15 = vpop.f32.mrb[243].mxu0 }
 0x2e6   : > { %v5694_v49 = vmul.f32 0.1, %v4368_v53  ;;  %v4371_v12 = vadd.f32 %v18231_v22, %v4370_v15  ;;  %15600 = vmatprep.mubr.msk.bf16.mxu1 %vm6737_vm3, %v6596_v62 }
 0x2e7   : > { %v5697_v51 = vmul.f32 0.1, %v4379_v38  ;;  %15601 = vmatmul.mubr.msk.bf16.gmra.mrb[116].mxu1 %vm6737_vm3, %v6597_v58  ;;  %v6208_v57 = vmax.f32 %v4376_v21, %v5696_v33 }
 0x2e8   : > { %v5695_v23 = vmul.f32 0.1, %v4371_v12  ;;  %v6206_v52 = vmax.f32 %v4368_v53, %v5694_v49  ;;  %v17023_v49 = vld [vmem:[%s17602_s29 + $0x498] sm:$0xff]  }
 0x2e9   : > { %v6209_v55 = vmax.f32 %v4379_v38, %v5697_v51  ;;  %v17022_v38 = vld [vmem:[%s17602_s29 + $0x490] sm:$0xff]  }
 0x2ea   : > { %v6207_v6 = vmax.f32 %v4371_v12, %v5695_v23  ;;  %v15224_v28 = vpop.f32.mrb[244].mxu0  ;;  %15270 = vmatprep.mubr.msk.bf16.mxu0 %vm2600_vm1, %v17022_v38 }
 0x2eb   : > { %v4392_v3 = vadd.f32 %v18231_v22, %v15224_v28  ;;  %v4383_v11 = vpop.f32.mrb[245].mxu0  ;;  %v6599_v8 = vpack.c.bf16 %v6209_v55, %v6208_v57  ;;  %15271 = vmatmul.mubr.msk.bf16.gmra.mrb[36].mxu0 %vm2600_vm1, %v17023_v49 }
 0x2ec   : > { %v4384_v4 = vadd.f32 %v18231_v22, %v4383_v11  ;;  %v15225_v46 = vpop.f32.mrb[246].mxu0  ;;  %v6598_v29 = vpack.c.bf16 %v6207_v6, %v6206_v52 }
 0x2ed   : > { %v5700_v58 = vmul.f32 0.1, %v4392_v3  ;;  %v4395_v21 = vadd.f32 %v18231_v22, %v15225_v46  ;;  %v4386_v34 = vpop.f32.mrb[247].mxu0 }
 0x2ee   : > { %v5698_v62 = vmul.f32 0.1, %v4384_v4  ;;  %v4387_v53 = vadd.f32 %v18231_v22, %v4386_v34  ;;  %15604 = vmatprep.mubr.msk.bf16.mxu1 %vm6737_vm3, %v6598_v29 }
 0x2ef   : > { %v5701_v33 = vmul.f32 0.1, %v4395_v21  ;;  %15605 = vmatmul.mubr.msk.bf16.gmra.mrb[120].mxu1 %vm6737_vm3, %v6599_v8  ;;  %v6212_v12 = vmax.f32 %v4392_v3, %v5700_v58 }
 0x2f0   : > { %v5699_v15 = vmul.f32 0.1, %v4387_v53  ;;  %v6210_v16 = vmax.f32 %v4384_v4, %v5698_v62  ;;  %v17025_v62 = vld [vmem:[%s17602_s29 + $0x4a8] sm:$0xff]  }
 0x2f1   : > { %v6213_v51 = vmax.f32 %v4395_v21, %v5701_v33  ;;  %v17024_v21 = vld [vmem:[%s17602_s29 + $0x4a0] sm:$0xff]  }
 0x2f2   : > { %v6211_v23 = vmax.f32 %v4387_v53, %v5699_v15  ;;  %v15228_v39 = vpop.f32.mrb[248].mxu0  ;;  %15274 = vmatprep.mubr.msk.bf16.mxu0 %vm2600_vm1, %v17024_v21 }
 0x2f3   : > { %v4399_v57 = vpop.f32.mrb[249].mxu0  ;;  %v6601_v55 = vpack.c.bf16 %v6213_v51, %v6212_v12  ;;  %v4408_v52 = vadd.f32 %v18231_v22, %v15228_v39  ;;  %15275 = vmatmul.mubr.msk.bf16.gmra.mrb[40].mxu0 %vm2600_vm1, %v17025_v62 }
 0x2f4   : > { %v15229_v6 = vpop.f32.mrb[250].mxu0  ;;  %v6600_v28 = vpack.c.bf16 %v6211_v23, %v6210_v16  ;;  %v4400_v11 = vadd.f32 %v18231_v22, %v4399_v57 }
 0x2f5   : > { %v4402_v8 = vpop.f32.mrb[251].mxu0  ;;  %v4411_v3 = vadd.f32 %v18231_v22, %v15229_v6  ;;  %v5704_v46 = vmul.f32 0.1, %v4408_v52 }
 0x2f6   : > { %15608 = vmatprep.mubr.msk.bf16.mxu1 %vm6737_vm3, %v6600_v28  ;;  %v4403_v4 = vadd.f32 %v18231_v22, %v4402_v8  ;;  %v5702_v29 = vmul.f32 0.1, %v4400_v11 }
 0x2f7   : > { %15609 = vmatmul.mubr.msk.bf16.gmra.mrb[124].mxu1 %vm6737_vm3, %v6601_v55  ;;  %v5705_v58 = vmul.f32 0.1, %v4411_v3  ;;  %v6216_v53 = vmax.f32 %v4408_v52, %v5704_v46 }
 0x2f8   : > { %v5703_v34 = vmul.f32 0.1, %v4403_v4  ;;  %v6214_v15 = vmax.f32 %v4400_v11, %v5702_v29 }
 0x2f9   : > { %v6217_v33 = vmax.f32 %v4411_v3, %v5705_v58  ;;  %v17026_v3 = vld [vmem:[%s17602_s29 + $0x4b0] sm:$0xff]  }
 0x2fa   : > { %v15232_v38 = vpop.f32.mrb[252].mxu0  ;;  %v6215_v49 = vmax.f32 %v4403_v4, %v5703_v34  ;;  %v17027_v4 = vld [vmem:[%s17602_s29 + $0x4b8] sm:$0xff]   ;;  %15278 = vmatprep.mubr.msk.bf16.mxu0 %vm2600_vm1, %v17026_v3 }
 0x2fb   : > { %v4415_v12 = vpop.f32.mrb[253].mxu0  ;;  %v6603_v51 = vpack.c.bf16 %v6217_v33, %v6216_v53  ;;  %v4424_v16 = vadd.f32 %v18231_v22, %v15232_v38  ;;  %15279 = vmatmul.mubr.msk.bf16.gmra.mrb[44].mxu0 %vm2600_vm1, %v17027_v4  ;;  %v17028_v53 = vld [vmem:[%s17602_s29 + $0x4c0] sm:$0xff]   ;;  %v17029_v33 = vld [vmem:[%s17602_s29 + $0x4c8] sm:$0xff]   ;;  %v8414_v38 = vsel %vm6930_vm2, %v18275_v42, 0  ;;  %v17035_v42 = vld [vmem:[%s17602_s29 + $0x4f8] sm:$0xff]  }
 0x2fc   : > { %v15233_v23 = vpop.f32.mrb[254].mxu0  ;;  %v6602_v39 = vpack.c.bf16 %v6215_v49, %v6214_v15  ;;  %v4416_v57 = vadd.f32 %v18231_v22, %v4415_v12  ;;  %15282 = vmatprep.mubr.msk.bf16.mxu0 %vm2600_vm1, %v17028_v53  ;;  %v17030_v15 = vld [vmem:[%s17602_s29 + $0x4d0] sm:$0xff]   ;;  %v17031_v49 = vld [vmem:[%s17602_s29 + $0x4d8] sm:$0xff]   ;;  %v18569_v53 = vld [vmem:[%s20684_s4 + $0xc] sm:$0xf] }
 0x2fd   : > { %v4418_v55 = vpop.f32.mrb[255].mxu0  ;;  %v4427_v52 = vadd.f32 %v18231_v22, %v15233_v23  ;;  %v5708_v6 = vmul.f32 0.1, %v4424_v16 }
 0x2fe   : > { %15612 = vmatprep.mubr.msk.bf16.mxu1 %vm6737_vm3, %v6602_v39  ;;  %v4419_v28 = vadd.f32 %v18231_v22, %v4418_v55  ;;  %v5706_v11 = vmul.f32 0.1, %v4416_v57 }
 0x2ff   : > { %15613 = vmatmul.mubr.msk.bf16.gmra.mrb[128].mxu1 %vm6737_vm3, %v6603_v51  ;;  %v5709_v8 = vmul.f32 0.1, %v4427_v52  ;;  %v6220_v29 = vmax.f32 %v4424_v16, %v5708_v6  ;;  %v17058_v16 = vld [vmem:[%s17602_s29 + $0x5b0] sm:$0xff]  }
 0x300   : > { %v5707_v46 = vmul.f32 0.1, %v4419_v28  ;;  %v6218_v21 = vmax.f32 %v4416_v57, %v5706_v11  ;;  %v17059_v57 = vld [vmem:[%s17602_s29 + $0x5b8] sm:$0xff]  }
 0x301   : > { %v6221_v58 = vmax.f32 %v4427_v52, %v5709_v8 }
 0x302   : > { %v6219_v34 = vmax.f32 %v4419_v28, %v5707_v46 }
 0x303   : > { %v6605_v22 = vpack.c.bf16 %v6221_v58, %v6220_v29  ;;  %15283 = vmatmul.mubr.msk.bf16.gmra.mrb[48].mxu0 %vm2600_vm1, %v17029_v33 }
 0x304   : > { %v6604_v62 = vpack.c.bf16 %v6219_v34, %v6218_v21  ;;  %15286 = vmatprep.mubr.msk.bf16.mxu0 %vm2600_vm1, %v17030_v15  ;;  %v17060_v21 = vld [vmem:[%s17602_s29 + $0x5c0] sm:$0xff]  }
 0x306   : > { %15616 = vmatprep.mubr.msk.bf16.mxu1 %vm6737_vm3, %v6604_v62  ;;  %v17061_v62 = vld [vmem:[%s17602_s29 + $0x5c8] sm:$0xff]  }
 0x307   : > { %15617 = vmatmul.mubr.msk.bf16.gmra.mrb[132].mxu1 %vm6737_vm3, %v6605_v22 }
 0x308   : > { %15622 = vmatprep.mubr.msk.bf16.mxu1 %vm6737_vm3, %v17733_v20  ;;  %v17032_v20 = vld [vmem:[%s17602_s29 + $0x4e0] sm:$0xff]  }
 0x30b   : > { %15287 = vmatmul.mubr.msk.bf16.gmra.mrb[52].mxu0 %vm2600_vm1, %v17031_v49 }
 0x30c   : > { %15290 = vmatprep.mubr.msk.bf16.mxu0 %vm2600_vm1, %v17032_v20 }
 0x30f   : > { %15623 = vmatmul.mubr.msk.bf16.vlgmr.msra.gmra.mrb[8].mxu1 %vm6737_vm3, %v17727_v13  ;;  %v17033_v13 = vld [vmem:[%s17602_s29 + $0x4e8] sm:$0xff]  }
 0x310   : > { %15751 = vmatpush3.bf16.msra.mxu1 %v8414_v38  ;;  %15626 = vmatprep.mubr.msk.bf16.mxu1 %vm6737_vm3, %v17745_v40  ;;  %v17034_v40 = vld [vmem:[%s17602_s29 + $0x4f0] sm:$0xff]  }
 0x311   : > { %16825 = vmatprep.subr.msk.bf16.mxu1 %vm6930_vm2, %v18569_v53 }
 0x313   : > { %15291 = vmatmul.mubr.msk.bf16.gmra.mrb[56].mxu0 %vm2600_vm1, %v17033_v13 }
 0x314   : > { %15294 = vmatprep.mubr.msk.bf16.mxu0 %vm2600_vm1, %v17034_v40 }
 0x317   : > { %15627 = vmatmul.mubr.msk.bf16.gmra.mrb[12].mxu1 %vm6737_vm3, %v17741_v36  ;;  %v17036_v36 = vld [vmem:[%s17602_s29 + $0x500] sm:$0xff]  }
 0x318   : > { %15630 = vmatprep.mubr.msk.bf16.mxu1 %vm6737_vm3, %v17757_v61  ;;  %v17037_v61 = vld [vmem:[%s17602_s29 + $0x508] sm:$0xff]  }
 0x31b   : > { %15295 = vmatmul.mubr.msk.bf16.gmra.mrb[60].mxu0 %vm2600_vm1, %v17035_v42 }
 0x31c   : > { %15298 = vmatprep.mubr.msk.bf16.mxu0 %vm2600_vm1, %v17036_v36 }
 0x31f   : > { %15631 = vmatmul.mubr.msk.bf16.gmra.mrb[16].mxu1 %vm6737_vm3, %v17753_v56  ;;  %v17038_v56 = vld [vmem:[%s17602_s29 + $0x510] sm:$0xff]  }
 0x320   : > { %15634 = vmatprep.mubr.msk.bf16.mxu1 %vm6737_vm3, %v17769_v18  ;;  %v17039_v18 = vld [vmem:[%s17602_s29 + $0x518] sm:$0xff]  }
 0x323   : > { %15299 = vmatmul.mubr.msk.bf16.gmra.mrb[64].mxu0 %vm2600_vm1, %v17037_v61 }
 0x324   : > { %15302 = vmatprep.mubr.msk.bf16.mxu0 %vm2600_vm1, %v17038_v56 }
 0x327   : > { %15635 = vmatmul.mubr.msk.bf16.gmra.mrb[20].mxu1 %vm6737_vm3, %v17765_v14  ;;  %v17040_v14 = vld [vmem:[%s17602_s29 + $0x520] sm:$0xff]  }
 0x328   : > { %15638 = vmatprep.mubr.msk.bf16.mxu1 %vm6737_vm3, %v17781_v41  ;;  %v17041_v41 = vld [vmem:[%s17602_s29 + $0x528] sm:$0xff]  }
 0x32b   : > { %15303 = vmatmul.mubr.msk.bf16.gmra.mrb[68].mxu0 %vm2600_vm1, %v17039_v18 }
 0x32c   : > { %15306 = vmatprep.mubr.msk.bf16.mxu0 %vm2600_vm1, %v17040_v14 }
 0x32f   : > { %15639 = vmatmul.mubr.msk.bf16.gmra.mrb[24].mxu1 %vm6737_vm3, %v17777_v35  ;;  %v17042_v35 = vld [vmem:[%s17602_s29 + $0x530] sm:$0xff]  }
 0x330   : > { %15642 = vmatprep.mubr.msk.bf16.mxu1 %vm6737_vm3, %v17793_v0  ;;  %v17043_v0 = vld [vmem:[%s17602_s29 + $0x538] sm:$0xff]  }
 0x333   : > { %15307 = vmatmul.mubr.msk.bf16.gmra.mrb[72].mxu0 %vm2600_vm1, %v17041_v41  ;;  %v17062_v41 = vld [vmem:[%s17602_s29 + $0x5d0] sm:$0xff]  }
 0x334   : > { %15310 = vmatprep.mubr.msk.bf16.mxu0 %vm2600_vm1, %v17042_v35 }
 0x337   : > { %15643 = vmatmul.mubr.msk.bf16.gmra.mrb[28].mxu1 %vm6737_vm3, %v17789_v59  ;;  %v17044_v59 = vld [vmem:[%s17602_s29 + $0x540] sm:$0xff]  }
 0x338   : > { %15646 = vmatprep.mubr.msk.bf16.mxu1 %vm6737_vm3, %v17805_v24  ;;  %v17045_v24 = vld [vmem:[%s17602_s29 + $0x548] sm:$0xff]  }
 0x33b   : > { %15311 = vmatmul.mubr.msk.bf16.gmra.mrb[76].mxu0 %vm2600_vm1, %v17043_v0  ;;  %v20717_v0 = vld [vmem:[#allocation9_spill] sm:$0xff] }
 0x33c   : > { %15314 = vmatprep.mubr.msk.bf16.mxu0 %vm2600_vm1, %v17044_v59 }
 0x33f   : > { %15647 = vmatmul.mubr.msk.bf16.gmra.mrb[32].mxu1 %vm6737_vm3, %v17801_v19  ;;  %v17046_v19 = vld [vmem:[%s17602_s29 + $0x550] sm:$0xff]  }
 0x340   : > { %15650 = vmatprep.mubr.msk.bf16.mxu1 %vm6737_vm3, %v17817_v48  ;;  %v17047_v48 = vld [vmem:[%s17602_s29 + $0x558] sm:$0xff]  }
 0x343   : > { %15315 = vmatmul.mubr.msk.bf16.gmra.mrb[80].mxu0 %vm2600_vm1, %v17045_v24  ;;  %v17063_v24 = vld [vmem:[%s17602_s29 + $0x5d8] sm:$0xff]  }
 0x344   : > { %15318 = vmatprep.mubr.msk.bf16.mxu0 %vm2600_vm1, %v17046_v19 }
 0x347   : > { %15651 = vmatmul.mubr.msk.bf16.gmra.mrb[36].mxu1 %vm6737_vm3, %v17813_v44  ;;  %v17048_v44 = vld [vmem:[%s17602_s29 + $0x560] sm:$0xff]  }
 0x348   : > { %15654 = vmatprep.mubr.msk.bf16.mxu1 %vm6737_vm3, %v17829_v9  ;;  %v17049_v9 = vld [vmem:[%s17602_s29 + $0x568] sm:$0xff]  }
 0x34b   : > { %15319 = vmatmul.mubr.msk.bf16.gmra.mrb[84].mxu0 %vm2600_vm1, %v17047_v48 }
 0x34c   : > { %15322 = vmatprep.mubr.msk.bf16.mxu0 %vm2600_vm1, %v17048_v44 }
 0x34f   : > { %15655 = vmatmul.mubr.msk.bf16.gmra.mrb[40].mxu1 %vm6737_vm3, %v17825_v5  ;;  %v17050_v5 = vld [vmem:[%s17602_s29 + $0x570] sm:$0xff]  }
 0x350   : > { %15658 = vmatprep.mubr.msk.bf16.mxu1 %vm6737_vm3, %v17841_v37  ;;  %v17051_v37 = vld [vmem:[%s17602_s29 + $0x578] sm:$0xff]  }
 0x353   : > { %15323 = vmatmul.mubr.msk.bf16.gmra.mrb[88].mxu0 %vm2600_vm1, %v17049_v9 }
 0x354   : > { %15326 = vmatprep.mubr.msk.bf16.mxu0 %vm2600_vm1, %v17050_v5 }
 0x357   : > { %15659 = vmatmul.mubr.msk.bf16.gmra.mrb[44].mxu1 %vm6737_vm3, %v17837_v31  ;;  %v17052_v31 = vld [vmem:[%s17602_s29 + $0x580] sm:$0xff]  }
 0x358   : > { %15662 = vmatprep.mubr.msk.bf16.mxu1 %vm6737_vm3, %v17853_v2  ;;  %v17053_v2 = vld [vmem:[%s17602_s29 + $0x588] sm:$0xff]  }
 0x35b   : > { %15327 = vmatmul.mubr.msk.bf16.gmra.mrb[92].mxu0 %vm2600_vm1, %v17051_v37 }
 0x35c   : > { %15330 = vmatprep.mubr.msk.bf16.mxu0 %vm2600_vm1, %v17052_v31 }
 0x35f   : > { %15663 = vmatmul.mubr.msk.bf16.gmra.mrb[48].mxu1 %vm6737_vm3, %v17849_v60  ;;  %v17054_v60 = vld [vmem:[%s17602_s29 + $0x590] sm:$0xff]  }
 0x360   : > { %15666 = vmatprep.mubr.msk.bf16.mxu1 %vm6737_vm3, %v17865_v30  ;;  %v17055_v30 = vld [vmem:[%s17602_s29 + $0x598] sm:$0xff]  }
 0x363   : > { %15331 = vmatmul.mubr.msk.bf16.gmra.mrb[96].mxu0 %vm2600_vm1, %v17053_v2 }
 0x364   : > { %15334 = vmatprep.mubr.msk.bf16.mxu0 %vm2600_vm1, %v17054_v60 }
 0x367   : > { %15667 = vmatmul.mubr.msk.bf16.gmra.mrb[52].mxu1 %vm6737_vm3, %v17861_v26  ;;  %v17056_v26 = vld [vmem:[%s17602_s29 + $0x5a0] sm:$0xff]  }
 0x368   : > { %15670 = vmatprep.mubr.msk.bf16.mxu1 %vm6737_vm3, %v17877_v63  ;;  %v17057_v63 = vld [vmem:[%s17602_s29 + $0x5a8] sm:$0xff]  }
 0x36b   : > { %15335 = vmatmul.mubr.msk.bf16.gmra.mrb[100].mxu0 %vm2600_vm1, %v17055_v30 }
 0x36c   : > { %15338 = vmatprep.mubr.msk.bf16.mxu0 %vm2600_vm1, %v17056_v26 }
 0x36f   : > { %15671 = vmatmul.mubr.msk.bf16.gmra.mrb[56].mxu1 %vm6737_vm3, %v17873_v54 }
 0x370   : > { %15674 = vmatprep.mubr.msk.bf16.mxu1 %vm6737_vm3, %v17889_v32  ;;  %v18542_v32 = vld [vmem:[%s20683_s10] ss:$0 sm:$0xff] }
 0x373   : > { %15339 = vmatmul.mubr.msk.bf16.gmra.mrb[104].mxu0 %vm2600_vm1, %v17057_v63 }
 0x374   : > { %15342 = vmatprep.mubr.msk.bf16.mxu0 %vm2600_vm1, %v17058_v16  ;;  %v17064_v16 = vld [vmem:[%s17602_s29 + $0x5e0] sm:$0xff]  }
 0x375   : > { %v15236_v54 = vpop.f32.mrb[0].mxu0 }
 0x376   : > { %v4440_v12 = vadd.f32 %v18542_v32, %v15236_v54  ;;  %v4431_v51 = vpop.f32.mrb[1].mxu0 }
 0x377   : > { %15675 = vmatmul.mubr.msk.bf16.gmra.mrb[60].mxu1 %vm6737_vm3, %v17885_v25  ;;  %v15237_v25 = vpop.f32.mrb[2].mxu0  ;;  %v4432_v55 = vadd.f32 %v18542_v32, %v4431_v51  ;;  %v20718_v51 = vld [vmem:[#allocation8_spill] sm:$0xff] }
 0x378   : > { %15678 = vmatprep.mubr.msk.bf16.mxu1 %vm6737_vm3, %v17905_v7  ;;  %v5712_v7 = vmul.f32 0.1, %v4440_v12  ;;  %v4443_v23 = vadd.f32 %v18542_v32, %v15237_v25  ;;  %v4434_v39 = vpop.f32.mrb[3].mxu0 }
 0x379   : > { %v4435_v52 = vadd.f32 %v18542_v32, %v4434_v39 }
 0x37a   : > { %v6224_v6 = vmax.f32 %v4440_v12, %v5712_v7  ;;  %v5713_v28 = vmul.f32 0.1, %v4443_v23 }
 0x37b   : > { %15343 = vmatmul.mubr.msk.bf16.gmra.mrb[108].mxu0 %vm2600_vm1, %v17059_v57  ;;  %v5711_v11 = vmul.f32 0.1, %v4435_v52  ;;  %v17065_v57 = vld [vmem:[%s17602_s29 + $0x5e8] sm:$0xff]  }
 0x37c   : > { %15346 = vmatprep.mubr.msk.bf16.mxu0 %vm2600_vm1, %v17060_v21 }
 0x37d   : > { %v6223_v46 = vmax.f32 %v4435_v52, %v5711_v11 }
 0x37e   : > { %v15240_v8 = vpop.f32.mrb[4].mxu0 }
 0x37f   : > { %15679 = vmatmul.mubr.msk.bf16.gmra.mrb[64].mxu1 %vm6737_vm3, %v17901_v1  ;;  %v5710_v1 = vmul.f32 0.1, %v4432_v55  ;;  %v4447_v29 = vpop.f32.mrb[5].mxu0  ;;  %v4456_v38 = vadd.f32 %v18542_v32, %v15240_v8 }
 0x380   : > { %15682 = vmatprep.mubr.msk.bf16.mxu1 %vm6737_vm3, %v17926_v50  ;;  %v6225_v50 = vmax.f32 %v4443_v23, %v5713_v28  ;;  %v15241_v58 = vpop.f32.mrb[6].mxu0  ;;  %v20719_v23 = vld [vmem:[#allocation11_spill] sm:$0xff] }
 0x381   : > { %v6222_v3 = vmax.f32 %v4432_v55, %v5710_v1  ;;  %v4450_v22 = vpop.f32.mrb[7].mxu0  ;;  %v5716_v20 = vmul.f32 0.1, %v4456_v38 }
 0x382   : > { %v18556_v4 = vpack.c.bf16 %v6225_v50, %v6224_v6  ;;  %v4451_v33 = vadd.f32 %v18542_v32, %v4450_v22 }
 0x383   : > { %v18561_v34 = vpack.c.bf16 %v6223_v46, %v6222_v3  ;;  %15347 = vmatmul.mubr.msk.bf16.gmra.mrb[112].mxu0 %vm2600_vm1, %v17061_v62  ;;  %v6228_v61 = vmax.f32 %v4456_v38, %v5716_v20  ;;  %v17066_v38 = vld [vmem:[%s17602_s29 + $0x5f0] sm:$0xff]   ;;  %v17067_v20 = vld [vmem:[%s17602_s29 + $0x5f8] sm:$0xff]  }
 0x384   : > { %v5715_v49 = vmul.f32 0.1, %v4451_v33  ;;  %15350 = vmatprep.mubr.msk.bf16.mxu0 %vm2600_vm1, %v17062_v41 }
 0x386   : > { %v15244_v40 = vpop.f32.mrb[8].mxu0  ;;  %v6227_v36 = vmax.f32 %v4451_v33, %v5715_v49 }
 0x387   : > { %15683 = vmatmul.mubr.msk.bf16.gmra.mrb[68].mxu1 %vm6737_vm3, %v17922_v45  ;;  %v4448_v45 = vadd.f32 %v18542_v32, %v4447_v29  ;;  %v4463_v56 = vpop.f32.mrb[9].mxu0 }
 0x388   : > { %15686 = vmatprep.mubr.msk.bf16.mxu1 %vm6737_vm3, %v17938_v27  ;;  %v4459_v27 = vadd.f32 %v18542_v32, %v15241_v58  ;;  %v15245_v14 = vpop.f32.mrb[10].mxu0  ;;  %v4464_v48 = vadd.f32 %v18542_v32, %v4463_v56 }
 0x389   : > { %v5714_v15 = vmul.f32 0.1, %v4448_v45  ;;  %v4466_v59 = vpop.f32.mrb[11].mxu0  ;;  %v4475_v9 = vadd.f32 %v18542_v32, %v15245_v14 }
 0x38a   : > { %v5717_v13 = vmul.f32 0.1, %v4459_v27  ;;  %v4467_v44 = vadd.f32 %v18542_v32, %v4466_v59  ;;  %v5718_v5 = vmul.f32 0.1, %v4464_v48 }
 0x38b   : > { %v6226_v42 = vmax.f32 %v4448_v45, %v5714_v15  ;;  %15351 = vmatmul.mubr.msk.bf16.gmra.mrb[116].mxu0 %vm2600_vm1, %v17063_v24  ;;  %v5721_v2 = vmul.f32 0.1, %v4475_v9  ;;  %v20720_v45 = vld [vmem:[#allocation10_spill] sm:$0xff]  ;;  %v20721_v15 = vld [vmem:[#allocation13_spill] sm:$0xff] }
 0x38c   : > { %v6229_v18 = vmax.f32 %v4459_v27, %v5717_v13  ;;  %v5719_v37 = vmul.f32 0.1, %v4467_v44  ;;  %v6230_v30 = vmax.f32 %v4464_v48, %v5718_v5  ;;  %15354 = vmatprep.mubr.msk.bf16.mxu0 %vm2600_vm1, %v17064_v16 }
 0x38d   : > { %v18582_v35 = vpack.c.bf16 %v6227_v36, %v6226_v42  ;;  %v6233_v12 = vmax.f32 %v4475_v9, %v5721_v2  ;;  %v20722_v9 = vld [vmem:[#allocation12_spill] sm:$0xff]  ;;  %v20723_v2 = vld [vmem:[#allocation15_spill] sm:$0xff] }
 0x38e   : > { %v18587_v19 = vpack.c.bf16 %v6229_v18, %v6228_v61  ;;  %v15248_v60 = vpop.f32.mrb[12].mxu0  ;;  %v6231_v26 = vmax.f32 %v4467_v44, %v5719_v37  ;;  %v17068_v37 = vld [vmem:[%s17602_s29 + $0x600] sm:$0xff]  }
 0x38f   : > { %15687 = vmatmul.mubr.msk.bf16.gmra.mrb[72].mxu1 %vm6737_vm3, %v17934_v17  ;;  %v4472_v17 = vadd.f32 %v18542_v32, %v15244_v40  ;;  %v4479_v54 = vpop.f32.mrb[13].mxu0  ;;  %v4488_v28 = vadd.f32 %v18542_v32, %v15248_v60 }
 0x390   : > { %15690 = vmatprep.mubr.msk.bf16.mxu1 %vm6737_vm3, %v20717_v0  ;;  %v15249_v25 = vpop.f32.mrb[14].mxu0  ;;  %v18598_v7 = vpack.c.bf16 %v6231_v26, %v6230_v30  ;;  %v4480_v52 = vadd.f32 %v18542_v32, %v4479_v54  ;;  %v17069_v30 = vld [vmem:[%s17602_s29 + $0x608] sm:$0xff]  }
 0x391   : > { %v5720_v31 = vmul.f32 0.1, %v4472_v17  ;;  %v4482_v39 = vpop.f32.mrb[15].mxu0  ;;  %v4491_v1 = vadd.f32 %v18542_v32, %v15249_v25  ;;  %v5724_v8 = vmul.f32 0.1, %v4488_v28 }
 0x392   : > { %v4483_v6 = vadd.f32 %v18542_v32, %v4482_v39  ;;  %v5722_v11 = vmul.f32 0.1, %v4480_v52 }
 0x393   : > { %v6232_v63 = vmax.f32 %v4472_v17, %v5720_v31  ;;  %15355 = vmatmul.mubr.msk.bf16.gmra.mrb[120].mxu0 %vm2600_vm1, %v17065_v57  ;;  %v5725_v3 = vmul.f32 0.1, %v4491_v1  ;;  %v6236_v21 = vmax.f32 %v4488_v28, %v5724_v8  ;;  %v20724_v8 = vld [vmem:[#allocation14_spill] sm:$0xff] }
 0x394   : > { %v5723_v50 = vmul.f32 0.1, %v4483_v6  ;;  %v6234_v29 = vmax.f32 %v4480_v52, %v5722_v11  ;;  %15358 = vmatprep.mubr.msk.bf16.mxu0 %vm2600_vm1, %v17066_v38 }
 0x395   : > { %v18603_v55 = vpack.c.bf16 %v6233_v12, %v6232_v63  ;;  %v6237_v62 = vmax.f32 %v4491_v1, %v5725_v3 }
 0x396   : > { %v15252_v46 = vpop.f32.mrb[16].mxu0  ;;  %v6235_v58 = vmax.f32 %v4483_v6, %v5723_v50 }
 0x397   : > { %15691 = vmatmul.mubr.msk.bf16.gmra.mrb[76].mxu1 %vm6737_vm3, %v20718_v51  ;;  %v4495_v22 = vpop.f32.mrb[17].mxu0  ;;  %v18619_v13 = vpack.c.bf16 %v6237_v62, %v6236_v21  ;;  %v4504_v36 = vadd.f32 %v18542_v32, %v15252_v46  ;;  %v20725_v21 = vld [vmem:[#allocation17_spill] sm:$0xff] }
 0x398   : > { %15694 = vmatprep.mubr.msk.bf16.mxu1 %vm6737_vm3, %v20719_v23  ;;  %v15253_v33 = vpop.f32.mrb[18].mxu0  ;;  %v18614_v27 = vpack.c.bf16 %v6235_v58, %v6234_v29  ;;  %v4496_v40 = vadd.f32 %v18542_v32, %v4495_v22  ;;  %v17070_v29 = vld [vmem:[%s17602_s29 + $0x610] sm:$0xff]  }
 0x399   : > { %v4498_v49 = vpop.f32.mrb[19].mxu0  ;;  %v4507_v61 = vadd.f32 %v18542_v32, %v15253_v33  ;;  %v5728_v14 = vmul.f32 0.1, %v4504_v36  ;;  %v17071_v33 = vld [vmem:[%s17602_s29 + $0x618] sm:$0xff]  }
 0x39a   : > { %v4499_v42 = vadd.f32 %v18542_v32, %v4498_v49  ;;  %v5726_v56 = vmul.f32 0.1, %v4496_v40 }
 0x39b   : > { %15359 = vmatmul.mubr.msk.bf16.gmra.mrb[124].mxu0 %vm2600_vm1, %v17067_v20  ;;  %v5729_v41 = vmul.f32 0.1, %v4507_v61  ;;  %v6240_v48 = vmax.f32 %v4504_v36, %v5728_v14 }
 0x39c   : > { %v5727_v18 = vmul.f32 0.1, %v4499_v42  ;;  %v6238_v59 = vmax.f32 %v4496_v40, %v5726_v56  ;;  %15362 = vmatprep.mubr.msk.bf16.mxu0 %vm2600_vm1, %v17068_v37 }
 0x39d   : > { %v6241_v17 = vmax.f32 %v4507_v61, %v5729_v41 }
 0x39e   : > { %v15256_v0 = vpop.f32.mrb[20].mxu0  ;;  %v6239_v24 = vmax.f32 %v4499_v42, %v5727_v18 }
 0x39f   : > { %15695 = vmatmul.mubr.msk.bf16.gmra.mrb[80].mxu1 %vm6737_vm3, %v20720_v45  ;;  %v4511_v44 = vpop.f32.mrb[21].mxu0  ;;  %v18635_v26 = vpack.c.bf16 %v6241_v17, %v6240_v48  ;;  %v4520_v12 = vadd.f32 %v18542_v32, %v15256_v0  ;;  %v17072_v17 = vld [vmem:[%s17602_s29 + $0x620] sm:$0xff]  }
 0x3a0   : > { %15698 = vmatprep.mubr.msk.bf16.mxu1 %vm6737_vm3, %v20721_v15  ;;  %v15257_v5 = vpop.f32.mrb[22].mxu0  ;;  %v18630_v31 = vpack.c.bf16 %v6239_v24, %v6238_v59  ;;  %v4512_v63 = vadd.f32 %v18542_v32, %v4511_v44  ;;  %v20726_v59 = vld [vmem:[#allocation16_spill] sm:$0xff] }
 0x3a1   : > { %v4514_v60 = vpop.f32.mrb[23].mxu0  ;;  %v4523_v51 = vadd.f32 %v18542_v32, %v15257_v5  ;;  %v5732_v23 = vmul.f32 0.1, %v4520_v12 }
 0x3a2   : > { %v4515_v54 = vadd.f32 %v18542_v32, %v4514_v60  ;;  %v5730_v25 = vmul.f32 0.1, %v4512_v63  ;;  %v17073_v60 = vld [vmem:[%s17602_s29 + $0x628] sm:$0xff]  }
 0x3a3   : > { %15363 = vmatmul.mubr.msk.bf16.gmra.mrb[128].mxu0 %vm2600_vm1, %v17069_v30  ;;  %v5733_v39 = vmul.f32 0.1, %v4523_v51  ;;  %v6244_v28 = vmax.f32 %v4520_v12, %v5732_v23 }
 0x3a4   : > { %v5731_v16 = vmul.f32 0.1, %v4515_v54  ;;  %v6242_v52 = vmax.f32 %v4512_v63, %v5730_v25  ;;  %15366 = vmatprep.mubr.msk.bf16.mxu0 %vm2600_vm1, %v17070_v29 }
 0x3a5   : > { %v6245_v50 = vmax.f32 %v4523_v51, %v5733_v39 }
 0x3a6   : > { %v15260_v57 = vpop.f32.mrb[24].mxu0  ;;  %v6243_v6 = vmax.f32 %v4515_v54, %v5731_v16 }
 0x3a7   : > { %15699 = vmatmul.mubr.msk.bf16.gmra.mrb[84].mxu1 %vm6737_vm3, %v20722_v9  ;;  %v4536_v1 = vadd.f32 %v18542_v32, %v15260_v57  ;;  %v4527_v11 = vpop.f32.mrb[25].mxu0  ;;  %v18654_v38 = vpack.c.bf16 %v6245_v50, %v6244_v28  ;;  %v20727_v9 = vld [vmem:[#allocation19_spill] sm:$0xff]  ;;  %v20728_v28 = vld [vmem:[#allocation18_spill] sm:$0xff] }
 0x3a8   : > { %15702 = vmatprep.mubr.msk.bf16.mxu1 %vm6737_vm3, %v20723_v2  ;;  %v4528_v3 = vadd.f32 %v18542_v32, %v4527_v11  ;;  %v15261_v46 = vpop.f32.mrb[26].mxu0  ;;  %v18648_v58 = vpack.c.bf16 %v6243_v6, %v6242_v52 }
 0x3a9   : > { %v5736_v22 = vmul.f32 0.1, %v4536_v1  ;;  %v4539_v62 = vadd.f32 %v18542_v32, %v15261_v46  ;;  %v4530_v45 = vpop.f32.mrb[27].mxu0 }
 0x3aa   : > { %v5734_v15 = vmul.f32 0.1, %v4528_v3  ;;  %v4531_v49 = vadd.f32 %v18542_v32, %v4530_v45 }
 0x3ab   : > { %v6248_v20 = vmax.f32 %v4536_v1, %v5736_v22  ;;  %v5737_v40 = vmul.f32 0.1, %v4539_v62  ;;  %15367 = vmatmul.mubr.msk.bf16.gmra.mrb[132].mxu0 %vm2600_vm1, %v17071_v33  ;;  %v17075_v22 = vld [vmem:[%s17602_s29 + $0x638] sm:$0xff]  }
 0x3ac   : > { %v6246_v42 = vmax.f32 %v4528_v3, %v5734_v15  ;;  %v5735_v36 = vmul.f32 0.1, %v4531_v49  ;;  %15370 = vmatprep.mubr.msk.bf16.mxu0 %vm2600_vm1, %v17072_v17  ;;  %v20729_v3 = vld [vmem:[#allocation21_spill] sm:$0xff]  ;;  %v20731_v17 = vld [vmem:[#allocation23_spill] sm:$0xff] }
 0x3ad   : > { %v6249_v61 = vmax.f32 %v4539_v62, %v5737_v40 }
 0x3ae   : > { %v6247_v56 = vmax.f32 %v4531_v49, %v5735_v36  ;;  %v15264_v18 = vpop.f32.mrb[28].mxu0 }
 0x3af   : > { %15703 = vmatmul.mubr.msk.bf16.gmra.mrb[88].mxu1 %vm6737_vm3, %v20724_v8  ;;  %v18659_v14 = vpack.c.bf16 %v6249_v61, %v6248_v20  ;;  %v4552_v41 = vadd.f32 %v18542_v32, %v15264_v18  ;;  %v4543_v0 = vpop.f32.mrb[29].mxu0  ;;  %v17074_v8 = vld [vmem:[%s17602_s29 + $0x630] sm:$0xff]  }
 0x3b0   : > { %15706 = vmatprep.mubr.msk.bf16.mxu1 %vm6737_vm3, %v20725_v21  ;;  %v18664_v24 = vpack.c.bf16 %v6247_v56, %v6246_v42  ;;  %v4544_v48 = vadd.f32 %v18542_v32, %v4543_v0  ;;  %v15265_v44 = vpop.f32.mrb[30].mxu0 }
 0x3b1   : > { %v5740_v5 = vmul.f32 0.1, %v4552_v41  ;;  %v4555_v37 = vadd.f32 %v18542_v32, %v15265_v44  ;;  %v4546_v2 = vpop.f32.mrb[31].mxu0  ;;  %v17076_v44 = vld [vmem:[%s17602_s29 + $0x640] sm:$0xff]  }
 0x3b2   : > { %v5738_v30 = vmul.f32 0.1, %v4544_v48  ;;  %v4547_v63 = vadd.f32 %v18542_v32, %v4546_v2  ;;  %v17077_v2 = vld [vmem:[%s17602_s29 + $0x648] sm:$0xff]  }
 0x3b3   : > { %v6252_v54 = vmax.f32 %v4552_v41, %v5740_v5  ;;  %v5741_v12 = vmul.f32 0.1, %v4555_v37  ;;  %15371 = vmatmul.mubr.msk.bf16.gmra.mrb[136].mxu0 %vm2600_vm1, %v17073_v60  ;;  %v20730_v41 = vld [vmem:[#allocation20_spill] sm:$0xff] }
 0x3b4   : > { %v6250_v51 = vmax.f32 %v4544_v48, %v5738_v30  ;;  %v5739_v25 = vmul.f32 0.1, %v4547_v63  ;;  %15374 = vmatprep.mubr.msk.bf16.mxu0 %vm2600_vm1, %v17074_v8 }
 0x3b5   : > { %v6253_v16 = vmax.f32 %v4555_v37, %v5741_v12 }
 0x3b6   : > { %v6251_v23 = vmax.f32 %v4547_v63, %v5739_v25  ;;  %v15268_v39 = vpop.f32.mrb[32].mxu0 }
 0x3b7   : > { %15707 = vmatmul.mubr.msk.bf16.gmra.mrb[92].mxu1 %vm6737_vm3, %v20726_v59  ;;  %v18675_v57 = vpack.c.bf16 %v6253_v16, %v6252_v54  ;;  %v4568_v52 = vadd.f32 %v18542_v32, %v15268_v39  ;;  %v4559_v6 = vpop.f32.mrb[33].mxu0 }
 0x3b8   : > { %15710 = vmatprep.mubr.msk.bf16.mxu1 %vm6737_vm3, %v20727_v9  ;;  %v18680_v1 = vpack.c.bf16 %v6251_v23, %v6250_v51  ;;  %v4560_v11 = vadd.f32 %v18542_v32, %v4559_v6  ;;  %v15269_v50 = vpop.f32.mrb[34].mxu0 }
 0x3b9   : > { %v5744_v46 = vmul.f32 0.1, %v4568_v52  ;;  %v4571_v29 = vadd.f32 %v18542_v32, %v15269_v50  ;;  %v4562_v21 = vpop.f32.mrb[35].mxu0 }
 0x3ba   : > { %v5742_v62 = vmul.f32 0.1, %v4560_v11  ;;  %v4563_v45 = vadd.f32 %v18542_v32, %v4562_v21 }
 0x3bb   : > { %v6256_v33 = vmax.f32 %v4568_v52, %v5744_v46  ;;  %v5745_v15 = vmul.f32 0.1, %v4571_v29  ;;  %15375 = vmatmul.mubr.msk.bf16.gmra.mrb[140].mxu0 %vm2600_vm1, %v17075_v22  ;;  %v20733_v46 = vld [vmem:[#allocation25_spill] sm:$0xff] }
 0x3bc   : > { %v6254_v49 = vmax.f32 %v4560_v11, %v5742_v62  ;;  %v5743_v20 = vmul.f32 0.1, %v4563_v45  ;;  %15378 = vmatprep.mubr.msk.bf16.mxu0 %vm2600_vm1, %v17076_v44  ;;  %v17079_v62 = vld [vmem:[%s17602_s29 + $0x658] sm:$0xff]  }
 0x3bd   : > { %v6257_v40 = vmax.f32 %v4571_v29, %v5745_v15 }
 0x3be   : > { %v6255_v42 = vmax.f32 %v4563_v45, %v5743_v20  ;;  %v15272_v36 = vpop.f32.mrb[36].mxu0 }
 0x3bf   : > { %15711 = vmatmul.mubr.msk.bf16.gmra.mrb[96].mxu1 %vm6737_vm3, %v20728_v28  ;;  %v18691_v61 = vpack.c.bf16 %v6257_v40, %v6256_v33  ;;  %v4584_v56 = vadd.f32 %v18542_v32, %v15272_v36  ;;  %v4575_v18 = vpop.f32.mrb[37].mxu0  ;;  %v20732_v28 = vld [vmem:[#allocation22_spill] sm:$0xff] }
 0x3c0   : > { %15714 = vmatprep.mubr.msk.bf16.mxu1 %vm6737_vm3, %v20729_v3  ;;  %v18696_v0 = vpack.c.bf16 %v6255_v42, %v6254_v49  ;;  %v4576_v59 = vadd.f32 %v18542_v32, %v4575_v18  ;;  %v15273_v48 = vpop.f32.mrb[38].mxu0  ;;  %v17078_v3 = vld [vmem:[%s17602_s29 + $0x650] sm:$0xff]  }
 0x3c1   : > { %v5748_v9 = vmul.f32 0.1, %v4584_v56  ;;  %v4587_v5 = vadd.f32 %v18542_v32, %v15273_v48  ;;  %v4578_v37 = vpop.f32.mrb[39].mxu0  ;;  %v20734_v48 = vld [vmem:[#allocation24_spill] sm:$0xff] }
 0x3c2   : > { %v5746_v60 = vmul.f32 0.1, %v4576_v59  ;;  %v4579_v30 = vadd.f32 %v18542_v32, %v4578_v37  ;;  %v20735_v37 = vld [vmem:[#allocation27_spill] sm:$0xff] }
 0x3c3   : > { %v6260_v63 = vmax.f32 %v4584_v56, %v5748_v9  ;;  %v5749_v54 = vmul.f32 0.1, %v4587_v5  ;;  %15379 = vmatmul.mubr.msk.bf16.gmra.mrb[144].mxu0 %vm2600_vm1, %v17077_v2 }
 0x3c4   : > { %v6258_v12 = vmax.f32 %v4576_v59, %v5746_v60  ;;  %v5747_v51 = vmul.f32 0.1, %v4579_v30  ;;  %15382 = vmatprep.mubr.msk.bf16.mxu0 %vm2600_vm1, %v17078_v3 }
 0x3c5   : > { %v6261_v25 = vmax.f32 %v4587_v5, %v5749_v54  ;;  %v17080_v5 = vld [vmem:[%s17602_s29 + $0x660] sm:$0xff]  }
 0x3c6   : > { %v6259_v16 = vmax.f32 %v4579_v30, %v5747_v51  ;;  %v15276_v23 = vpop.f32.mrb[40].mxu0 }
 0x3c7   : > { %15715 = vmatmul.mubr.msk.bf16.gmra.mrb[100].mxu1 %vm6737_vm3, %v20730_v41  ;;  %v18707_v39 = vpack.c.bf16 %v6261_v25, %v6260_v63  ;;  %v4600_v52 = vadd.f32 %v18542_v32, %v15276_v23  ;;  %v4591_v6 = vpop.f32.mrb[41].mxu0  ;;  %v17081_v63 = vld [vmem:[%s17602_s29 + $0x668] sm:$0xff]  }
 0x3c8   : > { %15718 = vmatprep.mubr.msk.bf16.mxu1 %vm6737_vm3, %v20731_v17  ;;  %v18712_v11 = vpack.c.bf16 %v6259_v16, %v6258_v12  ;;  %v4592_v50 = vadd.f32 %v18542_v32, %v4591_v6  ;;  %v15277_v8 = vpop.f32.mrb[42].mxu0 }
 0x3c9   : > { %v5752_v29 = vmul.f32 0.1, %v4600_v52  ;;  %v4603_v21 = vadd.f32 %v18542_v32, %v15277_v8  ;;  %v4594_v22 = vpop.f32.mrb[43].mxu0 }
 0x3ca   : > { %v5750_v45 = vmul.f32 0.1, %v4592_v50  ;;  %v4595_v33 = vadd.f32 %v18542_v32, %v4594_v22 }
 0x3cb   : > { %v6264_v15 = vmax.f32 %v4600_v52, %v5752_v29  ;;  %v5753_v49 = vmul.f32 0.1, %v4603_v21  ;;  %15383 = vmatmul.mubr.msk.bf16.gmra.mrb[148].mxu0 %vm2600_vm1, %v17079_v62  ;;  %v17082_v62 = vld [vmem:[%s17602_s29 + $0x670] sm:$0xff]  }
 0x3cc   : > { %v6262_v20 = vmax.f32 %v4592_v50, %v5750_v45  ;;  %v5751_v40 = vmul.f32 0.1, %v4595_v33  ;;  %15386 = vmatprep.mubr.msk.bf16.mxu0 %vm2600_vm1, %v17080_v5  ;;  %v20737_v45 = vld [vmem:[#allocation29_spill] sm:$0xff] }
 0x3cd   : > { %v6265_v42 = vmax.f32 %v4603_v21, %v5753_v49 }
 0x3ce   : > { %v6263_v36 = vmax.f32 %v4595_v33, %v5751_v40  ;;  %v15280_v56 = vpop.f32.mrb[44].mxu0 }
 0x3cf   : > { %15719 = vmatmul.mubr.msk.bf16.gmra.mrb[104].mxu1 %vm6737_vm3, %v20732_v28  ;;  %v18723_v18 = vpack.c.bf16 %v6265_v42, %v6264_v15  ;;  %v4616_v41 = vadd.f32 %v18542_v32, %v15280_v56  ;;  %v4607_v59 = vpop.f32.mrb[45].mxu0 }
 0x3d0   : > { %15722 = vmatprep.mubr.msk.bf16.mxu1 %vm6737_vm3, %v20733_v46  ;;  %v18728_v44 = vpack.c.bf16 %v6263_v36, %v6262_v20  ;;  %v4608_v17 = vadd.f32 %v18542_v32, %v4607_v59  ;;  %v15281_v9 = vpop.f32.mrb[46].mxu0  ;;  %v20736_v46 = vld [vmem:[#allocation26_spill] sm:$0xff]  ;;  %v17083_v20 = vld [vmem:[%s17602_s29 + $0x678] sm:$0xff]  }
 0x3d1   : > { %v5756_v2 = vmul.f32 0.1, %v4616_v41  ;;  %v4619_v60 = vadd.f32 %v18542_v32, %v15281_v9  ;;  %v4610_v30 = vpop.f32.mrb[47].mxu0 }
 0x3d2   : > { %v5754_v54 = vmul.f32 0.1, %v4608_v17  ;;  %v4611_v12 = vadd.f32 %v18542_v32, %v4610_v30 }
 0x3d3   : > { %v6268_v51 = vmax.f32 %v4616_v41, %v5756_v2  ;;  %v5757_v25 = vmul.f32 0.1, %v4619_v60  ;;  %15387 = vmatmul.mubr.msk.bf16.gmra.mrb[152].mxu0 %vm2600_vm1, %v17081_v63 }
 0x3d4   : > { %v6266_v16 = vmax.f32 %v4608_v17, %v5754_v54  ;;  %v5755_v23 = vmul.f32 0.1, %v4611_v12  ;;  %15390 = vmatprep.mubr.msk.bf16.mxu0 %vm2600_vm1, %v17082_v62 }
 0x3d5   : > { %v6269_v52 = vmax.f32 %v4619_v60, %v5757_v25  ;;  %v20738_v60 = vld [vmem:[#allocation28_spill] sm:$0xff] }
 0x3d6   : > { %v6267_v6 = vmax.f32 %v4611_v12, %v5755_v23  ;;  %v15284_v28 = vpop.f32.mrb[48].mxu0  ;;  %v17084_v12 = vld [vmem:[%s17602_s29 + $0x680] sm:$0xff]  }
 0x3d7   : > { %15723 = vmatmul.mubr.msk.bf16.gmra.mrb[108].mxu1 %vm6737_vm3, %v20734_v48  ;;  %v18739_v50 = vpack.c.bf16 %v6269_v52, %v6268_v51  ;;  %v4632_v8 = vadd.f32 %v18542_v32, %v15284_v28  ;;  %v4623_v3 = vpop.f32.mrb[49].mxu0  ;;  %v20739_v51 = vld [vmem:[#allocation31_spill] sm:$0xff]  ;;  %v17085_v52 = vld [vmem:[%s17602_s29 + $0x688] sm:$0xff]  }
 0x3d8   : > { %15726 = vmatprep.mubr.msk.bf16.mxu1 %vm6737_vm3, %v20735_v37  ;;  %v18744_v29 = vpack.c.bf16 %v6267_v6, %v6266_v16  ;;  %v4624_v21 = vadd.f32 %v18542_v32, %v4623_v3  ;;  %v15285_v22 = vpop.f32.mrb[50].mxu0 }
 0x3d9   : > { %v5760_v33 = vmul.f32 0.1, %v4632_v8  ;;  %v4635_v15 = vadd.f32 %v18542_v32, %v15285_v22  ;;  %v4626_v49 = vpop.f32.mrb[51].mxu0 }
 0x3da   : > { %v5758_v40 = vmul.f32 0.1, %v4624_v21  ;;  %v4627_v42 = vadd.f32 %v18542_v32, %v4626_v49 }
 0x3db   : > { %v6272_v36 = vmax.f32 %v4632_v8, %v5760_v33  ;;  %v5761_v56 = vmul.f32 0.1, %v4635_v15  ;;  %15391 = vmatmul.mubr.msk.bf16.gmra.mrb[156].mxu0 %vm2600_vm1, %v17083_v20  ;;  %v20740_v20 = vld [vmem:[#allocation30_spill] sm:$0xff] }
 0x3dc   : > { %v6270_v41 = vmax.f32 %v4624_v21, %v5758_v40  ;;  %v5759_v59 = vmul.f32 0.1, %v4627_v42  ;;  %15394 = vmatprep.mubr.msk.bf16.mxu0 %vm2600_vm1, %v17084_v12 }
 0x3dd   : > { %v6273_v48 = vmax.f32 %v4635_v15, %v5761_v56  ;;  %v17086_v56 = vld [vmem:[%s17602_s29 + $0x690] sm:$0xff]  }
 0x3de   : > { %v6271_v17 = vmax.f32 %v4627_v42, %v5759_v59  ;;  %v15288_v9 = vpop.f32.mrb[52].mxu0 }
 0x3df   : > { %15727 = vmatmul.mubr.msk.bf16.gmra.mrb[112].mxu1 %vm6737_vm3, %v20736_v46  ;;  %v18755_v5 = vpack.c.bf16 %v6273_v48, %v6272_v36  ;;  %v4648_v37 = vadd.f32 %v18542_v32, %v15288_v9  ;;  %v4639_v2 = vpop.f32.mrb[53].mxu0  ;;  %v17087_v9 = vld [vmem:[%s17602_s29 + $0x698] sm:$0xff]  }
 0x3e0   : > { %15730 = vmatprep.mubr.msk.bf16.mxu1 %vm6737_vm3, %v20737_v45  ;;  %v18760_v30 = vpack.c.bf16 %v6271_v17, %v6270_v41  ;;  %v4640_v63 = vadd.f32 %v18542_v32, %v4639_v2  ;;  %v15289_v54 = vpop.f32.mrb[54].mxu0  ;;  %v20741_v41 = vld [vmem:[#allocation33_spill] sm:$0xff] }
 0x3e1   : > { %v5764_v25 = vmul.f32 0.1, %v4648_v37  ;;  %v4651_v16 = vadd.f32 %v18542_v32, %v15289_v54  ;;  %v4642_v23 = vpop.f32.mrb[55].mxu0 }
 0x3e2   : > { %v5762_v6 = vmul.f32 0.1, %v4640_v63  ;;  %v4643_v28 = vadd.f32 %v18542_v32, %v4642_v23 }
 0x3e3   : > { %v6276_v8 = vmax.f32 %v4648_v37, %v5764_v25  ;;  %v5765_v3 = vmul.f32 0.1, %v4651_v16  ;;  %15395 = vmatmul.mubr.msk.bf16.gmra.mrb[160].mxu0 %vm2600_vm1, %v17085_v52 }
 0x3e4   : > { %v6274_v46 = vmax.f32 %v4640_v63, %v5762_v6  ;;  %v5763_v21 = vmul.f32 0.1, %v4643_v28  ;;  %15398 = vmatprep.mubr.msk.bf16.mxu0 %vm2600_vm1, %v17086_v56 }
 0x3e5   : > { %v6277_v22 = vmax.f32 %v4651_v16, %v5765_v3 }
 0x3e6   : > { %v6275_v62 = vmax.f32 %v4643_v28, %v5763_v21  ;;  %v15292_v45 = vpop.f32.mrb[56].mxu0  ;;  %v20742_v28 = vld [vmem:[#allocation32_spill] sm:$0xff] }
 0x3e7   : > { %15731 = vmatmul.mubr.msk.bf16.gmra.mrb[116].mxu1 %vm6737_vm3, %v20738_v60  ;;  %v18771_v33 = vpack.c.bf16 %v6277_v22, %v6276_v8  ;;  %v4664_v15 = vadd.f32 %v18542_v32, %v15292_v45  ;;  %v4655_v49 = vpop.f32.mrb[57].mxu0  ;;  %v17088_v21 = vld [vmem:[%s17602_s29 + $0x6a0] sm:$0xff]   ;;  %v20743_v22 = vld [vmem:[#allocation35_spill] sm:$0xff] }
 0x3e8   : > { %15734 = vmatprep.mubr.msk.bf16.mxu1 %vm6737_vm3, %v20739_v51  ;;  %v18776_v40 = vpack.c.bf16 %v6275_v62, %v6274_v46  ;;  %v4656_v42 = vadd.f32 %v18542_v32, %v4655_v49  ;;  %v15293_v36 = vpop.f32.mrb[58].mxu0  ;;  %v17089_v49 = vld [vmem:[%s17602_s29 + $0x6a8] sm:$0xff]  }
 0x3e9   : > { %v5768_v59 = vmul.f32 0.1, %v4664_v15  ;;  %v4667_v48 = vadd.f32 %v18542_v32, %v15293_v36  ;;  %v4658_v17 = vpop.f32.mrb[59].mxu0 }
 0x3ea   : > { %v5766_v37 = vmul.f32 0.1, %v4656_v42  ;;  %v4659_v2 = vadd.f32 %v18542_v32, %v4658_v17 }
 0x3eb   : > { %v6280_v60 = vmax.f32 %v4664_v15, %v5768_v59  ;;  %v5769_v63 = vmul.f32 0.1, %v4667_v48  ;;  %15399 = vmatmul.mubr.msk.bf16.gmra.mrb[164].mxu0 %vm2600_vm1, %v17087_v9 }
 0x3ec   : > { %v6278_v54 = vmax.f32 %v4656_v42, %v5766_v37  ;;  %v5767_v12 = vmul.f32 0.1, %v4659_v2  ;;  %15402 = vmatprep.mubr.msk.bf16.mxu0 %vm2600_vm1, %v17088_v21 }
 0x3ed   : > { %v6281_v51 = vmax.f32 %v4667_v48, %v5769_v63  ;;  %v20744_v63 = vld [vmem:[#allocation34_spill] sm:$0xff] }
 0x3ee   : > { %v6279_v25 = vmax.f32 %v4659_v2, %v5767_v12  ;;  %v15296_v16 = vpop.f32.mrb[60].mxu0 }
 0x3ef   : > { %15735 = vmatmul.mubr.msk.bf16.gmra.mrb[120].mxu1 %vm6737_vm3, %v20740_v20  ;;  %v18787_v23 = vpack.c.bf16 %v6281_v51, %v6280_v60  ;;  %v4680_v52 = vadd.f32 %v18542_v32, %v15296_v16  ;;  %v4671_v6 = vpop.f32.mrb[61].mxu0  ;;  %v20745_v16 = vld [vmem:[#allocation37_spill] sm:$0xff] }
 0x3f0   : > { %15738 = vmatprep.mubr.msk.bf16.mxu1 %vm6737_vm3, %v20741_v41  ;;  %v18792_v8 = vpack.c.bf16 %v6279_v25, %v6278_v54  ;;  %v4672_v3 = vadd.f32 %v18542_v32, %v4671_v6  ;;  %v15297_v46 = vpop.f32.mrb[62].mxu0  ;;  %v17090_v25 = vld [vmem:[%s17602_s29 + $0x6b0] sm:$0xff]  }
 0x3f1   : > { %v5772_v62 = vmul.f32 0.1, %v4680_v52  ;;  %v4683_v45 = vadd.f32 %v18542_v32, %v15297_v46  ;;  %v4674_v15 = vpop.f32.mrb[63].mxu0 }
 0x3f2   : > { %v5770_v20 = vmul.f32 0.1, %v4672_v3  ;;  %v4675_v42 = vadd.f32 %v18542_v32, %v4674_v15 }
 0x3f3   : > { %v6284_v36 = vmax.f32 %v4680_v52, %v5772_v62  ;;  %v5773_v56 = vmul.f32 0.1, %v4683_v45  ;;  %15403 = vmatmul.mubr.msk.bf16.gmra.mrb[168].mxu0 %vm2600_vm1, %v17089_v49 }
 0x3f4   : > { %v6282_v41 = vmax.f32 %v4672_v3, %v5770_v20  ;;  %v5771_v59 = vmul.f32 0.1, %v4675_v42  ;;  %v17091_v3 = vld [vmem:[%s17602_s29 + $0x6b8] sm:$0xff]   ;;  %15406 = vmatprep.mubr.msk.bf16.mxu0 %vm2600_vm1, %v17090_v25 }
 0x3f5   : > { %v6285_v48 = vmax.f32 %v4683_v45, %v5773_v56 }
 0x3f6   : > { %v6283_v17 = vmax.f32 %v4675_v42, %v5771_v59  ;;  %v15300_v9 = vpop.f32.mrb[64].mxu0  ;;  %v20746_v59 = vld [vmem:[#allocation36_spill] sm:$0xff] }
 0x3f7   : > { %15739 = vmatmul.mubr.msk.bf16.gmra.mrb[124].mxu1 %vm6737_vm3, %v20742_v28  ;;  %v18803_v37 = vpack.c.bf16 %v6285_v48, %v6284_v36  ;;  %v4696_v2 = vadd.f32 %v18542_v32, %v15300_v9  ;;  %v4687_v60 = vpop.f32.mrb[65].mxu0 }
 0x3f8   : > { %15742 = vmatprep.mubr.msk.bf16.mxu1 %vm6737_vm3, %v20743_v22  ;;  %v18808_v54 = vpack.c.bf16 %v6283_v17, %v6282_v41  ;;  %v4688_v12 = vadd.f32 %v18542_v32, %v4687_v60  ;;  %v15301_v51 = vpop.f32.mrb[66].mxu0 }
 0x3f9   : > { %v5776_v52 = vmul.f32 0.1, %v4696_v2  ;;  %v4699_v6 = vadd.f32 %v18542_v32, %v15301_v51  ;;  %v4690_v28 = vpop.f32.mrb[67].mxu0  ;;  %v17093_v51 = vld [vmem:[%s17602_s29 + $0x6c8] sm:$0xff]  }
 0x3fa   : > { %v5774_v46 = vmul.f32 0.1, %v4688_v12  ;;  %v4691_v21 = vadd.f32 %v18542_v32, %v4690_v28 }
 0x3fb   : > { %v6288_v22 = vmax.f32 %v4696_v2, %v5776_v52  ;;  %v5777_v62 = vmul.f32 0.1, %v4699_v6  ;;  %15407 = vmatmul.mubr.msk.bf16.gmra.mrb[172].mxu0 %vm2600_vm1, %v17091_v3  ;;  %v17092_v2 = vld [vmem:[%s17602_s29 + $0x6c0] sm:$0xff]  }
 0x3fc   : > { %v6286_v45 = vmax.f32 %v4688_v12, %v5774_v46  ;;  %v5775_v15 = vmul.f32 0.1, %v4691_v21  ;;  %15410 = vmatprep.mubr.msk.bf16.mxu0 %vm2600_vm1, %v17092_v2 }
 0x3fd   : > { %v6289_v49 = vmax.f32 %v4699_v6, %v5777_v62 }
 0x3fe   : > { %v6287_v20 = vmax.f32 %v4691_v21, %v5775_v15  ;;  %v15304_v42 = vpop.f32.mrb[68].mxu0 }
 0x3ff   : > { %15743 = vmatmul.mubr.msk.bf16.gmra.mrb[128].mxu1 %vm6737_vm3, %v20744_v63  ;;  %v18819_v36 = vpack.c.bf16 %v6289_v49, %v6288_v22  ;;  %v4712_v56 = vadd.f32 %v18542_v32, %v15304_v42  ;;  %v4703_v41 = vpop.f32.mrb[69].mxu0 }
 0x400   : > { %15746 = vmatprep.mubr.msk.bf16.mxu1 %vm6737_vm3, %v20745_v16  ;;  %v18824_v48 = vpack.c.bf16 %v6287_v20, %v6286_v45  ;;  %v4704_v17 = vadd.f32 %v18542_v32, %v4703_v41  ;;  %v15305_v9 = vpop.f32.mrb[70].mxu0 }
 0x401   : > { %v5780_v60 = vmul.f32 0.1, %v4712_v56  ;;  %v4715_v63 = vadd.f32 %v18542_v32, %v15305_v9  ;;  %v4706_v12 = vpop.f32.mrb[71].mxu0 }
 0x402   : > { %v5778_v25 = vmul.f32 0.1, %v4704_v17  ;;  %v4707_v16 = vadd.f32 %v18542_v32, %v4706_v12 }
 0x403   : > { %v6292_v52 = vmax.f32 %v4712_v56, %v5780_v60  ;;  %v5781_v6 = vmul.f32 0.1, %v4715_v63  ;;  %15411 = vmatmul.mubr.msk.bf16.gmra.mrb[176].mxu0 %vm2600_vm1, %v17093_v51  ;;  %v17094_v56 = vld [vmem:[%s17602_s29 + $0x6d0] sm:$0xff]  }
 0x404   : > { %v6290_v28 = vmax.f32 %v4704_v17, %v5778_v25  ;;  %v5779_v3 = vmul.f32 0.1, %v4707_v16  ;;  %v17095_v17 = vld [vmem:[%s17602_s29 + $0x6d8] sm:$0xff]   ;;  %15414 = vmatprep.mubr.msk.bf16.mxu0 %vm2600_vm1, %v17094_v56 }
 0x405   : > { %v6293_v46 = vmax.f32 %v4715_v63, %v5781_v6 }
 0x406   : > { %v6291_v21 = vmax.f32 %v4707_v16, %v5779_v3  ;;  %v15308_v22 = vpop.f32.mrb[72].mxu0 }
 0x407   : > { %15747 = vmatmul.mubr.msk.bf16.gmra.mrb[132].mxu1 %vm6737_vm3, %v20746_v59  ;;  %v18837_v62 = vpack.c.bf16 %v6293_v46, %v6292_v52  ;;  %v4728_v45 = vadd.f32 %v18542_v32, %v15308_v22  ;;  %v4719_v15 = vpop.f32.mrb[73].mxu0 }
 0x408   : > { %15752 = vmatprep.mubr.msk.bf16.mxu1 %vm6737_vm3, %v18561_v34  ;;  %v9284_v34 = vsel %vm6930_vm2, %v18569_v53, 0  ;;  %v18842_v49 = vpack.c.bf16 %v6291_v21, %v6290_v28  ;;  %v4720_v20 = vadd.f32 %v18542_v32, %v4719_v15  ;;  %v15309_v42 = vpop.f32.mrb[74].mxu0  ;;  %v17097_v15 = vld [vmem:[%s17602_s29 + $0x6e8] sm:$0xff]  }
 0x409   : > { %v5784_v53 = vmul.f32 0.1, %v4728_v45  ;;  %v4731_v41 = vadd.f32 %v18542_v32, %v15309_v42  ;;  %v4722_v59 = vpop.f32.mrb[75].mxu0 }
 0x40a   : > { %v5782_v9 = vmul.f32 0.1, %v4720_v20  ;;  %v4723_v2 = vadd.f32 %v18542_v32, %v4722_v59 }
 0x40b   : > { %v5785_v60 = vmul.f32 0.1, %v4731_v41  ;;  %15415 = vmatmul.mubr.msk.bf16.gmra.mrb[180].mxu0 %vm2600_vm1, %v17095_v17 }
 0x40c   : > { %v6294_v63 = vmax.f32 %v4720_v20, %v5782_v9  ;;  %v5783_v12 = vmul.f32 0.1, %v4723_v2 }
 0x40d   : > { %v6297_v51 = vmax.f32 %v4731_v41, %v5785_v60 }
 0x40e   : > { %v15312_v25 = vpop.f32.mrb[76].mxu0 }
 0x40f   : > { %15753 = vmatmul.mubr.msk.bf16.vlgmr.msra.gmra.mrb[8].mxu1 %vm6737_vm3, %v18556_v4  ;;  %v6296_v4 = vmax.f32 %v4728_v45, %v5784_v53  ;;  %v4744_v52 = vadd.f32 %v18542_v32, %v15312_v25  ;;  %v4735_v6 = vpop.f32.mrb[77].mxu0 }
 0x410   : > { %15881 = vmatpush3.bf16.msra.mxu1 %v9284_v34  ;;  %15756 = vmatprep.mubr.msk.bf16.mxu1 %vm6737_vm3, %v18582_v35  ;;  %v6295_v35 = vmax.f32 %v4723_v2, %v5783_v12  ;;  %v4736_v3 = vadd.f32 %v18542_v32, %v4735_v6  ;;  %v15313_v46 = vpop.f32.mrb[78].mxu0  ;;  %v17096_v34 = vld [vmem:[%s17602_s29 + $0x6e0] sm:$0xff]   ;;  %v17099_v6 = vld [vmem:[%s17602_s29 + $0x6f8] sm:$0xff]  }
 0x411   : > { %v18853_v16 = vpack.c.bf16 %v6297_v51, %v6296_v4  ;;  %v5788_v21 = vmul.f32 0.1, %v4744_v52  ;;  %v4747_v22 = vadd.f32 %v18542_v32, %v15313_v46  ;;  %v4738_v45 = vpop.f32.mrb[79].mxu0  ;;  %15418 = vmatprep.mubr.msk.bf16.mxu0 %vm2600_vm1, %v17096_v34  ;;  %v17098_v51 = vld [vmem:[%s17602_s29 + $0x6f0] sm:$0xff]  }
 0x412   : > { %v18858_v28 = vpack.c.bf16 %v6295_v35, %v6294_v63  ;;  %v5786_v20 = vmul.f32 0.1, %v4736_v3  ;;  %v4739_v42 = vadd.f32 %v18542_v32, %v4738_v45 }
 0x413   : > { %v5789_v56 = vmul.f32 0.1, %v4747_v22  ;;  %15419 = vmatmul.mubr.msk.bf16.gmra.mrb[184].mxu0 %vm2600_vm1, %v17097_v15 }
 0x414   : > { %v6298_v53 = vmax.f32 %v4736_v3, %v5786_v20  ;;  %v5787_v41 = vmul.f32 0.1, %v4739_v42  ;;  %15422 = vmatprep.mubr.msk.bf16.mxu0 %vm2600_vm1, %v17098_v51 }
 0x415   : > { %v6301_v59 = vmax.f32 %v4747_v22, %v5789_v56 }
 0x416   : > { %v15316_v17 = vpop.f32.mrb[80].mxu0 }
 0x417   : > { %15757 = vmatmul.mubr.msk.bf16.gmra.mrb[12].mxu1 %vm6737_vm3, %v18587_v19  ;;  %v6300_v19 = vmax.f32 %v4744_v52, %v5788_v21  ;;  %v4760_v2 = vadd.f32 %v18542_v32, %v15316_v17  ;;  %v4751_v4 = vpop.f32.mrb[81].mxu0 }
 0x418   : > { %15760 = vmatprep.mubr.msk.bf16.mxu1 %vm6737_vm3, %v18598_v7  ;;  %v6299_v7 = vmax.f32 %v4739_v42, %v5787_v41  ;;  %v4752_v63 = vadd.f32 %v18542_v32, %v4751_v4  ;;  %v15317_v12 = vpop.f32.mrb[82].mxu0  ;;  %v17100_v4 = vld [vmem:[%s17602_s29 + $0x700] sm:$0xff]  }
 0x419   : > { %v18869_v9 = vpack.c.bf16 %v6301_v59, %v6300_v19  ;;  %v5792_v35 = vmul.f32 0.1, %v4760_v2  ;;  %v4763_v25 = vadd.f32 %v18542_v32, %v15317_v12  ;;  %v4754_v52 = vpop.f32.mrb[83].mxu0 }
 0x41a   : > { %v18874_v60 = vpack.c.bf16 %v6299_v7, %v6298_v53  ;;  %v5790_v3 = vmul.f32 0.1, %v4752_v63  ;;  %v4755_v46 = vadd.f32 %v18542_v32, %v4754_v52  ;;  %v18898_v7 = vld [vmem:[%s20683_s10] ss:$0 sm:$0xff] }
 0x41b   : > { %v5793_v34 = vmul.f32 0.1, %v4763_v25  ;;  %15423 = vmatmul.mubr.msk.bf16.gmra.mrb[188].mxu0 %vm2600_vm1, %v17099_v6 }
 0x41c   : > { %v6302_v21 = vmax.f32 %v4752_v63, %v5790_v3  ;;  %v5791_v22 = vmul.f32 0.1, %v4755_v46  ;;  %v17101_v63 = vld [vmem:[%s17602_s29 + $0x708] sm:$0xff]   ;;  %15426 = vmatprep.mubr.msk.bf16.mxu0 %vm2600_vm1, %v17100_v4 }
 0x41d   : > { %v6305_v45 = vmax.f32 %v4763_v25, %v5793_v34 }
 0x41e   : > { %v15320_v15 = vpop.f32.mrb[84].mxu0 }
 0x41f   : > { %15761 = vmatmul.mubr.msk.bf16.gmra.mrb[16].mxu1 %vm6737_vm3, %v18603_v55  ;;  %v6304_v55 = vmax.f32 %v4760_v2, %v5792_v35  ;;  %v4776_v42 = vadd.f32 %v18542_v32, %v15320_v15  ;;  %v4767_v19 = vpop.f32.mrb[85].mxu0 }
 0x420   : > { %15764 = vmatprep.mubr.msk.bf16.mxu1 %vm6737_vm3, %v18614_v27  ;;  %v6303_v27 = vmax.f32 %v4755_v46, %v5791_v22  ;;  %v4768_v53 = vadd.f32 %v18542_v32, %v4767_v19  ;;  %v15321_v41 = vpop.f32.mrb[86].mxu0  ;;  %v17103_v19 = vld [vmem:[%s17602_s29 + $0x718] sm:$0xff]  }
 0x421   : > { %v18885_v20 = vpack.c.bf16 %v6305_v45, %v6304_v55  ;;  %v5796_v59 = vmul.f32 0.1, %v4776_v42  ;;  %v4779_v17 = vadd.f32 %v18898_v7, %v15321_v41  ;;  %v4770_v2 = vpop.f32.mrb[87].mxu0 }
 0x422   : > { %v18890_v56 = vpack.c.bf16 %v6303_v27, %v6302_v21  ;;  %v4771_v12 = vadd.f32 %v18898_v7, %v4770_v2 }
 0x423   : > { %v6308_v51 = vmax.f32 %v4776_v42, %v5796_v59  ;;  %v5797_v32 = vmul.f32 0.1, %v4779_v17  ;;  %15427 = vmatmul.mubr.msk.bf16.gmra.mrb[192].mxu0 %vm2600_vm1, %v17101_v63  ;;  %v17102_v42 = vld [vmem:[%s17602_s29 + $0x710] sm:$0xff]  }
 0x424   : > { %15430 = vmatprep.mubr.msk.bf16.mxu0 %vm2600_vm1, %v17102_v42 }
 0x425   : > { %v6309_v25 = vmax.f32 %v4779_v17, %v5797_v32 }
 0x426   : > { %v15324_v6 = vpop.f32.mrb[88].mxu0 }
 0x427   : > { %15765 = vmatmul.mubr.msk.bf16.gmra.mrb[20].mxu1 %vm6737_vm3, %v18619_v13  ;;  %v5794_v13 = vmul.f32 0.1, %v4768_v53  ;;  %v18906_v3 = vpack.c.bf16 %v6309_v25, %v6308_v51  ;;  %v4792_v46 = vadd.f32 %v18898_v7, %v15324_v6  ;;  %v4783_v55 = vpop.f32.mrb[89].mxu0 }
 0x428   : > { %15768 = vmatprep.mubr.msk.bf16.mxu1 %vm6737_vm3, %v18630_v31  ;;  %v5795_v31 = vmul.f32 0.1, %v4771_v12  ;;  %v4784_v21 = vadd.f32 %v18898_v7, %v4783_v55  ;;  %v15325_v22 = vpop.f32.mrb[90].mxu0  ;;  %v17105_v55 = vld [vmem:[%s17602_s29 + $0x728] sm:$0xff]  }
 0x429   : > { %v6306_v35 = vmax.f32 %v4768_v53, %v5794_v13  ;;  %v5800_v45 = vmul.f32 0.1, %v4792_v46  ;;  %v4795_v27 = vadd.f32 %v18898_v7, %v15325_v22  ;;  %v4786_v15 = vpop.f32.mrb[91].mxu0 }
 0x42a   : > { %v6307_v52 = vmax.f32 %v4771_v12, %v5795_v31  ;;  %v5798_v53 = vmul.f32 0.1, %v4784_v21  ;;  %v4787_v41 = vadd.f32 %v18898_v7, %v4786_v15 }
 0x42b   : > { %v6312_v59 = vmax.f32 %v4792_v46, %v5800_v45  ;;  %v5801_v17 = vmul.f32 0.1, %v4795_v27  ;;  %15431 = vmatmul.mubr.msk.bf16.gmra.mrb[196].mxu0 %vm2600_vm1, %v17103_v19  ;;  %v17104_v46 = vld [vmem:[%s17602_s29 + $0x720] sm:$0xff]  }
 0x42c   : > { %v18911_v34 = vpack.c.bf16 %v6307_v52, %v6306_v35  ;;  %v5799_v2 = vmul.f32 0.1, %v4787_v41  ;;  %15434 = vmatprep.mubr.msk.bf16.mxu0 %vm2600_vm1, %v17104_v46 }
 0x42e   : > { %v6311_v4 = vmax.f32 %v4787_v41, %v5799_v2  ;;  %v15328_v63 = vpop.f32.mrb[92].mxu0 }
 0x42f   : > { %15769 = vmatmul.mubr.msk.bf16.gmra.mrb[24].mxu1 %vm6737_vm3, %v18635_v26  ;;  %v6310_v26 = vmax.f32 %v4784_v21, %v5798_v53  ;;  %v4808_v12 = vadd.f32 %v18898_v7, %v15328_v63  ;;  %v4799_v51 = vpop.f32.mrb[93].mxu0 }
 0x430   : > { %15772 = vmatprep.mubr.msk.bf16.mxu1 %vm6737_vm3, %v18648_v58  ;;  %v6313_v58 = vmax.f32 %v4795_v27, %v5801_v17  ;;  %v4800_v35 = vadd.f32 %v18898_v7, %v4799_v51  ;;  %v15329_v31 = vpop.f32.mrb[94].mxu0  ;;  %v17107_v51 = vld [vmem:[%s17602_s29 + $0x738] sm:$0xff]  }
 0x431   : > { %v18927_v32 = vpack.c.bf16 %v6311_v4, %v6310_v26  ;;  %v5804_v25 = vmul.f32 0.1, %v4808_v12  ;;  %v4811_v52 = vadd.f32 %v18898_v7, %v15329_v31  ;;  %v4802_v6 = vpop.f32.mrb[95].mxu0 }
 0x432   : > { %v18922_v13 = vpack.c.bf16 %v6313_v58, %v6312_v59  ;;  %v5802_v21 = vmul.f32 0.1, %v4800_v35  ;;  %v4803_v22 = vadd.f32 %v18898_v7, %v4802_v6 }
 0x433   : > { %v6316_v45 = vmax.f32 %v4808_v12, %v5804_v25  ;;  %v5805_v27 = vmul.f32 0.1, %v4811_v52  ;;  %15435 = vmatmul.mubr.msk.bf16.gmra.mrb[200].mxu0 %vm2600_vm1, %v17105_v55  ;;  %v17106_v12 = vld [vmem:[%s17602_s29 + $0x730] sm:$0xff]  }
 0x434   : > { %v5803_v15 = vmul.f32 0.1, %v4803_v22  ;;  %15438 = vmatprep.mubr.msk.bf16.mxu0 %vm2600_vm1, %v17106_v12 }
 0x436   : > { %v6315_v42 = vmax.f32 %v4803_v22, %v5803_v15  ;;  %v15332_v19 = vpop.f32.mrb[96].mxu0 }
 0x437   : > { %15773 = vmatmul.mubr.msk.bf16.gmra.mrb[28].mxu1 %vm6737_vm3, %v18654_v38  ;;  %v6314_v38 = vmax.f32 %v4800_v35, %v5802_v21  ;;  %v4824_v41 = vadd.f32 %v18898_v7, %v15332_v19  ;;  %v4815_v59 = vpop.f32.mrb[97].mxu0 }
 0x438   : > { %15776 = vmatprep.mubr.msk.bf16.mxu1 %vm6737_vm3, %v18664_v24  ;;  %v6317_v24 = vmax.f32 %v4811_v52, %v5805_v27  ;;  %v4816_v26 = vadd.f32 %v18898_v7, %v4815_v59  ;;  %v15333_v2 = vpop.f32.mrb[98].mxu0  ;;  %v17109_v59 = vld [vmem:[%s17602_s29 + $0x748] sm:$0xff]  }
 0x439   : > { %v18943_v17 = vpack.c.bf16 %v6315_v42, %v6314_v38  ;;  %v5808_v58 = vmul.f32 0.1, %v4824_v41  ;;  %v4827_v4 = vadd.f32 %v18898_v7, %v15333_v2  ;;  %v4818_v63 = vpop.f32.mrb[99].mxu0 }
 0x43a   : > { %v18938_v53 = vpack.c.bf16 %v6317_v24, %v6316_v45  ;;  %v5806_v35 = vmul.f32 0.1, %v4816_v26  ;;  %v4819_v31 = vadd.f32 %v18898_v7, %v4818_v63 }
 0x43b   : > { %v6320_v25 = vmax.f32 %v4824_v41, %v5808_v58  ;;  %v5809_v52 = vmul.f32 0.1, %v4827_v4  ;;  %15439 = vmatmul.mubr.msk.bf16.gmra.mrb[204].mxu0 %vm2600_vm1, %v17107_v51  ;;  %v17108_v41 = vld [vmem:[%s17602_s29 + $0x740] sm:$0xff]  }
 0x43c   : > { %v5807_v6 = vmul.f32 0.1, %v4819_v31  ;;  %15442 = vmatprep.mubr.msk.bf16.mxu0 %vm2600_vm1, %v17108_v41 }
 0x43e   : > { %v6319_v46 = vmax.f32 %v4819_v31, %v5807_v6  ;;  %v15336_v55 = vpop.f32.mrb[100].mxu0 }
 0x43f   : > { %15777 = vmatmul.mubr.msk.bf16.gmra.mrb[32].mxu1 %vm6737_vm3, %v18659_v14  ;;  %v6318_v14 = vmax.f32 %v4816_v26, %v5806_v35  ;;  %v4840_v22 = vadd.f32 %v18898_v7, %v15336_v55  ;;  %v4831_v45 = vpop.f32.mrb[101].mxu0 }
 0x440   : > { %15780 = vmatprep.mubr.msk.bf16.mxu1 %vm6737_vm3, %v18680_v1  ;;  %v6321_v1 = vmax.f32 %v4827_v4, %v5809_v52  ;;  %v4832_v38 = vadd.f32 %v18898_v7, %v4831_v45  ;;  %v15337_v15 = vpop.f32.mrb[102].mxu0  ;;  %v17111_v45 = vld [vmem:[%s17602_s29 + $0x758] sm:$0xff]  }
 0x441   : > { %v18959_v27 = vpack.c.bf16 %v6319_v46, %v6318_v14  ;;  %v5812_v24 = vmul.f32 0.1, %v4840_v22  ;;  %v4843_v42 = vadd.f32 %v18898_v7, %v15337_v15  ;;  %v4834_v19 = vpop.f32.mrb[103].mxu0 }
 0x442   : > { %v18954_v21 = vpack.c.bf16 %v6321_v1, %v6320_v25  ;;  %v5810_v26 = vmul.f32 0.1, %v4832_v38  ;;  %v4835_v2 = vadd.f32 %v18898_v7, %v4834_v19 }
 0x443   : > { %v6324_v58 = vmax.f32 %v4840_v22, %v5812_v24  ;;  %v5813_v4 = vmul.f32 0.1, %v4843_v42  ;;  %15443 = vmatmul.mubr.msk.bf16.gmra.mrb[208].mxu0 %vm2600_vm1, %v17109_v59  ;;  %v17110_v22 = vld [vmem:[%s17602_s29 + $0x750] sm:$0xff]  }
 0x444   : > { %v5811_v63 = vmul.f32 0.1, %v4835_v2  ;;  %15446 = vmatprep.mubr.msk.bf16.mxu0 %vm2600_vm1, %v17110_v22 }
 0x446   : > { %v6323_v12 = vmax.f32 %v4835_v2, %v5811_v63  ;;  %v15340_v51 = vpop.f32.mrb[104].mxu0 }
 0x447   : > { %15781 = vmatmul.mubr.msk.bf16.gmra.mrb[36].mxu1 %vm6737_vm3, %v18675_v57  ;;  %v6322_v57 = vmax.f32 %v4832_v38, %v5810_v26  ;;  %v4856_v31 = vadd.f32 %v18898_v7, %v15340_v51  ;;  %v4847_v25 = vpop.f32.mrb[105].mxu0 }
 0x448   : > { %15784 = vmatprep.mubr.msk.bf16.mxu1 %vm6737_vm3, %v18696_v0  ;;  %v6325_v0 = vmax.f32 %v4843_v42, %v5813_v4  ;;  %v4848_v14 = vadd.f32 %v18898_v7, %v4847_v25  ;;  %v15341_v6 = vpop.f32.mrb[106].mxu0  ;;  %v17113_v25 = vld [vmem:[%s17602_s29 + $0x768] sm:$0xff]  }
 0x449   : > { %v18975_v52 = vpack.c.bf16 %v6323_v12, %v6322_v57  ;;  %v5816_v1 = vmul.f32 0.1, %v4856_v31  ;;  %v4859_v46 = vadd.f32 %v18898_v7, %v15341_v6  ;;  %v4850_v55 = vpop.f32.mrb[107].mxu0 }
 0x44a   : > { %v18970_v35 = vpack.c.bf16 %v6325_v0, %v6324_v58  ;;  %v5814_v38 = vmul.f32 0.1, %v4848_v14  ;;  %v4851_v15 = vadd.f32 %v18898_v7, %v4850_v55 }
 0x44b   : > { %v6328_v24 = vmax.f32 %v4856_v31, %v5816_v1  ;;  %v5817_v42 = vmul.f32 0.1, %v4859_v46  ;;  %15447 = vmatmul.mubr.msk.bf16.gmra.mrb[212].mxu0 %vm2600_vm1, %v17111_v45  ;;  %v17112_v31 = vld [vmem:[%s17602_s29 + $0x760] sm:$0xff]  }
 0x44c   : > { %v5815_v19 = vmul.f32 0.1, %v4851_v15  ;;  %15450 = vmatprep.mubr.msk.bf16.mxu0 %vm2600_vm1, %v17112_v31 }
 0x44e   : > { %v6327_v41 = vmax.f32 %v4851_v15, %v5815_v19  ;;  %v15344_v59 = vpop.f32.mrb[108].mxu0 }
 0x44f   : > { %15785 = vmatmul.mubr.msk.bf16.gmra.mrb[40].mxu1 %vm6737_vm3, %v18691_v61  ;;  %v6326_v61 = vmax.f32 %v4848_v14, %v5814_v38  ;;  %v4872_v2 = vadd.f32 %v18898_v7, %v15344_v59  ;;  %v4863_v58 = vpop.f32.mrb[109].mxu0 }
 0x450   : > { %15788 = vmatprep.mubr.msk.bf16.mxu1 %vm6737_vm3, %v18712_v11  ;;  %v6329_v11 = vmax.f32 %v4859_v46, %v5817_v42  ;;  %v4864_v57 = vadd.f32 %v18898_v7, %v4863_v58  ;;  %v15345_v63 = vpop.f32.mrb[110].mxu0  ;;  %v17115_v58 = vld [vmem:[%s17602_s29 + $0x778] sm:$0xff]  }
 0x451   : > { %v18991_v4 = vpack.c.bf16 %v6327_v41, %v6326_v61  ;;  %v5820_v0 = vmul.f32 0.1, %v4872_v2  ;;  %v4875_v12 = vadd.f32 %v18898_v7, %v15345_v63  ;;  %v4866_v51 = vpop.f32.mrb[111].mxu0 }
 0x452   : > { %v18986_v26 = vpack.c.bf16 %v6329_v11, %v6328_v24  ;;  %v5818_v14 = vmul.f32 0.1, %v4864_v57  ;;  %v4867_v6 = vadd.f32 %v18898_v7, %v4866_v51 }
 0x453   : > { %v6332_v1 = vmax.f32 %v4872_v2, %v5820_v0  ;;  %v5821_v46 = vmul.f32 0.1, %v4875_v12  ;;  %15451 = vmatmul.mubr.msk.bf16.gmra.mrb[216].mxu0 %vm2600_vm1, %v17113_v25  ;;  %v17114_v2 = vld [vmem:[%s17602_s29 + $0x770] sm:$0xff]  }
 0x454   : > { %v5819_v55 = vmul.f32 0.1, %v4867_v6  ;;  %15454 = vmatprep.mubr.msk.bf16.mxu0 %vm2600_vm1, %v17114_v2 }
 0x456   : > { %v6331_v22 = vmax.f32 %v4867_v6, %v5819_v55  ;;  %v15348_v45 = vpop.f32.mrb[112].mxu0 }
 0x457   : > { %15789 = vmatmul.mubr.msk.bf16.gmra.mrb[44].mxu1 %vm6737_vm3, %v18707_v39  ;;  %v6330_v39 = vmax.f32 %v4864_v57, %v5818_v14  ;;  %v4888_v15 = vadd.f32 %v18898_v7, %v15348_v45  ;;  %v4879_v24 = vpop.f32.mrb[113].mxu0 }
 0x458   : > { %15792 = vmatprep.mubr.msk.bf16.mxu1 %vm6737_vm3, %v18728_v44  ;;  %v6333_v44 = vmax.f32 %v4875_v12, %v5821_v46  ;;  %v4880_v61 = vadd.f32 %v18898_v7, %v4879_v24  ;;  %v15349_v19 = vpop.f32.mrb[114].mxu0  ;;  %v17117_v24 = vld [vmem:[%s17602_s29 + $0x788] sm:$0xff]  }
 0x459   : > { %v19007_v42 = vpack.c.bf16 %v6331_v22, %v6330_v39  ;;  %v5824_v11 = vmul.f32 0.1, %v4888_v15  ;;  %v4891_v41 = vadd.f32 %v18898_v7, %v15349_v19  ;;  %v4882_v59 = vpop.f32.mrb[115].mxu0 }
 0x45a   : > { %v19002_v38 = vpack.c.bf16 %v6333_v44, %v6332_v1  ;;  %v5822_v57 = vmul.f32 0.1, %v4880_v61  ;;  %v4883_v63 = vadd.f32 %v18898_v7, %v4882_v59 }
 0x45b   : > { %v6336_v0 = vmax.f32 %v4888_v15, %v5824_v11  ;;  %v5825_v12 = vmul.f32 0.1, %v4891_v41  ;;  %15455 = vmatmul.mubr.msk.bf16.gmra.mrb[220].mxu0 %vm2600_vm1, %v17115_v58  ;;  %v17116_v15 = vld [vmem:[%s17602_s29 + $0x780] sm:$0xff]  }
 0x45c   : > { %v5823_v51 = vmul.f32 0.1, %v4883_v63  ;;  %15458 = vmatprep.mubr.msk.bf16.mxu0 %vm2600_vm1, %v17116_v15 }
 0x45e   : > { %v6335_v31 = vmax.f32 %v4883_v63, %v5823_v51  ;;  %v15352_v25 = vpop.f32.mrb[116].mxu0 }
 0x45f   : > { %15793 = vmatmul.mubr.msk.bf16.gmra.mrb[48].mxu1 %vm6737_vm3, %v18723_v18  ;;  %v6334_v18 = vmax.f32 %v4880_v61, %v5822_v57  ;;  %v4904_v6 = vadd.f32 %v18898_v7, %v15352_v25  ;;  %v4895_v1 = vpop.f32.mrb[117].mxu0 }
 0x460   : > { %15796 = vmatprep.mubr.msk.bf16.mxu1 %vm6737_vm3, %v18744_v29  ;;  %v6337_v29 = vmax.f32 %v4891_v41, %v5825_v12  ;;  %v4896_v39 = vadd.f32 %v18898_v7, %v4895_v1  ;;  %v15353_v55 = vpop.f32.mrb[118].mxu0  ;;  %v17119_v1 = vld [vmem:[%s17602_s29 + $0x798] sm:$0xff]  }
 0x461   : > { %v19023_v46 = vpack.c.bf16 %v6335_v31, %v6334_v18  ;;  %v5828_v44 = vmul.f32 0.1, %v4904_v6  ;;  %v4907_v22 = vadd.f32 %v18898_v7, %v15353_v55  ;;  %v4898_v45 = vpop.f32.mrb[119].mxu0 }
 0x462   : > { %v19018_v14 = vpack.c.bf16 %v6337_v29, %v6336_v0  ;;  %v5826_v61 = vmul.f32 0.1, %v4896_v39  ;;  %v4899_v19 = vadd.f32 %v18898_v7, %v4898_v45 }
 0x463   : > { %v6340_v11 = vmax.f32 %v4904_v6, %v5828_v44  ;;  %v5829_v41 = vmul.f32 0.1, %v4907_v22  ;;  %15459 = vmatmul.mubr.msk.bf16.gmra.mrb[224].mxu0 %vm2600_vm1, %v17117_v24  ;;  %v17118_v6 = vld [vmem:[%s17602_s29 + $0x790] sm:$0xff]  }
 0x464   : > { %v5827_v59 = vmul.f32 0.1, %v4899_v19  ;;  %15462 = vmatprep.mubr.msk.bf16.mxu0 %vm2600_vm1, %v17118_v6 }
 0x466   : > { %v6339_v2 = vmax.f32 %v4899_v19, %v5827_v59  ;;  %v15356_v58 = vpop.f32.mrb[120].mxu0 }
 0x467   : > { %15797 = vmatmul.mubr.msk.bf16.gmra.mrb[52].mxu1 %vm6737_vm3, %v18739_v50  ;;  %v6338_v50 = vmax.f32 %v4896_v39, %v5826_v61  ;;  %v4920_v63 = vadd.f32 %v18898_v7, %v15356_v58  ;;  %v4911_v0 = vpop.f32.mrb[121].mxu0 }
 0x468   : > { %15800 = vmatprep.mubr.msk.bf16.mxu1 %vm6737_vm3, %v18760_v30  ;;  %v6341_v30 = vmax.f32 %v4907_v22, %v5829_v41  ;;  %v4912_v18 = vadd.f32 %v18898_v7, %v4911_v0  ;;  %v15357_v51 = vpop.f32.mrb[122].mxu0  ;;  %v17121_v0 = vld [vmem:[%s17602_s29 + $0x7a8] sm:$0xff]  }
 0x469   : > { %v19039_v12 = vpack.c.bf16 %v6339_v2, %v6338_v50  ;;  %v5832_v29 = vmul.f32 0.1, %v4920_v63  ;;  %v4923_v31 = vadd.f32 %v18898_v7, %v15357_v51  ;;  %v4914_v25 = vpop.f32.mrb[123].mxu0 }
 0x46a   : > { %v19034_v57 = vpack.c.bf16 %v6341_v30, %v6340_v11  ;;  %v5830_v39 = vmul.f32 0.1, %v4912_v18  ;;  %v4915_v55 = vadd.f32 %v18898_v7, %v4914_v25 }
 0x46b   : > { %v6344_v44 = vmax.f32 %v4920_v63, %v5832_v29  ;;  %v5833_v22 = vmul.f32 0.1, %v4923_v31  ;;  %15463 = vmatmul.mubr.msk.bf16.gmra.mrb[228].mxu0 %vm2600_vm1, %v17119_v1  ;;  %v17120_v63 = vld [vmem:[%s17602_s29 + $0x7a0] sm:$0xff]  }
 0x46c   : > { %v5831_v45 = vmul.f32 0.1, %v4915_v55  ;;  %15466 = vmatprep.mubr.msk.bf16.mxu0 %vm2600_vm1, %v17120_v63 }
 0x46e   : > { %v6343_v15 = vmax.f32 %v4915_v55, %v5831_v45  ;;  %v15360_v24 = vpop.f32.mrb[124].mxu0 }
 0x46f   : > { %15801 = vmatmul.mubr.msk.bf16.gmra.mrb[56].mxu1 %vm6737_vm3, %v18755_v5  ;;  %v6342_v5 = vmax.f32 %v4912_v18, %v5830_v39  ;;  %v4936_v19 = vadd.f32 %v18898_v7, %v15360_v24  ;;  %v4927_v11 = vpop.f32.mrb[125].mxu0 }
 0x470   : > { %15804 = vmatprep.mubr.msk.bf16.mxu1 %vm6737_vm3, %v18776_v40  ;;  %v6345_v40 = vmax.f32 %v4923_v31, %v5833_v22  ;;  %v4928_v50 = vadd.f32 %v18898_v7, %v4927_v11  ;;  %v15361_v59 = vpop.f32.mrb[126].mxu0  ;;  %v17123_v11 = vld [vmem:[%s17602_s29 + $0x7b8] sm:$0xff]  }
 0x471   : > { %v19055_v41 = vpack.c.bf16 %v6343_v15, %v6342_v5  ;;  %v5836_v30 = vmul.f32 0.1, %v4936_v19  ;;  %v4939_v2 = vadd.f32 %v18898_v7, %v15361_v59  ;;  %v4930_v58 = vpop.f32.mrb[127].mxu0 }
 0x472   : > { %v19050_v61 = vpack.c.bf16 %v6345_v40, %v6344_v44  ;;  %v5834_v18 = vmul.f32 0.1, %v4928_v50  ;;  %v4931_v51 = vadd.f32 %v18898_v7, %v4930_v58 }
 0x473   : > { %v6348_v29 = vmax.f32 %v4936_v19, %v5836_v30  ;;  %v5837_v31 = vmul.f32 0.1, %v4939_v2  ;;  %15467 = vmatmul.mubr.msk.bf16.gmra.mrb[232].mxu0 %vm2600_vm1, %v17121_v0  ;;  %v17122_v19 = vld [vmem:[%s17602_s29 + $0x7b0] sm:$0xff]  }
 0x474   : > { %v5835_v25 = vmul.f32 0.1, %v4931_v51  ;;  %15470 = vmatprep.mubr.msk.bf16.mxu0 %vm2600_vm1, %v17122_v19 }
 0x476   : > { %v6347_v6 = vmax.f32 %v4931_v51, %v5835_v25  ;;  %v15364_v1 = vpop.f32.mrb[128].mxu0 }
 0x477   : > { %15805 = vmatmul.mubr.msk.bf16.gmra.mrb[60].mxu1 %vm6737_vm3, %v18771_v33  ;;  %v6346_v33 = vmax.f32 %v4928_v50, %v5834_v18  ;;  %v4952_v55 = vadd.f32 %v18898_v7, %v15364_v1  ;;  %v4943_v44 = vpop.f32.mrb[129].mxu0 }
 0x478   : > { %15808 = vmatprep.mubr.msk.bf16.mxu1 %vm6737_vm3, %v18792_v8  ;;  %v6349_v8 = vmax.f32 %v4939_v2, %v5837_v31  ;;  %v4944_v5 = vadd.f32 %v18898_v7, %v4943_v44  ;;  %v15365_v45 = vpop.f32.mrb[130].mxu0  ;;  %v17125_v44 = vld [vmem:[%s17602_s29 + $0x7c8] sm:$0xff]  }
 0x479   : > { %v19071_v22 = vpack.c.bf16 %v6347_v6, %v6346_v33  ;;  %v5840_v40 = vmul.f32 0.1, %v4952_v55  ;;  %v4955_v15 = vadd.f32 %v18898_v7, %v15365_v45  ;;  %v4946_v24 = vpop.f32.mrb[131].mxu0 }
 0x47a   : > { %v19066_v39 = vpack.c.bf16 %v6349_v8, %v6348_v29  ;;  %v5838_v50 = vmul.f32 0.1, %v4944_v5  ;;  %v4947_v59 = vadd.f32 %v18898_v7, %v4946_v24 }
 0x47b   : > { %v6352_v30 = vmax.f32 %v4952_v55, %v5840_v40  ;;  %v5841_v2 = vmul.f32 0.1, %v4955_v15  ;;  %15471 = vmatmul.mubr.msk.bf16.gmra.mrb[236].mxu0 %vm2600_vm1, %v17123_v11  ;;  %v17124_v55 = vld [vmem:[%s17602_s29 + $0x7c0] sm:$0xff]  }
 0x47c   : > { %v5839_v58 = vmul.f32 0.1, %v4947_v59  ;;  %15474 = vmatprep.mubr.msk.bf16.mxu0 %vm2600_vm1, %v17124_v55 }
 0x47e   : > { %v6351_v63 = vmax.f32 %v4947_v59, %v5839_v58  ;;  %v15368_v0 = vpop.f32.mrb[132].mxu0 }
 0x47f   : > { %15809 = vmatmul.mubr.msk.bf16.gmra.mrb[64].mxu1 %vm6737_vm3, %v18787_v23  ;;  %v6350_v23 = vmax.f32 %v4944_v5, %v5838_v50  ;;  %v4968_v51 = vadd.f32 %v18898_v7, %v15368_v0  ;;  %v4959_v29 = vpop.f32.mrb[133].mxu0 }
 0x480   : > { %15812 = vmatprep.mubr.msk.bf16.mxu1 %vm6737_vm3, %v18808_v54  ;;  %v6353_v54 = vmax.f32 %v4955_v15, %v5841_v2  ;;  %v4960_v33 = vadd.f32 %v18898_v7, %v4959_v29  ;;  %v15369_v25 = vpop.f32.mrb[134].mxu0  ;;  %v17127_v29 = vld [vmem:[%s17602_s29 + $0x7d8] sm:$0xff]  }
 0x481   : > { %v19087_v31 = vpack.c.bf16 %v6351_v63, %v6350_v23  ;;  %v5844_v8 = vmul.f32 0.1, %v4968_v51  ;;  %v4971_v6 = vadd.f32 %v18898_v7, %v15369_v25  ;;  %v4962_v1 = vpop.f32.mrb[135].mxu0 }
 0x482   : > { %v19082_v18 = vpack.c.bf16 %v6353_v54, %v6352_v30  ;;  %v5842_v5 = vmul.f32 0.1, %v4960_v33  ;;  %v4963_v45 = vadd.f32 %v18898_v7, %v4962_v1 }
 0x483   : > { %v6356_v40 = vmax.f32 %v4968_v51, %v5844_v8  ;;  %v5845_v15 = vmul.f32 0.1, %v4971_v6  ;;  %15475 = vmatmul.mubr.msk.bf16.gmra.mrb[240].mxu0 %vm2600_vm1, %v17125_v44  ;;  %v17126_v51 = vld [vmem:[%s17602_s29 + $0x7d0] sm:$0xff]   ;;  %s20747_s29 = sld [smem:[#allocation43_spill]] }
 0x484   : > { %v5843_v24 = vmul.f32 0.1, %v4963_v45  ;;  %15478 = vmatprep.mubr.msk.bf16.mxu0 %vm2600_vm1, %v17126_v51 }
 0x486   : > { %v6355_v19 = vmax.f32 %v4963_v45, %v5843_v24  ;;  %v15372_v11 = vpop.f32.mrb[136].mxu0 }
 0x487   : > { %15813 = vmatmul.mubr.msk.bf16.gmra.mrb[68].mxu1 %vm6737_vm3, %v18803_v37  ;;  %v6354_v37 = vmax.f32 %v4960_v33, %v5842_v5  ;;  %v4984_v59 = vadd.f32 %v18898_v7, %v15372_v11  ;;  %v4975_v30 = vpop.f32.mrb[137].mxu0 }
 0x488   : > { %15816 = vmatprep.mubr.msk.bf16.mxu1 %vm6737_vm3, %v18824_v48  ;;  %v6357_v48 = vmax.f32 %v4971_v6, %v5845_v15  ;;  %v4976_v23 = vadd.f32 %v18898_v7, %v4975_v30  ;;  %v15373_v58 = vpop.f32.mrb[138].mxu0 }
 0x489   : > { %v19103_v2 = vpack.c.bf16 %v6355_v19, %v6354_v37  ;;  %v5848_v54 = vmul.f32 0.1, %v4984_v59  ;;  %v4987_v63 = vadd.f32 %v18898_v7, %v15373_v58  ;;  %v4978_v0 = vpop.f32.mrb[139].mxu0 }
 0x48a   : > { %v19098_v50 = vpack.c.bf16 %v6357_v48, %v6356_v40  ;;  %v5846_v33 = vmul.f32 0.1, %v4976_v23  ;;  %v4979_v25 = vadd.f32 %v18898_v7, %v4978_v0 }
 0x48b   : > { %v6360_v8 = vmax.f32 %v4984_v59, %v5848_v54  ;;  %v5849_v6 = vmul.f32 0.1, %v4987_v63  ;;  %15479 = vmatmul.mubr.msk.bf16.gmra.mrb[244].mxu0 %vm2600_vm1, %v17127_v29 }
 0x48c   : > { %v5847_v1 = vmul.f32 0.1, %v4979_v25 }
 0x48d   : > { %v6361_v55 = vmax.f32 %v4987_v63, %v5849_v6 }
 0x48e   : > { %v6359_v44 = vmax.f32 %v4979_v25, %v5847_v1 }
 0x48f   : > { %15817 = vmatmul.mubr.msk.bf16.gmra.mrb[72].mxu1 %vm6737_vm3, %v18819_v36  ;;  %v6358_v36 = vmax.f32 %v4976_v23, %v5846_v33  ;;  %v19114_v5 = vpack.c.bf16 %v6361_v55, %v6360_v8 }
 0x490   : > { %15820 = vmatprep.mubr.msk.bf16.mxu1 %vm6737_vm3, %v18842_v49  ;;  %v15376_v49 = vpop.f32.mrb[140].mxu0 }
 0x491   : > { %v5000_v45 = vadd.f32 %v18898_v7, %v15376_v49  ;;  %v4991_v40 = vpop.f32.mrb[141].mxu0  ;;  %v19119_v15 = vpack.c.bf16 %v6359_v44, %v6358_v36 }
 0x492   : > { %v4992_v37 = vadd.f32 %v18898_v7, %v4991_v40  ;;  %v15377_v24 = vpop.f32.mrb[142].mxu0 }
 0x493   : > { %v5852_v48 = vmul.f32 0.1, %v5000_v45  ;;  %v5003_v19 = vadd.f32 %v18898_v7, %v15377_v24  ;;  %v4994_v11 = vpop.f32.mrb[143].mxu0 }
 0x494   : > { %v5850_v59 = vmul.f32 0.1, %v4992_v37  ;;  %v4995_v30 = vadd.f32 %v18898_v7, %v4994_v11 }
 0x495   : > { %v6364_v23 = vmax.f32 %v5000_v45, %v5852_v48  ;;  %v5853_v58 = vmul.f32 0.1, %v5003_v19 }
 0x496   : > { %v6362_v54 = vmax.f32 %v4992_v37, %v5850_v59  ;;  %v5851_v63 = vmul.f32 0.1, %v4995_v30  ;;  %v15380_v51 = vpop.f32.mrb[144].mxu0 }
 0x497   : > { %15821 = vmatmul.mubr.msk.bf16.gmra.mrb[76].mxu1 %vm6737_vm3, %v18837_v62  ;;  %v6365_v62 = vmax.f32 %v5003_v19, %v5853_v58  ;;  %v5016_v33 = vadd.f32 %v18898_v7, %v15380_v51  ;;  %v5007_v25 = vpop.f32.mrb[145].mxu0 }
 0x498   : > { %15824 = vmatprep.mubr.msk.bf16.mxu1 %vm6737_vm3, %v18858_v28  ;;  %v6363_v0 = vmax.f32 %v4995_v30, %v5851_v63  ;;  %v5008_v8 = vadd.f32 %v18898_v7, %v5007_v25  ;;  %v15381_v6 = vpop.f32.mrb[146].mxu0 }
 0x499   : > { %v19126_v29 = vpack.c.bf16 %v6365_v62, %v6364_v23  ;;  %v5856_v36 = vmul.f32 0.1, %v5016_v33  ;;  %v5019_v1 = vadd.f32 %v18898_v7, %v15381_v6  ;;  %v5010_v55 = vpop.f32.mrb[147].mxu0 }
 0x49a   : > { %v19131_v28 = vpack.c.bf16 %v6363_v0, %v6362_v54  ;;  %v5854_v44 = vmul.f32 0.1, %v5008_v8  ;;  %v5011_v49 = vadd.f32 %v18898_v7, %v5010_v55 }
 0x49b   : > { %v6368_v45 = vmax.f32 %v5016_v33, %v5856_v36  ;;  %v5857_v40 = vmul.f32 0.1, %v5019_v1 }
 0x49c   : > { %v6366_v37 = vmax.f32 %v5008_v8, %v5854_v44  ;;  %v5855_v24 = vmul.f32 0.1, %v5011_v49 }
 0x49e   : > { %v6367_v48 = vmax.f32 %v5011_v49, %v5855_v24  ;;  %v15384_v19 = vpop.f32.mrb[148].mxu0 }
 0x49f   : > { %15825 = vmatmul.mubr.msk.bf16.gmra.mrb[80].mxu1 %vm6737_vm3, %v18853_v16  ;;  %v6369_v16 = vmax.f32 %v5019_v1, %v5857_v40  ;;  %v5032_v59 = vadd.f32 %v18898_v7, %v15384_v19  ;;  %v5023_v30 = vpop.f32.mrb[149].mxu0 }
 0x4a0   : > { %15828 = vmatprep.mubr.msk.bf16.mxu1 %vm6737_vm3, %v18874_v60  ;;  %v19143_v60 = vpack.c.bf16 %v6367_v48, %v6366_v37  ;;  %v5024_v23 = vadd.f32 %v18898_v7, %v5023_v30  ;;  %v15385_v58 = vpop.f32.mrb[150].mxu0 }
 0x4a1   : > { %v19138_v11 = vpack.c.bf16 %v6369_v16, %v6368_v45  ;;  %v5860_v54 = vmul.f32 0.1, %v5032_v59  ;;  %v5035_v63 = vadd.f32 %v18898_v7, %v15385_v58  ;;  %v5026_v62 = vpop.f32.mrb[151].mxu0 }
 0x4a2   : > { %v5858_v0 = vmul.f32 0.1, %v5024_v23  ;;  %v5027_v51 = vadd.f32 %v18898_v7, %v5026_v62 }
 0x4a3   : > { %v6372_v33 = vmax.f32 %v5032_v59, %v5860_v54  ;;  %v5861_v25 = vmul.f32 0.1, %v5035_v63 }
 0x4a4   : > { %v6370_v8 = vmax.f32 %v5024_v23, %v5858_v0  ;;  %v5859_v6 = vmul.f32 0.1, %v5027_v51 }
 0x4a6   : > { %v6371_v36 = vmax.f32 %v5027_v51, %v5859_v6  ;;  %v15388_v1 = vpop.f32.mrb[152].mxu0 }
 0x4a7   : > { %15829 = vmatmul.mubr.msk.bf16.gmra.mrb[84].mxu1 %vm6737_vm3, %v18869_v9  ;;  %v6373_v9 = vmax.f32 %v5035_v63, %v5861_v25  ;;  %v5048_v44 = vadd.f32 %v18898_v7, %v15388_v1  ;;  %v5039_v49 = vpop.f32.mrb[153].mxu0 }
 0x4a8   : > { %15832 = vmatprep.mubr.msk.bf16.mxu1 %vm6737_vm3, %v18890_v56  ;;  %v19155_v56 = vpack.c.bf16 %v6371_v36, %v6370_v8  ;;  %v5040_v45 = vadd.f32 %v18898_v7, %v5039_v49  ;;  %v15389_v40 = vpop.f32.mrb[154].mxu0 }
 0x4a9   : > { %v19150_v55 = vpack.c.bf16 %v6373_v9, %v6372_v33  ;;  %v5864_v37 = vmul.f32 0.1, %v5048_v44  ;;  %v5051_v24 = vadd.f32 %v18898_v7, %v15389_v40  ;;  %v5042_v16 = vpop.f32.mrb[155].mxu0 }
 0x4aa   : > { %v5862_v48 = vmul.f32 0.1, %v5040_v45  ;;  %v5043_v19 = vadd.f32 %v18898_v7, %v5042_v16 }
 0x4ab   : > { %v6376_v59 = vmax.f32 %v5048_v44, %v5864_v37  ;;  %v5865_v30 = vmul.f32 0.1, %v5051_v24 }
 0x4ac   : > { %v6374_v23 = vmax.f32 %v5040_v45, %v5862_v48  ;;  %v5863_v58 = vmul.f32 0.1, %v5043_v19 }
 0x4ae   : > { %v6375_v54 = vmax.f32 %v5043_v19, %v5863_v58  ;;  %v15392_v63 = vpop.f32.mrb[156].mxu0 }
 0x4af   : > { %15833 = vmatmul.mubr.msk.bf16.gmra.mrb[88].mxu1 %vm6737_vm3, %v18885_v20  ;;  %v6377_v20 = vmax.f32 %v5051_v24, %v5865_v30  ;;  %v5064_v0 = vadd.f32 %v18898_v7, %v15392_v63  ;;  %v5055_v51 = vpop.f32.mrb[157].mxu0 }
 0x4b0   : > { %15836 = vmatprep.mubr.msk.bf16.mxu1 %vm6737_vm3, %v18911_v34  ;;  %v19167_v34 = vpack.c.bf16 %v6375_v54, %v6374_v23  ;;  %v5056_v33 = vadd.f32 %v18898_v7, %v5055_v51  ;;  %v15393_v25 = vpop.f32.mrb[158].mxu0 }
 0x4b1   : > { %v19162_v62 = vpack.c.bf16 %v6377_v20, %v6376_v59  ;;  %v5868_v8 = vmul.f32 0.1, %v5064_v0  ;;  %v5067_v6 = vadd.f32 %v18898_v7, %v15393_v25  ;;  %v5058_v9 = vpop.f32.mrb[159].mxu0 }
 0x4b2   : > { %v5866_v36 = vmul.f32 0.1, %v5056_v33  ;;  %v5059_v1 = vadd.f32 %v18898_v7, %v5058_v9 }
 0x4b3   : > { %v6380_v44 = vmax.f32 %v5064_v0, %v5868_v8  ;;  %v5869_v49 = vmul.f32 0.1, %v5067_v6 }
 0x4b4   : > { %v6378_v45 = vmax.f32 %v5056_v33, %v5866_v36  ;;  %v5867_v40 = vmul.f32 0.1, %v5059_v1 }
 0x4b6   : > { %v6379_v37 = vmax.f32 %v5059_v1, %v5867_v40  ;;  %v15396_v24 = vpop.f32.mrb[160].mxu0 }
 0x4b7   : > { %15837 = vmatmul.mubr.msk.bf16.gmra.mrb[92].mxu1 %vm6737_vm3, %v18906_v3  ;;  %v6381_v3 = vmax.f32 %v5067_v6, %v5869_v49  ;;  %v5080_v48 = vadd.f32 %v18898_v7, %v15396_v24  ;;  %v5071_v19 = vpop.f32.mrb[161].mxu0 }
 0x4b8   : > { %15840 = vmatprep.mubr.msk.bf16.mxu1 %vm6737_vm3, %v18927_v32  ;;  %v19179_v32 = vpack.c.bf16 %v6379_v37, %v6378_v45  ;;  %v5072_v59 = vadd.f32 %v18898_v7, %v5071_v19  ;;  %v15397_v30 = vpop.f32.mrb[162].mxu0 }
 0x4b9   : > { %v19174_v16 = vpack.c.bf16 %v6381_v3, %v6380_v44  ;;  %v5872_v23 = vmul.f32 0.1, %v5080_v48  ;;  %v5083_v58 = vadd.f32 %v18898_v7, %v15397_v30  ;;  %v5074_v20 = vpop.f32.mrb[163].mxu0 }
 0x4ba   : > { %v5870_v54 = vmul.f32 0.1, %v5072_v59  ;;  %v5075_v63 = vadd.f32 %v18898_v7, %v5074_v20 }
 0x4bb   : > { %v6384_v0 = vmax.f32 %v5080_v48, %v5872_v23  ;;  %v5873_v51 = vmul.f32 0.1, %v5083_v58 }
 0x4bc   : > { %v6382_v33 = vmax.f32 %v5072_v59, %v5870_v54  ;;  %v5871_v25 = vmul.f32 0.1, %v5075_v63 }
 0x4be   : > { %v6383_v8 = vmax.f32 %v5075_v63, %v5871_v25  ;;  %v15400_v6 = vpop.f32.mrb[164].mxu0 }
 0x4bf   : > { %15841 = vmatmul.mubr.msk.bf16.gmra.mrb[96].mxu1 %vm6737_vm3, %v18922_v13  ;;  %v6385_v13 = vmax.f32 %v5083_v58, %v5873_v51  ;;  %v5096_v36 = vadd.f32 %v18898_v7, %v15400_v6  ;;  %v5087_v1 = vpop.f32.mrb[165].mxu0 }
 0x4c0   : > { %15844 = vmatprep.mubr.msk.bf16.mxu1 %vm6737_vm3, %v18943_v17  ;;  %v19191_v17 = vpack.c.bf16 %v6383_v8, %v6382_v33  ;;  %v5088_v44 = vadd.f32 %v18898_v7, %v5087_v1  ;;  %v15401_v49 = vpop.f32.mrb[166].mxu0 }
 0x4c1   : > { %v19186_v9 = vpack.c.bf16 %v6385_v13, %v6384_v0  ;;  %v5876_v45 = vmul.f32 0.1, %v5096_v36  ;;  %v5099_v40 = vadd.f32 %v18898_v7, %v15401_v49  ;;  %v5090_v3 = vpop.f32.mrb[167].mxu0 }
 0x4c2   : > { %v5874_v37 = vmul.f32 0.1, %v5088_v44  ;;  %v5091_v24 = vadd.f32 %v18898_v7, %v5090_v3 }
 0x4c3   : > { %v6388_v48 = vmax.f32 %v5096_v36, %v5876_v45  ;;  %v5877_v19 = vmul.f32 0.1, %v5099_v40 }
 0x4c4   : > { %v6386_v59 = vmax.f32 %v5088_v44, %v5874_v37  ;;  %v5875_v30 = vmul.f32 0.1, %v5091_v24 }
 0x4c6   : > { %v6387_v23 = vmax.f32 %v5091_v24, %v5875_v30  ;;  %v15404_v58 = vpop.f32.mrb[168].mxu0 }
 0x4c7   : > { %15845 = vmatmul.mubr.msk.bf16.gmra.mrb[100].mxu1 %vm6737_vm3, %v18938_v53  ;;  %v6389_v53 = vmax.f32 %v5099_v40, %v5877_v19  ;;  %v5112_v54 = vadd.f32 %v18898_v7, %v15404_v58  ;;  %v5103_v63 = vpop.f32.mrb[169].mxu0 }
 0x4c8   : > { %15848 = vmatprep.mubr.msk.bf16.mxu1 %vm6737_vm3, %v18959_v27  ;;  %v19203_v27 = vpack.c.bf16 %v6387_v23, %v6386_v59  ;;  %v5104_v0 = vadd.f32 %v18898_v7, %v5103_v63  ;;  %v15405_v51 = vpop.f32.mrb[170].mxu0 }
 0x4c9   : > { %v19198_v20 = vpack.c.bf16 %v6389_v53, %v6388_v48  ;;  %v5880_v33 = vmul.f32 0.1, %v5112_v54  ;;  %v5115_v25 = vadd.f32 %v18898_v7, %v15405_v51  ;;  %v5106_v13 = vpop.f32.mrb[171].mxu0 }
 0x4ca   : > { %v5878_v8 = vmul.f32 0.1, %v5104_v0  ;;  %v5107_v6 = vadd.f32 %v18898_v7, %v5106_v13 }
 0x4cb   : > { %v6392_v36 = vmax.f32 %v5112_v54, %v5880_v33  ;;  %v5881_v1 = vmul.f32 0.1, %v5115_v25 }
 0x4cc   : > { %v6390_v44 = vmax.f32 %v5104_v0, %v5878_v8  ;;  %v5879_v49 = vmul.f32 0.1, %v5107_v6 }
 0x4ce   : > { %v6391_v45 = vmax.f32 %v5107_v6, %v5879_v49  ;;  %v15408_v40 = vpop.f32.mrb[172].mxu0 }
 0x4cf   : > { %15849 = vmatmul.mubr.msk.bf16.gmra.mrb[104].mxu1 %vm6737_vm3, %v18954_v21  ;;  %v6393_v21 = vmax.f32 %v5115_v25, %v5881_v1  ;;  %v5128_v37 = vadd.f32 %v18898_v7, %v15408_v40  ;;  %v5119_v24 = vpop.f32.mrb[173].mxu0 }
 0x4d0   : > { %15852 = vmatprep.mubr.msk.bf16.mxu1 %vm6737_vm3, %v18975_v52  ;;  %v19215_v52 = vpack.c.bf16 %v6391_v45, %v6390_v44  ;;  %v5120_v48 = vadd.f32 %v18898_v7, %v5119_v24  ;;  %v15409_v19 = vpop.f32.mrb[174].mxu0 }
 0x4d1   : > { %v19210_v3 = vpack.c.bf16 %v6393_v21, %v6392_v36  ;;  %v5884_v59 = vmul.f32 0.1, %v5128_v37  ;;  %v5131_v30 = vadd.f32 %v18898_v7, %v15409_v19  ;;  %v5122_v53 = vpop.f32.mrb[175].mxu0  ;;  %v19232_v36 = vld [vmem:[%s20683_s10] ss:$0 sm:$0xff]  ;;  %s20752_s10 = sld [smem:[#allocation47_spill]] }
 0x4d2   : > { %v5882_v23 = vmul.f32 0.1, %v5120_v48  ;;  %v5123_v58 = vadd.f32 %v18898_v7, %v5122_v53 }
 0x4d3   : > { %v6396_v54 = vmax.f32 %v5128_v37, %v5884_v59  ;;  %v5885_v63 = vmul.f32 0.1, %v5131_v30 }
 0x4d4   : > { %v6394_v0 = vmax.f32 %v5120_v48, %v5882_v23  ;;  %v5883_v51 = vmul.f32 0.1, %v5123_v58 }
 0x4d6   : > { %v6395_v33 = vmax.f32 %v5123_v58, %v5883_v51  ;;  %v15412_v25 = vpop.f32.mrb[176].mxu0 }
 0x4d7   : > { %15853 = vmatmul.mubr.msk.bf16.gmra.mrb[108].mxu1 %vm6737_vm3, %v18970_v35  ;;  %v6397_v35 = vmax.f32 %v5131_v30, %v5885_v63  ;;  %v5144_v8 = vadd.f32 %v18898_v7, %v15412_v25  ;;  %v5135_v6 = vpop.f32.mrb[177].mxu0 }
 0x4d8   : > { %15856 = vmatprep.mubr.msk.bf16.mxu1 %vm6737_vm3, %v18991_v4  ;;  %v19227_v4 = vpack.c.bf16 %v6395_v33, %v6394_v0  ;;  %v5136_v1 = vadd.f32 %v19232_v36, %v5135_v6  ;;  %v15413_v44 = vpop.f32.mrb[178].mxu0 }
 0x4d9   : > { %v19222_v13 = vpack.c.bf16 %v6397_v35, %v6396_v54  ;;  %v5888_v49 = vmul.f32 0.1, %v5144_v8  ;;  %v5147_v7 = vadd.f32 %v19232_v36, %v15413_v44  ;;  %v5138_v21 = vpop.f32.mrb[179].mxu0 }
 0x4da   : > { %v5886_v45 = vmul.f32 0.1, %v5136_v1 }
 0x4db   : > { %v6400_v40 = vmax.f32 %v5144_v8, %v5888_v49  ;;  %v5889_v37 = vmul.f32 0.1, %v5147_v7 }
 0x4dc   : > { %v6398_v24 = vmax.f32 %v5136_v1, %v5886_v45 }
 0x4dd   : > { %v6401_v19 = vmax.f32 %v5147_v7, %v5889_v37 }
 0x4de   : > { %v15416_v30 = vpop.f32.mrb[180].mxu0 }
 0x4df   : > { %15857 = vmatmul.mubr.msk.bf16.gmra.mrb[112].mxu1 %vm6737_vm3, %v18986_v26  ;;  %v5139_v26 = vadd.f32 %v19232_v36, %v5138_v21  ;;  %v19239_v53 = vpack.c.bf16 %v6401_v19, %v6400_v40  ;;  %v5160_v23 = vadd.f32 %v19232_v36, %v15416_v30  ;;  %v5151_v58 = vpop.f32.mrb[181].mxu0 }
 0x4e0   : > { %15860 = vmatprep.mubr.msk.bf16.mxu1 %vm6737_vm3, %v19007_v42  ;;  %v5152_v54 = vadd.f32 %v19232_v36, %v5151_v58  ;;  %v15417_v63 = vpop.f32.mrb[182].mxu0 }
 0x4e1   : > { %v5887_v48 = vmul.f32 0.1, %v5139_v26  ;;  %v5892_v0 = vmul.f32 0.1, %v5160_v23  ;;  %v5163_v51 = vadd.f32 %v19232_v36, %v15417_v63  ;;  %v5154_v35 = vpop.f32.mrb[183].mxu0 }
 0x4e2   : > { %v5890_v33 = vmul.f32 0.1, %v5152_v54  ;;  %v5155_v25 = vadd.f32 %v19232_v36, %v5154_v35 }
 0x4e3   : > { %v6399_v59 = vmax.f32 %v5139_v26, %v5887_v48  ;;  %v6404_v8 = vmax.f32 %v5160_v23, %v5892_v0  ;;  %v5893_v6 = vmul.f32 0.1, %v5163_v51 }
 0x4e4   : > { %v6402_v1 = vmax.f32 %v5152_v54, %v5890_v33  ;;  %v5891_v44 = vmul.f32 0.1, %v5155_v25 }
 0x4e5   : > { %v19244_v42 = vpack.c.bf16 %v6399_v59, %v6398_v24 }
 0x4e6   : > { %v6403_v49 = vmax.f32 %v5155_v25, %v5891_v44  ;;  %v15420_v7 = vpop.f32.mrb[184].mxu0 }
 0x4e7   : > { %15861 = vmatmul.mubr.msk.bf16.gmra.mrb[116].mxu1 %vm6737_vm3, %v19002_v38  ;;  %v6405_v38 = vmax.f32 %v5163_v51, %v5893_v6  ;;  %v5176_v45 = vadd.f32 %v19232_v36, %v15420_v7  ;;  %v5167_v26 = vpop.f32.mrb[185].mxu0 }
 0x4e8   : > { %15864 = vmatprep.mubr.msk.bf16.mxu1 %vm6737_vm3, %v19023_v46  ;;  %v19256_v46 = vpack.c.bf16 %v6403_v49, %v6402_v1  ;;  %v5168_v40 = vadd.f32 %v19232_v36, %v5167_v26  ;;  %v15421_v37 = vpop.f32.mrb[186].mxu0 }
 0x4e9   : > { %v19251_v21 = vpack.c.bf16 %v6405_v38, %v6404_v8  ;;  %v5896_v24 = vmul.f32 0.1, %v5176_v45  ;;  %v5179_v48 = vadd.f32 %v19232_v36, %v15421_v37  ;;  %v5170_v19 = vpop.f32.mrb[187].mxu0 }
 0x4ea   : > { %v5894_v59 = vmul.f32 0.1, %v5168_v40  ;;  %v5171_v30 = vadd.f32 %v19232_v36, %v5170_v19 }
 0x4eb   : > { %v6408_v23 = vmax.f32 %v5176_v45, %v5896_v24  ;;  %v5897_v58 = vmul.f32 0.1, %v5179_v48 }
 0x4ec   : > { %v6406_v54 = vmax.f32 %v5168_v40, %v5894_v59  ;;  %v5895_v63 = vmul.f32 0.1, %v5171_v30 }
 0x4ee   : > { %v6407_v0 = vmax.f32 %v5171_v30, %v5895_v63  ;;  %v15424_v51 = vpop.f32.mrb[188].mxu0 }
 0x4ef   : > { %15865 = vmatmul.mubr.msk.bf16.gmra.mrb[120].mxu1 %vm6737_vm3, %v19018_v14  ;;  %v6409_v14 = vmax.f32 %v5179_v48, %v5897_v58  ;;  %v5192_v33 = vadd.f32 %v19232_v36, %v15424_v51  ;;  %v5183_v25 = vpop.f32.mrb[189].mxu0 }
 0x4f0   : > { %15868 = vmatprep.mubr.msk.bf16.mxu1 %vm6737_vm3, %v19039_v12  ;;  %v19268_v12 = vpack.c.bf16 %v6407_v0, %v6406_v54  ;;  %v5184_v8 = vadd.f32 %v19232_v36, %v5183_v25  ;;  %v15425_v6 = vpop.f32.mrb[190].mxu0 }
 0x4f1   : > { %v19263_v35 = vpack.c.bf16 %v6409_v14, %v6408_v23  ;;  %v5900_v1 = vmul.f32 0.1, %v5192_v33  ;;  %v5195_v44 = vadd.f32 %v19232_v36, %v15425_v6  ;;  %v5186_v38 = vpop.f32.mrb[191].mxu0 }
 0x4f2   : > { %v5898_v49 = vmul.f32 0.1, %v5184_v8  ;;  %v5187_v7 = vadd.f32 %v19232_v36, %v5186_v38 }
 0x4f3   : > { %v6412_v45 = vmax.f32 %v5192_v33, %v5900_v1  ;;  %v5901_v26 = vmul.f32 0.1, %v5195_v44 }
 0x4f4   : > { %v6410_v40 = vmax.f32 %v5184_v8, %v5898_v49  ;;  %v5899_v37 = vmul.f32 0.1, %v5187_v7 }
 0x4f6   : > { %v6411_v24 = vmax.f32 %v5187_v7, %v5899_v37 }
 0x4f7   : > { %15869 = vmatmul.mubr.msk.bf16.gmra.mrb[124].mxu1 %vm6737_vm3, %v19034_v57  ;;  %v6413_v57 = vmax.f32 %v5195_v44, %v5901_v26 }
 0x4f8   : > { %15872 = vmatprep.mubr.msk.bf16.mxu1 %vm6737_vm3, %v19055_v41  ;;  %v19279_v19 = vpack.c.bf16 %v6411_v24, %v6410_v40  ;;  %v15428_v41 = vpop.f32.mrb[192].mxu0 }
 0x4f9   : > { %v19275_v48 = vpack.c.bf16 %v6413_v57, %v6412_v45  ;;  %v5208_v59 = vadd.f32 %v19232_v36, %v15428_v41  ;;  %v5199_v30 = vpop.f32.mrb[193].mxu0 }
 0x4fa   : > { %v5200_v23 = vadd.f32 %v19232_v36, %v5199_v30  ;;  %v15429_v58 = vpop.f32.mrb[194].mxu0 }
 0x4fb   : > { %v5904_v54 = vmul.f32 0.1, %v5208_v59  ;;  %v5211_v63 = vadd.f32 %v19232_v36, %v15429_v58  ;;  %v5202_v14 = vpop.f32.mrb[195].mxu0 }
 0x4fc   : > { %v5902_v0 = vmul.f32 0.1, %v5200_v23  ;;  %v5203_v51 = vadd.f32 %v19232_v36, %v5202_v14 }
 0x4fd   : > { %v5905_v33 = vmul.f32 0.1, %v5211_v63 }
 0x4fe   : > { %v6414_v25 = vmax.f32 %v5200_v23, %v5902_v0  ;;  %v5903_v8 = vmul.f32 0.1, %v5203_v51  ;;  %v15432_v6 = vpop.f32.mrb[196].mxu0 }
 0x4ff   : > { %15873 = vmatmul.mubr.msk.bf16.gmra.mrb[128].mxu1 %vm6737_vm3, %v19050_v61  ;;  %v6416_v61 = vmax.f32 %v5208_v59, %v5904_v54  ;;  %v5224_v44 = vadd.f32 %v19232_v36, %v15432_v6  ;;  %v5215_v38 = vpop.f32.mrb[197].mxu0 }
 0x500   : > { %15876 = vmatprep.mubr.msk.bf16.mxu1 %vm6737_vm3, %v19071_v22  ;;  %v6417_v22 = vmax.f32 %v5211_v63, %v5905_v33  ;;  %v6415_v1 = vmax.f32 %v5203_v51, %v5903_v8  ;;  %v5216_v7 = vadd.f32 %v19232_v36, %v5215_v38  ;;  %v15433_v45 = vpop.f32.mrb[198].mxu0 }
 0x501   : > { %v5908_v40 = vmul.f32 0.1, %v5224_v44  ;;  %v5227_v37 = vadd.f32 %v19232_v36, %v15433_v45 }
 0x502   : > { %v19292_v49 = vpack.c.bf16 %v6417_v22, %v6416_v61  ;;  %v19295_v26 = vpack.c.bf16 %v6415_v1, %v6414_v25  ;;  %v5906_v57 = vmul.f32 0.1, %v5216_v7 }
 0x503   : > { %v6420_v41 = vmax.f32 %v5224_v44, %v5908_v40 }
 0x504   : > { %v6418_v59 = vmax.f32 %v5216_v7, %v5906_v57 }
 0x507   : > { %15877 = vmatmul.mubr.msk.bf16.gmra.mrb[132].mxu1 %vm6737_vm3, %v19066_v39  ;;  %v5218_v39 = vpop.f32.mrb[199].mxu0 }
 0x508   : > { %15882 = vmatprep.mubr.msk.bf16.mxu1 %vm6737_vm3, %v19087_v31  ;;  %v5219_v24 = vadd.f32 %v19232_v36, %v5218_v39  ;;  %v5909_v31 = vmul.f32 0.1, %v5227_v37  ;;  %v15436_v54 = vpop.f32.mrb[200].mxu0 }
 0x509   : > { %v5240_v14 = vadd.f32 %v19232_v36, %v15436_v54  ;;  %v5231_v0 = vpop.f32.mrb[201].mxu0 }
 0x50a   : > { %v5907_v30 = vmul.f32 0.1, %v5219_v24  ;;  %v6421_v23 = vmax.f32 %v5227_v37, %v5909_v31  ;;  %v5232_v61 = vadd.f32 %v19232_v36, %v5231_v0  ;;  %v15437_v33 = vpop.f32.mrb[202].mxu0 }
 0x50b   : > { %v5912_v25 = vmul.f32 0.1, %v5240_v14  ;;  %v5243_v8 = vadd.f32 %v19232_v36, %v15437_v33  ;;  %v5234_v22 = vpop.f32.mrb[203].mxu0 }
 0x50c   : > { %v6419_v58 = vmax.f32 %v5219_v24, %v5907_v30  ;;  %v19303_v63 = vpack.c.bf16 %v6421_v23, %v6420_v41  ;;  %v5235_v6 = vadd.f32 %v19232_v36, %v5234_v22 }
 0x50d   : > { %v6424_v1 = vmax.f32 %v5240_v14, %v5912_v25  ;;  %v5913_v44 = vmul.f32 0.1, %v5243_v8 }
 0x50e   : > { %v19306_v51 = vpack.c.bf16 %v6419_v58, %v6418_v59  ;;  %v5911_v38 = vmul.f32 0.1, %v5235_v6  ;;  %v15440_v40 = vpop.f32.mrb[204].mxu0 }
 0x50f   : > { %15883 = vmatmul.mubr.msk.bf16.vlgmr.msra.gmra.mrb[8].mxu1 %vm6737_vm3, %v19082_v18  ;;  %v5910_v18 = vmul.f32 0.1, %v5232_v61  ;;  %v6425_v7 = vmax.f32 %v5243_v8, %v5913_v44  ;;  %v5256_v39 = vadd.f32 %v19232_v36, %v15440_v40  ;;  %v5247_v57 = vpop.f32.mrb[205].mxu0 }
 0x510   : > { %15886 = vmatprep.mubr.msk.bf16.mxu1 %vm6737_vm3, %v19103_v2  ;;  %v6423_v45 = vmax.f32 %v5235_v6, %v5911_v38  ;;  %v5248_v41 = vadd.f32 %v19232_v36, %v5247_v57  ;;  %v15441_v31 = vpop.f32.mrb[206].mxu0 }
 0x511   : > { %v6422_v2 = vmax.f32 %v5232_v61, %v5910_v18  ;;  %v19315_v37 = vpack.c.bf16 %v6425_v7, %v6424_v1  ;;  %v5916_v59 = vmul.f32 0.1, %v5256_v39  ;;  %v5259_v30 = vadd.f32 %v19232_v36, %v15441_v31  ;;  %v5250_v23 = vpop.f32.mrb[207].mxu0 }
 0x512   : > { %v5251_v58 = vadd.f32 %v19232_v36, %v5250_v23 }
 0x513   : > { %v19318_v24 = vpack.c.bf16 %v6423_v45, %v6422_v2  ;;  %v6428_v54 = vmax.f32 %v5256_v39, %v5916_v59  ;;  %v5917_v14 = vmul.f32 0.1, %v5259_v30 }
 0x514   : > { %v5915_v0 = vmul.f32 0.1, %v5251_v58 }
 0x515   : > { %v6429_v61 = vmax.f32 %v5259_v30, %v5917_v14 }
 0x516   : > { %v6427_v33 = vmax.f32 %v5251_v58, %v5915_v0  ;;  %v15444_v25 = vpop.f32.mrb[208].mxu0 }
 0x517   : > { %15887 = vmatmul.mubr.msk.bf16.gmra.mrb[12].mxu1 %vm6737_vm3, %v19098_v50  ;;  %v5914_v50 = vmul.f32 0.1, %v5248_v41  ;;  %v19327_v8 = vpack.c.bf16 %v6429_v61, %v6428_v54  ;;  %v5272_v22 = vadd.f32 %v19232_v36, %v15444_v25  ;;  %v5263_v18 = vpop.f32.mrb[209].mxu0 }
 0x518   : > { %15890 = vmatprep.mubr.msk.bf16.mxu1 %vm6737_vm3, %v19119_v15  ;;  %v5264_v1 = vadd.f32 %v19232_v36, %v5263_v18  ;;  %v15445_v44 = vpop.f32.mrb[210].mxu0 }
 0x519   : > { %v6426_v15 = vmax.f32 %v5248_v41, %v5914_v50  ;;  %v5920_v2 = vmul.f32 0.1, %v5272_v22  ;;  %v5275_v38 = vadd.f32 %v19232_v36, %v15445_v44  ;;  %v5266_v7 = vpop.f32.mrb[211].mxu0 }
 0x51a   : > { %v5267_v45 = vadd.f32 %v19232_v36, %v5266_v7 }
 0x51b   : > { %v19330_v6 = vpack.c.bf16 %v6427_v33, %v6426_v15  ;;  %v6432_v40 = vmax.f32 %v5272_v22, %v5920_v2  ;;  %v5921_v39 = vmul.f32 0.1, %v5275_v38 }
 0x51c   : > { %v5919_v57 = vmul.f32 0.1, %v5267_v45 }
 0x51d   : > { %v6433_v41 = vmax.f32 %v5275_v38, %v5921_v39 }
 0x51e   : > { %v6431_v31 = vmax.f32 %v5267_v45, %v5919_v57  ;;  %v15448_v59 = vpop.f32.mrb[212].mxu0 }
 0x51f   : > { %15891 = vmatmul.mubr.msk.bf16.gmra.mrb[16].mxu1 %vm6737_vm3, %v19114_v5  ;;  %v5918_v5 = vmul.f32 0.1, %v5264_v1  ;;  %v19339_v30 = vpack.c.bf16 %v6433_v41, %v6432_v40  ;;  %v5288_v23 = vadd.f32 %v19232_v36, %v15448_v59  ;;  %v5279_v50 = vpop.f32.mrb[213].mxu0 }
 0x520   : > { %15894 = vmatprep.mubr.msk.bf16.mxu1 %vm6737_vm3, %v19131_v28  ;;  %v5280_v54 = vadd.f32 %v19232_v36, %v5279_v50  ;;  %v15449_v14 = vpop.f32.mrb[214].mxu0 }
 0x521   : > { %v6430_v28 = vmax.f32 %v5264_v1, %v5918_v5  ;;  %v5924_v15 = vmul.f32 0.1, %v5288_v23  ;;  %v5291_v0 = vadd.f32 %v19232_v36, %v15449_v14  ;;  %v5282_v61 = vpop.f32.mrb[215].mxu0 }
 0x522   : > { %v5283_v33 = vadd.f32 %v19232_v36, %v5282_v61 }
 0x523   : > { %v19342_v58 = vpack.c.bf16 %v6431_v31, %v6430_v28  ;;  %v6436_v25 = vmax.f32 %v5288_v23, %v5924_v15  ;;  %v5925_v22 = vmul.f32 0.1, %v5291_v0 }
 0x524   : > { %v5923_v18 = vmul.f32 0.1, %v5283_v33 }
 0x525   : > { %v6437_v1 = vmax.f32 %v5291_v0, %v5925_v22 }
 0x526   : > { %v6435_v44 = vmax.f32 %v5283_v33, %v5923_v18  ;;  %v15452_v2 = vpop.f32.mrb[216].mxu0 }
 0x527   : > { %15895 = vmatmul.mubr.msk.bf16.gmra.mrb[20].mxu1 %vm6737_vm3, %v19126_v29  ;;  %v5922_v29 = vmul.f32 0.1, %v5280_v54  ;;  %v19351_v38 = vpack.c.bf16 %v6437_v1, %v6436_v25  ;;  %v5304_v7 = vadd.f32 %v19232_v36, %v15452_v2  ;;  %v5295_v5 = vpop.f32.mrb[217].mxu0 }
 0x528   : > { %15898 = vmatprep.mubr.msk.bf16.mxu1 %vm6737_vm3, %v19143_v60  ;;  %v5296_v40 = vadd.f32 %v19232_v36, %v5295_v5  ;;  %v15453_v39 = vpop.f32.mrb[218].mxu0 }
 0x529   : > { %v6434_v60 = vmax.f32 %v5280_v54, %v5922_v29  ;;  %v5928_v28 = vmul.f32 0.1, %v5304_v7  ;;  %v5307_v57 = vadd.f32 %v19232_v36, %v15453_v39  ;;  %v5298_v41 = vpop.f32.mrb[219].mxu0 }
 0x52a   : > { %v5299_v31 = vadd.f32 %v19232_v36, %v5298_v41 }
 0x52b   : > { %v19354_v45 = vpack.c.bf16 %v6435_v44, %v6434_v60  ;;  %v6440_v59 = vmax.f32 %v5304_v7, %v5928_v28  ;;  %v5929_v23 = vmul.f32 0.1, %v5307_v57 }
 0x52c   : > { %v5927_v50 = vmul.f32 0.1, %v5299_v31 }
 0x52d   : > { %v6441_v54 = vmax.f32 %v5307_v57, %v5929_v23 }
 0x52e   : > { %v6439_v14 = vmax.f32 %v5299_v31, %v5927_v50  ;;  %v15456_v15 = vpop.f32.mrb[220].mxu0 }
 0x52f   : > { %15899 = vmatmul.mubr.msk.bf16.gmra.mrb[24].mxu1 %vm6737_vm3, %v19138_v11  ;;  %v5926_v11 = vmul.f32 0.1, %v5296_v40  ;;  %v19363_v0 = vpack.c.bf16 %v6441_v54, %v6440_v59  ;;  %v5320_v61 = vadd.f32 %v19232_v36, %v15456_v15  ;;  %v5311_v29 = vpop.f32.mrb[221].mxu0 }
 0x530   : > { %15902 = vmatprep.mubr.msk.bf16.mxu1 %vm6737_vm3, %v19155_v56  ;;  %v5312_v25 = vadd.f32 %v19232_v36, %v5311_v29  ;;  %v15457_v22 = vpop.f32.mrb[222].mxu0 }
 0x531   : > { %v6438_v56 = vmax.f32 %v5296_v40, %v5926_v11  ;;  %v5932_v60 = vmul.f32 0.1, %v5320_v61  ;;  %v5323_v18 = vadd.f32 %v19232_v36, %v15457_v22  ;;  %v5314_v1 = vpop.f32.mrb[223].mxu0 }
 0x532   : > { %v5315_v44 = vadd.f32 %v19232_v36, %v5314_v1 }
 0x533   : > { %v19366_v33 = vpack.c.bf16 %v6439_v14, %v6438_v56  ;;  %v6444_v2 = vmax.f32 %v5320_v61, %v5932_v60  ;;  %v5933_v7 = vmul.f32 0.1, %v5323_v18 }
 0x534   : > { %v5931_v5 = vmul.f32 0.1, %v5315_v44 }
 0x535   : > { %v6445_v40 = vmax.f32 %v5323_v18, %v5933_v7 }
 0x536   : > { %v6443_v39 = vmax.f32 %v5315_v44, %v5931_v5  ;;  %v15460_v28 = vpop.f32.mrb[224].mxu0 }
 0x537   : > { %15903 = vmatmul.mubr.msk.bf16.gmra.mrb[28].mxu1 %vm6737_vm3, %v19150_v55  ;;  %v5930_v55 = vmul.f32 0.1, %v5312_v25  ;;  %v19375_v57 = vpack.c.bf16 %v6445_v40, %v6444_v2  ;;  %v5336_v41 = vadd.f32 %v19232_v36, %v15460_v28  ;;  %v5327_v11 = vpop.f32.mrb[225].mxu0 }
 0x538   : > { %15906 = vmatprep.mubr.msk.bf16.mxu1 %vm6737_vm3, %v19167_v34  ;;  %v5328_v59 = vadd.f32 %v19232_v36, %v5327_v11  ;;  %v15461_v23 = vpop.f32.mrb[226].mxu0 }
 0x539   : > { %v6442_v34 = vmax.f32 %v5312_v25, %v5930_v55  ;;  %v5936_v56 = vmul.f32 0.1, %v5336_v41  ;;  %v5339_v50 = vadd.f32 %v19232_v36, %v15461_v23  ;;  %v5330_v54 = vpop.f32.mrb[227].mxu0 }
 0x53a   : > { %v5331_v14 = vadd.f32 %v19232_v36, %v5330_v54 }
 0x53b   : > { %v19378_v31 = vpack.c.bf16 %v6443_v39, %v6442_v34  ;;  %v6448_v15 = vmax.f32 %v5336_v41, %v5936_v56  ;;  %v5937_v61 = vmul.f32 0.1, %v5339_v50 }
 0x53c   : > { %v5935_v29 = vmul.f32 0.1, %v5331_v14 }
 0x53d   : > { %v6449_v25 = vmax.f32 %v5339_v50, %v5937_v61 }
 0x53e   : > { %v6447_v22 = vmax.f32 %v5331_v14, %v5935_v29  ;;  %v15464_v60 = vpop.f32.mrb[228].mxu0 }
 0x53f   : > { %15907 = vmatmul.mubr.msk.bf16.gmra.mrb[32].mxu1 %vm6737_vm3, %v19162_v62  ;;  %v5934_v62 = vmul.f32 0.1, %v5328_v59  ;;  %v19387_v18 = vpack.c.bf16 %v6449_v25, %v6448_v15  ;;  %v5352_v1 = vadd.f32 %v19232_v36, %v15464_v60  ;;  %v5343_v55 = vpop.f32.mrb[229].mxu0 }
 0x540   : > { %15910 = vmatprep.mubr.msk.bf16.mxu1 %vm6737_vm3, %v19179_v32  ;;  %v5344_v2 = vadd.f32 %v19232_v36, %v5343_v55  ;;  %v15465_v7 = vpop.f32.mrb[230].mxu0 }
 0x541   : > { %v6446_v32 = vmax.f32 %v5328_v59, %v5934_v62  ;;  %v5940_v34 = vmul.f32 0.1, %v5352_v1  ;;  %v5355_v5 = vadd.f32 %v19232_v36, %v15465_v7  ;;  %v5346_v40 = vpop.f32.mrb[231].mxu0 }
 0x542   : > { %v5347_v39 = vadd.f32 %v19232_v36, %v5346_v40 }
 0x543   : > { %v19390_v44 = vpack.c.bf16 %v6447_v22, %v6446_v32  ;;  %v6452_v28 = vmax.f32 %v5352_v1, %v5940_v34  ;;  %v5941_v41 = vmul.f32 0.1, %v5355_v5 }
 0x544   : > { %v5939_v11 = vmul.f32 0.1, %v5347_v39 }
 0x545   : > { %v6453_v59 = vmax.f32 %v5355_v5, %v5941_v41 }
 0x546   : > { %v6451_v23 = vmax.f32 %v5347_v39, %v5939_v11  ;;  %v15468_v56 = vpop.f32.mrb[232].mxu0 }
 0x547   : > { %15911 = vmatmul.mubr.msk.bf16.gmra.mrb[36].mxu1 %vm6737_vm3, %v19174_v16  ;;  %v5938_v16 = vmul.f32 0.1, %v5344_v2  ;;  %v19399_v50 = vpack.c.bf16 %v6453_v59, %v6452_v28  ;;  %v5368_v54 = vadd.f32 %v19232_v36, %v15468_v56  ;;  %v5359_v62 = vpop.f32.mrb[233].mxu0 }
 0x548   : > { %15914 = vmatprep.mubr.msk.bf16.mxu1 %vm6737_vm3, %v19191_v17  ;;  %v5360_v15 = vadd.f32 %v19232_v36, %v5359_v62  ;;  %v15469_v61 = vpop.f32.mrb[234].mxu0 }
 0x549   : > { %v6450_v17 = vmax.f32 %v5344_v2, %v5938_v16  ;;  %v5944_v32 = vmul.f32 0.1, %v5368_v54  ;;  %v5371_v29 = vadd.f32 %v19232_v36, %v15469_v61  ;;  %v5362_v25 = vpop.f32.mrb[235].mxu0 }
 0x54a   : > { %v5363_v22 = vadd.f32 %v19232_v36, %v5362_v25 }
 0x54b   : > { %v19402_v14 = vpack.c.bf16 %v6451_v23, %v6450_v17  ;;  %v6456_v60 = vmax.f32 %v5368_v54, %v5944_v32  ;;  %v5945_v1 = vmul.f32 0.1, %v5371_v29 }
 0x54c   : > { %v5943_v55 = vmul.f32 0.1, %v5363_v22 }
 0x54d   : > { %v6457_v2 = vmax.f32 %v5371_v29, %v5945_v1 }
 0x54e   : > { %v6455_v7 = vmax.f32 %v5363_v22, %v5943_v55  ;;  %v15472_v34 = vpop.f32.mrb[236].mxu0 }
 0x54f   : > { %15915 = vmatmul.mubr.msk.bf16.gmra.mrb[40].mxu1 %vm6737_vm3, %v19186_v9  ;;  %v5942_v9 = vmul.f32 0.1, %v5360_v15  ;;  %v19411_v5 = vpack.c.bf16 %v6457_v2, %v6456_v60  ;;  %v5384_v40 = vadd.f32 %v19232_v36, %v15472_v34  ;;  %v5375_v16 = vpop.f32.mrb[237].mxu0 }
 0x550   : > { %15918 = vmatprep.mubr.msk.bf16.mxu1 %vm6737_vm3, %v19203_v27  ;;  %v5376_v28 = vadd.f32 %v19232_v36, %v5375_v16  ;;  %v15473_v41 = vpop.f32.mrb[238].mxu0 }
 0x551   : > { %v6454_v27 = vmax.f32 %v5360_v15, %v5942_v9  ;;  %v5948_v17 = vmul.f32 0.1, %v5384_v40  ;;  %v5387_v11 = vadd.f32 %v19232_v36, %v15473_v41  ;;  %v5378_v59 = vpop.f32.mrb[239].mxu0 }
 0x552   : > { %v5379_v23 = vadd.f32 %v19232_v36, %v5378_v59 }
 0x553   : > { %v19414_v39 = vpack.c.bf16 %v6455_v7, %v6454_v27  ;;  %v6460_v56 = vmax.f32 %v5384_v40, %v5948_v17  ;;  %v5949_v54 = vmul.f32 0.1, %v5387_v11 }
 0x554   : > { %v5947_v62 = vmul.f32 0.1, %v5379_v23 }
 0x555   : > { %v6461_v15 = vmax.f32 %v5387_v11, %v5949_v54 }
 0x556   : > { %v6459_v61 = vmax.f32 %v5379_v23, %v5947_v62  ;;  %v15476_v32 = vpop.f32.mrb[240].mxu0 }
 0x557   : > { %15919 = vmatmul.mubr.msk.bf16.gmra.mrb[44].mxu1 %vm6737_vm3, %v19198_v20  ;;  %v5946_v20 = vmul.f32 0.1, %v5376_v28  ;;  %v19423_v29 = vpack.c.bf16 %v6461_v15, %v6460_v56  ;;  %v5400_v9 = vadd.f32 %v19232_v36, %v15476_v32  ;;  %v5391_v22 = vpop.f32.mrb[241].mxu0 }
 0x558   : > { %15922 = vmatprep.mubr.msk.bf16.mxu1 %vm6737_vm3, %v19215_v52  ;;  %v15477_v60 = vpop.f32.mrb[242].mxu0  ;;  %v5392_v55 = vadd.f32 %v19232_v36, %v5391_v22 }
 0x559   : > { %v6458_v52 = vmax.f32 %v5376_v28, %v5946_v20  ;;  %v5952_v1 = vmul.f32 0.1, %v5400_v9  ;;  %v5394_v27 = vpop.f32.mrb[243].mxu0 }
 0x55a   : > { %v5395_v2 = vadd.f32 %v19232_v36, %v5394_v27 }
 0x55b   : > { %v19425_v25 = vpack.c.bf16 %v6459_v61, %v6458_v52  ;;  %v6464_v34 = vmax.f32 %v5400_v9, %v5952_v1 }
 0x55c   : > { %v5951_v7 = vmul.f32 0.1, %v5395_v2 }
 0x55e   : > { %v6463_v28 = vmax.f32 %v5395_v2, %v5951_v7  ;;  %v15480_v41 = vpop.f32.mrb[244].mxu0 }
 0x55f   : > { %15923 = vmatmul.mubr.msk.bf16.gmra.mrb[48].mxu1 %vm6737_vm3, %v19210_v3  ;;  %v5403_v3 = vadd.f32 %v19232_v36, %v15477_v60  ;;  %v5407_v11 = vpop.f32.mrb[245].mxu0  ;;  %v5416_v20 = vadd.f32 %v19232_v36, %v15480_v41 }
 0x560   : > { %15926 = vmatprep.mubr.msk.bf16.mxu1 %vm6737_vm3, %v19227_v4  ;;  %v5950_v4 = vmul.f32 0.1, %v5392_v55  ;;  %v15481_v23 = vpop.f32.mrb[246].mxu0 }
 0x561   : > { %v5953_v40 = vmul.f32 0.1, %v5403_v3  ;;  %v5410_v56 = vpop.f32.mrb[247].mxu0  ;;  %v5956_v54 = vmul.f32 0.1, %v5416_v20  ;;  %v5419_v62 = vadd.f32 %v19232_v36, %v15481_v23 }
 0x562   : > { %v6462_v16 = vmax.f32 %v5392_v55, %v5950_v4  ;;  %v5411_v52 = vadd.f32 %v19232_v36, %v5410_v56 }
 0x563   : > { %v6465_v17 = vmax.f32 %v5403_v3, %v5953_v40  ;;  %v6468_v32 = vmax.f32 %v5416_v20, %v5956_v54  ;;  %v5957_v9 = vmul.f32 0.1, %v5419_v62 }
 0x564   : > { %v19435_v59 = vpack.c.bf16 %v6463_v28, %v6462_v16  ;;  %v5955_v61 = vmul.f32 0.1, %v5411_v52 }
 0x565   : > { %v6469_v1 = vmax.f32 %v5419_v62, %v5957_v9 }
 0x566   : > { %v6467_v60 = vmax.f32 %v5411_v52, %v5955_v61 }
 0x567   : > { %15927 = vmatmul.mubr.msk.bf16.gmra.mrb[52].mxu1 %vm6737_vm3, %v19222_v13  ;;  %v19438_v13 = vpack.c.bf16 %v6465_v17, %v6464_v34  ;;  %v19449_v55 = vpack.c.bf16 %v6469_v1, %v6468_v32 }
 0x568   : > { %15930 = vmatprep.mubr.msk.bf16.mxu1 %vm6737_vm3, %v19244_v42  ;;  %v5408_v42 = vadd.f32 %v19232_v36, %v5407_v11  ;;  %v19486_v36 = vld [vmem:[%s20697_s0] sm:$0xff]  }
 0x569   : > { %16044 = vmatprep.subr.bf16.mxu0 %v19486_v36 }
 0x56a   : > { %v5954_v15 = vmul.f32 0.1, %v5408_v42 }
 0x56c   : > { %v6466_v22 = vmax.f32 %v5408_v42, %v5954_v15 }
 0x56e   : > { %v19447_v27 = vpack.c.bf16 %v6467_v60, %v6466_v22 }
 0x56f   : > { %15931 = vmatmul.mubr.msk.bf16.gmra.mrb[56].mxu1 %vm6737_vm3, %v19239_v53  ;;  %v19514_v53 = vld [vmem:[%s20747_s29] ss:$0 sm:$0xff] }
 0x570   : > { %15934 = vmatprep.mubr.msk.bf16.mxu1 %vm6737_vm3, %v19256_v46 }
 0x577   : > { %15935 = vmatmul.mubr.msk.bf16.gmra.mrb[60].mxu1 %vm6737_vm3, %v19251_v21 }
 0x578   : > { %15938 = vmatprep.mubr.msk.bf16.mxu1 %vm6737_vm3, %v19268_v12 }
 0x57f   : > { %15939 = vmatmul.mubr.msk.bf16.gmra.mrb[64].mxu1 %vm6737_vm3, %v19263_v35 }
 0x580   : > { %15942 = vmatprep.mubr.msk.bf16.mxu1 %vm6737_vm3, %v19279_v19 }
 0x587   : > { %15943 = vmatmul.mubr.msk.bf16.gmra.mrb[68].mxu1 %vm6737_vm3, %v19275_v48 }
 0x588   : > { %15946 = vmatprep.mubr.msk.bf16.mxu1 %vm6737_vm3, %v19295_v26 }
 0x58f   : > { %15947 = vmatmul.mubr.msk.bf16.gmra.mrb[72].mxu1 %vm6737_vm3, %v19292_v49 }
 0x590   : > { %15950 = vmatprep.mubr.msk.bf16.mxu1 %vm6737_vm3, %v19306_v51 }
 0x597   : > { %15951 = vmatmul.mubr.msk.bf16.gmra.mrb[76].mxu1 %vm6737_vm3, %v19303_v63 }
 0x598   : > { %15954 = vmatprep.mubr.msk.bf16.mxu1 %vm6737_vm3, %v19318_v24 }
 0x59f   : > { %15955 = vmatmul.mubr.msk.bf16.gmra.mrb[80].mxu1 %vm6737_vm3, %v19315_v37 }
 0x5a0   : > { %15958 = vmatprep.mubr.msk.bf16.mxu1 %vm6737_vm3, %v19330_v6 }
 0x5a7   : > { %15959 = vmatmul.mubr.msk.bf16.gmra.mrb[84].mxu1 %vm6737_vm3, %v19327_v8 }
 0x5a8   : > { %15962 = vmatprep.mubr.msk.bf16.mxu1 %vm6737_vm3, %v19342_v58 }
 0x5af   : > { %15963 = vmatmul.mubr.msk.bf16.gmra.mrb[88].mxu1 %vm6737_vm3, %v19339_v30 }
 0x5b0   : > { %15966 = vmatprep.mubr.msk.bf16.mxu1 %vm6737_vm3, %v19354_v45 }
 0x5b7   : > { %15967 = vmatmul.mubr.msk.bf16.gmra.mrb[92].mxu1 %vm6737_vm3, %v19351_v38 }
 0x5b8   : > { %15970 = vmatprep.mubr.msk.bf16.mxu1 %vm6737_vm3, %v19366_v33 }
 0x5bf   : > { %15971 = vmatmul.mubr.msk.bf16.gmra.mrb[96].mxu1 %vm6737_vm3, %v19363_v0 }
 0x5c0   : > { %15974 = vmatprep.mubr.msk.bf16.mxu1 %vm6737_vm3, %v19378_v31 }
 0x5c7   : > { %15975 = vmatmul.mubr.msk.bf16.gmra.mrb[100].mxu1 %vm6737_vm3, %v19375_v57 }
 0x5c8   : > { %15978 = vmatprep.mubr.msk.bf16.mxu1 %vm6737_vm3, %v19390_v44 }
 0x5cf   : > { %15979 = vmatmul.mubr.msk.bf16.gmra.mrb[104].mxu1 %vm6737_vm3, %v19387_v18 }
 0x5d0   : > { %15982 = vmatprep.mubr.msk.bf16.mxu1 %vm6737_vm3, %v19402_v14 }
 0x5d7   : > { %15983 = vmatmul.mubr.msk.bf16.gmra.mrb[108].mxu1 %vm6737_vm3, %v19399_v50 }
 0x5d8   : > { %15986 = vmatprep.mubr.msk.bf16.mxu1 %vm6737_vm3, %v19414_v39 }
 0x5df   : > { %15987 = vmatmul.mubr.msk.bf16.gmra.mrb[112].mxu1 %vm6737_vm3, %v19411_v5 }
 0x5e0   : > { %15990 = vmatprep.mubr.msk.bf16.mxu1 %vm6737_vm3, %v19425_v25 }
 0x5e2   : > { %v15884_v21 = vpop.f32.mrb[8].mxu1 }
 0x5e3   : > { %v9968_v46 = vadd.f32 %v15884_v21, %v19514_v53  ;;  %v9320_v35 = vpop.f32.mrb[9].mxu1 }
 0x5e4   : > { %v9966_v12 = vadd.f32 %v19514_v53, %v9320_v35  ;;  %v15885_v48 = vpop.f32.mrb[10].mxu1 }
 0x5e5   : > { %v10096_v19 = vmul.f32 0.1, %v9968_v46  ;;  %v9969_v49 = vadd.f32 %v15885_v48, %v19514_v53  ;;  %v9323_v26 = vpop.f32.mrb[11].mxu1 }
 0x5e6   : > { %v10094_v63 = vmul.f32 0.1, %v9966_v12  ;;  %v9967_v51 = vadd.f32 %v19514_v53, %v9323_v26 }
 0x5e7   : > { %v10097_v37 = vmul.f32 0.1, %v9969_v49  ;;  %15991 = vmatmul.mubr.msk.bf16.gmra.mrb[116].mxu1 %vm6737_vm3, %v19423_v29  ;;  %v10224_v8 = vmax.f32 %v9968_v46, %v10096_v19  ;;  %v20748_v19 = vld [vmem:[#allocation38_spill] sm:$0xff] }
 0x5e8   : > { %v10095_v24 = vmul.f32 0.1, %v9967_v51  ;;  %15994 = vmatprep.mubr.msk.bf16.mxu1 %vm6737_vm3, %v19435_v59  ;;  %v10222_v30 = vmax.f32 %v9966_v12, %v10094_v63 }
 0x5e9   : > { %v10225_v6 = vmax.f32 %v9969_v49, %v10097_v37 }
 0x5ea   : > { %v10223_v58 = vmax.f32 %v9967_v51, %v10095_v24  ;;  %v15888_v38 = vpop.f32.mrb[12].mxu1 }
 0x5eb   : > { %v19526_v45 = vpack.c.bf16 %v10225_v6, %v10224_v8  ;;  %v9972_v0 = vadd.f32 %v15888_v38, %v19514_v53  ;;  %v9336_v33 = vpop.f32.mrb[13].mxu1 }
 0x5ec   : > { %v19529_v57 = vpack.c.bf16 %v10223_v58, %v10222_v30  ;;  %v9970_v31 = vadd.f32 %v19514_v53, %v9336_v33  ;;  %v15889_v18 = vpop.f32.mrb[14].mxu1 }
 0x5ed   : > { %v10100_v44 = vmul.f32 0.1, %v9972_v0  ;;  %v9973_v50 = vadd.f32 %v15889_v18, %v19514_v53  ;;  %v9339_v14 = vpop.f32.mrb[15].mxu1 }
 0x5ee   : > { %v10098_v5 = vmul.f32 0.1, %v9970_v31  ;;  %v9971_v39 = vadd.f32 %v19514_v53, %v9339_v14 }
 0x5ef   : > { %v10101_v29 = vmul.f32 0.1, %v9973_v50  ;;  %15995 = vmatmul.mubr.msk.bf16.gmra.mrb[120].mxu1 %vm6737_vm3, %v19438_v13  ;;  %v10228_v2 = vmax.f32 %v9972_v0, %v10100_v44 }
 0x5f0   : > { %v10099_v25 = vmul.f32 0.1, %v9971_v39  ;;  %15998 = vmatprep.mubr.msk.bf16.mxu1 %vm6737_vm3, %v19447_v27  ;;  %v10226_v4 = vmax.f32 %v9970_v31, %v10098_v5 }
 0x5f1   : > { %v10229_v3 = vmax.f32 %v9973_v50, %v10101_v29 }
 0x5f2   : > { %v10227_v7 = vmax.f32 %v9971_v39, %v10099_v25  ;;  %v15892_v34 = vpop.f32.mrb[16].mxu1 }
 0x5f3   : > { %v19538_v40 = vpack.c.bf16 %v10229_v3, %v10228_v2  ;;  %v9976_v16 = vadd.f32 %v15892_v34, %v19514_v53  ;;  %v9352_v28 = vpop.f32.mrb[17].mxu1 }
 0x5f4   : > { %v19541_v41 = vpack.c.bf16 %v10227_v7, %v10226_v4  ;;  %v9974_v17 = vadd.f32 %v19514_v53, %v9352_v28  ;;  %v15893_v11 = vpop.f32.mrb[18].mxu1 }
 0x5f5   : > { %v10104_v59 = vmul.f32 0.1, %v9976_v16  ;;  %v9977_v20 = vadd.f32 %v15893_v11, %v19514_v53  ;;  %v9355_v23 = vpop.f32.mrb[19].mxu1 }
 0x5f6   : > { %v10102_v13 = vmul.f32 0.1, %v9974_v17  ;;  %v9975_v56 = vadd.f32 %v19514_v53, %v9355_v23 }
 0x5f7   : > { %v10105_v54 = vmul.f32 0.1, %v9977_v20  ;;  %15999 = vmatmul.mubr.msk.bf16.gmra.mrb[124].mxu1 %vm6737_vm3, %v19449_v55  ;;  %v10232_v52 = vmax.f32 %v9976_v16, %v10104_v59 }
 0x5f8   : > { %v10103_v42 = vmul.f32 0.1, %v9975_v56  ;;  %16002 = vmatprep.mubr.msk.bf16.mxu1 %vm6737_vm3, %v18221_v47  ;;  %v10230_v15 = vmax.f32 %v9974_v17, %v10102_v13 }
 0x5f9   : > { %v10233_v62 = vmax.f32 %v9977_v20, %v10105_v54 }
 0x5fa   : > { %v10231_v61 = vmax.f32 %v9975_v56, %v10103_v42  ;;  %v15896_v32 = vpop.f32.mrb[20].mxu1 }
 0x5fb   : > { %v19550_v9 = vpack.c.bf16 %v10233_v62, %v10232_v52  ;;  %v9980_v22 = vadd.f32 %v15896_v32, %v19514_v53  ;;  %v9368_v60 = vpop.f32.mrb[21].mxu1 }
 0x5fc   : > { %v19553_v1 = vpack.c.bf16 %v10231_v61, %v10230_v15  ;;  %v9978_v27 = vadd.f32 %v19514_v53, %v9368_v60  ;;  %v15897_v21 = vpop.f32.mrb[22].mxu1 }
 0x5fd   : > { %v10108_v55 = vmul.f32 0.1, %v9980_v22  ;;  %v9981_v46 = vadd.f32 %v15897_v21, %v19514_v53  ;;  %v9371_v35 = vpop.f32.mrb[23].mxu1 }
 0x5fe   : > { %v10106_v47 = vmul.f32 0.1, %v9978_v27  ;;  %v9979_v12 = vadd.f32 %v19514_v53, %v9371_v35 }
 0x5ff   : > { %v10109_v48 = vmul.f32 0.1, %v9981_v46  ;;  %16003 = vmatmul.mubr.msk.bf16.gmra.mrb[128].mxu1 %vm6737_vm3, %v20748_v19  ;;  %v10236_v26 = vmax.f32 %v9980_v22, %v10108_v55 }
 0x600   : > { %v10107_v49 = vmul.f32 0.1, %v9979_v12  ;;  %16006 = vmatprep.mubr.msk.bf16.mxu1 %vm6737_vm3, %v18240_v10  ;;  %v10234_v51 = vmax.f32 %v9978_v27, %v10106_v47 }
 0x601   : > { %v10237_v63 = vmax.f32 %v9981_v46, %v10109_v48 }
 0x602   : > { %v10235_v37 = vmax.f32 %v9979_v12, %v10107_v49  ;;  %v15900_v24 = vpop.f32.mrb[24].mxu1 }
 0x603   : > { %v19562_v8 = vpack.c.bf16 %v10237_v63, %v10236_v26  ;;  %v9984_v6 = vadd.f32 %v15900_v24, %v19514_v53  ;;  %v9384_v30 = vpop.f32.mrb[25].mxu1 }
 0x604   : > { %v19565_v58 = vpack.c.bf16 %v10235_v37, %v10234_v51  ;;  %v9982_v38 = vadd.f32 %v19514_v53, %v9384_v30  ;;  %v15901_v0 = vpop.f32.mrb[26].mxu1 }
 0x605   : > { %v10112_v33 = vmul.f32 0.1, %v9984_v6  ;;  %v9985_v31 = vadd.f32 %v15901_v0, %v19514_v53  ;;  %v9387_v18 = vpop.f32.mrb[27].mxu1 }
 0x606   : > { %v10110_v10 = vmul.f32 0.1, %v9982_v38  ;;  %v9983_v44 = vadd.f32 %v19514_v53, %v9387_v18 }
 0x607   : > { %v10113_v50 = vmul.f32 0.1, %v9985_v31  ;;  %16007 = vmatmul.mubr.msk.bf16.gmra.mrb[132].mxu1 %vm6737_vm3, %v18238_v43  ;;  %v10240_v5 = vmax.f32 %v9984_v6, %v10112_v33 }
 0x608   : > { %v10111_v14 = vmul.f32 0.1, %v9983_v44  ;;  %v10238_v29 = vmax.f32 %v9982_v38, %v10110_v10 }
 0x609   : > { %v10241_v39 = vmax.f32 %v9985_v31, %v10113_v50 }
 0x60a   : > { %v10239_v25 = vmax.f32 %v9983_v44, %v10111_v14  ;;  %v15904_v2 = vpop.f32.mrb[28].mxu1 }
 0x60b   : > { %v19572_v3 = vpack.c.bf16 %v10241_v39, %v10240_v5  ;;  %v9988_v4 = vadd.f32 %v15904_v2, %v19514_v53  ;;  %v9400_v7 = vpop.f32.mrb[29].mxu1 }
 0x60c   : > { %v19575_v34 = vpack.c.bf16 %v10239_v25, %v10238_v29  ;;  %v9986_v16 = vadd.f32 %v19514_v53, %v9400_v7  ;;  %v15905_v28 = vpop.f32.mrb[30].mxu1 }
 0x60d   : > { %v10116_v17 = vmul.f32 0.1, %v9988_v4  ;;  %v9989_v11 = vadd.f32 %v15905_v28, %v19514_v53  ;;  %v9403_v43 = vpop.f32.mrb[31].mxu1 }
 0x60e   : > { %v10114_v59 = vmul.f32 0.1, %v9986_v16  ;;  %v9987_v20 = vadd.f32 %v19514_v53, %v9403_v43 }
 0x60f   : > { %v10117_v23 = vmul.f32 0.1, %v9989_v11  ;;  %v10244_v56 = vmax.f32 %v9988_v4, %v10116_v17 }
 0x610   : > { %v10115_v13 = vmul.f32 0.1, %v9987_v20  ;;  %v10242_v42 = vmax.f32 %v9986_v16, %v10114_v59 }
 0x611   : > { %v10245_v54 = vmax.f32 %v9989_v11, %v10117_v23 }
 0x612   : > { %v10243_v52 = vmax.f32 %v9987_v20, %v10115_v13  ;;  %v15908_v62 = vpop.f32.mrb[32].mxu1 }
 0x613   : > { %v19580_v15 = vpack.c.bf16 %v10245_v54, %v10244_v56  ;;  %v9992_v61 = vadd.f32 %v15908_v62, %v19514_v53  ;;  %v9416_v32 = vpop.f32.mrb[33].mxu1 }
 0x614   : > { %v19583_v22 = vpack.c.bf16 %v10243_v52, %v10242_v42  ;;  %v9990_v60 = vadd.f32 %v19514_v53, %v9416_v32  ;;  %v15909_v27 = vpop.f32.mrb[34].mxu1 }
 0x615   : > { %v10120_v21 = vmul.f32 0.1, %v9992_v61  ;;  %v9993_v55 = vadd.f32 %v15909_v27, %v19514_v53  ;;  %v9419_v46 = vpop.f32.mrb[35].mxu1 }
 0x616   : > { %v10118_v35 = vmul.f32 0.1, %v9990_v60  ;;  %v9991_v47 = vadd.f32 %v19514_v53, %v9419_v46 }
 0x617   : > { %v10121_v12 = vmul.f32 0.1, %v9993_v55  ;;  %v10248_v19 = vmax.f32 %v9992_v61, %v10120_v21 }
 0x618   : > { %v10119_v48 = vmul.f32 0.1, %v9991_v47  ;;  %v10246_v26 = vmax.f32 %v9990_v60, %v10118_v35 }
 0x619   : > { %v10249_v49 = vmax.f32 %v9993_v55, %v10121_v12 }
 0x61a   : > { %v10247_v63 = vmax.f32 %v9991_v47, %v10119_v48  ;;  %v15912_v51 = vpop.f32.mrb[36].mxu1 }
 0x61b   : > { %v19588_v37 = vpack.c.bf16 %v10249_v49, %v10248_v19  ;;  %v9996_v24 = vadd.f32 %v15912_v51, %v19514_v53  ;;  %v9432_v6 = vpop.f32.mrb[37].mxu1  ;;  %v19610_v19 = vld [vmem:[%s20697_s0 + $0x10] sm:$0xff]  }
 0x61c   : > { %v19591_v30 = vpack.c.bf16 %v10247_v63, %v10246_v26  ;;  %v9994_v38 = vadd.f32 %v19514_v53, %v9432_v6  ;;  %v15913_v0 = vpop.f32.mrb[38].mxu1 }
 0x61d   : > { %v10124_v33 = vmul.f32 0.1, %v9996_v24  ;;  %v9997_v31 = vadd.f32 %v15913_v0, %v19514_v53  ;;  %v9435_v18 = vpop.f32.mrb[39].mxu1 }
 0x61e   : > { %v10122_v10 = vmul.f32 0.1, %v9994_v38  ;;  %v9995_v44 = vadd.f32 %v19514_v53, %v9435_v18 }
 0x61f   : > { %v10125_v50 = vmul.f32 0.1, %v9997_v31  ;;  %v10252_v5 = vmax.f32 %v9996_v24, %v10124_v33 }
 0x620   : > { %v10123_v14 = vmul.f32 0.1, %v9995_v44  ;;  %v10250_v29 = vmax.f32 %v9994_v38, %v10122_v10 }
 0x621   : > { %v10253_v39 = vmax.f32 %v9997_v31, %v10125_v50 }
 0x622   : > { %v10251_v25 = vmax.f32 %v9995_v44, %v10123_v14  ;;  %v15916_v2 = vpop.f32.mrb[40].mxu1 }
 0x623   : > { %v19596_v4 = vpack.c.bf16 %v10253_v39, %v10252_v5  ;;  %v10000_v7 = vadd.f32 %v15916_v2, %v19514_v53  ;;  %v9448_v16 = vpop.f32.mrb[41].mxu1 }
 0x624   : > { %v19599_v28 = vpack.c.bf16 %v10251_v25, %v10250_v29  ;;  %v9998_v17 = vadd.f32 %v19514_v53, %v9448_v16  ;;  %v15917_v11 = vpop.f32.mrb[42].mxu1 }
 0x625   : > { %v10128_v43 = vmul.f32 0.1, %v10000_v7  ;;  %v10001_v59 = vadd.f32 %v15917_v11, %v19514_v53  ;;  %v9451_v20 = vpop.f32.mrb[43].mxu1 }
 0x626   : > { %v10126_v23 = vmul.f32 0.1, %v9998_v17  ;;  %v9999_v13 = vadd.f32 %v19514_v53, %v9451_v20 }
 0x627   : > { %v10129_v56 = vmul.f32 0.1, %v10001_v59  ;;  %v10256_v42 = vmax.f32 %v10000_v7, %v10128_v43 }
 0x628   : > { %v10127_v54 = vmul.f32 0.1, %v9999_v13  ;;  %v10254_v62 = vmax.f32 %v9998_v17, %v10126_v23 }
 0x629   : > { %v10257_v52 = vmax.f32 %v10001_v59, %v10129_v56 }
 0x62a   : > { %v10255_v61 = vmax.f32 %v9999_v13, %v10127_v54  ;;  %v15920_v32 = vpop.f32.mrb[44].mxu1 }
 0x62b   : > { %v10367_v60 = vpack.c.bf16 %v10257_v52, %v10256_v42  ;;  %v10004_v27 = vadd.f32 %v15920_v32, %v19514_v53  ;;  %v9464_v21 = vpop.f32.mrb[45].mxu1 }
 0x62c   : > { %v10366_v55 = vpack.c.bf16 %v10255_v61, %v10254_v62  ;;  %v10002_v46 = vadd.f32 %v19514_v53, %v9464_v21  ;;  %v15921_v35 = vpop.f32.mrb[46].mxu1 }
 0x62d   : > { %v10132_v47 = vmul.f32 0.1, %v10004_v27  ;;  %v10005_v12 = vadd.f32 %v15921_v35, %v19514_v53  ;;  %v9467_v48 = vpop.f32.mrb[47].mxu1 }
 0x62e   : > { %v10130_v49 = vmul.f32 0.1, %v10002_v46  ;;  %v10003_v26 = vadd.f32 %v19514_v53, %v9467_v48  ;;  %16012 = vmatprep.mubr.msk.bf16.mxu0 %vm10425_vm4, %v10366_v55 }
 0x62f   : > { %v10133_v63 = vmul.f32 0.1, %v10005_v12  ;;  %16013 = vmatmul.mubr.msk.bf16.vlgmr.msra.gmra.mrb[248].mxu0 %vm10425_vm4, %v10367_v60  ;;  %v10260_v24 = vmax.f32 %v10004_v27, %v10132_v47 }
 0x630   : > { %v10131_v51 = vmul.f32 0.1, %v10003_v26  ;;  %16045 = vmatpush3.bf16.msra.mxu0 %v19486_v36  ;;  %v10258_v38 = vmax.f32 %v10002_v46, %v10130_v49 }
 0x631   : > { %v10261_v6 = vmax.f32 %v10005_v12, %v10133_v63  ;;  %16078 = vmatprep.subr.bf16.mxu0 %v19610_v19 }
 0x632   : > { %v10259_v0 = vmax.f32 %v10003_v26, %v10131_v51  ;;  %v15924_v33 = vpop.f32.mrb[48].mxu1 }
 0x633   : > { %v10369_v31 = vpack.c.bf16 %v10261_v6, %v10260_v24  ;;  %v10008_v18 = vadd.f32 %v15924_v33, %v19514_v53  ;;  %v9480_v10 = vpop.f32.mrb[49].mxu1 }
 0x634   : > { %v10368_v44 = vpack.c.bf16 %v10259_v0, %v10258_v38  ;;  %v10006_v50 = vadd.f32 %v19514_v53, %v9480_v10  ;;  %v15925_v14 = vpop.f32.mrb[50].mxu1 }
 0x635   : > { %v10136_v5 = vmul.f32 0.1, %v10008_v18  ;;  %v10009_v39 = vadd.f32 %v15925_v14, %v19514_v53  ;;  %v9483_v29 = vpop.f32.mrb[51].mxu1 }
 0x636   : > { %v10134_v36 = vmul.f32 0.1, %v10006_v50  ;;  %v10007_v25 = vadd.f32 %v19514_v53, %v9483_v29  ;;  %16016 = vmatprep.mubr.msk.bf16.mxu0 %vm10425_vm4, %v10368_v44 }
 0x637   : > { %v10137_v2 = vmul.f32 0.1, %v10009_v39  ;;  %16017 = vmatmul.mubr.msk.bf16.gmra.mrb[252].mxu0 %vm10425_vm4, %v10369_v31  ;;  %v10264_v16 = vmax.f32 %v10008_v18, %v10136_v5 }
 0x638   : > { %v10135_v7 = vmul.f32 0.1, %v10007_v25  ;;  %v10262_v11 = vmax.f32 %v10006_v50, %v10134_v36 }
 0x639   : > { %v10265_v17 = vmax.f32 %v10009_v39, %v10137_v2 }
 0x63a   : > { %v10263_v43 = vmax.f32 %v10007_v25, %v10135_v7  ;;  %v15928_v59 = vpop.f32.mrb[52].mxu1 }
 0x63b   : > { %v10371_v20 = vpack.c.bf16 %v10265_v17, %v10264_v16  ;;  %v10012_v23 = vadd.f32 %v15928_v59, %v19514_v53  ;;  %v9496_v13 = vpop.f32.mrb[53].mxu1 }
 0x63c   : > { %v10370_v56 = vpack.c.bf16 %v10263_v43, %v10262_v11  ;;  %v10010_v54 = vadd.f32 %v19514_v53, %v9496_v13  ;;  %v15929_v42 = vpop.f32.mrb[54].mxu1 }
 0x63d   : > { %v10140_v52 = vmul.f32 0.1, %v10012_v23  ;;  %v10013_v62 = vadd.f32 %v15929_v42, %v19514_v53  ;;  %v9499_v61 = vpop.f32.mrb[55].mxu1 }
 0x63e   : > { %v10138_v32 = vmul.f32 0.1, %v10010_v54  ;;  %v10011_v60 = vadd.f32 %v19514_v53, %v9499_v61  ;;  %16020 = vmatprep.mubr.msk.bf16.mxu0 %vm10425_vm4, %v10370_v56 }
 0x63f   : > { %v10141_v27 = vmul.f32 0.1, %v10013_v62  ;;  %16021 = vmatmul.mubr.msk.bf16.gmra.mrb[0].mxu0 %vm10425_vm4, %v10371_v20  ;;  %v10268_v55 = vmax.f32 %v10012_v23, %v10140_v52 }
 0x640   : > { %v10139_v21 = vmul.f32 0.1, %v10011_v60  ;;  %v10266_v35 = vmax.f32 %v10010_v54, %v10138_v32 }
 0x641   : > { %v10269_v46 = vmax.f32 %v10013_v62, %v10141_v27 }
 0x642   : > { %v10267_v47 = vmax.f32 %v10011_v60, %v10139_v21  ;;  %v15932_v12 = vpop.f32.mrb[56].mxu1 }
 0x643   : > { %v10373_v48 = vpack.c.bf16 %v10269_v46, %v10268_v55  ;;  %v10016_v49 = vadd.f32 %v15932_v12, %v19514_v53  ;;  %v9512_v26 = vpop.f32.mrb[57].mxu1 }
 0x644   : > { %v10372_v63 = vpack.c.bf16 %v10267_v47, %v10266_v35  ;;  %v10014_v51 = vadd.f32 %v19514_v53, %v9512_v26  ;;  %v15933_v24 = vpop.f32.mrb[58].mxu1 }
 0x645   : > { %v10144_v6 = vmul.f32 0.1, %v10016_v49  ;;  %v10017_v38 = vadd.f32 %v15933_v24, %v19514_v53  ;;  %v9515_v0 = vpop.f32.mrb[59].mxu1 }
 0x646   : > { %v10142_v33 = vmul.f32 0.1, %v10014_v51  ;;  %v10015_v31 = vadd.f32 %v19514_v53, %v9515_v0  ;;  %16024 = vmatprep.mubr.msk.bf16.mxu0 %vm10425_vm4, %v10372_v63 }
 0x647   : > { %v10145_v18 = vmul.f32 0.1, %v10017_v38  ;;  %16025 = vmatmul.mubr.msk.bf16.gmra.mrb[4].mxu0 %vm10425_vm4, %v10373_v48  ;;  %v10272_v44 = vmax.f32 %v10016_v49, %v10144_v6 }
 0x648   : > { %v10143_v10 = vmul.f32 0.1, %v10015_v31  ;;  %v10270_v14 = vmax.f32 %v10014_v51, %v10142_v33 }
 0x649   : > { %v10273_v50 = vmax.f32 %v10017_v38, %v10145_v18 }
 0x64a   : > { %v10271_v5 = vmax.f32 %v10015_v31, %v10143_v10  ;;  %v15936_v39 = vpop.f32.mrb[60].mxu1 }
 0x64b   : > { %v10375_v29 = vpack.c.bf16 %v10273_v50, %v10272_v44  ;;  %v10020_v36 = vadd.f32 %v15936_v39, %v19514_v53  ;;  %v9528_v25 = vpop.f32.mrb[61].mxu1 }
 0x64c   : > { %v10374_v2 = vpack.c.bf16 %v10271_v5, %v10270_v14  ;;  %v10018_v7 = vadd.f32 %v19514_v53, %v9528_v25  ;;  %v15937_v16 = vpop.f32.mrb[62].mxu1 }
 0x64d   : > { %v10148_v17 = vmul.f32 0.1, %v10020_v36  ;;  %v10021_v11 = vadd.f32 %v15937_v16, %v19514_v53  ;;  %v9531_v43 = vpop.f32.mrb[63].mxu1 }
 0x64e   : > { %v10146_v59 = vmul.f32 0.1, %v10018_v7  ;;  %v10019_v20 = vadd.f32 %v19514_v53, %v9531_v43  ;;  %16028 = vmatprep.mubr.msk.bf16.mxu0 %vm10425_vm4, %v10374_v2 }
 0x64f   : > { %v10149_v23 = vmul.f32 0.1, %v10021_v11  ;;  %16029 = vmatmul.mubr.msk.bf16.gmra.mrb[8].mxu0 %vm10425_vm4, %v10375_v29  ;;  %v10276_v56 = vmax.f32 %v10020_v36, %v10148_v17 }
 0x650   : > { %v10147_v13 = vmul.f32 0.1, %v10019_v20  ;;  %v10274_v42 = vmax.f32 %v10018_v7, %v10146_v59 }
 0x651   : > { %v10277_v54 = vmax.f32 %v10021_v11, %v10149_v23 }
 0x652   : > { %v10275_v52 = vmax.f32 %v10019_v20, %v10147_v13  ;;  %v15940_v62 = vpop.f32.mrb[64].mxu1 }
 0x653   : > { %v10377_v61 = vpack.c.bf16 %v10277_v54, %v10276_v56  ;;  %v10024_v32 = vadd.f32 %v15940_v62, %v19514_v53  ;;  %v9544_v60 = vpop.f32.mrb[65].mxu1  ;;  %v17131_v54 = vld [vmem:[%s20749_s1 + $0x10] sm:$0xff]  }
 0x654   : > { %v10376_v27 = vpack.c.bf16 %v10275_v52, %v10274_v42  ;;  %v10022_v21 = vadd.f32 %v19514_v53, %v9544_v60  ;;  %v15941_v55 = vpop.f32.mrb[66].mxu1  ;;  %16146 = vmatprep.subr.bf16.mxu1 %v17131_v54 }
 0x655   : > { %v10152_v46 = vmul.f32 0.1, %v10024_v32  ;;  %v10025_v35 = vadd.f32 %v15941_v55, %v19514_v53  ;;  %v9547_v47 = vpop.f32.mrb[67].mxu1  ;;  %16147 = vmatpush3.bf16.msra.mxu1 %v17131_v54 }
 0x656   : > { %v10150_v12 = vmul.f32 0.1, %v10022_v21  ;;  %v10023_v48 = vadd.f32 %v19514_v53, %v9547_v47  ;;  %16032 = vmatprep.mubr.msk.bf16.mxu0 %vm10425_vm4, %v10376_v27 }
 0x657   : > { %v10153_v49 = vmul.f32 0.1, %v10025_v35  ;;  %16033 = vmatmul.mubr.msk.bf16.gmra.mrb[12].mxu0 %vm10425_vm4, %v10377_v61  ;;  %v10280_v63 = vmax.f32 %v10024_v32, %v10152_v46 }
 0x658   : > { %v10151_v26 = vmul.f32 0.1, %v10023_v48  ;;  %v10278_v24 = vmax.f32 %v10022_v21, %v10150_v12 }
 0x659   : > { %v10281_v51 = vmax.f32 %v10025_v35, %v10153_v49 }
 0x65a   : > { %v10279_v6 = vmax.f32 %v10023_v48, %v10151_v26  ;;  %v15944_v38 = vpop.f32.mrb[68].mxu1 }
 0x65b   : > { %v10379_v0 = vpack.c.bf16 %v10281_v51, %v10280_v63  ;;  %v10028_v33 = vadd.f32 %v15944_v38, %v19514_v53  ;;  %v9560_v31 = vpop.f32.mrb[69].mxu1 }
 0x65c   : > { %v10378_v18 = vpack.c.bf16 %v10279_v6, %v10278_v24  ;;  %v10026_v10 = vadd.f32 %v19514_v53, %v9560_v31  ;;  %v15945_v44 = vpop.f32.mrb[70].mxu1 }
 0x65d   : > { %v10156_v50 = vmul.f32 0.1, %v10028_v33  ;;  %v10029_v14 = vadd.f32 %v15945_v44, %v19514_v53  ;;  %v9563_v5 = vpop.f32.mrb[71].mxu1 }
 0x65e   : > { %v10154_v39 = vmul.f32 0.1, %v10026_v10  ;;  %v10027_v29 = vadd.f32 %v19514_v53, %v9563_v5  ;;  %16036 = vmatprep.mubr.msk.bf16.mxu0 %vm10425_vm4, %v10378_v18 }
 0x65f   : > { %v10157_v36 = vmul.f32 0.1, %v10029_v14  ;;  %16037 = vmatmul.mubr.msk.bf16.gmra.mrb[16].mxu0 %vm10425_vm4, %v10379_v0  ;;  %v10284_v2 = vmax.f32 %v10028_v33, %v10156_v50 }
 0x660   : > { %v10155_v25 = vmul.f32 0.1, %v10027_v29  ;;  %v10282_v16 = vmax.f32 %v10026_v10, %v10154_v39 }
 0x661   : > { %v10285_v7 = vmax.f32 %v10029_v14, %v10157_v36 }
 0x662   : > { %v10283_v17 = vmax.f32 %v10027_v29, %v10155_v25  ;;  %v15948_v11 = vpop.f32.mrb[72].mxu1 }
 0x663   : > { %v10381_v43 = vpack.c.bf16 %v10285_v7, %v10284_v2  ;;  %v10032_v59 = vadd.f32 %v15948_v11, %v19514_v53  ;;  %v9576_v20 = vpop.f32.mrb[73].mxu1 }
 0x664   : > { %v10380_v23 = vpack.c.bf16 %v10283_v17, %v10282_v16  ;;  %v10030_v13 = vadd.f32 %v19514_v53, %v9576_v20  ;;  %v15949_v56 = vpop.f32.mrb[74].mxu1 }
 0x665   : > { %v10160_v42 = vmul.f32 0.1, %v10032_v59  ;;  %v10033_v52 = vadd.f32 %v15949_v56, %v19514_v53  ;;  %v9579_v62 = vpop.f32.mrb[75].mxu1 }
 0x666   : > { %v10158_v61 = vmul.f32 0.1, %v10030_v13  ;;  %v10031_v32 = vadd.f32 %v19514_v53, %v9579_v62  ;;  %16040 = vmatprep.mubr.msk.bf16.mxu0 %vm10425_vm4, %v10380_v23 }
 0x667   : > { %v10161_v60 = vmul.f32 0.1, %v10033_v52  ;;  %16041 = vmatmul.mubr.msk.bf16.gmra.mrb[20].mxu0 %vm10425_vm4, %v10381_v43  ;;  %v10288_v21 = vmax.f32 %v10032_v59, %v10160_v42 }
 0x668   : > { %v10159_v27 = vmul.f32 0.1, %v10031_v32  ;;  %16046 = vmatprep.mubr.msk.bf16.mxu0 %vm10425_vm4, %v19529_v57  ;;  %v10286_v46 = vmax.f32 %v10030_v13, %v10158_v61  ;;  %v19674_v57 = vld [vmem:[%s20697_s0 + $0x18] sm:$0xff]   ;;  %s20750_s0 = sld [smem:[#allocation45_spill]] }
 0x669   : > { %v10289_v55 = vmax.f32 %v10033_v52, %v10161_v60 }
 0x66a   : > { %v10287_v35 = vmax.f32 %v10031_v32, %v10159_v27  ;;  %v15952_v47 = vpop.f32.mrb[76].mxu1 }
 0x66b   : > { %v19664_v12 = vpack.c.bf16 %v10289_v55, %v10288_v21  ;;  %v10036_v48 = vadd.f32 %v15952_v47, %v19514_v53  ;;  %v9592_v49 = vpop.f32.mrb[77].mxu1 }
 0x66c   : > { %v19667_v26 = vpack.c.bf16 %v10287_v35, %v10286_v46  ;;  %v10034_v63 = vadd.f32 %v19514_v53, %v9592_v49  ;;  %v15953_v51 = vpop.f32.mrb[78].mxu1 }
 0x66d   : > { %v10164_v24 = vmul.f32 0.1, %v10036_v48  ;;  %v10037_v6 = vadd.f32 %v15953_v51, %v19514_v53  ;;  %v9595_v38 = vpop.f32.mrb[79].mxu1 }
 0x66e   : > { %v10162_v0 = vmul.f32 0.1, %v10034_v63  ;;  %v10035_v33 = vadd.f32 %v19514_v53, %v9595_v38 }
 0x66f   : > { %v10165_v31 = vmul.f32 0.1, %v10037_v6  ;;  %16047 = vmatmul.mubr.msk.bf16.vlgmr.msra.gmra.mrb[248].mxu0 %vm10425_vm4, %v19526_v45  ;;  %v10292_v10 = vmax.f32 %v10036_v48, %v10164_v24 }
 0x670   : > { %v10163_v18 = vmul.f32 0.1, %v10035_v33  ;;  %16079 = vmatpush3.bf16.msra.mxu0 %v19610_v19  ;;  %16050 = vmatprep.mubr.msk.bf16.mxu0 %vm10425_vm4, %v19541_v41  ;;  %v10290_v50 = vmax.f32 %v10034_v63, %v10162_v0 }
 0x671   : > { %v10293_v44 = vmax.f32 %v10037_v6, %v10165_v31  ;;  %16112 = vmatprep.subr.bf16.mxu0 %v19674_v57 }
 0x672   : > { %v10291_v14 = vmax.f32 %v10035_v33, %v10163_v18  ;;  %v15956_v5 = vpop.f32.mrb[80].mxu1 }
 0x673   : > { %v19683_v39 = vpack.c.bf16 %v10293_v44, %v10292_v10  ;;  %v10040_v29 = vadd.f32 %v15956_v5, %v19514_v53  ;;  %v9608_v36 = vpop.f32.mrb[81].mxu1 }
 0x674   : > { %v19686_v25 = vpack.c.bf16 %v10291_v14, %v10290_v50  ;;  %v10038_v45 = vadd.f32 %v19514_v53, %v9608_v36  ;;  %v15957_v19 = vpop.f32.mrb[82].mxu1 }
 0x675   : > { %v10168_v2 = vmul.f32 0.1, %v10040_v29  ;;  %v10041_v41 = vadd.f32 %v15957_v19, %v19514_v53  ;;  %v9611_v7 = vpop.f32.mrb[83].mxu1 }
 0x676   : > { %v10166_v16 = vmul.f32 0.1, %v10038_v45  ;;  %v10039_v17 = vadd.f32 %v19514_v53, %v9611_v7 }
 0x677   : > { %v10169_v11 = vmul.f32 0.1, %v10041_v41  ;;  %16051 = vmatmul.mubr.msk.bf16.gmra.mrb[252].mxu0 %vm10425_vm4, %v19538_v40  ;;  %v10296_v59 = vmax.f32 %v10040_v29, %v10168_v2 }
 0x678   : > { %v10167_v43 = vmul.f32 0.1, %v10039_v17  ;;  %16054 = vmatprep.mubr.msk.bf16.mxu0 %vm10425_vm4, %v19553_v1  ;;  %v10294_v23 = vmax.f32 %v10038_v45, %v10166_v16 }
 0x679   : > { %v10297_v20 = vmax.f32 %v10041_v41, %v10169_v11 }
 0x67a   : > { %v10295_v13 = vmax.f32 %v10039_v17, %v10167_v43  ;;  %v15960_v56 = vpop.f32.mrb[84].mxu1 }
 0x67b   : > { %v19695_v54 = vpack.c.bf16 %v10297_v20, %v10296_v59  ;;  %v10044_v42 = vadd.f32 %v15960_v56, %v19514_v53  ;;  %v9624_v52 = vpop.f32.mrb[85].mxu1 }
 0x67c   : > { %v19698_v62 = vpack.c.bf16 %v10295_v13, %v10294_v23  ;;  %v10042_v61 = vadd.f32 %v19514_v53, %v9624_v52  ;;  %v15961_v32 = vpop.f32.mrb[86].mxu1 }
 0x67d   : > { %v10172_v40 = vmul.f32 0.1, %v10044_v42  ;;  %v10045_v60 = vadd.f32 %v15961_v32, %v19514_v53  ;;  %v9627_v27 = vpop.f32.mrb[87].mxu1 }
 0x67e   : > { %v10170_v1 = vmul.f32 0.1, %v10042_v61  ;;  %v10043_v21 = vadd.f32 %v19514_v53, %v9627_v27 }
 0x67f   : > { %v10173_v55 = vmul.f32 0.1, %v10045_v60  ;;  %16055 = vmatmul.mubr.msk.bf16.gmra.mrb[0].mxu0 %vm10425_vm4, %v19550_v9  ;;  %v10300_v35 = vmax.f32 %v10044_v42, %v10172_v40 }
 0x680   : > { %v10171_v46 = vmul.f32 0.1, %v10043_v21  ;;  %16058 = vmatprep.mubr.msk.bf16.mxu0 %vm10425_vm4, %v19565_v58  ;;  %v10298_v48 = vmax.f32 %v10042_v61, %v10170_v1 }
 0x681   : > { %v10301_v47 = vmax.f32 %v10045_v60, %v10173_v55 }
 0x682   : > { %v10299_v49 = vmax.f32 %v10043_v21, %v10171_v46  ;;  %v15964_v63 = vpop.f32.mrb[88].mxu1 }
 0x683   : > { %v19707_v51 = vpack.c.bf16 %v10301_v47, %v10300_v35  ;;  %v10048_v24 = vadd.f32 %v15964_v63, %v19514_v53  ;;  %v9640_v6 = vpop.f32.mrb[89].mxu1 }
 0x684   : > { %v19710_v38 = vpack.c.bf16 %v10299_v49, %v10298_v48  ;;  %v10046_v0 = vadd.f32 %v19514_v53, %v9640_v6  ;;  %v15965_v33 = vpop.f32.mrb[90].mxu1 }
 0x685   : > { %v10176_v9 = vmul.f32 0.1, %v10048_v24  ;;  %v10049_v31 = vadd.f32 %v15965_v33, %v19514_v53  ;;  %v9643_v18 = vpop.f32.mrb[91].mxu1 }
 0x686   : > { %v10174_v58 = vmul.f32 0.1, %v10046_v0  ;;  %v10047_v10 = vadd.f32 %v19514_v53, %v9643_v18 }
 0x687   : > { %v10177_v44 = vmul.f32 0.1, %v10049_v31  ;;  %16059 = vmatmul.mubr.msk.bf16.gmra.mrb[4].mxu0 %vm10425_vm4, %v19562_v8  ;;  %v10304_v14 = vmax.f32 %v10048_v24, %v10176_v9 }
 0x688   : > { %v10175_v50 = vmul.f32 0.1, %v10047_v10  ;;  %16062 = vmatprep.mubr.msk.bf16.mxu0 %vm10425_vm4, %v19575_v34  ;;  %v10302_v29 = vmax.f32 %v10046_v0, %v10174_v58 }
 0x689   : > { %v10305_v5 = vmax.f32 %v10049_v31, %v10177_v44 }
 0x68a   : > { %v10303_v36 = vmax.f32 %v10047_v10, %v10175_v50  ;;  %v15968_v45 = vpop.f32.mrb[92].mxu1 }
 0x68b   : > { %v19719_v19 = vpack.c.bf16 %v10305_v5, %v10304_v14  ;;  %v10052_v2 = vadd.f32 %v15968_v45, %v19514_v53  ;;  %v9656_v41 = vpop.f32.mrb[93].mxu1 }
 0x68c   : > { %v19722_v7 = vpack.c.bf16 %v10303_v36, %v10302_v29  ;;  %v10050_v16 = vadd.f32 %v19514_v53, %v9656_v41  ;;  %v15969_v17 = vpop.f32.mrb[94].mxu1 }
 0x68d   : > { %v10180_v8 = vmul.f32 0.1, %v10052_v2  ;;  %v10053_v11 = vadd.f32 %v15969_v17, %v19514_v53  ;;  %v9659_v43 = vpop.f32.mrb[95].mxu1 }
 0x68e   : > { %v10178_v34 = vmul.f32 0.1, %v10050_v16  ;;  %v10051_v59 = vadd.f32 %v19514_v53, %v9659_v43 }
 0x68f   : > { %v10181_v20 = vmul.f32 0.1, %v10053_v11  ;;  %16063 = vmatmul.mubr.msk.bf16.gmra.mrb[8].mxu0 %vm10425_vm4, %v19572_v3  ;;  %v10308_v13 = vmax.f32 %v10052_v2, %v10180_v8 }
 0x690   : > { %v10179_v23 = vmul.f32 0.1, %v10051_v59  ;;  %16066 = vmatprep.mubr.msk.bf16.mxu0 %vm10425_vm4, %v19583_v22  ;;  %v10306_v42 = vmax.f32 %v10050_v16, %v10178_v34 }
 0x691   : > { %v10309_v56 = vmax.f32 %v10053_v11, %v10181_v20 }
 0x692   : > { %v10307_v52 = vmax.f32 %v10051_v59, %v10179_v23  ;;  %v15972_v61 = vpop.f32.mrb[96].mxu1 }
 0x693   : > { %v19731_v32 = vpack.c.bf16 %v10309_v56, %v10308_v13  ;;  %v10056_v40 = vadd.f32 %v15972_v61, %v19514_v53  ;;  %v9672_v60 = vpop.f32.mrb[97].mxu1 }
 0x694   : > { %v19734_v27 = vpack.c.bf16 %v10307_v52, %v10306_v42  ;;  %v10054_v1 = vadd.f32 %v19514_v53, %v9672_v60  ;;  %v15973_v21 = vpop.f32.mrb[98].mxu1  ;;  %v17132_v42 = vld [vmem:[%s20749_s1 + $0x18] sm:$0xff]  }
 0x695   : > { %v10184_v3 = vmul.f32 0.1, %v10056_v40  ;;  %v10057_v55 = vadd.f32 %v15973_v21, %v19514_v53  ;;  %v9675_v46 = vpop.f32.mrb[99].mxu1  ;;  %16148 = vmatprep.subr.bf16.mxu1 %v17132_v42 }
 0x696   : > { %v10182_v22 = vmul.f32 0.1, %v10054_v1  ;;  %v10055_v35 = vadd.f32 %v19514_v53, %v9675_v46  ;;  %16149 = vmatpush3.bf16.msra.mxu1 %v17132_v42 }
 0x697   : > { %v10185_v47 = vmul.f32 0.1, %v10057_v55  ;;  %16067 = vmatmul.mubr.msk.bf16.gmra.mrb[12].mxu0 %vm10425_vm4, %v19580_v15  ;;  %v10312_v49 = vmax.f32 %v10056_v40, %v10184_v3 }
 0x698   : > { %v10183_v48 = vmul.f32 0.1, %v10055_v35  ;;  %16070 = vmatprep.mubr.msk.bf16.mxu0 %vm10425_vm4, %v19591_v30  ;;  %v10310_v24 = vmax.f32 %v10054_v1, %v10182_v22 }
 0x699   : > { %v10313_v63 = vmax.f32 %v10057_v55, %v10185_v47 }
 0x69a   : > { %v10311_v6 = vmax.f32 %v10055_v35, %v10183_v48  ;;  %v15976_v0 = vpop.f32.mrb[100].mxu1 }
 0x69b   : > { %v19743_v33 = vpack.c.bf16 %v10313_v63, %v10312_v49  ;;  %v10060_v9 = vadd.f32 %v15976_v0, %v19514_v53  ;;  %v9688_v31 = vpop.f32.mrb[101].mxu1 }
 0x69c   : > { %v19746_v18 = vpack.c.bf16 %v10311_v6, %v10310_v24  ;;  %v10058_v58 = vadd.f32 %v19514_v53, %v9688_v31  ;;  %v15977_v10 = vpop.f32.mrb[102].mxu1 }
 0x69d   : > { %v10188_v15 = vmul.f32 0.1, %v10060_v9  ;;  %v10061_v44 = vadd.f32 %v15977_v10, %v19514_v53  ;;  %v9691_v50 = vpop.f32.mrb[103].mxu1 }
 0x69e   : > { %v10186_v30 = vmul.f32 0.1, %v10058_v58  ;;  %v10059_v14 = vadd.f32 %v19514_v53, %v9691_v50 }
 0x69f   : > { %v10189_v5 = vmul.f32 0.1, %v10061_v44  ;;  %16071 = vmatmul.mubr.msk.bf16.gmra.mrb[16].mxu0 %vm10425_vm4, %v19588_v37  ;;  %v10316_v36 = vmax.f32 %v10060_v9, %v10188_v15 }
 0x6a0   : > { %v10187_v29 = vmul.f32 0.1, %v10059_v14  ;;  %16074 = vmatprep.mubr.msk.bf16.mxu0 %vm10425_vm4, %v19599_v28  ;;  %v10314_v2 = vmax.f32 %v10058_v58, %v10186_v30 }
 0x6a1   : > { %v10317_v45 = vmax.f32 %v10061_v44, %v10189_v5 }
 0x6a2   : > { %v10315_v41 = vmax.f32 %v10059_v14, %v10187_v29  ;;  %v15980_v16 = vpop.f32.mrb[104].mxu1 }
 0x6a3   : > { %v19755_v17 = vpack.c.bf16 %v10317_v45, %v10316_v36  ;;  %v10064_v8 = vadd.f32 %v15980_v16, %v19514_v53  ;;  %v9704_v11 = vpop.f32.mrb[105].mxu1 }
 0x6a4   : > { %v19758_v43 = vpack.c.bf16 %v10315_v41, %v10314_v2  ;;  %v10062_v34 = vadd.f32 %v19514_v53, %v9704_v11  ;;  %v15981_v59 = vpop.f32.mrb[106].mxu1 }
 0x6a5   : > { %v10192_v37 = vmul.f32 0.1, %v10064_v8  ;;  %v10065_v20 = vadd.f32 %v15981_v59, %v19514_v53  ;;  %v9707_v23 = vpop.f32.mrb[107].mxu1 }
 0x6a6   : > { %v10190_v28 = vmul.f32 0.1, %v10062_v34  ;;  %v10063_v13 = vadd.f32 %v19514_v53, %v9707_v23 }
 0x6a7   : > { %v10193_v56 = vmul.f32 0.1, %v10065_v20  ;;  %16075 = vmatmul.mubr.msk.bf16.gmra.mrb[20].mxu0 %vm10425_vm4, %v19596_v4  ;;  %v10320_v61 = vmax.f32 %v10064_v8, %v10192_v37 }
 0x6a8   : > { %v10191_v52 = vmul.f32 0.1, %v10063_v13  ;;  %16080 = vmatprep.mubr.msk.bf16.mxu0 %vm10425_vm4, %v19667_v26  ;;  %v10318_v60 = vmax.f32 %v10062_v34, %v10190_v28  ;;  %v19779_v26 = vld [vmem:[%s20747_s29] ss:$0 sm:$0xff] }
 0x6a9   : > { %v10321_v40 = vmax.f32 %v10065_v20, %v10193_v56 }
 0x6aa   : > { %v10319_v1 = vmax.f32 %v10063_v13, %v10191_v52  ;;  %v15984_v21 = vpop.f32.mrb[108].mxu1 }
 0x6ab   : > { %v19770_v3 = vpack.c.bf16 %v10321_v40, %v10320_v61  ;;  %v10068_v55 = vadd.f32 %v15984_v21, %v19514_v53  ;;  %v9720_v4 = vpop.f32.mrb[109].mxu1 }
 0x6ac   : > { %v19773_v46 = vpack.c.bf16 %v10319_v1, %v10318_v60  ;;  %v10066_v22 = vadd.f32 %v19514_v53, %v9720_v4  ;;  %v15985_v35 = vpop.f32.mrb[110].mxu1 }
 0x6ad   : > { %v10196_v47 = vmul.f32 0.1, %v10068_v55  ;;  %v10069_v48 = vadd.f32 %v19779_v26, %v15985_v35  ;;  %v9723_v49 = vpop.f32.mrb[111].mxu1 }
 0x6ae   : > { %v10194_v63 = vmul.f32 0.1, %v10066_v22  ;;  %v10067_v24 = vadd.f32 %v19779_v26, %v9723_v49 }
 0x6af   : > { %v10197_v6 = vmul.f32 0.1, %v10069_v48  ;;  %16081 = vmatmul.mubr.msk.bf16.vlgmr.msra.gmra.mrb[248].mxu0 %vm10425_vm4, %v19664_v12  ;;  %v10324_v53 = vmax.f32 %v10068_v55, %v10196_v47 }
 0x6b0   : > { %v10195_v0 = vmul.f32 0.1, %v10067_v24  ;;  %16113 = vmatpush3.bf16.msra.mxu0 %v19674_v57  ;;  %16084 = vmatprep.mubr.msk.bf16.mxu0 %vm10425_vm4, %v19686_v25  ;;  %v10322_v31 = vmax.f32 %v10066_v22, %v10194_v63 }
 0x6b1   : > { %v10325_v9 = vmax.f32 %v10069_v48, %v10197_v6 }
 0x6b2   : > { %v10323_v58 = vmax.f32 %v10067_v24, %v10195_v0  ;;  %v15988_v10 = vpop.f32.mrb[112].mxu1 }
 0x6b3   : > { %v19788_v15 = vpack.c.bf16 %v10325_v9, %v10324_v53  ;;  %v10072_v44 = vadd.f32 %v19779_v26, %v15988_v10  ;;  %v9736_v50 = vpop.f32.mrb[113].mxu1 }
 0x6b4   : > { %v19791_v30 = vpack.c.bf16 %v10323_v58, %v10322_v31  ;;  %v10070_v12 = vadd.f32 %v19779_v26, %v9736_v50  ;;  %v15989_v14 = vpop.f32.mrb[114].mxu1 }
 0x6b5   : > { %v10200_v5 = vmul.f32 0.1, %v10072_v44  ;;  %v10073_v57 = vadd.f32 %v19779_v26, %v15989_v14  ;;  %v9739_v29 = vpop.f32.mrb[115].mxu1 }
 0x6b6   : > { %v10198_v25 = vmul.f32 0.1, %v10070_v12  ;;  %v10071_v36 = vadd.f32 %v19779_v26, %v9739_v29 }
 0x6b7   : > { %v10201_v45 = vmul.f32 0.1, %v10073_v57  ;;  %16085 = vmatmul.mubr.msk.bf16.gmra.mrb[252].mxu0 %vm10425_vm4, %v19683_v39  ;;  %v10328_v41 = vmax.f32 %v10072_v44, %v10200_v5 }
 0x6b8   : > { %v10199_v2 = vmul.f32 0.1, %v10071_v36  ;;  %16088 = vmatprep.mubr.msk.bf16.mxu0 %vm10425_vm4, %v19698_v62  ;;  %v10326_v8 = vmax.f32 %v10070_v12, %v10198_v25 }
 0x6b9   : > { %v10329_v16 = vmax.f32 %v10073_v57, %v10201_v45 }
 0x6ba   : > { %v10327_v11 = vmax.f32 %v10071_v36, %v10199_v2  ;;  %v15992_v34 = vpop.f32.mrb[116].mxu1 }
 0x6bb   : > { %v19800_v59 = vpack.c.bf16 %v10329_v16, %v10328_v41  ;;  %v10076_v37 = vadd.f32 %v19779_v26, %v15992_v34  ;;  %v9752_v20 = vpop.f32.mrb[117].mxu1 }
 0x6bc   : > { %v19803_v23 = vpack.c.bf16 %v10327_v11, %v10326_v8  ;;  %v10074_v28 = vadd.f32 %v19779_v26, %v9752_v20  ;;  %v15993_v13 = vpop.f32.mrb[118].mxu1 }
 0x6bd   : > { %v10204_v39 = vmul.f32 0.1, %v10076_v37  ;;  %v10077_v56 = vadd.f32 %v19779_v26, %v15993_v13  ;;  %v9755_v42 = vpop.f32.mrb[119].mxu1 }
 0x6be   : > { %v10202_v62 = vmul.f32 0.1, %v10074_v28  ;;  %v10075_v52 = vadd.f32 %v19779_v26, %v9755_v42 }
 0x6bf   : > { %v10205_v61 = vmul.f32 0.1, %v10077_v56  ;;  %16089 = vmatmul.mubr.msk.bf16.gmra.mrb[0].mxu0 %vm10425_vm4, %v19695_v54  ;;  %v10332_v60 = vmax.f32 %v10076_v37, %v10204_v39 }
 0x6c0   : > { %v10203_v40 = vmul.f32 0.1, %v10075_v52  ;;  %16092 = vmatprep.mubr.msk.bf16.mxu0 %vm10425_vm4, %v19710_v38  ;;  %v10330_v21 = vmax.f32 %v10074_v28, %v10202_v62 }
 0x6c1   : > { %v10333_v1 = vmax.f32 %v10077_v56, %v10205_v61 }
 0x6c2   : > { %v10331_v55 = vmax.f32 %v10075_v52, %v10203_v40  ;;  %v15996_v4 = vpop.f32.mrb[120].mxu1 }
 0x6c3   : > { %v19812_v22 = vpack.c.bf16 %v10333_v1, %v10332_v60  ;;  %v10080_v35 = vadd.f32 %v19779_v26, %v15996_v4  ;;  %v9768_v47 = vpop.f32.mrb[121].mxu1 }
 0x6c4   : > { %v19815_v48 = vpack.c.bf16 %v10331_v55, %v10330_v21  ;;  %v10078_v49 = vadd.f32 %v19779_v26, %v9768_v47  ;;  %v15997_v63 = vpop.f32.mrb[122].mxu1 }
 0x6c5   : > { %v10208_v54 = vmul.f32 0.1, %v10080_v35  ;;  %v10081_v24 = vadd.f32 %v19779_v26, %v15997_v63  ;;  %v9771_v6 = vpop.f32.mrb[123].mxu1 }
 0x6c6   : > { %v10206_v38 = vmul.f32 0.1, %v10078_v49  ;;  %v10079_v0 = vadd.f32 %v19779_v26, %v9771_v6 }
 0x6c7   : > { %v10209_v53 = vmul.f32 0.1, %v10081_v24  ;;  %16093 = vmatmul.mubr.msk.bf16.gmra.mrb[4].mxu0 %vm10425_vm4, %v19707_v51  ;;  %v10336_v31 = vmax.f32 %v10080_v35, %v10208_v54 }
 0x6c8   : > { %v10207_v9 = vmul.f32 0.1, %v10079_v0  ;;  %16096 = vmatprep.mubr.msk.bf16.mxu0 %vm10425_vm4, %v19722_v7  ;;  %v10334_v10 = vmax.f32 %v10078_v49, %v10206_v38 }
 0x6c9   : > { %v10337_v58 = vmax.f32 %v10081_v24, %v10209_v53 }
 0x6ca   : > { %v10335_v44 = vmax.f32 %v10079_v0, %v10207_v9  ;;  %v16000_v50 = vpop.f32.mrb[124].mxu1 }
 0x6cb   : > { %v19824_v12 = vpack.c.bf16 %v10337_v58, %v10336_v31  ;;  %v10084_v14 = vadd.f32 %v19779_v26, %v16000_v50  ;;  %v9784_v5 = vpop.f32.mrb[125].mxu1 }
 0x6cc   : > { %v19827_v57 = vpack.c.bf16 %v10335_v44, %v10334_v10  ;;  %v10082_v29 = vadd.f32 %v19779_v26, %v9784_v5  ;;  %v16001_v25 = vpop.f32.mrb[126].mxu1 }
 0x6cd   : > { %v10212_v51 = vmul.f32 0.1, %v10084_v14  ;;  %v10085_v36 = vadd.f32 %v19779_v26, %v16001_v25  ;;  %v9787_v45 = vpop.f32.mrb[127].mxu1 }
 0x6ce   : > { %v10210_v7 = vmul.f32 0.1, %v10082_v29  ;;  %v10083_v2 = vadd.f32 %v19779_v26, %v9787_v45 }
 0x6cf   : > { %v10213_v41 = vmul.f32 0.1, %v10085_v36  ;;  %16097 = vmatmul.mubr.msk.bf16.gmra.mrb[8].mxu0 %vm10425_vm4, %v19719_v19  ;;  %v10340_v8 = vmax.f32 %v10084_v14, %v10212_v51 }
 0x6d0   : > { %v10211_v16 = vmul.f32 0.1, %v10083_v2  ;;  %16100 = vmatprep.mubr.msk.bf16.mxu0 %vm10425_vm4, %v19734_v27  ;;  %v10338_v34 = vmax.f32 %v10082_v29, %v10210_v7 }
 0x6d1   : > { %v10341_v11 = vmax.f32 %v10085_v36, %v10213_v41 }
 0x6d2   : > { %v10339_v37 = vmax.f32 %v10083_v2, %v10211_v16  ;;  %v16004_v20 = vpop.f32.mrb[128].mxu1 }
 0x6d3   : > { %v10409_v28 = vpack.c.bf16 %v10341_v11, %v10340_v8  ;;  %v10088_v13 = vadd.f32 %v19779_v26, %v16004_v20  ;;  %v9800_v39 = vpop.f32.mrb[129].mxu1 }
 0x6d4   : > { %v10408_v56 = vpack.c.bf16 %v10339_v37, %v10338_v34  ;;  %v10086_v42 = vadd.f32 %v19779_v26, %v9800_v39  ;;  %v16005_v62 = vpop.f32.mrb[130].mxu1 }
 0x6d5   : > { %v10216_v52 = vmul.f32 0.1, %v10088_v13  ;;  %v10089_v19 = vadd.f32 %v19779_v26, %v16005_v62  ;;  %v9803_v61 = vpop.f32.mrb[131].mxu1 }
 0x6d6   : > { %v10214_v40 = vmul.f32 0.1, %v10086_v42  ;;  %v10087_v27 = vadd.f32 %v19779_v26, %v9803_v61 }
 0x6d7   : > { %v10217_v60 = vmul.f32 0.1, %v10089_v19  ;;  %16101 = vmatmul.mubr.msk.bf16.gmra.mrb[12].mxu0 %vm10425_vm4, %v19731_v32  ;;  %v10344_v21 = vmax.f32 %v10088_v13, %v10216_v52 }
 0x6d8   : > { %v10215_v1 = vmul.f32 0.1, %v10087_v27  ;;  %16104 = vmatprep.mubr.msk.bf16.mxu0 %vm10425_vm4, %v19746_v18  ;;  %v10342_v4 = vmax.f32 %v10086_v42, %v10214_v40 }
 0x6d9   : > { %v10345_v55 = vmax.f32 %v10089_v19, %v10217_v60 }
 0x6da   : > { %v10343_v35 = vmax.f32 %v10087_v27, %v10215_v1  ;;  %v16008_v47 = vpop.f32.mrb[132].mxu1 }
 0x6db   : > { %v10411_v49 = vpack.c.bf16 %v10345_v55, %v10344_v21  ;;  %v10092_v63 = vadd.f32 %v19779_v26, %v16008_v47  ;;  %v9816_v54 = vpop.f32.mrb[133].mxu1 }
 0x6dc   : > { %v10410_v24 = vpack.c.bf16 %v10343_v35, %v10342_v4  ;;  %v10090_v6 = vadd.f32 %v19779_v26, %v9816_v54  ;;  %v16009_v38 = vpop.f32.mrb[134].mxu1 }
 0x6dd   : > { %v10220_v0 = vmul.f32 0.1, %v10092_v63  ;;  %v10093_v32 = vadd.f32 %v19779_v26, %v16009_v38  ;;  %v9819_v53 = vpop.f32.mrb[135].mxu1 }
 0x6de   : > { %v10218_v9 = vmul.f32 0.1, %v10090_v6  ;;  %v10091_v18 = vadd.f32 %v19779_v26, %v9819_v53 }
 0x6df   : > { %v10221_v31 = vmul.f32 0.1, %v10093_v32  ;;  %16105 = vmatmul.mubr.msk.bf16.gmra.mrb[16].mxu0 %vm10425_vm4, %v19743_v33  ;;  %v10348_v10 = vmax.f32 %v10092_v63, %v10220_v0  ;;  %v19883_v33 = vld [vmem:[%s20749_s1] sm:$0xff]  }
 0x6e0   : > { %v10219_v58 = vmul.f32 0.1, %v10091_v18  ;;  %16108 = vmatprep.mubr.msk.bf16.mxu0 %vm10425_vm4, %v19758_v43  ;;  %v10346_v50 = vmax.f32 %v10090_v6, %v10218_v9  ;;  %16158 = vmatprep.subr.bf16.mxu1 %v19883_v33 }
 0x6e1   : > { %v10349_v44 = vmax.f32 %v10093_v32, %v10221_v31 }
 0x6e2   : > { %v10347_v14 = vmax.f32 %v10091_v18, %v10219_v58 }
 0x6e3   : > { %v10413_v5 = vpack.c.bf16 %v10349_v44, %v10348_v10 }
 0x6e4   : > { %v10412_v29 = vpack.c.bf16 %v10347_v14, %v10346_v50 }
 0x6e7   : > { %16109 = vmatmul.mubr.msk.bf16.gmra.mrb[20].mxu0 %vm10425_vm4, %v19755_v17  ;;  %v19889_v17 = vld [vmem:[%s20750_s0] ss:$0 sm:$0xff] }
 0x6e8   : > { %16114 = vmatprep.mubr.msk.bf16.mxu0 %vm10425_vm4, %v19773_v46 }
 0x6ef   : > { %16115 = vmatmul.mubr.msk.bf16.vlgmr.msra.gmra.mrb[248].mxu0 %vm10425_vm4, %v19770_v3 }
 0x6f0   : > { %16118 = vmatprep.mubr.msk.bf16.mxu0 %vm10425_vm4, %v19791_v30 }
 0x6f7   : > { %16119 = vmatmul.mubr.msk.bf16.gmra.mrb[252].mxu0 %vm10425_vm4, %v19788_v15 }
 0x6f8   : > { %16122 = vmatprep.mubr.msk.bf16.mxu0 %vm10425_vm4, %v19803_v23 }
 0x6ff   : > { %16123 = vmatmul.mubr.msk.bf16.gmra.mrb[0].mxu0 %vm10425_vm4, %v19800_v59 }
 0x700   : > { %16126 = vmatprep.mubr.msk.bf16.mxu0 %vm10425_vm4, %v19815_v48 }
 0x707   : > { %16127 = vmatmul.mubr.msk.bf16.gmra.mrb[4].mxu0 %vm10425_vm4, %v19812_v22 }
 0x708   : > { %16130 = vmatprep.mubr.msk.bf16.mxu0 %vm10425_vm4, %v19827_v57 }
 0x70f   : > { %16131 = vmatmul.mubr.msk.bf16.gmra.mrb[8].mxu0 %vm10425_vm4, %v19824_v12 }
 0x710   : > { %16134 = vmatprep.mubr.msk.bf16.mxu0 %vm10425_vm4, %v10408_v56 }
 0x717   : > { %16135 = vmatmul.mubr.msk.bf16.gmra.mrb[12].mxu0 %vm10425_vm4, %v10409_v28 }
 0x718   : > { %16138 = vmatprep.mubr.msk.bf16.mxu0 %vm10425_vm4, %v10410_v24 }
 0x71f   : > { %16139 = vmatmul.mubr.msk.bf16.gmra.mrb[16].mxu0 %vm10425_vm4, %v10411_v49 }
 0x720   : > { %16142 = vmatprep.mubr.msk.bf16.mxu0 %vm10425_vm4, %v10412_v29 }
 0x727   : > { %16143 = vmatmul.mubr.msk.bf16.gmra.mrb[20].mxu0 %vm10425_vm4, %v10413_v5 }
 0x7c2   : > { %v16116_v43 = vpop.f32.mrb[248].mxu0 }
 0x7c3   : > { %v11359_v3 = vadd.f32 %v16116_v43, %v19889_v17  ;;  %v11191_v46 = vpop.f32.mrb[249].mxu0  ;;  %v17134_v43 = vld [vmem:[%s20749_s1 + $0x8] sm:$0xff]  }
 0x7c4   : > { %v11357_v26 = vadd.f32 %v19889_v17, %v11191_v46  ;;  %v16117_v15 = vpop.f32.mrb[250].mxu0 }
 0x7c5   : > { %v11391_v30 = vmul.f32 0.1, %v11359_v3  ;;  %v11360_v59 = vadd.f32 %v16117_v15, %v19889_v17  ;;  %v11194_v23 = vpop.f32.mrb[251].mxu0 }
 0x7c6   : > { %v11389_v22 = vmul.f32 0.1, %v11357_v26  ;;  %v11358_v48 = vadd.f32 %v19889_v17, %v11194_v23  ;;  %v17135_v23 = vld [vmem:[%s20749_s1 + $0x20] sm:$0xff]  }
 0x7c7   : > { %v11392_v12 = vmul.f32 0.1, %v11360_v59  ;;  %v11423_v25 = vmax.f32 %v11359_v3, %v11391_v30 }
 0x7c8   : > { %v11390_v57 = vmul.f32 0.1, %v11358_v48  ;;  %v11421_v36 = vmax.f32 %v11357_v26, %v11389_v22 }
 0x7c9   : > { %v11424_v51 = vmax.f32 %v11360_v59, %v11392_v12 }
 0x7ca   : > { %v11422_v45 = vmax.f32 %v11358_v48, %v11390_v57  ;;  %v16120_v7 = vpop.f32.mrb[252].mxu0 }
 0x7cb   : > { %v19895_v2 = vpack.c.bf16 %v11424_v51, %v11423_v25  ;;  %v11363_v41 = vadd.f32 %v16120_v7, %v19889_v17  ;;  %v11207_v16 = vpop.f32.mrb[253].mxu0 }
 0x7cc   : > { %v19898_v8 = vpack.c.bf16 %v11422_v45, %v11421_v36  ;;  %v11361_v11 = vadd.f32 %v19889_v17, %v11207_v16  ;;  %v16121_v34 = vpop.f32.mrb[254].mxu0 }
 0x7cd   : > { %v11395_v37 = vmul.f32 0.1, %v11363_v41  ;;  %v11364_v20 = vadd.f32 %v16121_v34, %v19889_v17  ;;  %v11210_v28 = vpop.f32.mrb[255].mxu0 }
 0x7ce   : > { %v11393_v13 = vmul.f32 0.1, %v11361_v11  ;;  %v11362_v39 = vadd.f32 %v19889_v17, %v11210_v28 }
 0x7cf   : > { %v11396_v56 = vmul.f32 0.1, %v11364_v20  ;;  %v11427_v62 = vmax.f32 %v11363_v41, %v11395_v37 }
 0x7d0   : > { %v11394_v42 = vmul.f32 0.1, %v11362_v39  ;;  %v11425_v19 = vmax.f32 %v11361_v11, %v11393_v13 }
 0x7d1   : > { %v11428_v52 = vmax.f32 %v11364_v20, %v11396_v56 }
 0x7d2   : > { %v11426_v61 = vmax.f32 %v11362_v39, %v11394_v42  ;;  %v16124_v40 = vpop.f32.mrb[0].mxu0 }
 0x7d3   : > { %v19903_v27 = vpack.c.bf16 %v11428_v52, %v11427_v62  ;;  %v11367_v60 = vadd.f32 %v16124_v40, %v19889_v17  ;;  %v11223_v1 = vpop.f32.mrb[1].mxu0 }
 0x7d4   : > { %v19906_v21 = vpack.c.bf16 %v11426_v61, %v11425_v19  ;;  %v11365_v55 = vadd.f32 %v19889_v17, %v11223_v1  ;;  %v16125_v4 = vpop.f32.mrb[2].mxu0 }
 0x7d5   : > { %v11399_v35 = vmul.f32 0.1, %v11367_v60  ;;  %v11368_v47 = vadd.f32 %v16125_v4, %v19889_v17  ;;  %v11226_v49 = vpop.f32.mrb[3].mxu0 }
 0x7d6   : > { %v11397_v63 = vmul.f32 0.1, %v11365_v55  ;;  %v11366_v54 = vadd.f32 %v19889_v17, %v11226_v49 }
 0x7d7   : > { %v11400_v24 = vmul.f32 0.1, %v11368_v47  ;;  %v11431_v38 = vmax.f32 %v11367_v60, %v11399_v35  ;;  %v17136_v35 = vld [vmem:[%s20749_s1 + $0x28] sm:$0xff]  }
 0x7d8   : > { %v11398_v6 = vmul.f32 0.1, %v11366_v54  ;;  %v11429_v32 = vmax.f32 %v11365_v55, %v11397_v63 }
 0x7d9   : > { %v11432_v0 = vmax.f32 %v11368_v47, %v11400_v24 }
 0x7da   : > { %v11430_v53 = vmax.f32 %v11366_v54, %v11398_v6  ;;  %v16128_v9 = vpop.f32.mrb[4].mxu0 }
 0x7db   : > { %v19911_v18 = vpack.c.bf16 %v11432_v0, %v11431_v38  ;;  %v11371_v31 = vadd.f32 %v16128_v9, %v19889_v17  ;;  %v11239_v58 = vpop.f32.mrb[5].mxu0  ;;  %v17137_v38 = vld [vmem:[%s20749_s1 + $0x30] sm:$0xff]  }
 0x7dc   : > { %v19914_v10 = vpack.c.bf16 %v11430_v53, %v11429_v32  ;;  %v11369_v44 = vadd.f32 %v19889_v17, %v11239_v58  ;;  %v16129_v50 = vpop.f32.mrb[6].mxu0 }
 0x7dd   : > { %v11403_v14 = vmul.f32 0.1, %v11371_v31  ;;  %v11372_v5 = vadd.f32 %v16129_v50, %v19889_v17  ;;  %v11242_v29 = vpop.f32.mrb[7].mxu0 }
 0x7de   : > { %v11401_v3 = vmul.f32 0.1, %v11369_v44  ;;  %v11370_v46 = vadd.f32 %v19889_v17, %v11242_v29  ;;  %16150 = vmatprep.mubr.msk.bf16.mxu1 %vm11490_vm5, %v19914_v10 }
 0x7df   : > { %v11404_v26 = vmul.f32 0.1, %v11372_v5  ;;  %16151 = vmatmul.mubr.msk.bf16.vlgmr.msra.gmra.mrb[136].mxu1 %vm11490_vm5, %v19911_v18  ;;  %v11435_v30 = vmax.f32 %v11371_v31, %v11403_v14 }
 0x7e0   : > { %v11402_v15 = vmul.f32 0.1, %v11370_v46  ;;  %16159 = vmatpush3.bf16.msra.mxu1 %v19883_v33  ;;  %v11433_v22 = vmax.f32 %v11369_v44, %v11401_v3 }
 0x7e1   : > { %v11436_v59 = vmax.f32 %v11372_v5, %v11404_v26  ;;  %16160 = vmatprep.subr.bf16.mxu1 %v17134_v43 }
 0x7e2   : > { %v11434_v48 = vmax.f32 %v11370_v46, %v11402_v15  ;;  %v16132_v12 = vpop.f32.mrb[8].mxu0 }
 0x7e3   : > { %v19930_v57 = vpack.c.bf16 %v11436_v59, %v11435_v30  ;;  %v11375_v25 = vadd.f32 %v16132_v12, %v19889_v17  ;;  %v11255_v51 = vpop.f32.mrb[9].mxu0 }
 0x7e4   : > { %v19933_v36 = vpack.c.bf16 %v11434_v48, %v11433_v22  ;;  %v11373_v45 = vadd.f32 %v19889_v17, %v11255_v51  ;;  %v16133_v33 = vpop.f32.mrb[10].mxu0  ;;  %16161 = vmatpush3.bf16.msra.mxu1 %v17134_v43 }
 0x7e5   : > { %v11407_v7 = vmul.f32 0.1, %v11375_v25  ;;  %v11376_v41 = vadd.f32 %v16133_v33, %v19889_v17  ;;  %v11258_v16 = vpop.f32.mrb[11].mxu0  ;;  %16170 = vmatprep.subr.bf16.mxu1 %v17135_v23 }
 0x7e6   : > { %v11405_v11 = vmul.f32 0.1, %v11373_v45  ;;  %v11374_v34 = vadd.f32 %v19889_v17, %v11258_v16  ;;  %16154 = vmatprep.mubr.msk.bf16.mxu1 %vm11490_vm5, %v19933_v36 }
 0x7e7   : > { %v11408_v37 = vmul.f32 0.1, %v11376_v41  ;;  %16155 = vmatmul.mubr.msk.bf16.gmra.mrb[140].mxu1 %vm11490_vm5, %v19930_v57  ;;  %v11439_v28 = vmax.f32 %v11375_v25, %v11407_v7 }
 0x7e8   : > { %v11406_v20 = vmul.f32 0.1, %v11374_v34  ;;  %16162 = vmatprep.mubr.msk.bf16.mxu1 %vm11490_vm5, %v19898_v8  ;;  %v11437_v39 = vmax.f32 %v11373_v45, %v11405_v11 }
 0x7e9   : > { %v11440_v13 = vmax.f32 %v11376_v41, %v11408_v37 }
 0x7ea   : > { %v11438_v56 = vmax.f32 %v11374_v34, %v11406_v20  ;;  %v16136_v42 = vpop.f32.mrb[12].mxu0  ;;  %v17138_v34 = vld [vmem:[%s20749_s1 + $0x38] sm:$0xff]   ;;  %s20662_s1 = sand.u32 1, %s17397_s3  }
 0x7eb   : > { %v19944_v62 = vpack.c.bf16 %v11440_v13, %v11439_v28  ;;  %v11379_v52 = vadd.f32 %v16136_v42, %v19889_v17  ;;  %v11271_v19 = vpop.f32.mrb[13].mxu0  ;;  %s16826_s29 = smul.u32 672, %s20662_s1 }
 0x7ec   : > { %v19947_v61 = vpack.c.bf16 %v11438_v56, %v11437_v39  ;;  %v11377_v40 = vadd.f32 %v19889_v17, %v11271_v19  ;;  %v16137_v60 = vpop.f32.mrb[14].mxu0  ;;  %s14311_s1 = smul.u32 10752, %s17568_s8  ;;  %s20755_s8 = sand.u32 1, %s17397_s3  }
 0x7ed   : > { %v11411_v1 = vmul.f32 0.1, %v11379_v52  ;;  %v11380_v55 = vadd.f32 %v16137_v60, %v19889_v17  ;;  %v11274_v4 = vpop.f32.mrb[15].mxu0  ;;  %v17139_v60 = vld [vmem:[%s20751_s6 + $0x20] sm:$0xff]   ;;  %s20199_s9 = scalar_lea.vmem [#allocation2], %s16826_s29  ;;  %s20580_s7 = scalar_lea.sflag [#allocation3], %s20755_s8 }
 0x7ee   : > { %v11409_v47 = vmul.f32 0.1, %v11377_v40  ;;  %v11378_v49 = vadd.f32 %v19889_v17, %v11274_v4  ;;  %v17142_v4 = vld [vmem:[%s20751_s6 + $0x38] sm:$0xff]   ;;  %s13224_s0 = sshll.u32 %s20199_s9, 4  ;;  %s20575_s0 = int_to_ptr.vmem [resolvable:$true] %s13224_s0 }
 0x7ef   : > { %v11412_v63 = vmul.f32 0.1, %v11380_v55  ;;  %16163 = vmatmul.mubr.msk.bf16.vlgmr.msra.gmra.mrb[136].mxu1 %vm11490_vm5, %v19895_v2  ;;  %v11443_v24 = vmax.f32 %v11379_v52, %v11411_v1  ;;  %v17140_v1 = vld [vmem:[%s20751_s6 + $0x28] sm:$0xff]   ;;  %s17343_s4 = scalar_lea.vmem %s20575_s0, 10752 }
 0x7f0   : > { %v11410_v54 = vmul.f32 0.1, %v11378_v49  ;;  %16171 = vmatpush3.bf16.msra.mxu1 %v17135_v23  ;;  %16166 = vmatprep.mubr.msk.bf16.mxu1 %vm11490_vm5, %v19906_v21  ;;  %v11441_v0 = vmax.f32 %v11377_v40, %v11409_v47  ;;  %p17344_p11 = scmp.ne.s32.totalorder %s20575_s0, %s17343_s4 }
 0x7f1   : > { %v11444_v6 = vmax.f32 %v11380_v55, %v11412_v63  ;;  %16172 = vmatprep.subr.bf16.mxu1 %v17136_v35  ;;  %v17141_v55 = vld [vmem:[%s20751_s6 + $0x30] sm:$0xff]  }
 0x7f2   : > { %v11442_v32 = vmax.f32 %v11378_v49, %v11410_v54  ;;  %v16140_v53 = vpop.f32.mrb[16].mxu0  ;;  %p17345_p12 = pnand %p17344_p11, %p17585_p5 }
 0x7f3   : > { %v19962_v9 = vpack.c.bf16 %v11444_v6, %v11443_v24  ;;  %v11383_v31 = vadd.f32 %v16140_v53, %v19889_v17  ;;  %v11287_v58 = vpop.f32.mrb[17].mxu0 }
 0x7f4   : > { %v19965_v44 = vpack.c.bf16 %v11442_v32, %v11441_v0  ;;  %v11381_v50 = vadd.f32 %v19889_v17, %v11287_v58  ;;  %v16141_v14 = vpop.f32.mrb[18].mxu0  ;;  %16173 = vmatpush3.bf16.msra.mxu1 %v17136_v35  ;;  %v14177_v35 = vld [vmem:[%s20752_s10] ss:$0 sm:$0xff]  ;;  %s20754_s10 = sld [smem:[#allocation49_spill]]  ;;  %p17346_p13 = pneg %p17345_p12 }
 0x7f5   : > { %v11415_v5 = vmul.f32 0.1, %v11383_v31  ;;  %v11384_v29 = vadd.f32 %v16141_v14, %v19889_v17  ;;  %v11290_v43 = vpop.f32.mrb[19].mxu0  ;;  %16182 = vmatprep.subr.bf16.mxu1 %v17137_v38 }
 0x7f6   : > { %v11413_v3 = vmul.f32 0.1, %v11381_v50  ;;  %v11382_v46 = vadd.f32 %v19889_v17, %v11290_v43 }
 0x7f7   : > { %v11416_v26 = vmul.f32 0.1, %v11384_v29  ;;  %16167 = vmatmul.mubr.msk.bf16.gmra.mrb[140].mxu1 %vm11490_vm5, %v19903_v27  ;;  %v11447_v30 = vmax.f32 %v11383_v31, %v11415_v5 }
 0x7f8   : > { %v11414_v15 = vmul.f32 0.1, %v11382_v46  ;;  %16174 = vmatprep.mubr.msk.bf16.mxu1 %vm11490_vm5, %v19947_v61  ;;  %v11445_v23 = vmax.f32 %v11381_v50, %v11413_v3  ;;  %v17143_v3 = vld [vmem:[%s20751_s6] sm:$0xff]  }
 0x7f9   : > { %v11448_v59 = vmax.f32 %v11384_v29, %v11416_v26 }
 0x7fa   : > { %v11446_v22 = vmax.f32 %v11382_v46, %v11414_v15  ;;  %v16144_v48 = vpop.f32.mrb[20].mxu0 }
 0x7fb   : > { %v19974_v12 = vpack.c.bf16 %v11448_v59, %v11447_v30  ;;  %v11387_v25 = vadd.f32 %v16144_v48, %v19889_v17  ;;  %v11303_v51 = vpop.f32.mrb[21].mxu0 }
 0x7fc   : > { %v19977_v45 = vpack.c.bf16 %v11446_v22, %v11445_v23  ;;  %v11385_v33 = vadd.f32 %v19889_v17, %v11303_v51  ;;  %v16145_v7 = vpop.f32.mrb[22].mxu0 }
 0x7fd   : > { %v11419_v41 = vmul.f32 0.1, %v11387_v25  ;;  %v11388_v16 = vadd.f32 %v16145_v7, %v19889_v17  ;;  %v11306_v11 = vpop.f32.mrb[23].mxu0  ;;  %v17144_v7 = vld [vmem:[%s20751_s6 + $0x8] sm:$0xff]  }
 0x7fe   : > { %v11417_v37 = vmul.f32 0.1, %v11385_v33  ;;  %v11386_v20 = vadd.f32 %v19889_v17, %v11306_v11  ;;  %v17407_v17 = vmov 0.0  }
 0x7ff   : > { %v11420_v28 = vmul.f32 0.1, %v11388_v16  ;;  %16175 = vmatmul.mubr.msk.bf16.vlgmr.msra.gmra.mrb[136].mxu1 %vm11490_vm5, %v19944_v62  ;;  %v11451_v39 = vmax.f32 %v11387_v25, %v11419_v41 }
 0x800   : > { %v11418_v13 = vmul.f32 0.1, %v11386_v20  ;;  %16183 = vmatpush3.bf16.msra.mxu1 %v17137_v38  ;;  %16178 = vmatprep.mubr.msk.bf16.mxu1 %vm11490_vm5, %v19965_v44  ;;  %v11449_v42 = vmax.f32 %v11385_v33, %v11417_v37 }
 0x801   : > { %v11452_v56 = vmax.f32 %v11388_v16, %v11420_v28  ;;  %16184 = vmatprep.subr.bf16.mxu1 %v17138_v34  ;;  %v17145_v28 = vld [vmem:[%s20751_s6 + $0x10] sm:$0xff]  }
 0x802   : > { %v11450_v52 = vmax.f32 %v11386_v20, %v11418_v13 }
 0x803   : > { %v19989_v19 = vpack.c.bf16 %v11452_v56, %v11451_v39  ;;  %v17146_v56 = vld [vmem:[%s20751_s6 + $0x18] sm:$0xff]  }
 0x804   : > { %v19991_v40 = vpack.c.bf16 %v11450_v52, %v11449_v42  ;;  %16185 = vmatpush3.bf16.msra.mxu1 %v17138_v34  ;;  %v17147_v42 = vld [vmem:[%s20751_s6 + $0x40] sm:$0xff]   ;;  %v17148_v52 = vld [vmem:[%s20751_s6 + $0x48] sm:$0xff]  }
 0x805   : > { %16194 = vmatprep.subr.bf16.mxu1 %v17407_v17 }
 0x807   : > { %16179 = vmatmul.mubr.msk.bf16.gmra.mrb[140].mxu1 %vm11490_vm5, %v19962_v9 }
 0x808   : > { %16186 = vmatprep.mubr.msk.bf16.mxu1 %vm11490_vm5, %v19977_v45 }
 0x80f   : > { %16187 = vmatmul.mubr.msk.bf16.vlgmr.msra.gmra.mrb[136].mxu1 %vm11490_vm5, %v19974_v12 }
 0x810   : > { %16190 = vmatprep.mubr.msk.bf16.mxu1 %vm11490_vm5, %v19991_v40  ;;  %16195 = vmatpush3.bf16.msra.mxu1 %v17139_v60  ;;  %v17149_v60 = vld [vmem:[%s20751_s6 + $0x50] sm:$0xff]  }
 0x811   : > { %16196 = vmatprep.subr.bf16.mxu1 %v17407_v17 }
 0x814   : > { %16197 = vmatpush3.bf16.msra.mxu1 %v17140_v1  ;;  %v17150_v1 = vld [vmem:[%s20751_s6 + $0x58] sm:$0xff]  }
 0x815   : > { %16198 = vmatprep.subr.bf16.mxu1 %v17407_v17 }
 0x817   : > { %16191 = vmatmul.mubr.msk.bf16.gmra.mrb[140].mxu1 %vm11490_vm5, %v19989_v19 }
 0x818   : > { %16199 = vmatpush3.bf16.msra.mxu1 %v17141_v55  ;;  %16202 = vmatprep.mubr.msk.bf16.mxu1 %vm17408_vm6, %v17407_v17  ;;  %v17151_v55 = vld [vmem:[%s20751_s6 + $0x60] sm:$0xff]  }
 0x819   : > { %16200 = vmatprep.subr.bf16.mxu1 %v17407_v17 }
 0x81c   : > { %16201 = vmatpush3.bf16.msra.mxu1 %v17142_v4  ;;  %v17152_v4 = vld [vmem:[%s20751_s6 + $0x68] sm:$0xff]  }
 0x81d   : > { %16206 = vmatprep.subr.bf16.mxu1 %v17407_v17 }
 0x8e2   : > { %v16188_v47 = vpop.f32.mrb[136].mxu1 }
 0x8e3   : > { %v11870_v49 = vadd.f32 %v16188_v47, %v14177_v35  ;;  %v11822_v63 = vpop.f32.mrb[137].mxu1  ;;  %v17154_v47 = vld [vmem:[%s20751_s6 + $0x78] sm:$0xff]  }
 0x8e4   : > { %v11868_v54 = vadd.f32 %v14177_v35, %v11822_v63  ;;  %v16189_v24 = vpop.f32.mrb[138].mxu1  ;;  %v17156_v63 = vld [vmem:[%s20753_s11 + $0x8] sm:$0xff]  }
 0x8e5   : > { %v11878_v6 = vmul.f32 0.1, %v11870_v49  ;;  %v11871_v38 = vadd.f32 %v16189_v24, %v14177_v35  ;;  %v11825_v0 = vpop.f32.mrb[139].mxu1  ;;  %v17158_v24 = vld [vmem:[%s20637_s16 + $0x8] sm:$0xff]  }
 0x8e6   : > { %v11876_v32 = vmul.f32 0.1, %v11868_v54  ;;  %v11869_v53 = vadd.f32 %v14177_v35, %v11825_v0 }
 0x8e7   : > { %v11879_v31 = vmul.f32 0.1, %v11871_v38  ;;  %v11886_v50 = vmax.f32 %v11870_v49, %v11878_v6  ;;  %v17155_v49 = vld [vmem:[%s20753_s11] sm:$0xff]   ;;  %v17160_v6 = vld [vmem:[%s20637_s16 + $0x18] sm:$0xff]   ;;  %s20572_s11 = scalar_lea.hbm %s20647_s26, %s14311_s1 }
 0x8e8   : > { %v11877_v58 = vmul.f32 0.1, %v11869_v53  ;;  %v11884_v5 = vmax.f32 %v11868_v54, %v11876_v32  ;;  %v17157_v54 = vld [vmem:[%s20637_s16] sm:$0xff]  }
 0x8e9   : > { %v11887_v14 = vmax.f32 %v11871_v38, %v11879_v31 }
 0x8ea   : > { %v11885_v29 = vmax.f32 %v11869_v53, %v11877_v58  ;;  %v16192_v43 = vpop.f32.mrb[140].mxu1 }
 0x8eb   : > { %v20028_v46 = vpack.c.bf16 %v11887_v14, %v11886_v50  ;;  %v11874_v26 = vadd.f32 %v16192_v43, %v14177_v35  ;;  %v11838_v15 = vpop.f32.mrb[141].mxu1 }
 0x8ec   : > { %v20030_v30 = vpack.c.bf16 %v11885_v29, %v11884_v5  ;;  %v11872_v59 = vadd.f32 %v14177_v35, %v11838_v15  ;;  %v16193_v23 = vpop.f32.mrb[142].mxu1  ;;  %v14222_v29 = vld [vmem:[%s20754_s10] ss:$0 sm:$0xff]  ;;  %s17409_s10 = smov [#allocation2]  }
 0x8ed   : > { %v11882_v22 = vmul.f32 0.1, %v11874_v26  ;;  %v11875_v48 = vadd.f32 %v16193_v23, %v14177_v35  ;;  %v11841_v25 = vpop.f32.mrb[143].mxu1  ;;  %16203 = vmatmul.mubr.msk.bf16.vlgmr.msra.gmra.mrb[144].mxu1 %vm11937_vm7, %v20028_v46 }
 0x8ee   : > { %v11880_v51 = vmul.f32 0.1, %v11872_v59  ;;  %v11873_v33 = vadd.f32 %v14177_v35, %v11841_v25  ;;  %16207 = vmatpush3.bf16.msra.mxu1 %v17143_v3  ;;  %16214 = vmatprep.mubr.msk.bf16.mxu1 %vm17408_vm6, %v17407_v17  ;;  %v17153_v35 = vld [vmem:[%s20751_s6 + $0x70] sm:$0xff]   ;;  %s17347_s6 = sshll.u32 %s17409_s10, 4  ;;  %s17348_s6 = int_to_ptr.vmem [resolvable:$false] %s17347_s6 }
 0x8ef   : > { %v11883_v41 = vmul.f32 0.1, %v11875_v48  ;;  %16208 = vmatprep.subr.bf16.mxu1 %v17407_v17  ;;  %v11890_v11 = vmax.f32 %v11874_v26, %v11882_v22  ;;  %v20195_v22 = vld [vmem:[%s20633_s12] ss:$0 sm:$0xff]  ;;  %s17349_s1 = scalar_lea.vmem %s17348_s6, 21504  ;;  %p17350_p0 = scmp.lt.s32.totalorder %s20575_s0, %s17348_s6 }
 0x8f0   : > { %v11881_v16 = vmul.f32 0.1, %v11873_v33  ;;  %v11888_v37 = vmax.f32 %v11872_v59, %v11880_v51  ;;  %p17351_p1 = scmp.lt.s32.totalorder %s17349_s1, %s17343_s4 }
 0x8f1   : > { %v11891_v34 = vmax.f32 %v11875_v48, %v11883_v41 }
 0x8f2   : > { %v11889_v20 = vmax.f32 %v11873_v33, %v11881_v16  ;;  %16209 = vmatpush3.bf16.msra.mxu1 %v17144_v7  ;;  %p17352_p2 = por %p17351_p1, %p17350_p0 }
 0x8f3   : > { %v20043_v13 = vpack.c.bf16 %v11891_v34, %v11890_v11  ;;  %16210 = vmatprep.subr.bf16.mxu1 %v17407_v17 }
 0x8f4   : > { %v20046_v39 = vpack.c.bf16 %v11889_v20, %v11888_v37  ;;  %p17353_p3 = pnand %p17352_p2, %p17346_p13 }
 0x8f6   : > { %16211 = vmatpush3.bf16.msra.mxu1 %v17145_v28 }
 0x8f7   : > { %16212 = vmatprep.subr.bf16.mxu1 %v17407_v17 }
 0x8fa   : > { %16213 = vmatpush3.bf16.msra.mxu1 %v17146_v56 }
 0x8fb   : > { %16218 = vmatprep.subr.bf16.mxu1 %v17407_v17 }
 0x8fd   : > { %16215 = vmatmul.mubr.msk.bf16.vlgmr.msra.gmra.mrb[148].mxu1 %vm11937_vm7, %v20030_v30 }
 0x8fe   : > { %16219 = vmatpush3.bf16.msra.mxu1 %v17147_v42  ;;  %16226 = vmatprep.mubr.msk.bf16.mxu1 %vm17408_vm6, %v17407_v17 }
 0x8ff   : > { %16220 = vmatprep.subr.bf16.mxu1 %v17407_v17 }
 0x902   : > { %16221 = vmatpush3.bf16.msra.mxu1 %v17148_v52 }
 0x903   : > { %16222 = vmatprep.subr.bf16.mxu1 %v17407_v17 }
 0x906   : > { %16223 = vmatpush3.bf16.msra.mxu1 %v17149_v60 }
 0x907   : > { %16224 = vmatprep.subr.bf16.mxu1 %v17407_v17 }
 0x90a   : > { %16225 = vmatpush3.bf16.msra.mxu1 %v17150_v1 }
 0x90b   : > { %16230 = vmatprep.subr.bf16.mxu1 %v17407_v17 }
 0x90d   : > { %16227 = vmatmul.mubr.msk.bf16.vlgmr.msra.gmra.mrb[152].mxu1 %vm11937_vm7, %v20046_v39 }
 0x90e   : > { %16231 = vmatpush3.bf16.msra.mxu1 %v17151_v55  ;;  %16238 = vmatprep.mubr.msk.bf16.mxu1 %vm17408_vm6, %v17407_v17 }
 0x90f   : > { %16232 = vmatprep.subr.bf16.mxu1 %v17407_v17 }
 0x912   : > { %16233 = vmatpush3.bf16.msra.mxu1 %v17152_v4 }
 0x913   : > { %16234 = vmatprep.subr.bf16.mxu1 %v17407_v17 }
 0x916   : > { %16235 = vmatpush3.bf16.msra.mxu1 %v17153_v35 }
 0x917   : > { %16236 = vmatprep.subr.bf16.mxu1 %v17407_v17 }
 0x91a   : > { %16237 = vmatpush3.bf16.msra.mxu1 %v17154_v47 }
 0x91b   : > { %16242 = vmatprep.subr.bf16.mxu1 %v17155_v49 }
 0x91d   : > { %16239 = vmatmul.mubr.msk.bf16.vlgmr.msra.gmra.mrb[156].mxu1 %vm11937_vm7, %v20043_v13 }
 0x91e   : > { %16243 = vmatpush3.bf16.msra.mxu1 %v17155_v49  ;;  %16246 = vmatprep.mubr.msk.bf16.mxu1 %vm11490_vm5, %v19898_v8  ;;  %v17159_v8 = vld [vmem:[%s20637_s16 + $0x10] sm:$0xff]  }
 0x91f   : > { %16244 = vmatprep.subr.bf16.mxu1 %v17156_v63 }
 0x922   : > { %16245 = vmatpush3.bf16.msra.mxu1 %v17156_v63 }
 0x923   : > { %16278 = vmatprep.subr.bf16.mxu1 %v17157_v54 }
 0x925   : > { %16247 = vmatmul.mubr.msk.bf16.vlgmr.msra.gmra.mrb[160].mxu1 %vm11490_vm5, %v19895_v2  ;;  %v17161_v2 = vld [vmem:[%s20642_s21] sm:$0xff]  }
 0x926   : > { %16250 = vmatprep.mubr.msk.bf16.mxu1 %vm11490_vm5, %v19906_v21  ;;  %16279 = vmatpush3.bf16.msra.mxu1 %v17157_v54  ;;  %v17163_v21 = vld [vmem:[%s20642_s21 + $0x10] sm:$0xff]  }
 0x927   : > { %16280 = vmatprep.subr.bf16.mxu1 %v17158_v24 }
 0x92a   : > { %16281 = vmatpush3.bf16.msra.mxu1 %v17158_v24 }
 0x92b   : > { %16282 = vmatprep.subr.bf16.mxu1 %v17159_v8 }
 0x92d   : > { %16251 = vmatmul.mubr.msk.bf16.gmra.mrb[164].mxu1 %vm11490_vm5, %v19903_v27  ;;  %v17162_v27 = vld [vmem:[%s20642_s21 + $0x8] sm:$0xff]  }
 0x92e   : > { %16254 = vmatprep.mubr.msk.bf16.mxu1 %vm11490_vm5, %v19914_v10  ;;  %16283 = vmatpush3.bf16.msra.mxu1 %v17159_v8  ;;  %v17165_v10 = vld [vmem:[%s20642_s21 + $0x20] sm:$0xff]  }
 0x92f   : > { %16284 = vmatprep.subr.bf16.mxu1 %v17160_v6 }
 0x932   : > { %16285 = vmatpush3.bf16.msra.mxu1 %v17160_v6 }
 0x933   : > { %16294 = vmatprep.subr.bf16.mxu1 %v17407_v17 }
 0x935   : > { %16255 = vmatmul.mubr.msk.bf16.gmra.mrb[168].mxu1 %vm11490_vm5, %v19911_v18  ;;  %v17164_v18 = vld [vmem:[%s20642_s21 + $0x18] sm:$0xff]  }
 0x936   : > { %16258 = vmatprep.mubr.msk.bf16.mxu1 %vm11490_vm5, %v19933_v36  ;;  %v17167_v36 = vld [vmem:[%s20642_s21 + $0x30] sm:$0xff]  }
 0x93d   : > { %16259 = vmatmul.mubr.msk.bf16.gmra.mrb[172].mxu1 %vm11490_vm5, %v19930_v57  ;;  %v17166_v57 = vld [vmem:[%s20642_s21 + $0x28] sm:$0xff]  }
 0x93e   : > { %16262 = vmatprep.mubr.msk.bf16.mxu1 %vm11490_vm5, %v19947_v61 }
 0x945   : > { %16263 = vmatmul.mubr.msk.bf16.gmra.mrb[176].mxu1 %vm11490_vm5, %v19944_v62  ;;  %v17168_v62 = vld [vmem:[%s20642_s21 + $0x38] sm:$0xff]  }
 0x946   : > { %16266 = vmatprep.mubr.msk.bf16.mxu1 %vm11490_vm5, %v19965_v44 }
 0x94d   : > { %16267 = vmatmul.mubr.msk.bf16.gmra.mrb[180].mxu1 %vm11490_vm5, %v19962_v9 }
 0x94e   : > { %16270 = vmatprep.mubr.msk.bf16.mxu1 %vm11490_vm5, %v19977_v45 }
 0x955   : > { %16271 = vmatmul.mubr.msk.bf16.gmra.mrb[184].mxu1 %vm11490_vm5, %v19974_v12 }
 0x956   : > { %16274 = vmatprep.mubr.msk.bf16.mxu1 %vm11490_vm5, %v19991_v40 }
 0x95d   : > { %16275 = vmatmul.mubr.msk.bf16.gmra.mrb[188].mxu1 %vm11490_vm5, %v19989_v19 }
 0x95e   : > { %16286 = vmatprep.mubr.msk.bf16.mxu1 %vm11937_vm7, %v20030_v30 }
 0x965   : > { %16287 = vmatmul.mubr.msk.bf16.vlgmr.msra.gmra.mrb[192].mxu1 %vm11937_vm7, %v20028_v46 }
 0x966   : > { %16290 = vmatprep.mubr.msk.bf16.mxu1 %vm11937_vm7, %v20046_v39  ;;  %16295 = vmatpush3.bf16.msra.mxu1 %v17161_v2 }
 0x967   : > { %16296 = vmatprep.subr.bf16.mxu1 %v17407_v17 }
 0x96a   : > { %16297 = vmatpush3.bf16.msra.mxu1 %v17162_v27 }
 0x96b   : > { %16298 = vmatprep.subr.bf16.mxu1 %v17407_v17 }
 0x96d   : > { %16291 = vmatmul.mubr.msk.bf16.gmra.mrb[196].mxu1 %vm11937_vm7, %v20043_v13 }
 0x96e   : > { %16299 = vmatpush3.bf16.msra.mxu1 %v17163_v21  ;;  %16310 = vmatprep.mubr.msk.bf16.mxu1 %vm17408_vm6, %v17407_v17 }
 0x96f   : > { %16300 = vmatprep.subr.bf16.mxu1 %v17407_v17 }
 0x972   : > { %16301 = vmatpush3.bf16.msra.mxu1 %v17164_v18 }
 0x973   : > { %16302 = vmatprep.subr.bf16.mxu1 %v17407_v17 }
 0x976   : > { %16303 = vmatpush3.bf16.msra.mxu1 %v17165_v10 }
 0x977   : > { %16304 = vmatprep.subr.bf16.mxu1 %v17407_v17 }
 0x97a   : > { %16305 = vmatpush3.bf16.msra.mxu1 %v17166_v57 }
 0x97b   : > { %16306 = vmatprep.subr.bf16.mxu1 %v17407_v17 }
 0x97e   : > { %16307 = vmatpush3.bf16.msra.mxu1 %v17167_v36 }
 0x97f   : > { %16308 = vmatprep.subr.bf16.mxu1 %v17407_v17 }
 0x982   : > { %16309 = vmatpush3.bf16.msra.mxu1 %v17168_v62 }
 0x9c0   : > { %v11975_v61 = vpop.f32.mrb[144].mxu1 }
 0x9c1   : > { %v16204_v9 = vpop.f32.mrb[145].mxu1 }
 0x9c2   : > { %v11978_v44 = vpop.f32.mrb[146].mxu1 }
 0x9c3   : > { %v16205_v12 = vpop.f32.mrb[147].mxu1 }
 0x9d0   : > { %v12043_v45 = vpop.f32.mrb[148].mxu1 }
 0x9d1   : > { %v12044_v19 = vadd.f32 %v12043_v45, %v11975_v61  ;;  %v16216_v40 = vpop.f32.mrb[149].mxu1 }
 0x9d2   : > { %v12046_v38 = vpop.f32.mrb[150].mxu1 }
 0x9d3   : > { %v12047_v0 = vadd.f32 %v12046_v38, %v11978_v44  ;;  %v16217_v32 = vpop.f32.mrb[151].mxu1 }
 0x9e0   : > { %v12120_v53 = vpop.f32.mrb[152].mxu1 }
 0x9e1   : > { %v12127_v31 = vadd.f32 %v12120_v53, %v12044_v19  ;;  %v16228_v58 = vpop.f32.mrb[153].mxu1 }
 0x9e2   : > { %v12123_v50 = vpop.f32.mrb[154].mxu1 }
 0x9e3   : > { %v12128_v14 = vadd.f32 %v12123_v50, %v12047_v0  ;;  %v16229_v5 = vpop.f32.mrb[155].mxu1 }
 0x9f0   : > { %v12199_v17 = vpop.f32.mrb[156].mxu1 }
 0x9f1   : > { %v12206_v43 = vadd.f32 %v12199_v17, %v12127_v31  ;;  %v16240_v3 = vpop.f32.mrb[157].mxu1 }
 0x9f2   : > { %v12202_v46 = vpop.f32.mrb[158].mxu1 }
 0x9f3   : > { %v12215_v26 = vadd.f32 %v14222_v29, %v12206_v43  ;;  %v12207_v15 = vadd.f32 %v12202_v46, %v12128_v14  ;;  %v16241_v30 = vpop.f32.mrb[159].mxu1  ;;  %v20227_v46 = vld [vmem:[%s20634_s13] ss:$0 sm:$0xff] }
 0x9f5   : > { %v12217_v59 = vmul.f32 0.1, %v12215_v26  ;;  %v12216_v23 = vadd.f32 %v14222_v29, %v12207_v15 }
 0x9f7   : > { %v12218_v48 = vmul.f32 0.1, %v12216_v23  ;;  %v12219_v51 = vmax.f32 %v12215_v26, %v12217_v59 }
 0x9f8   : > { %v16248_v25 = vpop.f32.mrb[160].mxu1 }
 0x9f9   : > { %v12220_v33 = vmax.f32 %v12216_v23, %v12218_v48  ;;  %v12287_v7 = vadd.f32 %v16248_v25, %v20195_v22  ;;  %v12278_v41 = vpop.f32.mrb[161].mxu1 }
 0x9fa   : > { %v12279_v16 = vadd.f32 %v20195_v22, %v12278_v41  ;;  %v16249_v11 = vpop.f32.mrb[162].mxu1 }
 0x9fb   : > { %v13057_v34 = vpack.c.bf16 %v12220_v33, %v12219_v51  ;;  %v14244_v37 = vmul.f32 -1.442695, %v12287_v7  ;;  %12773 = vst [vmem:[%s20199_s9 + $0x10] sm:$0xff] %v12287_v7  ;;  %v12290_v20 = vadd.f32 %v16249_v11, %v20195_v22  ;;  %v12281_v28 = vpop.f32.mrb[163].mxu1  ;;  %v20235_v33 = vld [vmem:[%s20635_s14] ss:$0 sm:$0xff] }
 0x9fc   : > { %v14242_v13 = vmul.f32 -1.442695, %v12279_v16  ;;  %12771 = vst [vmem:[%s20199_s9] sm:$0xff] %v12279_v16  ;;  %v12282_v39 = vadd.f32 %v20195_v22, %v12281_v28 }
 0x9fd   : > { %17169 = vpow2.f32 %v14244_v37  ;;  %v14245_v56 = vmul.f32 -1.442695, %v12290_v20  ;;  %12774 = vst [vmem:[%s20199_s9 + $0x18] sm:$0xff] %v12290_v20  ;;  %16311 = vmatmul.mubr.bf16.vlgmr.msra.gmra.mrb[200].mxu1 %v13057_v34 }
 0x9fe   : > { %17171 = vpow2.f32 %v14242_v13  ;;  %v14243_v42 = vmul.f32 -1.442695, %v12282_v39  ;;  %12772 = vst [vmem:[%s20199_s9 + $0x8] sm:$0xff] %v12282_v39 }
 0x9ff   : > { %17173 = vpow2.f32 %v14245_v56 }
 0xa00   : > { %17175 = vpow2.f32 %v14243_v42  ;;  %v16252_v52 = vpop.f32.mrb[164].mxu1 }
 0xa01   : > { %v12303_v60 = vadd.f32 %v16252_v52, %v20195_v22  ;;  %v12294_v1 = vpop.f32.mrb[165].mxu1  ;;  %v12709_v52 = vld [vmem:[%s20636_s15 + $0x10] sm:$0xff] }
 0xa02   : > { %v12295_v55 = vadd.f32 %v20195_v22, %v12294_v1  ;;  %v16253_v4 = vpop.f32.mrb[166].mxu1 }
 0xa03   : > { %v14248_v35 = vmul.f32 -1.442695, %v12303_v60  ;;  %12777 = vst [vmem:[%s20199_s9 + $0x30] sm:$0xff] %v12303_v60  ;;  %v12306_v47 = vadd.f32 %v16253_v4, %v20195_v22  ;;  %v12297_v49 = vpop.f32.mrb[167].mxu1 }
 0xa04   : > { %v14246_v63 = vmul.f32 -1.442695, %v12295_v55  ;;  %12775 = vst [vmem:[%s20199_s9 + $0x20] sm:$0xff] %v12295_v55  ;;  %v12298_v54 = vadd.f32 %v20195_v22, %v12297_v49 }
 0xa05   : > { %17177 = vpow2.f32 %v14248_v35  ;;  %v14249_v24 = vmul.f32 -1.442695, %v12306_v47  ;;  %12778 = vst [vmem:[%s20199_s9 + $0x38] sm:$0xff] %v12306_v47  ;;  %v12707_v47 = vld [vmem:[%s20636_s15] sm:$0xff] }
 0xa06   : > { %17179 = vpow2.f32 %v14246_v63  ;;  %v14247_v8 = vmul.f32 -1.442695, %v12298_v54  ;;  %12776 = vst [vmem:[%s20199_s9 + $0x28] sm:$0xff] %v12298_v54 }
 0xa07   : > { %v17170_v6 = vpop.eup %17169  ;;  %17181 = vpow2.f32 %v14249_v24 }
 0xa08   : > { %v17172_v2 = vpop.eup %17171  ;;  %v12503_v27 = vadd.f32 1.0, %v17170_v6  ;;  %17183 = vpow2.f32 %v14247_v8  ;;  %v16256_v21 = vpop.f32.mrb[168].mxu1  ;;  %v12710_v6 = vld [vmem:[%s20636_s15 + $0x18] sm:$0xff] }
 0xa09   : > { %v17174_v18 = vpop.eup %17173  ;;  %v12501_v10 = vadd.f32 1.0, %v17172_v2  ;;  %v12319_v57 = vadd.f32 %v16256_v21, %v20195_v22  ;;  %v12310_v36 = vpop.f32.mrb[169].mxu1 }
 0xa0a   : > { %v17176_v62 = vpop.eup %17175  ;;  %17185 = vrcp.f32 %v12503_v27  ;;  %v12504_v61 = vadd.f32 1.0, %v17174_v18  ;;  %v12311_v9 = vadd.f32 %v20195_v22, %v12310_v36  ;;  %v16257_v44 = vpop.f32.mrb[170].mxu1 }
 0xa0b   : > { %17187 = vrcp.f32 %v12501_v10  ;;  %v12502_v12 = vadd.f32 1.0, %v17176_v62  ;;  %v14252_v45 = vmul.f32 -1.442695, %v12319_v57  ;;  %12781 = vst [vmem:[%s20199_s9 + $0x50] sm:$0xff] %v12319_v57  ;;  %v12322_v19 = vadd.f32 %v16257_v44, %v20195_v22  ;;  %v12313_v40 = vpop.f32.mrb[171].mxu1  ;;  %v12708_v62 = vld [vmem:[%s20636_s15 + $0x8] sm:$0xff] }
 0xa0c   : > { %17189 = vrcp.f32 %v12504_v61  ;;  %v14250_v38 = vmul.f32 -1.442695, %v12311_v9  ;;  %12779 = vst [vmem:[%s20199_s9 + $0x40] sm:$0xff] %v12311_v9  ;;  %v12314_v0 = vadd.f32 %v20195_v22, %v12313_v40 }
 0xa0d   : > { %17191 = vrcp.f32 %v12502_v12  ;;  %v14253_v32 = vmul.f32 -1.442695, %v12322_v19  ;;  %12782 = vst [vmem:[%s20199_s9 + $0x58] sm:$0xff] %v12322_v19 }
 0xa0e   : > { %17193 = vpow2.f32 %v14252_v45  ;;  %v14251_v53 = vmul.f32 -1.442695, %v12314_v0  ;;  %12780 = vst [vmem:[%s20199_s9 + $0x48] sm:$0xff] %v12314_v0 }
 0xa0f   : > { %v17178_v31 = vpop.eup %17177  ;;  %17195 = vpow2.f32 %v14250_v38 }
 0xa10   : > { %v17180_v58 = vpop.eup %17179  ;;  %v12507_v50 = vadd.f32 1.0, %v17178_v31  ;;  %17197 = vpow2.f32 %v14253_v32  ;;  %v16260_v14 = vpop.f32.mrb[172].mxu1 }
 0xa11   : > { %v17182_v5 = vpop.eup %17181  ;;  %v12505_v17 = vadd.f32 1.0, %v17180_v58  ;;  %17199 = vpow2.f32 %v14251_v53  ;;  %v12335_v29 = vadd.f32 %v16260_v14, %v20195_v22  ;;  %v12326_v43 = vpop.f32.mrb[173].mxu1 }
 0xa12   : > { %v17184_v3 = vpop.eup %17183  ;;  %17201 = vrcp.f32 %v12507_v50  ;;  %v12508_v26 = vadd.f32 1.0, %v17182_v5  ;;  %v12327_v15 = vadd.f32 %v20195_v22, %v12326_v43  ;;  %v16261_v30 = vpop.f32.mrb[174].mxu1 }
 0xa13   : > { %17203 = vrcp.f32 %v12505_v17  ;;  %v12506_v59 = vadd.f32 1.0, %v17184_v3  ;;  %v14256_v23 = vmul.f32 -1.442695, %v12335_v29  ;;  %12785 = vst [vmem:[%s20199_s9 + $0x70] sm:$0xff] %v12335_v29  ;;  %v12338_v48 = vadd.f32 %v16261_v30, %v20195_v22  ;;  %v12329_v25 = vpop.f32.mrb[175].mxu1  ;;  %v12713_v3 = vld [vmem:[%s20636_s15 + $0x30] sm:$0xff] }
 0xa14   : > { %v17186_v51 = vpop.eup %17185  ;;  %17205 = vrcp.f32 %v12508_v26  ;;  %v14254_v7 = vmul.f32 -1.442695, %v12327_v15  ;;  %12783 = vst [vmem:[%s20199_s9 + $0x60] sm:$0xff] %v12327_v15  ;;  %v12330_v41 = vadd.f32 %v20195_v22, %v12329_v25 }
 0xa15   : > { %v17188_v16 = vpop.eup %17187  ;;  %v12606_v11 = vmul.f32 %v17186_v51, %v20227_v46  ;;  %17207 = vrcp.f32 %v12506_v59  ;;  %v14257_v34 = vmul.f32 -1.442695, %v12338_v48  ;;  %12786 = vst [vmem:[%s20199_s9 + $0x78] sm:$0xff] %v12338_v48 }
 0xa16   : > { %v17190_v37 = vpop.eup %17189  ;;  %v12604_v20 = vmul.f32 %v17188_v16, %v20227_v46  ;;  %17209 = vpow2.f32 %v14256_v23  ;;  %v14255_v28 = vmul.f32 -1.442695, %v12330_v41  ;;  %12784 = vst [vmem:[%s20199_s9 + $0x68] sm:$0xff] %v12330_v41 }
 0xa17   : > { %v17192_v13 = vpop.eup %17191  ;;  %v12645_v39 = vadd.f32 %v20235_v33, %v12606_v11  ;;  %v12607_v56 = vmul.f32 %v17190_v37, %v20227_v46  ;;  %17211 = vpow2.f32 %v14254_v7 }
 0xa18   : > { %v17194_v42 = vpop.eup %17193  ;;  %v12643_v60 = vadd.f32 %v20235_v33, %v12604_v20  ;;  %v12605_v1 = vmul.f32 %v17192_v13, %v20227_v46  ;;  %17213 = vpow2.f32 %v14257_v34  ;;  %v16264_v55 = vpop.f32.mrb[176].mxu1  ;;  %v12714_v20 = vld [vmem:[%s20636_s15 + $0x38] sm:$0xff] }
 0xa19   : > { %v17196_v4 = vpop.eup %17195  ;;  %v12677_v35 = vmul.f32 %v17186_v51, %v12645_v39  ;;  %v12646_v49 = vadd.f32 %v20235_v33, %v12607_v56  ;;  %v12511_v63 = vadd.f32 1.0, %v17194_v42  ;;  %17215 = vpow2.f32 %v14255_v28  ;;  %v12342_v54 = vpop.f32.mrb[177].mxu1  ;;  %v12711_v51 = vld [vmem:[%s20636_s15 + $0x20] sm:$0xff] }
 0xa1a   : > { %v17198_v24 = vpop.eup %17197  ;;  %v12675_v8 = vmul.f32 %v17188_v16, %v12643_v60  ;;  %v12644_v2 = vadd.f32 %v20235_v33, %v12605_v1  ;;  %v12509_v27 = vadd.f32 1.0, %v17196_v4  ;;  %v12351_v21 = vadd.f32 %v16264_v55, %v20195_v22  ;;  %v16265_v18 = vpop.f32.mrb[178].mxu1  ;;  %v12712_v60 = vld [vmem:[%s20636_s15 + $0x28] sm:$0xff] }
 0xa1b   : > { %v17200_v10 = vpop.eup %17199  ;;  %v12741_v57 = vadd.f32 %v12709_v52, %v12677_v35  ;;  %v12678_v36 = vmul.f32 %v17190_v37, %v12646_v49  ;;  %17217 = vrcp.f32 %v12511_v63  ;;  %v12512_v61 = vadd.f32 1.0, %v17198_v24  ;;  %v12345_v9 = vpop.f32.mrb[179].mxu1 }
 0xa1c   : > { %v17202_v44 = vpop.eup %17201  ;;  %v12739_v12 = vadd.f32 %v12707_v47, %v12675_v8  ;;  %v12676_v45 = vmul.f32 %v17192_v13, %v12644_v2  ;;  %17219 = vrcp.f32 %v12509_v27  ;;  %v12510_v19 = vadd.f32 1.0, %v17200_v10  ;;  %12789 = vst [vmem:[%s20199_s9 + $0x90] sm:$0xff] %v12351_v21 }
 0xa1d   : > { %v17204_v40 = vpop.eup %17203  ;;  %12805 = vst [vmem:[%s20199_s9 + $0x110] sm:$0xff] %v12741_v57  ;;  %v12742_v38 = vadd.f32 %v12710_v6, %v12678_v36  ;;  %v12610_v0 = vmul.f32 %v17202_v44, %v20227_v46  ;;  %17221 = vrcp.f32 %v12512_v61  ;;  %v14260_v32 = vmul.f32 -1.442695, %v12351_v21 }
 0xa1e   : > { %v17206_v53 = vpop.eup %17205  ;;  %12803 = vst [vmem:[%s20199_s9 + $0x100] sm:$0xff] %v12739_v12  ;;  %v12740_v31 = vadd.f32 %v12708_v62, %v12676_v45  ;;  %v12608_v58 = vmul.f32 %v17204_v40, %v20227_v46  ;;  %17223 = vrcp.f32 %v12510_v19  ;;  %v12343_v50 = vadd.f32 %v20195_v22, %v12342_v54  ;;  %v12717_v45 = vld [vmem:[%s20636_s15 + $0x50] sm:$0xff] }
 0xa1f   : > { %v17208_v14 = vpop.eup %17207  ;;  %12806 = vst [vmem:[%s20199_s9 + $0x118] sm:$0xff] %v12742_v38  ;;  %v12649_v5 = vadd.f32 %v20235_v33, %v12610_v0  ;;  %v12611_v17 = vmul.f32 %v17206_v53, %v20227_v46  ;;  %17225 = vpow2.f32 %v14260_v32  ;;  %v12354_v29 = vadd.f32 %v16265_v18, %v20195_v22 }
 0xa20   : > { %v17210_v43 = vpop.eup %17209  ;;  %12804 = vst [vmem:[%s20199_s9 + $0x108] sm:$0xff] %v12740_v31  ;;  %v12647_v26 = vadd.f32 %v20235_v33, %v12608_v58  ;;  %v12609_v15 = vmul.f32 %v17208_v14, %v20227_v46  ;;  %v14258_v30 = vmul.f32 -1.442695, %v12343_v50  ;;  %12787 = vst [vmem:[%s20199_s9 + $0x80] sm:$0xff] %v12343_v50  ;;  %v12346_v59 = vadd.f32 %v20195_v22, %v12345_v9  ;;  %v16268_v23 = vpop.f32.mrb[180].mxu1 }
 0xa21   : > { %v17212_v48 = vpop.eup %17211  ;;  %v12681_v25 = vmul.f32 %v17202_v44, %v12649_v5  ;;  %v12650_v7 = vadd.f32 %v20235_v33, %v12611_v17  ;;  %v12515_v41 = vadd.f32 1.0, %v17210_v43  ;;  %v14261_v16 = vmul.f32 -1.442695, %v12354_v29  ;;  %12790 = vst [vmem:[%s20199_s9 + $0x98] sm:$0xff] %v12354_v29  ;;  %v12358_v11 = vpop.f32.mrb[181].mxu1  ;;  %v12718_v5 = vld [vmem:[%s20636_s15 + $0x58] sm:$0xff] }
 0xa22   : > { %v17214_v34 = vpop.eup %17213  ;;  %v12679_v37 = vmul.f32 %v17204_v40, %v12647_v26  ;;  %v12648_v28 = vadd.f32 %v20235_v33, %v12609_v15  ;;  %v12513_v13 = vadd.f32 1.0, %v17212_v48  ;;  %17227 = vpow2.f32 %v14258_v30  ;;  %12788 = vst [vmem:[%s20199_s9 + $0x88] sm:$0xff] %v12346_v59  ;;  %v16269_v39 = vpop.f32.mrb[182].mxu1  ;;  %v12716_v30 = vld [vmem:[%s20636_s15 + $0x48] sm:$0xff] }
 0xa23   : > { %v17216_v56 = vpop.eup %17215  ;;  %v12745_v42 = vadd.f32 %v12713_v3, %v12681_v25  ;;  %v12682_v52 = vmul.f32 %v17206_v53, %v12650_v7  ;;  %17229 = vrcp.f32 %v12515_v41  ;;  %v12516_v1 = vadd.f32 1.0, %v17214_v34  ;;  %v12361_v55 = vpop.f32.mrb[183].mxu1  ;;  %v12715_v53 = vld [vmem:[%s20636_s15 + $0x40] sm:$0xff] }
 0xa24   : > { %v12743_v4 = vadd.f32 %v12711_v51, %v12679_v37  ;;  %v12680_v35 = vmul.f32 %v17208_v14, %v12648_v28  ;;  %17231 = vrcp.f32 %v12513_v13  ;;  %v12514_v47 = vadd.f32 1.0, %v17216_v56 }
 0xa25   : > { %v17218_v49 = vpop.eup %17217  ;;  %12809 = vst [vmem:[%s20199_s9 + $0x130] sm:$0xff] %v12745_v42  ;;  %v12746_v63 = vadd.f32 %v12714_v20, %v12682_v52  ;;  %17233 = vrcp.f32 %v12516_v1  ;;  %v14259_v54 = vmul.f32 -1.442695, %v12346_v59  ;;  %v12367_v24 = vadd.f32 %v16268_v23, %v20195_v22 }
 0xa26   : > { %v17220_v8 = vpop.eup %17219  ;;  %12807 = vst [vmem:[%s20199_s9 + $0x120] sm:$0xff] %v12743_v4  ;;  %v12744_v6 = vadd.f32 %v12712_v60, %v12680_v35  ;;  %v12614_v2 = vmul.f32 %v17218_v49, %v20227_v46  ;;  %17235 = vrcp.f32 %v12514_v47  ;;  %v12359_v27 = vadd.f32 %v20195_v22, %v12358_v11  ;;  %v12721_v4 = vld [vmem:[%s20636_s15 + $0x70] sm:$0xff] }
 0xa27   : > { %v17222_v21 = vpop.eup %17221  ;;  %12810 = vst [vmem:[%s20199_s9 + $0x138] sm:$0xff] %v12746_v63  ;;  %v12612_v18 = vmul.f32 %v17220_v8, %v20227_v46  ;;  %17237 = vpow2.f32 %v14261_v16  ;;  %v14264_v10 = vmul.f32 -1.442695, %v12367_v24  ;;  %12793 = vst [vmem:[%s20199_s9 + $0xb0] sm:$0xff] %v12367_v24  ;;  %v12370_v57 = vadd.f32 %v16269_v39, %v20195_v22 }
 0xa28   : > { %v17224_v36 = vpop.eup %17223  ;;  %12808 = vst [vmem:[%s20199_s9 + $0x128] sm:$0xff] %v12744_v6  ;;  %v12653_v62 = vadd.f32 %v20235_v33, %v12614_v2  ;;  %v12615_v61 = vmul.f32 %v17222_v21, %v20227_v46  ;;  %17239 = vpow2.f32 %v14259_v54  ;;  %v14262_v9 = vmul.f32 -1.442695, %v12359_v27  ;;  %12791 = vst [vmem:[%s20199_s9 + $0xa0] sm:$0xff] %v12359_v27  ;;  %v16272_v44 = vpop.f32.mrb[184].mxu1 }
 0xa29   : > { %v17226_v12 = vpop.eup %17225  ;;  %v12651_v19 = vadd.f32 %v20235_v33, %v12612_v18  ;;  %v12613_v40 = vmul.f32 %v17224_v36, %v20227_v46  ;;  %17241 = vpow2.f32 %v14264_v10  ;;  %v14265_v38 = vmul.f32 -1.442695, %v12370_v57  ;;  %12794 = vst [vmem:[%s20199_s9 + $0xb8] sm:$0xff] %v12370_v57  ;;  %v12374_v0 = vpop.f32.mrb[185].mxu1  ;;  %v12722_v10 = vld [vmem:[%s20636_s15 + $0x78] sm:$0xff] }
 0xa2a   : > { %v12685_v32 = vmul.f32 %v17218_v49, %v12653_v62  ;;  %v12654_v31 = vadd.f32 %v20235_v33, %v12615_v61  ;;  %v12519_v58 = vadd.f32 1.0, %v17226_v12  ;;  %17243 = vpow2.f32 %v14262_v9  ;;  %v16273_v50 = vpop.f32.mrb[186].mxu1  ;;  %v12720_v12 = vld [vmem:[%s20636_s15 + $0x68] sm:$0xff] }
 0xa2b   : > { %v12683_v14 = vmul.f32 %v17220_v8, %v12651_v19  ;;  %v12652_v17 = vadd.f32 %v20235_v33, %v12613_v40  ;;  %17245 = vpow2.f32 %v14265_v38  ;;  %v12362_v29 = vadd.f32 %v20195_v22, %v12361_v55  ;;  %v20321_v43 = vpop.f32.mrb[187].mxu1  ;;  %v12719_v8 = vld [vmem:[%s20636_s15 + $0x60] sm:$0xff] }
 0xa2c   : > { %v17228_v3 = vpop.eup %17227  ;;  %v12749_v26 = vadd.f32 %v12717_v45, %v12685_v32  ;;  %v12686_v15 = vmul.f32 %v17222_v21, %v12654_v31  ;;  %17247 = vrcp.f32 %v12519_v58  ;;  %v12383_v59 = vadd.f32 %v16272_v44, %v20195_v22 }
 0xa2d   : > { %v17230_v23 = vpop.eup %17229  ;;  %v12747_v48 = vadd.f32 %v12715_v53, %v12683_v14  ;;  %v12684_v25 = vmul.f32 %v17224_v36, %v12652_v17  ;;  %v12517_v51 = vadd.f32 1.0, %v17228_v3  ;;  %v14263_v7 = vmul.f32 -1.442695, %v12362_v29  ;;  %12792 = vst [vmem:[%s20199_s9 + $0xa8] sm:$0xff] %v12362_v29 }
 0xa2e   : > { %v17232_v41 = vpop.eup %17231  ;;  %12813 = vst [vmem:[%s20199_s9 + $0x150] sm:$0xff] %v12749_v26  ;;  %v12750_v16 = vadd.f32 %v12718_v5, %v12686_v15  ;;  %v12618_v11 = vmul.f32 %v17230_v23, %v20227_v46  ;;  %v14268_v34 = vmul.f32 -1.442695, %v12383_v59  ;;  %12797 = vst [vmem:[%s20199_s9 + $0xd0] sm:$0xff] %v12383_v59  ;;  %v12375_v37 = vadd.f32 %v20195_v22, %v12374_v0 }
 0xa2f   : > { %v17234_v20 = vpop.eup %17233  ;;  %12811 = vst [vmem:[%s20199_s9 + $0x140] sm:$0xff] %v12747_v48  ;;  %v12748_v28 = vadd.f32 %v12716_v30, %v12684_v25  ;;  %v12616_v13 = vmul.f32 %v17232_v41, %v20227_v46  ;;  %17249 = vrcp.f32 %v12517_v51  ;;  %v12386_v39 = vadd.f32 %v16273_v50, %v20195_v22  ;;  %v20363_v50 = vld [vmem:[%s20638_s17] ss:$0 sm:$0xff] }
 0xa30   : > { %v17236_v56 = vpop.eup %17235  ;;  %12814 = vst [vmem:[%s20199_s9 + $0x158] sm:$0xff] %v12750_v16  ;;  %v12657_v42 = vadd.f32 %v20235_v33, %v12618_v11  ;;  %v12619_v52 = vmul.f32 %v17234_v20, %v20227_v46  ;;  %17251 = vpow2.f32 %v14263_v7  ;;  %v14266_v60 = vmul.f32 -1.442695, %v12375_v37  ;;  %12795 = vst [vmem:[%s20199_s9 + $0xc0] sm:$0xff] %v12375_v37  ;;  %v16276_v1 = vpop.f32.mrb[188].mxu1  ;;  %v12725_v7 = vld [vmem:[%s20636_s15 + $0x90] sm:$0xff] }
 0xa31   : > { %v17238_v55 = vpop.eup %17237  ;;  %12812 = vst [vmem:[%s20199_s9 + $0x148] sm:$0xff] %v12748_v28  ;;  %v12655_v35 = vadd.f32 %v20235_v33, %v12616_v13  ;;  %v12617_v47 = vmul.f32 %v17236_v56, %v20227_v46  ;;  %17253 = vpow2.f32 %v14268_v34  ;;  %v14269_v49 = vmul.f32 -1.442695, %v12386_v39  ;;  %12798 = vst [vmem:[%s20199_s9 + $0xd8] sm:$0xff] %v12386_v39  ;;  %v12390_v63 = vpop.f32.mrb[189].mxu1 }
 0xa32   : > { %v17240_v54 = vpop.eup %17239  ;;  %v12689_v24 = vmul.f32 %v17230_v23, %v12657_v42  ;;  %v12658_v6 = vadd.f32 %v20235_v33, %v12619_v52  ;;  %v12520_v2 = vadd.f32 1.0, %v17238_v55  ;;  %17255 = vpow2.f32 %v14266_v60  ;;  %v16277_v27 = vpop.f32.mrb[190].mxu1  ;;  %v12723_v55 = vld [vmem:[%s20636_s15 + $0x80] sm:$0xff] }
 0xa33   : > { %v17242_v21 = vpop.eup %17241  ;;  %v12687_v18 = vmul.f32 %v17232_v41, %v12655_v35  ;;  %v12656_v57 = vadd.f32 %v20235_v33, %v12617_v47  ;;  %v12518_v36 = vadd.f32 1.0, %v17240_v54  ;;  %17257 = vpow2.f32 %v14269_v49  ;;  %v12393_v62 = vpop.f32.mrb[191].mxu1 }
 0xa34   : > { %v17244_v61 = vpop.eup %17243  ;;  %v12753_v9 = vadd.f32 %v12721_v4, %v12689_v24  ;;  %v12690_v44 = vmul.f32 %v17234_v20, %v12658_v6  ;;  %17259 = vrcp.f32 %v12520_v2  ;;  %v12523_v45 = vadd.f32 1.0, %v17242_v21 }
 0xa35   : > { %v17246_v19 = vpop.eup %17245  ;;  %v12751_v40 = vadd.f32 %v12719_v8, %v12687_v18  ;;  %v12688_v38 = vmul.f32 %v17236_v56, %v12656_v57  ;;  %17261 = vrcp.f32 %v12518_v36  ;;  %v12521_v0 = vadd.f32 1.0, %v17244_v61 }
 0xa36   : > { %v17248_v32 = vpop.eup %17247  ;;  %12817 = vst [vmem:[%s20199_s9 + $0x170] sm:$0xff] %v12753_v9  ;;  %v12754_v53 = vadd.f32 %v12722_v10, %v12690_v44  ;;  %17263 = vrcp.f32 %v12523_v45  ;;  %v12524_v31 = vadd.f32 1.0, %v17246_v19  ;;  %v12378_v58 = vadd.f32 %v20195_v22, %v20321_v43  ;;  %v12726_v45 = vld [vmem:[%s20636_s15 + $0x98] sm:$0xff] }
 0xa37   : > { %12815 = vst [vmem:[%s20199_s9 + $0x160] sm:$0xff] %v12751_v40  ;;  %v12752_v14 = vadd.f32 %v12720_v12, %v12688_v38  ;;  %v12622_v5 = vmul.f32 %v17248_v32, %v20227_v46  ;;  %17265 = vrcp.f32 %v12521_v0  ;;  %v12399_v17 = vadd.f32 %v16276_v1, %v20195_v22 }
 0xa38   : > { %12818 = vst [vmem:[%s20199_s9 + $0x178] sm:$0xff] %v12754_v53  ;;  %17267 = vrcp.f32 %v12524_v31  ;;  %v14267_v29 = vmul.f32 -1.442695, %v12378_v58  ;;  %12796 = vst [vmem:[%s20199_s9 + $0xc8] sm:$0xff] %v12378_v58  ;;  %v12391_v3 = vadd.f32 %v20195_v22, %v12390_v63  ;;  %v12402_v43 = vadd.f32 %v16277_v27, %v20195_v22  ;;  %v16288_v26 = vpop.f32.mrb[192].mxu1  ;;  %v12724_v53 = vld [vmem:[%s20636_s15 + $0x88] sm:$0xff] }
 0xa39   : > { %v17250_v15 = vpop.eup %17249  ;;  %12816 = vst [vmem:[%s20199_s9 + $0x168] sm:$0xff] %v12752_v14  ;;  %v12661_v30 = vadd.f32 %v20235_v33, %v12622_v5  ;;  %v14272_v59 = vmul.f32 -1.442695, %v12399_v17  ;;  %12801 = vst [vmem:[%s20199_s9 + $0xf0] sm:$0xff] %v12399_v17  ;;  %v12394_v23 = vadd.f32 %v20195_v22, %v12393_v62  ;;  %v12917_v48 = vadd.f32 %v16288_v26, %v20363_v50  ;;  %v12908_v25 = vpop.f32.mrb[193].mxu1 }
 0xa3a   : > { %v17252_v51 = vpop.eup %17251  ;;  %v12620_v41 = vmul.f32 %v17250_v15, %v20227_v46  ;;  %17269 = vpow2.f32 %v14267_v29  ;;  %v14270_v16 = vmul.f32 -1.442695, %v12391_v3  ;;  %12799 = vst [vmem:[%s20199_s9 + $0xe0] sm:$0xff] %v12391_v3  ;;  %v14273_v11 = vmul.f32 -1.442695, %v12402_v43  ;;  %12802 = vst [vmem:[%s20199_s9 + $0xf8] sm:$0xff] %v12402_v43 }
 0xa3b   : > { %v16289_v34 = vpop.f32.mrb[194].mxu1  ;;  %v17254_v37 = vpop.eup %17253  ;;  %v12693_v22 = vmul.f32 %v17248_v32, %v12661_v30  ;;  %v12522_v20 = vadd.f32 1.0, %v17252_v51  ;;  %17271 = vpow2.f32 %v14272_v59  ;;  %v14271_v28 = vmul.f32 -1.442695, %v12394_v23  ;;  %12800 = vst [vmem:[%s20199_s9 + $0xe8] sm:$0xff] %v12394_v23  ;;  %13043 = vst [vmem:[%s20199_s9 + $0x210] sm:$0xff] %v12917_v48 }
 0xa3c   : > { %v12911_v13 = vpop.f32.mrb[195].mxu1  ;;  %v17256_v39 = vpop.eup %17255  ;;  %v12659_v56 = vadd.f32 %v20235_v33, %v12620_v41  ;;  %v12527_v42 = vadd.f32 1.0, %v17254_v37  ;;  %17273 = vpow2.f32 %v14270_v16  ;;  %v14287_v52 = vmul.f32 -1.442695, %v12917_v48  ;;  %v12729_v29 = vld [vmem:[%s20636_s15 + $0xb0] sm:$0xff]  ;;  %v12727_v59 = vld [vmem:[%s20636_s15 + $0xa0] sm:$0xff] }
 0xa3d   : > { %v17258_v60 = vpop.eup %17257  ;;  %v12757_v1 = vadd.f32 %v12725_v7, %v12693_v22  ;;  %17275 = vrcp.f32 %v12522_v20  ;;  %v12525_v4 = vadd.f32 1.0, %v17256_v39  ;;  %v12909_v35 = vadd.f32 %v20363_v50, %v12908_v25  ;;  %v12730_v41 = vld [vmem:[%s20636_s15 + $0xb8] sm:$0xff] }
 0xa3e   : > { %v17260_v47 = vpop.eup %17259  ;;  %v12691_v49 = vmul.f32 %v17250_v15, %v12659_v56  ;;  %17277 = vrcp.f32 %v12527_v42  ;;  %v12528_v63 = vadd.f32 1.0, %v17258_v60  ;;  %v12920_v54 = vadd.f32 %v16289_v34, %v20363_v50 }
 0xa3f   : > { %v17262_v24 = vpop.eup %17261  ;;  %12821 = vst [vmem:[%s20199_s9 + $0x190] sm:$0xff] %v12757_v1  ;;  %v12623_v8 = vmul.f32 %v17260_v47, %v20227_v46  ;;  %17279 = vrcp.f32 %v12525_v4  ;;  %v14285_v6 = vmul.f32 -1.442695, %v12909_v35  ;;  %13041 = vst [vmem:[%s20199_s9 + $0x200] sm:$0xff] %v12909_v35  ;;  %v12912_v2 = vadd.f32 %v20363_v50, %v12911_v13 }
 0xa40   : > { %v17264_v27 = vpop.eup %17263  ;;  %v12755_v21 = vadd.f32 %v12723_v55, %v12691_v49  ;;  %v12621_v18 = vmul.f32 %v17262_v24, %v20227_v46  ;;  %17281 = vrcp.f32 %v12528_v63  ;;  %v14288_v10 = vmul.f32 -1.442695, %v12920_v54  ;;  %13044 = vst [vmem:[%s20199_s9 + $0x218] sm:$0xff] %v12920_v54  ;;  %v16292_v57 = vpop.f32.mrb[196].mxu1  ;;  %v12728_v49 = vld [vmem:[%s20636_s15 + $0xa8] sm:$0xff] }
 0xa41   : > { %v17266_v36 = vpop.eup %17265  ;;  %v12662_v62 = vadd.f32 %v20235_v33, %v12623_v8  ;;  %v12626_v61 = vmul.f32 %v17264_v27, %v20227_v46  ;;  %17283 = vpow2.f32 %v14273_v11  ;;  %v14286_v9 = vmul.f32 -1.442695, %v12912_v2  ;;  %13042 = vst [vmem:[%s20199_s9 + $0x208] sm:$0xff] %v12912_v2  ;;  %v12924_v44 = vpop.f32.mrb[197].mxu1  ;;  %v12733_v2 = vld [vmem:[%s20636_s15 + $0xd0] sm:$0xff] }
 0xa42   : > { %v17268_v12 = vpop.eup %17267  ;;  %12819 = vst [vmem:[%s20199_s9 + $0x180] sm:$0xff] %v12755_v21  ;;  %v12660_v19 = vadd.f32 %v20235_v33, %v12621_v18  ;;  %v12624_v40 = vmul.f32 %v17266_v36, %v20227_v46  ;;  %17285 = vpow2.f32 %v14271_v28  ;;  %v12933_v38 = vadd.f32 %v16292_v57, %v20363_v50  ;;  %v16293_v0 = vpop.f32.mrb[198].mxu1  ;;  %v12731_v57 = vld [vmem:[%s20636_s15 + $0xc0] sm:$0xff] }
 0xa43   : > { %v12694_v32 = vmul.f32 %v17260_v47, %v12662_v62  ;;  %v12665_v31 = vadd.f32 %v20235_v33, %v12626_v61  ;;  %v12627_v58 = vmul.f32 %v17268_v12, %v20227_v46  ;;  %17287 = vpow2.f32 %v14287_v52  ;;  %v20412_v14 = vpop.f32.mrb[199].mxu1 }
 0xa44   : > { %v17270_v5 = vpop.eup %17269  ;;  %v12692_v17 = vmul.f32 %v17262_v24, %v12660_v19  ;;  %v12663_v3 = vadd.f32 %v20235_v33, %v12624_v40  ;;  %17289 = vpow2.f32 %v14285_v6  ;;  %v14291_v43 = vmul.f32 -1.442695, %v12933_v38  ;;  %13047 = vst [vmem:[%s20199_s9 + $0x230] sm:$0xff] %v12933_v38 }
 0xa45   : > { %v17272_v26 = vpop.eup %17271  ;;  %v12758_v15 = vadd.f32 %v12726_v45, %v12694_v32  ;;  %v12697_v30 = vmul.f32 %v17264_v27, %v12665_v31  ;;  %v12666_v23 = vadd.f32 %v20235_v33, %v12627_v58  ;;  %v12526_v48 = vadd.f32 1.0, %v17270_v5 }
 0xa46   : > { %v17274_v25 = vpop.eup %17273  ;;  %v12756_v51 = vadd.f32 %v12724_v53, %v12692_v17  ;;  %v12695_v7 = vmul.f32 %v17266_v36, %v12663_v3  ;;  %v12531_v16 = vadd.f32 1.0, %v17272_v26  ;;  %17291 = vpow2.f32 %v14288_v10 }
 0xa47   : > { %v17276_v11 = vpop.eup %17275  ;;  %12822 = vst [vmem:[%s20199_s9 + $0x198] sm:$0xff] %v12758_v15  ;;  %v12761_v34 = vadd.f32 %v12729_v29, %v12697_v30  ;;  %v12698_v37 = vmul.f32 %v17268_v12, %v12666_v23  ;;  %17293 = vrcp.f32 %v12526_v48  ;;  %v12529_v22 = vadd.f32 1.0, %v17274_v25  ;;  %v12734_v12 = vld [vmem:[%s20636_s15 + $0xd8] sm:$0xff] }
 0xa48   : > { %v17278_v20 = vpop.eup %17277  ;;  %12820 = vst [vmem:[%s20199_s9 + $0x188] sm:$0xff] %v12756_v51  ;;  %v12759_v28 = vadd.f32 %v12727_v59, %v12695_v7  ;;  %v12625_v13 = vmul.f32 %v17276_v11, %v20227_v46  ;;  %17295 = vrcp.f32 %v12531_v16  ;;  %v12925_v39 = vadd.f32 %v20363_v50, %v12924_v44  ;;  %v12732_v59 = vld [vmem:[%s20636_s15 + $0xc8] sm:$0xff]  ;;  %v12737_v7 = vld [vmem:[%s20636_s15 + $0xf0] sm:$0xff] }
 0xa49   : > { %v17280_v56 = vpop.eup %17279  ;;  %12825 = vst [vmem:[%s20199_s9 + $0x1b0] sm:$0xff] %v12761_v34  ;;  %v12762_v42 = vadd.f32 %v12730_v41, %v12698_v37  ;;  %v12630_v52 = vmul.f32 %v17278_v20, %v20227_v46  ;;  %17297 = vrcp.f32 %v12529_v22  ;;  %v12936_v60 = vadd.f32 %v16293_v0, %v20363_v50  ;;  %v12735_v37 = vld [vmem:[%s20636_s15 + $0xe0] sm:$0xff] }
 0xa4a   : > { %v17282_v1 = vpop.eup %17281  ;;  %12823 = vst [vmem:[%s20199_s9 + $0x1a0] sm:$0xff] %v12759_v28  ;;  %v12664_v55 = vadd.f32 %v20235_v33, %v12625_v13  ;;  %v12628_v4 = vmul.f32 %v17280_v56, %v20227_v46  ;;  %17299 = vpow2.f32 %v14286_v9  ;;  %v14289_v35 = vmul.f32 -1.442695, %v12925_v39  ;;  %13045 = vst [vmem:[%s20199_s9 + $0x220] sm:$0xff] %v12925_v39  ;;  %v20480_v39 = vld [vmem:[%s20639_s18] ss:$0 sm:$0xff] }
 0xa4b   : > { %v17284_v47 = vpop.eup %17283  ;;  %12826 = vst [vmem:[%s20199_s9 + $0x1b8] sm:$0xff] %v12762_v42  ;;  %v12669_v63 = vadd.f32 %v20235_v33, %v12630_v52  ;;  %v12631_v54 = vmul.f32 %v17282_v1, %v20227_v46  ;;  %17301 = vpow2.f32 %v14291_v43  ;;  %v14292_v24 = vmul.f32 -1.442695, %v12936_v60  ;;  %13048 = vst [vmem:[%s20199_s9 + $0x238] sm:$0xff] %v12936_v60 }
 0xa4c   : > { %v17286_v8 = vpop.eup %17285  ;;  %v12696_v6 = vmul.f32 %v17276_v11, %v12664_v55  ;;  %v12667_v27 = vadd.f32 %v20235_v33, %v12628_v4  ;;  %v12532_v21 = vadd.f32 1.0, %v17284_v47  ;;  %17303 = vpow2.f32 %v14289_v35  ;;  %v20488_v35 = vld [vmem:[%s20640_s19] ss:$0 sm:$0xff] }
 0xa4d   : > { %v17288_v18 = vpop.eup %17287  ;;  %v12701_v10 = vmul.f32 %v17278_v20, %v12669_v63  ;;  %v12670_v36 = vadd.f32 %v20235_v33, %v12631_v54  ;;  %v12530_v62 = vadd.f32 1.0, %v17286_v8  ;;  %17305 = vpow2.f32 %v14292_v24  ;;  %v12738_v54 = vld [vmem:[%s20636_s15 + $0xf8] sm:$0xff] }
 0xa4e   : > { %v17290_v61 = vpop.eup %17289  ;;  %v12760_v9 = vadd.f32 %v12728_v49, %v12696_v6  ;;  %v12699_v44 = vmul.f32 %v17280_v56, %v12667_v27  ;;  %17307 = vrcp.f32 %v12532_v21  ;;  %v12965_v45 = vadd.f32 1.0, %v17288_v18 }
 0xa4f   : > { %v12765_v19 = vadd.f32 %v12733_v2, %v12701_v10  ;;  %v12702_v40 = vmul.f32 %v17282_v1, %v12670_v36  ;;  %17309 = vrcp.f32 %v12530_v62  ;;  %v12963_v38 = vadd.f32 1.0, %v17290_v61  ;;  %v12736_v2 = vld [vmem:[%s20636_s15 + $0xe8] sm:$0xff]  ;;  %v13027_v10 = vld [vmem:[%s20641_s20 + $0x10] sm:$0xff]  ;;  %v13025_v61 = vld [vmem:[%s20641_s20] sm:$0xff] }
 0xa50   : > { %v17292_v0 = vpop.eup %17291  ;;  %12824 = vst [vmem:[%s20199_s9 + $0x1a8] sm:$0xff] %v12760_v9  ;;  %v12763_v32 = vadd.f32 %v12731_v57, %v12699_v44  ;;  %17311 = vrcp.f32 %v12965_v45  ;;  %v12928_v53 = vadd.f32 %v20363_v50, %v20412_v14 }
 0xa51   : > { %v17294_v31 = vpop.eup %17293  ;;  %12829 = vst [vmem:[%s20199_s9 + $0x1d0] sm:$0xff] %v12765_v19  ;;  %v12766_v58 = vadd.f32 %v12734_v12, %v12702_v40  ;;  %17313 = vrcp.f32 %v12963_v38  ;;  %v12966_v5 = vadd.f32 1.0, %v17292_v0  ;;  %v13028_v38 = vld [vmem:[%s20641_s20 + $0x18] sm:$0xff] }
 0xa52   : > { %v17296_v17 = vpop.eup %17295  ;;  %12827 = vst [vmem:[%s20199_s9 + $0x1c0] sm:$0xff] %v12763_v32  ;;  %v12629_v29 = vmul.f32 %v17294_v31, %v20227_v46  ;;  %v14290_v3 = vmul.f32 -1.442695, %v12928_v53  ;;  %13046 = vst [vmem:[%s20199_s9 + $0x228] sm:$0xff] %v12928_v53 }
 0xa53   : > { %v17298_v43 = vpop.eup %17297  ;;  %12830 = vst [vmem:[%s20199_s9 + $0x1d8] sm:$0xff] %v12766_v58  ;;  %v12634_v26 = vmul.f32 %v17296_v17, %v20227_v46  ;;  %17315 = vrcp.f32 %v12966_v5 }
 0xa54   : > { %v17300_v15 = vpop.eup %17299  ;;  %v12668_v30 = vadd.f32 %v20235_v33, %v12629_v29  ;;  %v12632_v50 = vmul.f32 %v17298_v43, %v20227_v46  ;;  %17317 = vpow2.f32 %v14290_v3 }
 0xa55   : > { %v17302_v14 = vpop.eup %17301  ;;  %v12673_v23 = vadd.f32 %v20235_v33, %v12634_v26  ;;  %v12964_v48 = vadd.f32 1.0, %v17300_v15  ;;  %v13026_v26 = vld [vmem:[%s20641_s20 + $0x8] sm:$0xff] }
 0xa56   : > { %v17304_v25 = vpop.eup %17303  ;;  %v12700_v51 = vmul.f32 %v17294_v31, %v12668_v30  ;;  %v12671_v41 = vadd.f32 %v20235_v33, %v12632_v50  ;;  %v12969_v16 = vadd.f32 1.0, %v17302_v14  ;;  %v13031_v14 = vld [vmem:[%s20641_s20 + $0x30] sm:$0xff] }
 0xa57   : > { %v17306_v11 = vpop.eup %17305  ;;  %v12705_v34 = vmul.f32 %v17296_v17, %v12673_v23  ;;  %17319 = vrcp.f32 %v12964_v48  ;;  %v12967_v22 = vadd.f32 1.0, %v17304_v25  ;;  %v13029_v48 = vld [vmem:[%s20641_s20 + $0x20] sm:$0xff] }
 0xa58   : > { %v17308_v20 = vpop.eup %17307  ;;  %v12764_v28 = vadd.f32 %v12732_v59, %v12700_v51  ;;  %v12703_v13 = vmul.f32 %v17298_v43, %v12671_v41  ;;  %17321 = vrcp.f32 %v12969_v16  ;;  %v12970_v56 = vadd.f32 1.0, %v17306_v11  ;;  %v13032_v41 = vld [vmem:[%s20641_s20 + $0x38] sm:$0xff] }
 0xa59   : > { %v17310_v42 = vpop.eup %17309  ;;  %v12769_v52 = vadd.f32 %v12737_v7, %v12705_v34  ;;  %v12635_v60 = vmul.f32 %v17308_v20, %v20227_v46  ;;  %17323 = vrcp.f32 %v12967_v22 }
 0xa5a   : > { %v17312_v1 = vpop.eup %17311  ;;  %12828 = vst [vmem:[%s20199_s9 + $0x1c8] sm:$0xff] %v12764_v28  ;;  %v12767_v55 = vadd.f32 %v12735_v37, %v12703_v13  ;;  %v12633_v4 = vmul.f32 %v17310_v42, %v20227_v46  ;;  %17325 = vrcp.f32 %v12970_v56  ;;  %v13030_v13 = vld [vmem:[%s20641_s20 + $0x28] sm:$0xff] }
 0xa5b   : > { %v17314_v47 = vpop.eup %17313  ;;  %12833 = vst [vmem:[%s20199_s9 + $0x1f0] sm:$0xff] %v12769_v52  ;;  %v12674_v49 = vadd.f32 %v20235_v33, %v12635_v60  ;;  %v12996_v63 = vmul.f32 %v17312_v1, %v20480_v39  ;;  %v14295_v52 = vld [vmem:[%s20643_s22] ss:$0 sm:$0xff] }
 0xa5c   : > { %12831 = vst [vmem:[%s20199_s9 + $0x1e0] sm:$0xff] %v12767_v55  ;;  %v12672_v24 = vadd.f32 %v20235_v33, %v12633_v4  ;;  %v12994_v46 = vmul.f32 %v17314_v47, %v20480_v39 }
 0xa5d   : > { %v17316_v8 = vpop.eup %17315  ;;  %v12706_v6 = vmul.f32 %v17308_v20, %v12674_v49  ;;  %v13011_v27 = vadd.f32 %v20488_v35, %v12996_v63 }
 0xa5e   : > { %v17318_v21 = vpop.eup %17317  ;;  %v12704_v18 = vmul.f32 %v17310_v42, %v12672_v24  ;;  %v13009_v33 = vadd.f32 %v20488_v35, %v12994_v46  ;;  %v12997_v57 = vmul.f32 %v17316_v8, %v20480_v39 }
 0xa5f   : > { %v12770_v36 = vadd.f32 %v12738_v54, %v12706_v6  ;;  %v13019_v62 = vmul.f32 %v17312_v1, %v13011_v27  ;;  %v12968_v9 = vadd.f32 1.0, %v17318_v21 }
 0xa60   : > { %v12768_v44 = vadd.f32 %v12736_v2, %v12704_v18  ;;  %v13017_v12 = vmul.f32 %v17314_v47, %v13009_v33  ;;  %v13012_v45 = vadd.f32 %v20488_v35, %v12997_v57  ;;  %v14307_v2 = vld [vmem:[%s20645_s24] ss:$0 sm:$0xff] }
 0xa61   : > { %v17320_v19 = vpop.eup %17319  ;;  %12834 = vst [vmem:[%s20199_s9 + $0x1f8] sm:$0xff] %v12770_v36  ;;  %v13035_v40 = vadd.f32 %v13027_v10, %v13019_v62  ;;  %17327 = vrcp.f32 %v12968_v9  ;;  %v13202_v33 = vld [vmem:[%s20646_s25] sm:$0xff]  ;;  %v13203_v62 = vld [vmem:[%s20646_s25 + $0x8] sm:$0xff] }
 0xa62   : > { %v17322_v0 = vpop.eup %17321  ;;  %12832 = vst [vmem:[%s20199_s9 + $0x1e8] sm:$0xff] %v12768_v44  ;;  %v13033_v32 = vadd.f32 %v13025_v61, %v13017_v12  ;;  %v13020_v53 = vmul.f32 %v17316_v8, %v13012_v45  ;;  %v12995_v31 = vmul.f32 %v17320_v19, %v20480_v39  ;;  %v14306_v8 = vld [vmem:[%s20644_s23] ss:$0 sm:$0xff] }
 0xa63   : > { %v17324_v58 = vpop.eup %17323  ;;  %13051 = vst [vmem:[%s20199_s9 + $0x250] sm:$0xff] %v13035_v40  ;;  %v13000_v5 = vmul.f32 %v17322_v0, %v20480_v39 }
 0xa64   : > { %v17326_v17 = vpop.eup %17325  ;;  %13049 = vst [vmem:[%s20199_s9 + $0x240] sm:$0xff] %v13033_v32  ;;  %v13036_v29 = vadd.f32 %v13028_v38, %v13020_v53  ;;  %v13010_v3 = vadd.f32 %v20488_v35, %v12995_v31  ;;  %v12998_v43 = vmul.f32 %v17324_v58, %v20480_v39 }
 0xa65   : > { %v13015_v15 = vadd.f32 %v20488_v35, %v13000_v5  ;;  %v13001_v30 = vmul.f32 %v17326_v17, %v20480_v39 }
 0xa66   : > { %13052 = vst [vmem:[%s20199_s9 + $0x258] sm:$0xff] %v13036_v29  ;;  %v13018_v50 = vmul.f32 %v17320_v19, %v13010_v3  ;;  %v13013_v59 = vadd.f32 %v20488_v35, %v12998_v43 }
 0xa67   : > { %v13023_v23 = vmul.f32 %v17322_v0, %v13015_v15  ;;  %v13016_v25 = vadd.f32 %v20488_v35, %v13001_v30 }
 0xa68   : > { %v13034_v51 = vadd.f32 %v13026_v26, %v13018_v50  ;;  %v13021_v7 = vmul.f32 %v17324_v58, %v13013_v59 }
 0xa69   : > { %v13039_v16 = vadd.f32 %v13031_v14, %v13023_v23  ;;  %v13024_v11 = vmul.f32 %v17326_v17, %v13016_v25 }
 0xa6a   : > { %13050 = vst [vmem:[%s20199_s9 + $0x248] sm:$0xff] %v13034_v51  ;;  %v13037_v34 = vadd.f32 %v13029_v48, %v13021_v7 }
 0xa6b   : > { %v17328_v37 = vpop.eup %17327  ;;  %13055 = vst [vmem:[%s20199_s9 + $0x270] sm:$0xff] %v13039_v16  ;;  %v13040_v22 = vadd.f32 %v13032_v41, %v13024_v11 }
 0xa6c   : > { %13053 = vst [vmem:[%s20199_s9 + $0x260] sm:$0xff] %v13037_v34  ;;  %v12999_v20 = vmul.f32 %v17328_v37, %v20480_v39 }
 0xa6d   : > { %13056 = vst [vmem:[%s20199_s9 + $0x278] sm:$0xff] %v13040_v22 }
 0xa6e   : > { %v13014_v28 = vadd.f32 %v20488_v35, %v12999_v20 }
 0xa70   : > { %v13022_v56 = vmul.f32 %v17328_v37, %v13014_v28 }
 0xa72   : > { %v13038_v42 = vadd.f32 %v13030_v13, %v13022_v56 }
 0xa74   : > { %13054 = vst [vmem:[%s20199_s9 + $0x268] sm:$0xff] %v13038_v42 }
 0xad0   : > { %v13163_v60 = vpop.f32.mrb[200].mxu1 }
 0xad1   : > { %v13164_v1 = vadd.f32 %v14295_v52, %v13163_v60  ;;  %v16312_v55 = vpop.f32.mrb[201].mxu1 }
 0xad2   : > { %v13166_v4 = vpop.f32.mrb[202].mxu1 }
 0xad3   : > { %v14304_v39 = vmul.f32 -1.442695, %v13164_v1  ;;  %13206 = vst [vmem:[%s20199_s9 + $0x280] sm:$0xff] %v13164_v1  ;;  %v13167_v47 = vadd.f32 %v14295_v52, %v13166_v4  ;;  %v16313_v35 = vpop.f32.mrb[203].mxu1 }
 0xad5   : > { %17329 = vpow2.f32 %v14304_v39  ;;  %v14305_v49 = vmul.f32 -1.442695, %v13167_v47  ;;  %13207 = vst [vmem:[%s20199_s9 + $0x288] sm:$0xff] %v13167_v47 }
 0xad7   : > { %17331 = vpow2.f32 %v14305_v49 }
 0xadf   : > { %v17330_v63 = vpop.eup %17329 }
 0xae0   : > { %v13176_v54 = vadd.f32 1.0, %v17330_v63 }
 0xae1   : > { %v17332_v24 = vpop.eup %17331 }
 0xae2   : > { %17333 = vrcp.f32 %v13176_v54  ;;  %v13177_v46 = vadd.f32 1.0, %v17332_v24 }
 0xae4   : > { %17335 = vrcp.f32 %v13177_v46 }
 0xaec   : > { %v17334_v6 = vpop.eup %17333 }
 0xaed   : > { %v13189_v27 = vmul.f32 %v17334_v6, %v14306_v8 }
 0xaee   : > { %v17336_v21 = vpop.eup %17335 }
 0xaef   : > { %v13198_v18 = vadd.f32 %v14307_v2, %v13189_v27  ;;  %v13190_v10 = vmul.f32 %v17336_v21, %v14306_v8 }
 0xaf1   : > { %v13200_v57 = vmul.f32 %v17334_v6, %v13198_v18  ;;  %v13199_v36 = vadd.f32 %v14307_v2, %v13190_v10 }
 0xaf3   : > { %v13204_v61 = vadd.f32 %v13202_v33, %v13200_v57  ;;  %v13201_v9 = vmul.f32 %v17336_v21, %v13199_v36 }
 0xaf5   : > { %13208 = vst [vmem:[%s20199_s9 + $0x290] sm:$0xff] %v13204_v61  ;;  %v13205_v44 = vadd.f32 %v13203_v62, %v13201_v9 }
 0xaf7   : > { %13209 = vst [vmem:[%s20199_s9 + $0x298] sm:$0xff] %v13205_v44 }
 0xaf8   : > { %17356 = shalt.err (!%p17353_p3)
}
 0xaf9   : > { %s17357_s9 = scalar_lea.hbm %s20572_s11, 10752  ;;  %s17361_s8 = scalar_lea.hbm %s20647_s26, 21504 }
 0xafa   : > { %p17358_p4 = scmp.ne.s32.totalorder %s20572_s11, %s17357_s9  ;;  %p17362_p9 = scmp.lt.u32.totalorder %s20572_s11, %s20647_s26 }
 0xafb   : > { %p17363_p10 = scmp.lt.u32.totalorder %s17361_s8, %s17357_s9  ;;  %p17365_p12 = scmp.lt.u32.totalorder %s17357_s9, %s20572_s11 }
 0xafc   : > { %p17359_p7 = pnand %p17358_p4, %p17585_p5 }
 0xafd   : > { %p17364_p11 = por %p17363_p10, %p17362_p9 }
 0xafe   : > { %p17360_p8 = pneg %p17359_p7 }
 0xaff   : > { %p17366_p13 = por %p17365_p12, %p17364_p11 }
 0xb01   : > { %p17367_p0 = pnand %p17366_p13, %p17360_p8 }
 0xb03   : > { %17370 = shalt.err (!%p17367_p0)
}
 0xb04   : > { %s17410_s4 = smov 128   ;;  %s17411_s1 = smov 8  }
 0xb05   : > { %16827 = dma.vmem_to_hbm [thread:$0]  (%p17585_p5), %s20575_s0, 10752, %s20572_s11, %s20580_s7, %s17410_s4, %s17410_s4, %s17411_s1  }
 0xb06 PF: > { %p16833_p1 = scmp.ge.s32.totalorder %s17405_s28, 2  ;;  %s13239_s29 = sand.u32 1, %s17393_s27  }
 0xb07   : > { %s13240_s9 = scalar_lea.sflag [#allocation3], %s13239_s29 }
 0xb08   : > { %p16830_p2 = pnand %p16833_p1, %p17589_p6 }
 0xb0a   : > { %17388 = dma.done.wait (!%p16830_p2), %s13240_s9, 10752  }
 0xb0b   : > { %17390 = vsyncadd (!%p16830_p2), %s13240_s9, 4294956544  ;;  %s20756_s28 = sld [smem:[#allocation6_spill]]  ;;  %s20757_s30 = sld [smem:[#allocation5_spill]] }
 0xb0c   : > { %s20758_s7 = sld [smem:[#allocation7_spill]]  ;;  %s20759_s27 = smov %s17397_s3 }
 0xb11   : > { %p36_p3 = scmp.ge.s32.totalorder %s20756_s28, 4   ;;  %s20760_s3 = smov %s20757_s30 }
 0xb13   :  { %38 = sbr.rel (!%p36_p3) target bundleno = 16 (0x10), region = 171 }
 0xb1a   :  { %13245 = vsyncpa [#allocation3], 1 }
 0xb1b   :  { %13247 = vsyncpa [#allocation3 + $0x1], 1 }

</bundles_post_ra>
